<compile_context>
chip_gen: v7x
topology: tpu7x:2x2x1
jax: 0.10.0
libtpu: 0.0.40
codegen_flags: <defaults>
</compile_context>

<pallas_src>
import jax
import jax.numpy as jnp
from jax import lax
from jax.experimental import pallas as pl
from jax.experimental.pallas import tpu as pltpu

# ---------------- configuration (SKConv(mid_planes=128) defaults) ------------
MID = 128                  # mid_planes
GROUPS = 32                # cardinality
CPG = MID // GROUPS        # channels per group = 4
M = 2
R = 16
L = 32
D = max(MID // R, L)       # 32
T_SIZE = 15                # t_dict[128]
B, T, H, W = 2, T_SIZE, 8, 8
HW = H * W                 # 64
PT, PH, PW = 4, 1, 1       # pad once with the max padding (branch 1: (4,1,1))
TP = T + 2 * PT            # 23
K9 = 9 * MID               # 1152 : im2col K-width (9 HW taps x 128 channels)
EPS = 1e-5

T_TILE = 5                 # time-steps per grid step
NT = T // T_TILE           # 3
assert NT * T_TILE == T
MROWS = T_TILE * HW        # 320 : LHS rows per batched dot

# padded-T offsets of the three kt taps per branch
#   branch 0: dilation (1,1,1), pad 1 -> input row  t + 3 + kt
#   branch 1: dilation (4,1,1), pad 4 -> input row  t + 4*kt
OFF0 = (3, 4, 5)
OFF1 = (0, 4, 8)


# ---------------- fused SKConv kernel ----------------------------------------
def skconv_kernel(slab_ref, wmid_ref, wext_ref, bnp_ref, wfc_ref, bnfc_ref,
                  wfcs_ref, o_ref):
    # slab_ref : (TP*HW, 1152) bf16   flat HW-im2col of the padded input (one b)
    # wmid_ref : (1152, 256)   bf16   kt==1 weights, [branch0 | branch1] on N
    # wext_ref : (4, 1152, 128) bf16  [b0 kt0, b0 kt2, b1 kt0, b1 kt2]
    # bnp_ref  : (4, 128) f32         [s0, sh0, s1, sh1] folded BN
    # wfc_ref  : (128, 32) f32 ; bnfc_ref : (2, 32) f32 ; wfcs_ref : (32, 256) f32
    # o_ref    : (T_TILE, 64, 128) f32
    row0 = pl.program_id(1) * MROWS

    def lhs(off):
        # contiguous 320-row window, start always a multiple of 64 (aligned)
        start = pl.multiple_of(row0 + off * HW, HW)
        return slab_ref[pl.ds(start, MROWS), :]                     # (320, 1152)

    # shared tap (kt==1): both branches read the same rows -> one
    # (320,1152)@(1152,256) dot feeds both accumulators.
    dm = jnp.dot(lhs(OFF0[1]), wmid_ref[...],
                 preferred_element_type=jnp.float32)                # (320, 256)
    acc0 = (dm[:, :MID]
            + jnp.dot(lhs(OFF0[0]), wext_ref[0],
                      preferred_element_type=jnp.float32)
            + jnp.dot(lhs(OFF0[2]), wext_ref[1],
                      preferred_element_type=jnp.float32))          # (320, 128)
    acc1 = (dm[:, MID:]
            + jnp.dot(lhs(OFF1[0]), wext_ref[2],
                      preferred_element_type=jnp.float32)
            + jnp.dot(lhs(OFF1[2]), wext_ref[3],
                      preferred_element_type=jnp.float32))          # (320, 128)

    s0, sh0 = bnp_ref[0:1, :], bnp_ref[1:2, :]
    s1, sh1 = bnp_ref[2:3, :], bnp_ref[3:4, :]
    sfc, shfc = bnfc_ref[0:1, :], bnfc_ref[1:2, :]

    f0 = jnp.maximum(acc0 * s0 + sh0, 0.0)                          # BN + ReLU
    f1 = jnp.maximum(acc1 * s1 + sh1, 0.0)
    u = f0 + f1                                                     # (320, 128)

    # AdaptiveAvgPool3d((t_size,1,1)) == per-frame mean over H,W; batched over
    # the 5 frames of the tile.
    pooled = jnp.concatenate(
        [jnp.mean(u[tl * HW:(tl + 1) * HW], axis=0, keepdims=True)
         for tl in range(T_TILE)], axis=0)                          # (5, 128)
    z = jnp.dot(pooled, wfc_ref[...], preferred_element_type=jnp.float32)
    z = jnp.maximum(z * sfc + shfc, 0.0)                            # (5, 32)
    attn = jnp.dot(z, wfcs_ref[...], preferred_element_type=jnp.float32)  # (5,256)
    # softmax over M=2  ==  sigmoid(a0 - a1); reciprocal on the EUP slot.
    w_att0 = pl.reciprocal(1.0 + jnp.exp(attn[:, MID:] - attn[:, :MID]),
                           approx=True)                             # (5, 128)
    w_att1 = 1.0 - w_att0

    for tl in range(T_TILE):                       # short static loop (5)
        sl = slice(tl * HW, (tl + 1) * HW)
        o_ref[tl] = (w_att0[tl:tl + 1] * f0[sl]
                     + w_att1[tl:tl + 1] * f1[sl])                  # (64, 128)


# ---------------- wrapper: layout plumbing + pallas_call ----------------------
def _build_slab(x):
    """HW im2col of the (T,H,W)-padded input -> (B, (T+8)*H*W, 9*C) bf16."""
    xp = jnp.pad(x, ((0, 0), (PT, PT), (PH, PH), (PW, PW), (0, 0)))
    cols = [xp[:, :, kh:kh + H, kw:kw + W, :]
            for kh in range(3) for kw in range(3)]
    slab = jnp.concatenate(cols, axis=-1)              # (B, TP, H, W, 9*C)
    return slab.reshape(B, TP * HW, K9).astype(jnp.bfloat16)


def skconv_forward(x, p):
    slab = _build_slab(x)
    out = pl.pallas_call(
        skconv_kernel,
        out_shape=jax.ShapeDtypeStruct((B, T, HW, MID), jnp.float32),
        grid_spec=pltpu.PrefetchScalarGridSpec(
            num_scalar_prefetch=0,
            grid=(B, NT),
            in_specs=[
                pl.BlockSpec((None, TP * HW, K9), lambda b, nt: (b, 0, 0)),
                pl.BlockSpec((K9, M * MID), lambda b, nt: (0, 0)),
                pl.BlockSpec((4, K9, MID), lambda b, nt: (0, 0, 0)),
                pl.BlockSpec((4, MID), lambda b, nt: (0, 0)),
                pl.BlockSpec((MID, D), lambda b, nt: (0, 0)),
                pl.BlockSpec((2, D), lambda b, nt: (0, 0)),
                pl.BlockSpec((D, M * MID), lambda b, nt: (0, 0)),
            ],
            out_specs=pl.BlockSpec((None, T_TILE, HW, MID),
                                   lambda b, nt: (b, nt, 0, 0)),
        ),
        compiler_params=pltpu.CompilerParams(
            dimension_semantics=("parallel", "arbitrary"),
            vmem_limit_bytes=32 * 1024 * 1024,          # honoured on v7x too
        ),
    )(slab, p['w_mid'], p['w_ext'], p['bnp'], p['wfc'], p['bnfc'], p['wfcs'])
    return out.reshape(B, T, H, W, MID)


# ---------------- parameter preparation ---------------------------------------
def expand_grouped_weight(w_pt):
    """(C_out, C_in/g, 3,3,3) grouped-conv weight -> dense (27, C_in, C_out)
    block-diagonal matrix per tap (zeros outside the group blocks)."""
    wg = w_pt.reshape(GROUPS, CPG, CPG, 3, 3, 3)               # (g, o, i, kt, kh, kw)
    eye = jnp.eye(GROUPS, dtype=w_pt.dtype)                    # (g_in, g_out)
    dense = jnp.einsum('hg,goiabc->abchigo', eye, wg)          # (kt,kh,kw,g_in,i,g_out,o)
    return dense.reshape(27, MID, MID)


def fold_bn(gamma, beta, mean, var):
    scale = gamma / jnp.sqrt(var + EPS)
    shift = beta - mean * scale
    return scale.reshape(1, -1), shift.reshape(1, -1)


# ---------------- pure-JAX reference (semantics of the PyTorch forward) -------
def reference_skconv(x_ndhwc, raw, p):
    # x / conv weights are quantized to bf16 to match the kernel's MXU input
    # precision (accumulation stays f32 on both sides).
    dn = ('NDHWC', 'DHWIO', 'NDHWC')
    xq = x_ndhwc.astype(jnp.bfloat16).astype(jnp.float32)

    def branch(w_pt, dil, pad, scale, shift):
        wq = w_pt.astype(jnp.bfloat16).astype(jnp.float32)
        w = jnp.transpose(wq, (2, 3, 4, 1, 0))                 # (kt,kh,kw, C_in/g, C_out)
        y = lax.conv_general_dilated(
            xq, w, window_strides=(1, 1, 1),
            padding=[(pad[0], pad[0]), (pad[1], pad[1]), (pad[2], pad[2])],
            rhs_dilation=dil, dimension_numbers=dn,
            feature_group_count=GROUPS, precision=lax.Precision.HIGHEST)
        return jnp.maximum(y * scale.reshape(1, 1, 1, 1, MID)
                           + shift.reshape(1, 1, 1, 1, MID), 0.0)

    f0 = branch(raw['w0_pt'], (1, 1, 1), (1, 1, 1), p['s0'], p['sh0'])
    f1 = branch(raw['w1_pt'], (4, 1, 1), (4, 1, 1), p['s1'], p['sh1'])
    s_pool = jnp.mean(f0 + f1, axis=(2, 3))                          # (B, T, C)
    z = jnp.maximum(s_pool @ p['wfc'] * p['sfc'] + p['shfc'], 0.0)   # (B, T, D)
    attn = z @ p['wfcs']                                             # (B, T, 2C)
    a = jnp.stack([attn[..., :MID], attn[..., MID:]], axis=1)        # (B, M, T, C)
    a = jax.nn.softmax(a, axis=1)
    w0a = a[:, 0][:, :, None, None, :]
    w1a = a[:, 1][:, :, None, None, :]
    return w0a * f0 + w1a * f1


# ---------------- demo / self-check -------------------------------------------
if __name__ == "__main__":
    key = jax.random.PRNGKey(0)
    ks = jax.random.split(key, 8)

    # input (NDHWC); PyTorch equivalent is x.transpose -> (B, C, T, H, W)
    x = jax.random.normal(ks[0], (B, T, H, W, MID), jnp.float32)

    # grouped conv weights (PyTorch shape: (C_out, C_in/groups, 3, 3, 3))
    w0_pt = 0.1 * jax.random.normal(ks[1], (MID, CPG, 3, 3, 3), jnp.float32)
    w1_pt = 0.1 * jax.random.normal(ks[2], (MID, CPG, 3, 3, 3), jnp.float32)

    def bn_init(k, n):
        k1, k2, k3, k4 = jax.random.split(k, 4)
        gamma = 1.0 + 0.1 * jax.random.normal(k1, (n,), jnp.float32)
        beta = 0.1 * jax.random.normal(k2, (n,), jnp.float32)
        mean = 0.1 * jax.random.normal(k3, (n,), jnp.float32)
        var = 1.0 + 0.1 * jax.nn.sigmoid(jax.random.normal(k4, (n,), jnp.float32))
        return gamma, beta, mean, var

    s0, sh0 = fold_bn(*bn_init(ks[3], MID))
    s1, sh1 = fold_bn(*bn_init(ks[4], MID))
    sfc, shfc = fold_bn(*bn_init(ks[5], D))

    # fc: Conv3d(C, d, 1) weight (d, C, 1,1,1); fcs: Conv3d(d, C*M, 1) weight (C*M, d, 1,1,1)
    wfc_pt = 0.1 * jax.random.normal(ks[6], (D, MID, 1, 1, 1), jnp.float32)
    wfcs_pt = 0.1 * jax.random.normal(ks[7], (M * MID, D, 1, 1, 1), jnp.float32)

    # per-kt dense block-diagonal weights (compact, bf16)
    d0 = expand_grouped_weight(w0_pt).reshape(3, K9, MID)
    d1 = expand_grouped_weight(w1_pt).reshape(3, K9, MID)

    params = dict(
        # kernel-packed parameters
        w_mid=jnp.concatenate([d0[1], d1[1]], axis=-1).astype(jnp.bfloat16),  # (1152,256)
        w_ext=jnp.stack([d0[0], d0[2], d1[0], d1[2]]).astype(jnp.bfloat16),   # (4,1152,128)
        bnp=jnp.concatenate([s0, sh0, s1, sh1], axis=0),                       # (4,128)
        bnfc=jnp.concatenate([sfc, shfc], axis=0),                             # (2,32)
        wfc=wfc_pt.reshape(D, MID).T,                                          # (128,32)
        wfcs=wfcs_pt.reshape(M * MID, D).T,                                    # (32,256)
        # plain copies for the reference
        s0=s0, sh0=sh0, s1=s1, sh1=sh1, sfc=sfc, shfc=shfc,
    )
    raw = dict(w0_pt=w0_pt, w1_pt=w1_pt)

    fwd = jax.jit(skconv_forward)
    out = jax.block_until_ready(fwd(x, params))

    ref = reference_skconv(x, raw, params)
    assert out.shape == (B, T, H, W, MID), out.shape
    if not jnp.allclose(out, ref, rtol=1e-2, atol=1e-2):
        raise AssertionError(
            "mismatch vs reference, max abs err="
            f"{float(jnp.max(jnp.abs(out - ref)))}")

    print("KERNEL_OK")
</pallas_src>

<mosaic_0001>
module attributes {stable_mosaic.version = 11 : i64} {
  func.func @skconv_kernel(%arg0: i32, %arg1: i32, %arg2: memref<1x1472x1152xbf16, #tpu.memory_space<vmem>>, %arg3: memref<1152x256xbf16, #tpu.memory_space<vmem>>, %arg4: memref<4x1152x128xbf16, #tpu.memory_space<vmem>>, %arg5: memref<4x128xf32, #tpu.memory_space<vmem>>, %arg6: memref<128x32xf32, #tpu.memory_space<vmem>>, %arg7: memref<2x32xf32, #tpu.memory_space<vmem>>, %arg8: memref<32x256xf32, #tpu.memory_space<vmem>>, %arg9: memref<1x5x64x128xf32, #tpu.memory_space<vmem>>) attributes {dimension_semantics = [#tpu.dimension_semantics<parallel>, #tpu.dimension_semantics<arbitrary>], iteration_bounds = array<i64: 2, 3>, scalar_prefetch = 0 : i64, scratch_operands = 0 : i64, tpu.core_type = #tpu.core_type<tc>, window_params = [{transform_indices = @transform_0, window_bounds = array<i64: 1, 1472, 1152>}, {pipeline_mode = #tpu.pipeline_mode<synchronous>, transform_indices = @transform_1, window_bounds = array<i64: 1152, 256>}, {pipeline_mode = #tpu.pipeline_mode<synchronous>, transform_indices = @transform_2, window_bounds = array<i64: 4, 1152, 128>}, {pipeline_mode = #tpu.pipeline_mode<synchronous>, transform_indices = @transform_3, window_bounds = array<i64: 4, 128>}, {pipeline_mode = #tpu.pipeline_mode<synchronous>, transform_indices = @transform_4, window_bounds = array<i64: 128, 32>}, {pipeline_mode = #tpu.pipeline_mode<synchronous>, transform_indices = @transform_5, window_bounds = array<i64: 2, 32>}, {pipeline_mode = #tpu.pipeline_mode<synchronous>, transform_indices = @transform_6, window_bounds = array<i64: 32, 256>}, {transform_indices = @transform_7, window_bounds = array<i64: 1, 5, 64, 128>}]} {
    %c320_i32 = arith.constant 320 : i32
    %0 = arith.muli %arg1, %c320_i32 : i32
    %c256_i32 = arith.constant 256 : i32
    %1 = arith.addi %0, %c256_i32 : i32
    %2 = tpu.assume_multiple %1, 64 : i32
    %c0 = arith.constant 0 : index
    %3 = arith.index_cast %2 : i32 to index
    %c0_0 = arith.constant 0 : index
    %4 = vector.load %arg2[%c0, %3, %c0_0] : memref<1x1472x1152xbf16, #tpu.memory_space<vmem>>, vector<1x320x1152xbf16>
    %5 = vector.shape_cast %4 : vector<1x320x1152xbf16> to vector<320x1152xbf16>
    %c0_1 = arith.constant 0 : index
    %c0_2 = arith.constant 0 : index
    %6 = vector.load %arg3[%c0_1, %c0_2] : memref<1152x256xbf16, #tpu.memory_space<vmem>>, vector<1152x256xbf16>
    %cst = arith.constant dense<0.000000e+00> : vector<320x256xf32>
    %7 = tpu.matmul %5, %6, %cst {dimension_numbers = #tpu.dot_dimension_numbers<[1], [0], [0], [1], [0, 0, 1, 1], [], []>} : vector<320x1152xbf16>, vector<1152x256xbf16>, vector<320x256xf32> -> vector<320x256xf32>
    %8 = vector.extract_strided_slice %7 {offsets = [0, 0], sizes = [320, 128], strides = [1, 1]} : vector<320x256xf32> to vector<320x128xf32>
    %c192_i32 = arith.constant 192 : i32
    %9 = arith.addi %0, %c192_i32 : i32
    %10 = tpu.assume_multiple %9, 64 : i32
    %c0_3 = arith.constant 0 : index
    %11 = arith.index_cast %10 : i32 to index
    %c0_4 = arith.constant 0 : index
    %12 = vector.load %arg2[%c0_3, %11, %c0_4] : memref<1x1472x1152xbf16, #tpu.memory_space<vmem>>, vector<1x320x1152xbf16>
    %13 = vector.shape_cast %12 : vector<1x320x1152xbf16> to vector<320x1152xbf16>
    %c0_5 = arith.constant 0 : index
    %c0_6 = arith.constant 0 : index
    %c0_7 = arith.constant 0 : index
    %14 = vector.load %arg4[%c0_5, %c0_6, %c0_7] : memref<4x1152x128xbf16, #tpu.memory_space<vmem>>, vector<1x1152x128xbf16>
    %15 = vector.shape_cast %14 : vector<1x1152x128xbf16> to vector<1152x128xbf16>
    %cst_8 = arith.constant dense<0.000000e+00> : vector<320x128xf32>
    %16 = tpu.matmul %13, %15, %cst_8 {dimension_numbers = #tpu.dot_dimension_numbers<[1], [0], [0], [1], [0, 0, 1, 1], [], []>} : vector<320x1152xbf16>, vector<1152x128xbf16>, vector<320x128xf32> -> vector<320x128xf32>
    %17 = arith.addf %8, %16 : vector<320x128xf32>
    %c320_i32_9 = arith.constant 320 : i32
    %18 = arith.addi %0, %c320_i32_9 : i32
    %19 = tpu.assume_multiple %18, 64 : i32
    %c0_10 = arith.constant 0 : index
    %20 = arith.index_cast %19 : i32 to index
    %c0_11 = arith.constant 0 : index
    %21 = vector.load %arg2[%c0_10, %20, %c0_11] : memref<1x1472x1152xbf16, #tpu.memory_space<vmem>>, vector<1x320x1152xbf16>
    %22 = vector.shape_cast %21 : vector<1x320x1152xbf16> to vector<320x1152xbf16>
    %c1 = arith.constant 1 : index
    %c0_12 = arith.constant 0 : index
    %c0_13 = arith.constant 0 : index
    %23 = vector.load %arg4[%c1, %c0_12, %c0_13] : memref<4x1152x128xbf16, #tpu.memory_space<vmem>>, vector<1x1152x128xbf16>
    %24 = vector.shape_cast %23 : vector<1x1152x128xbf16> to vector<1152x128xbf16>
    %cst_14 = arith.constant dense<0.000000e+00> : vector<320x128xf32>
    %25 = tpu.matmul %22, %24, %cst_14 {dimension_numbers = #tpu.dot_dimension_numbers<[1], [0], [0], [1], [0, 0, 1, 1], [], []>} : vector<320x1152xbf16>, vector<1152x128xbf16>, vector<320x128xf32> -> vector<320x128xf32>
    %26 = arith.addf %17, %25 : vector<320x128xf32>
    %27 = vector.extract_strided_slice %7 {offsets = [0, 128], sizes = [320, 128], strides = [1, 1]} : vector<320x256xf32> to vector<320x128xf32>
    %c0_i32 = arith.constant 0 : i32
    %28 = arith.addi %0, %c0_i32 : i32
    %29 = tpu.assume_multiple %28, 64 : i32
    %c0_15 = arith.constant 0 : index
    %30 = arith.index_cast %29 : i32 to index
    %c0_16 = arith.constant 0 : index
    %31 = vector.load %arg2[%c0_15, %30, %c0_16] : memref<1x1472x1152xbf16, #tpu.memory_space<vmem>>, vector<1x320x1152xbf16>
    %32 = vector.shape_cast %31 : vector<1x320x1152xbf16> to vector<320x1152xbf16>
    %c2 = arith.constant 2 : index
    %c0_17 = arith.constant 0 : index
    %c0_18 = arith.constant 0 : index
    %33 = vector.load %arg4[%c2, %c0_17, %c0_18] : memref<4x1152x128xbf16, #tpu.memory_space<vmem>>, vector<1x1152x128xbf16>
    %34 = vector.shape_cast %33 : vector<1x1152x128xbf16> to vector<1152x128xbf16>
    %cst_19 = arith.constant dense<0.000000e+00> : vector<320x128xf32>
    %35 = tpu.matmul %32, %34, %cst_19 {dimension_numbers = #tpu.dot_dimension_numbers<[1], [0], [0], [1], [0, 0, 1, 1], [], []>} : vector<320x1152xbf16>, vector<1152x128xbf16>, vector<320x128xf32> -> vector<320x128xf32>
    %36 = arith.addf %27, %35 : vector<320x128xf32>
    %c512_i32 = arith.constant 512 : i32
    %37 = arith.addi %0, %c512_i32 : i32
    %38 = tpu.assume_multiple %37, 64 : i32
    %c0_20 = arith.constant 0 : index
    %39 = arith.index_cast %38 : i32 to index
    %c0_21 = arith.constant 0 : index
    %40 = vector.load %arg2[%c0_20, %39, %c0_21] : memref<1x1472x1152xbf16, #tpu.memory_space<vmem>>, vector<1x320x1152xbf16>
    %41 = vector.shape_cast %40 : vector<1x320x1152xbf16> to vector<320x1152xbf16>
    %c3 = arith.constant 3 : index
    %c0_22 = arith.constant 0 : index
    %c0_23 = arith.constant 0 : index
    %42 = vector.load %arg4[%c3, %c0_22, %c0_23] : memref<4x1152x128xbf16, #tpu.memory_space<vmem>>, vector<1x1152x128xbf16>
    %43 = vector.shape_cast %42 : vector<1x1152x128xbf16> to vector<1152x128xbf16>
    %cst_24 = arith.constant dense<0.000000e+00> : vector<320x128xf32>
    %44 = tpu.matmul %41, %43, %cst_24 {dimension_numbers = #tpu.dot_dimension_numbers<[1], [0], [0], [1], [0, 0, 1, 1], [], []>} : vector<320x1152xbf16>, vector<1152x128xbf16>, vector<320x128xf32> -> vector<320x128xf32>
    %45 = arith.addf %36, %44 : vector<320x128xf32>
    %c0_25 = arith.constant 0 : index
    %c0_26 = arith.constant 0 : index
    %46 = vector.load %arg5[%c0_25, %c0_26] : memref<4x128xf32, #tpu.memory_space<vmem>>, vector<1x128xf32>
    %c1_27 = arith.constant 1 : index
    %c0_28 = arith.constant 0 : index
    %47 = vector.load %arg5[%c1_27, %c0_28] : memref<4x128xf32, #tpu.memory_space<vmem>>, vector<1x128xf32>
    %c2_29 = arith.constant 2 : index
    %c0_30 = arith.constant 0 : index
    %48 = vector.load %arg5[%c2_29, %c0_30] : memref<4x128xf32, #tpu.memory_space<vmem>>, vector<1x128xf32>
    %c3_31 = arith.constant 3 : index
    %c0_32 = arith.constant 0 : index
    %49 = vector.load %arg5[%c3_31, %c0_32] : memref<4x128xf32, #tpu.memory_space<vmem>>, vector<1x128xf32>
    %c0_33 = arith.constant 0 : index
    %c0_34 = arith.constant 0 : index
    %50 = vector.load %arg7[%c0_33, %c0_34] : memref<2x32xf32, #tpu.memory_space<vmem>>, vector<1x32xf32>
    %c1_35 = arith.constant 1 : index
    %c0_36 = arith.constant 0 : index
    %51 = vector.load %arg7[%c1_35, %c0_36] : memref<2x32xf32, #tpu.memory_space<vmem>>, vector<1x32xf32>
    %52 = vector.broadcast %46 : vector<1x128xf32> to vector<320x128xf32>
    %53 = arith.mulf %26, %52 : vector<320x128xf32>
    %54 = vector.broadcast %47 : vector<1x128xf32> to vector<320x128xf32>
    %55 = arith.addf %53, %54 : vector<320x128xf32>
    %cst_37 = arith.constant 0.000000e+00 : f32
    %56 = vector.broadcast %cst_37 : f32 to vector<320x128xf32>
    %57 = arith.maximumf %55, %56 : vector<320x128xf32>
    %58 = vector.broadcast %48 : vector<1x128xf32> to vector<320x128xf32>
    %59 = arith.mulf %45, %58 : vector<320x128xf32>
    %60 = vector.broadcast %49 : vector<1x128xf32> to vector<320x128xf32>
    %61 = arith.addf %59, %60 : vector<320x128xf32>
    %cst_38 = arith.constant 0.000000e+00 : f32
    %62 = vector.broadcast %cst_38 : f32 to vector<320x128xf32>
    %63 = arith.maximumf %61, %62 : vector<320x128xf32>
    %64 = arith.addf %57, %63 : vector<320x128xf32>
    %65 = vector.extract_strided_slice %64 {offsets = [0, 0], sizes = [64, 128], strides = [1, 1]} : vector<320x128xf32> to vector<64x128xf32>
    %cst_39 = arith.constant dense<0.000000e+00> : vector<128xf32>
    %66 = vector.multi_reduction <add>, %65, %cst_39 [0] : vector<64x128xf32> to vector<128xf32>
    %67 = vector.shape_cast %66 : vector<128xf32> to vector<1x128xf32>
    %cst_40 = arith.constant 6.400000e+01 : f32
    %68 = vector.broadcast %cst_40 : f32 to vector<1x128xf32>
    %69 = arith.divf %67, %68 : vector<1x128xf32>
    %70 = vector.extract_strided_slice %64 {offsets = [64, 0], sizes = [64, 128], strides = [1, 1]} : vector<320x128xf32> to vector<64x128xf32>
    %cst_41 = arith.constant dense<0.000000e+00> : vector<128xf32>
    %71 = vector.multi_reduction <add>, %70, %cst_41 [0] : vector<64x128xf32> to vector<128xf32>
    %72 = vector.shape_cast %71 : vector<128xf32> to vector<1x128xf32>
    %cst_42 = arith.constant 6.400000e+01 : f32
    %73 = vector.broadcast %cst_42 : f32 to vector<1x128xf32>
    %74 = arith.divf %72, %73 : vector<1x128xf32>
    %75 = vector.extract_strided_slice %64 {offsets = [128, 0], sizes = [64, 128], strides = [1, 1]} : vector<320x128xf32> to vector<64x128xf32>
    %cst_43 = arith.constant dense<0.000000e+00> : vector<128xf32>
    %76 = vector.multi_reduction <add>, %75, %cst_43 [0] : vector<64x128xf32> to vector<128xf32>
    %77 = vector.shape_cast %76 : vector<128xf32> to vector<1x128xf32>
    %cst_44 = arith.constant 6.400000e+01 : f32
    %78 = vector.broadcast %cst_44 : f32 to vector<1x128xf32>
    %79 = arith.divf %77, %78 : vector<1x128xf32>
    %80 = vector.extract_strided_slice %64 {offsets = [192, 0], sizes = [64, 128], strides = [1, 1]} : vector<320x128xf32> to vector<64x128xf32>
    %cst_45 = arith.constant dense<0.000000e+00> : vector<128xf32>
    %81 = vector.multi_reduction <add>, %80, %cst_45 [0] : vector<64x128xf32> to vector<128xf32>
    %82 = vector.shape_cast %81 : vector<128xf32> to vector<1x128xf32>
    %cst_46 = arith.constant 6.400000e+01 : f32
    %83 = vector.broadcast %cst_46 : f32 to vector<1x128xf32>
    %84 = arith.divf %82, %83 : vector<1x128xf32>
    %85 = vector.extract_strided_slice %64 {offsets = [256, 0], sizes = [64, 128], strides = [1, 1]} : vector<320x128xf32> to vector<64x128xf32>
    %cst_47 = arith.constant dense<0.000000e+00> : vector<128xf32>
    %86 = vector.multi_reduction <add>, %85, %cst_47 [0] : vector<64x128xf32> to vector<128xf32>
    %87 = vector.shape_cast %86 : vector<128xf32> to vector<1x128xf32>
    %cst_48 = arith.constant 6.400000e+01 : f32
    %88 = vector.broadcast %cst_48 : f32 to vector<1x128xf32>
    %89 = arith.divf %87, %88 : vector<1x128xf32>
    %90 = tpu.concatenate %69, %74, %79, %84, %89 in 0 : vector<1x128xf32>, vector<1x128xf32>, vector<1x128xf32>, vector<1x128xf32>, vector<1x128xf32> -> vector<5x128xf32>
    %c0_49 = arith.constant 0 : index
    %c0_50 = arith.constant 0 : index
    %91 = vector.load %arg6[%c0_49, %c0_50] : memref<128x32xf32, #tpu.memory_space<vmem>>, vector<128x32xf32>
    %cst_51 = arith.constant dense<0.000000e+00> : vector<5x32xf32>
    %92 = tpu.matmul %90, %91, %cst_51 {dimension_numbers = #tpu.dot_dimension_numbers<[1], [0], [0], [1], [0, 0, 1, 1], [], []>} : vector<5x128xf32>, vector<128x32xf32>, vector<5x32xf32> -> vector<5x32xf32>
    %93 = vector.broadcast %50 : vector<1x32xf32> to vector<5x32xf32>
    %94 = arith.mulf %92, %93 : vector<5x32xf32>
    %95 = vector.broadcast %51 : vector<1x32xf32> to vector<5x32xf32>
    %96 = arith.addf %94, %95 : vector<5x32xf32>
    %cst_52 = arith.constant 0.000000e+00 : f32
    %97 = vector.broadcast %cst_52 : f32 to vector<5x32xf32>
    %98 = arith.maximumf %96, %97 : vector<5x32xf32>
    %c0_53 = arith.constant 0 : index
    %c0_54 = arith.constant 0 : index
    %99 = vector.load %arg8[%c0_53, %c0_54] : memref<32x256xf32, #tpu.memory_space<vmem>>, vector<32x256xf32>
    %cst_55 = arith.constant dense<0.000000e+00> : vector<5x256xf32>
    %100 = tpu.matmul %98, %99, %cst_55 {dimension_numbers = #tpu.dot_dimension_numbers<[1], [0], [0], [1], [0, 0, 1, 1], [], []>} : vector<5x32xf32>, vector<32x256xf32>, vector<5x256xf32> -> vector<5x256xf32>
    %101 = vector.extract_strided_slice %100 {offsets = [0, 128], sizes = [5, 128], strides = [1, 1]} : vector<5x256xf32> to vector<5x128xf32>
    %102 = vector.extract_strided_slice %100 {offsets = [0, 0], sizes = [5, 128], strides = [1, 1]} : vector<5x256xf32> to vector<5x128xf32>
    %103 = arith.subf %101, %102 : vector<5x128xf32>
    %104 = math.exp %103 : vector<5x128xf32>
    %cst_56 = arith.constant 1.000000e+00 : f32
    %105 = vector.broadcast %cst_56 : f32 to vector<5x128xf32>
    %106 = arith.addf %105, %104 : vector<5x128xf32>
    %107 = tpu.reciprocal %106 {approx = true} : vector<5x128xf32> -> vector<5x128xf32>
    %cst_57 = arith.constant 1.000000e+00 : f32
    %108 = vector.broadcast %cst_57 : f32 to vector<5x128xf32>
    %109 = arith.subf %108, %107 : vector<5x128xf32>
    %110 = vector.extract_strided_slice %107 {offsets = [0, 0], sizes = [1, 128], strides = [1, 1]} : vector<5x128xf32> to vector<1x128xf32>
    %111 = vector.extract_strided_slice %57 {offsets = [0, 0], sizes = [64, 128], strides = [1, 1]} : vector<320x128xf32> to vector<64x128xf32>
    %112 = vector.broadcast %110 : vector<1x128xf32> to vector<64x128xf32>
    %113 = arith.mulf %112, %111 : vector<64x128xf32>
    %114 = vector.extract_strided_slice %109 {offsets = [0, 0], sizes = [1, 128], strides = [1, 1]} : vector<5x128xf32> to vector<1x128xf32>
    %115 = vector.extract_strided_slice %63 {offsets = [0, 0], sizes = [64, 128], strides = [1, 1]} : vector<320x128xf32> to vector<64x128xf32>
    %116 = vector.broadcast %114 : vector<1x128xf32> to vector<64x128xf32>
    %117 = arith.mulf %116, %115 : vector<64x128xf32>
    %118 = arith.addf %113, %117 : vector<64x128xf32>
    %c0_58 = arith.constant 0 : index
    %c0_59 = arith.constant 0 : index
    %c0_60 = arith.constant 0 : index
    %c0_61 = arith.constant 0 : index
    %119 = vector.load %arg9[%c0_58, %c0_59, %c0_60, %c0_61] : memref<1x5x64x128xf32, #tpu.memory_space<vmem>>, vector<1x1x64x128xf32>
    %120 = vector.shape_cast %119 : vector<1x1x64x128xf32> to vector<64x128xf32>
    %121 = vector.shape_cast %118 : vector<64x128xf32> to vector<1x1x64x128xf32>
    tpu.vector_store %arg9[%c0_58, %c0_59, %c0_60, %c0_61], %121 {strides = array<i32>} : memref<1x5x64x128xf32, #tpu.memory_space<vmem>>, vector<1x1x64x128xf32>,
    %122 = vector.extract_strided_slice %107 {offsets = [1, 0], sizes = [1, 128], strides = [1, 1]} : vector<5x128xf32> to vector<1x128xf32>
    %123 = vector.extract_strided_slice %57 {offsets = [64, 0], sizes = [64, 128], strides = [1, 1]} : vector<320x128xf32> to vector<64x128xf32>
    %124 = vector.broadcast %122 : vector<1x128xf32> to vector<64x128xf32>
    %125 = arith.mulf %124, %123 : vector<64x128xf32>
    %126 = vector.extract_strided_slice %109 {offsets = [1, 0], sizes = [1, 128], strides = [1, 1]} : vector<5x128xf32> to vector<1x128xf32>
    %127 = vector.extract_strided_slice %63 {offsets = [64, 0], sizes = [64, 128], strides = [1, 1]} : vector<320x128xf32> to vector<64x128xf32>
    %128 = vector.broadcast %126 : vector<1x128xf32> to vector<64x128xf32>
    %129 = arith.mulf %128, %127 : vector<64x128xf32>
    %130 = arith.addf %125, %129 : vector<64x128xf32>
    %c0_62 = arith.constant 0 : index
    %c1_63 = arith.constant 1 : index
    %c0_64 = arith.constant 0 : index
    %c0_65 = arith.constant 0 : index
    %131 = vector.load %arg9[%c0_62, %c1_63, %c0_64, %c0_65] : memref<1x5x64x128xf32, #tpu.memory_space<vmem>>, vector<1x1x64x128xf32>
    %132 = vector.shape_cast %131 : vector<1x1x64x128xf32> to vector<64x128xf32>
    %133 = vector.shape_cast %130 : vector<64x128xf32> to vector<1x1x64x128xf32>
    tpu.vector_store %arg9[%c0_62, %c1_63, %c0_64, %c0_65], %133 {strides = array<i32>} : memref<1x5x64x128xf32, #tpu.memory_space<vmem>>, vector<1x1x64x128xf32>,
    %134 = vector.extract_strided_slice %107 {offsets = [2, 0], sizes = [1, 128], strides = [1, 1]} : vector<5x128xf32> to vector<1x128xf32>
    %135 = vector.extract_strided_slice %57 {offsets = [128, 0], sizes = [64, 128], strides = [1, 1]} : vector<320x128xf32> to vector<64x128xf32>
    %136 = vector.broadcast %134 : vector<1x128xf32> to vector<64x128xf32>
    %137 = arith.mulf %136, %135 : vector<64x128xf32>
    %138 = vector.extract_strided_slice %109 {offsets = [2, 0], sizes = [1, 128], strides = [1, 1]} : vector<5x128xf32> to vector<1x128xf32>
    %139 = vector.extract_strided_slice %63 {offsets = [128, 0], sizes = [64, 128], strides = [1, 1]} : vector<320x128xf32> to vector<64x128xf32>
    %140 = vector.broadcast %138 : vector<1x128xf32> to vector<64x128xf32>
    %141 = arith.mulf %140, %139 : vector<64x128xf32>
    %142 = arith.addf %137, %141 : vector<64x128xf32>
    %c0_66 = arith.constant 0 : index
    %c2_67 = arith.constant 2 : index
    %c0_68 = arith.constant 0 : index
    %c0_69 = arith.constant 0 : index
    %143 = vector.load %arg9[%c0_66, %c2_67, %c0_68, %c0_69] : memref<1x5x64x128xf32, #tpu.memory_space<vmem>>, vector<1x1x64x128xf32>
    %144 = vector.shape_cast %143 : vector<1x1x64x128xf32> to vector<64x128xf32>
    %145 = vector.shape_cast %142 : vector<64x128xf32> to vector<1x1x64x128xf32>
    tpu.vector_store %arg9[%c0_66, %c2_67, %c0_68, %c0_69], %145 {strides = array<i32>} : memref<1x5x64x128xf32, #tpu.memory_space<vmem>>, vector<1x1x64x128xf32>,
    %146 = vector.extract_strided_slice %107 {offsets = [3, 0], sizes = [1, 128], strides = [1, 1]} : vector<5x128xf32> to vector<1x128xf32>
    %147 = vector.extract_strided_slice %57 {offsets = [192, 0], sizes = [64, 128], strides = [1, 1]} : vector<320x128xf32> to vector<64x128xf32>
    %148 = vector.broadcast %146 : vector<1x128xf32> to vector<64x128xf32>
    %149 = arith.mulf %148, %147 : vector<64x128xf32>
    %150 = vector.extract_strided_slice %109 {offsets = [3, 0], sizes = [1, 128], strides = [1, 1]} : vector<5x128xf32> to vector<1x128xf32>
    %151 = vector.extract_strided_slice %63 {offsets = [192, 0], sizes = [64, 128], strides = [1, 1]} : vector<320x128xf32> to vector<64x128xf32>
    %152 = vector.broadcast %150 : vector<1x128xf32> to vector<64x128xf32>
    %153 = arith.mulf %152, %151 : vector<64x128xf32>
    %154 = arith.addf %149, %153 : vector<64x128xf32>
    %c0_70 = arith.constant 0 : index
    %c3_71 = arith.constant 3 : index
    %c0_72 = arith.constant 0 : index
    %c0_73 = arith.constant 0 : index
    %155 = vector.load %arg9[%c0_70, %c3_71, %c0_72, %c0_73] : memref<1x5x64x128xf32, #tpu.memory_space<vmem>>, vector<1x1x64x128xf32>
    %156 = vector.shape_cast %155 : vector<1x1x64x128xf32> to vector<64x128xf32>
    %157 = vector.shape_cast %154 : vector<64x128xf32> to vector<1x1x64x128xf32>
    tpu.vector_store %arg9[%c0_70, %c3_71, %c0_72, %c0_73], %157 {strides = array<i32>} : memref<1x5x64x128xf32, #tpu.memory_space<vmem>>, vector<1x1x64x128xf32>,
    %158 = vector.extract_strided_slice %107 {offsets = [4, 0], sizes = [1, 128], strides = [1, 1]} : vector<5x128xf32> to vector<1x128xf32>
    %159 = vector.extract_strided_slice %57 {offsets = [256, 0], sizes = [64, 128], strides = [1, 1]} : vector<320x128xf32> to vector<64x128xf32>
    %160 = vector.broadcast %158 : vector<1x128xf32> to vector<64x128xf32>
    %161 = arith.mulf %160, %159 : vector<64x128xf32>
    %162 = vector.extract_strided_slice %109 {offsets = [4, 0], sizes = [1, 128], strides = [1, 1]} : vector<5x128xf32> to vector<1x128xf32>
    %163 = vector.extract_strided_slice %63 {offsets = [256, 0], sizes = [64, 128], strides = [1, 1]} : vector<320x128xf32> to vector<64x128xf32>
    %164 = vector.broadcast %162 : vector<1x128xf32> to vector<64x128xf32>
    %165 = arith.mulf %164, %163 : vector<64x128xf32>
    %166 = arith.addf %161, %165 : vector<64x128xf32>
    %c0_74 = arith.constant 0 : index
    %c4 = arith.constant 4 : index
    %c0_75 = arith.constant 0 : index
    %c0_76 = arith.constant 0 : index
    %167 = vector.load %arg9[%c0_74, %c4, %c0_75, %c0_76] : memref<1x5x64x128xf32, #tpu.memory_space<vmem>>, vector<1x1x64x128xf32>
    %168 = vector.shape_cast %167 : vector<1x1x64x128xf32> to vector<64x128xf32>
    %169 = vector.shape_cast %166 : vector<64x128xf32> to vector<1x1x64x128xf32>
    tpu.vector_store %arg9[%c0_74, %c4, %c0_75, %c0_76], %169 {strides = array<i32>} : memref<1x5x64x128xf32, #tpu.memory_space<vmem>>, vector<1x1x64x128xf32>,
    return
  }
  func.func @transform_0(%arg0: i32, %arg1: i32) -> (i32, i32, i32) {
    %c0_i32 = arith.constant 0 : i32
    %c0_i32_0 = arith.constant 0 : i32
    %c0_i32_1 = arith.constant 0 : i32
    return %arg0, %c0_i32, %c0_i32_0 : i32, i32, i32
  }
  func.func @transform_1(%arg0: i32, %arg1: i32) -> (i32, i32) {
    %c0_i32 = arith.constant 0 : i32
    %c0_i32_0 = arith.constant 0 : i32
    %c0_i32_1 = arith.constant 0 : i32
    return %c0_i32, %c0_i32_0 : i32, i32
  }
  func.func @transform_2(%arg0: i32, %arg1: i32) -> (i32, i32, i32) {
    %c0_i32 = arith.constant 0 : i32
    %c0_i32_0 = arith.constant 0 : i32
    %c0_i32_1 = arith.constant 0 : i32
    %c0_i32_2 = arith.constant 0 : i32
    return %c0_i32, %c0_i32_0, %c0_i32_1 : i32, i32, i32
  }
  func.func @transform_3(%arg0: i32, %arg1: i32) -> (i32, i32) {
    %c0_i32 = arith.constant 0 : i32
    %c0_i32_0 = arith.constant 0 : i32
    %c0_i32_1 = arith.constant 0 : i32
    return %c0_i32, %c0_i32_0 : i32, i32
  }
  func.func @transform_4(%arg0: i32, %arg1: i32) -> (i32, i32) {
    %c0_i32 = arith.constant 0 : i32
    %c0_i32_0 = arith.constant 0 : i32
    %c0_i32_1 = arith.constant 0 : i32
    return %c0_i32, %c0_i32_0 : i32, i32
  }
  func.func @transform_5(%arg0: i32, %arg1: i32) -> (i32, i32) {
    %c0_i32 = arith.constant 0 : i32
    %c0_i32_0 = arith.constant 0 : i32
    %c0_i32_1 = arith.constant 0 : i32
    return %c0_i32, %c0_i32_0 : i32, i32
  }
  func.func @transform_6(%arg0: i32, %arg1: i32) -> (i32, i32) {
    %c0_i32 = arith.constant 0 : i32
    %c0_i32_0 = arith.constant 0 : i32
    %c0_i32_1 = arith.constant 0 : i32
    return %c0_i32, %c0_i32_0 : i32, i32
  }
  func.func @transform_7(%arg0: i32, %arg1: i32) -> (i32, i32, i32, i32) {
    %c0_i32 = arith.constant 0 : i32
    %c0_i32_0 = arith.constant 0 : i32
    %c0_i32_1 = arith.constant 0 : i32
    return %arg0, %arg1, %c0_i32, %c0_i32_0 : i32, i32, i32, i32
  }
}

</mosaic_0001>

<bundles_post_ra>
// kernel: skconv_forward.1
= control target key start
LH: loop header
LB: loop body
LE: loop exit
PB: predicated region body
PF: predicated region fallthrough
CT: control target
= control target key end

     0   :  { %12 = vsyncpa [#allocation3], 0  ;;  %s25550_s0 = inlined_call_operand.vmem [shape: bf16[2,1472,1152], index: 0, kind: input, shape index: {}]   ;;  %s25551_s1 = inlined_call_operand.vmem [shape: bf16[1152,256], index: 1, kind: input, shape index: {}]   ;;  %s25552_s2 = inlined_call_operand.vmem [shape: bf16[4,1152,128], index: 2, kind: input, shape index: {}]   ;;  %s25553_s3 = inlined_call_operand.vmem [shape: f32[4,128], index: 3, kind: input, shape index: {}]   ;;  %s25554_s4 = inlined_call_operand.vmem [shape: f32[128,32], index: 4, kind: input, shape index: {}]   ;;  %s25555_s5 = inlined_call_operand.vmem [shape: f32[2,32], index: 5, kind: input, shape index: {}]   ;;  %s25556_s6 = inlined_call_operand.vmem [shape: f32[32,256], index: 6, kind: input, shape index: {}]   ;;  %s25557_s7 = inlined_call_operand.hbm [shape: f32[2,15,64,128], index: 7, kind: output, shape index: {}]  }
   0x1   :  { %14 = vsyncpa [#allocation3 + $0x1], 0  ;;  %s20716_s24 = smov 0   ;;  %s20718_s25 = smov 0  }
   0x2   :  { %s20720_s26 = smov 0   ;;  %s20722_s27 = smov 0  }
   0x3   :  { %s20724_s28 = smov 0   ;;  %s20726_s29 = smov 0  }
   0x4   :  { %s20728_s30 = smov 0   ;;  %s20730_s8 = smov 0  }
   0x5 LB: > { %25665 = sst [smem:[#allocation5_spill]] %s20659_s29  ;;  %s15153_s9 = sadd.s32 4294967295, %s20667_s8   ;;  %s20667_s8 = sphi %s20730_s8, %s20_s8   ;;  %s20663_s30 = sphi %s20728_s30, %s26304_s30   ;;  %s20659_s29 = sphi %s20726_s29, %s26303_s29   ;;  %s20655_s28 = sphi %s20724_s28, %s26302_s28   ;;  %s20651_s27 = sphi %s20722_s27, %s26301_s27   ;;  %s20647_s26 = sphi %s20720_s26, %s26307_s26   ;;  %s20643_s25 = sphi %s20718_s25, %s26306_s25   ;;  %s20639_s24 = sphi %s20716_s24, %s26305_s24  }
   0x6   : > { %25666 = sst [smem:[#allocation6_spill]] %s20663_s30  ;;  %s15154_s10 = sadd.s32 4294967294, %s20667_s8  }
   0x7   : > { %s29_s11 = sadd.s32 1, %s20659_s29  ;;  %s32_s12 = sadd.s32 1, %s20663_s30 }
   0x8   : > { %p30_p0 = scmp.ge.s32.totalorder %s29_s11, 3  ;;  %p203_p1 = scmp.ne.s32.totalorder %s20647_s26, %s20643_s25 }
   0x9   : > { %p204_p2 = scmp.eq.s32.totalorder %s15153_s9, 5  ;;  %p209_p5 = scmp.ne.s32.totalorder %s20643_s25, %s20639_s24 }
   0xa   : > { %s26309_s11 = smov (%p30_p0, %s29_s11), 0  ;;  %s26311_s12 = smov (!%p30_p0, %s32_s12), %s20663_s30 }
   0xb   : > { %25667 = sst [smem:[#allocation7_spill]] %s26309_s11  ;;  %s189_s13 = ssub.s32 %s20659_s29, %s26309_s11 }
   0xc   : > { %p20767_p3 = por %p204_p2, %p203_p1  ;;  %p34_p4 = scmp.ge.s32.totalorder %s26311_s12, 2 }
   0xd   : > { %p210_p6 = scmp.eq.s32.totalorder %s15154_s10, 5  ;;  %p15157_p7 = scmp.ge.s32.totalorder %s20667_s8, 1 }
   0xe   : > { %s26313_s12 = smov (%p34_p4, %s26311_s12), 0  ;;  %p254_p9 = scmp.lt.s32.totalorder %s20667_s8, 7 }
   0xf   : > { %25669 = sst [smem:[#allocation8_spill]] %s26313_s12  ;;  %p20776_p8 = por %p210_p6, %p209_p5 }
  0x10   : > { %s188_s16 = ssub.s32 %s20663_s30, %s26313_s12  ;;  %s193_s17 = sadd.s32 1, %s20647_s26 }
  0x11   : > { %s190_s18 = sor.u32 %s189_s13, %s188_s16  ;;  %p255_p10 = pnand %p15157_p7, %p254_p9 }
  0x12   : > { %p191_p11 = scmp.eq.s32.totalorder %s190_s18, 0 }
  0x13   : > { %258 = sbr.rel (%p255_p10) target bundleno = 2708 (0xa94), region = 48 }
  0x14   : > { %s20785_s19 = scalar_select %p191_p11, %s20647_s26, %s193_s17  }
  0x16   : > { %25671 = sst [smem:[#allocation9_spill]] %s20785_s19 }
  0x1a   : > { %v18749_v0 = vld [vmem:[%s25551_s1 + $0x4] ss:$8 sps:$4 sm:$0xff]   ;;  %v25562_v1 = vmov 0   ;;  %v18752_v3 = vld [vmem:[%s25551_s1] ss:$8 sps:$4 sm:$0xff]   ;;  %v18759_v8 = vld [vmem:[%s25552_s2 + $0x90] sm:$0xff]  }
  0x1b   : > { %17397 = vmatprep.subr.bf16.mxu1 %v25562_v1  ;;  %v18751_v2 = vld [vmem:[%s25552_s2 + $0x80] sm:$0xff]   ;;  %2284 = vmatprep.subr.bf16.mxu0 %v18749_v0  ;;  %v18753_v4 = vld [vmem:[%s25551_s1 + $0x14] ss:$8 sps:$4 sm:$0xff]   ;;  %v18755_v5 = vld [vmem:[%s25552_s2 + $0x88] sm:$0xff]   ;;  %p286_p12 = scmp.lt.s32.totalorder %s20655_s28, 1  ;;  %s20852_s17 = smul.u32 320, %s20651_s27 }
  0x1c   : > { %17413 = vmatpush1.bf16.msra.mxu1 %v18751_v2  ;;  %2285 = vmatpush1.bf16.msra.mxu0 %v18752_v3  ;;  %v18756_v6 = vld [vmem:[%s25551_s1 + $0x10] ss:$8 sps:$4 sm:$0xff]   ;;  %v18757_v7 = vld [vmem:[%s25551_s1 + $0x24] ss:$8 sps:$4 sm:$0xff]   ;;  %v18760_v9 = vld [vmem:[%s25551_s1 + $0x20] ss:$8 sps:$4 sm:$0xff]  }
  0x1d   : > { %17398 = vmatprep.subr.bf16.mxu1 %v25562_v1  ;;  %2286 = vmatprep.subr.bf16.mxu0 %v18753_v4  ;;  %v18761_v10 = vld [vmem:[%s25551_s1 + $0x34] ss:$8 sps:$4 sm:$0xff]   ;;  %v18764_v12 = vld [vmem:[%s25551_s1 + $0x30] ss:$8 sps:$4 sm:$0xff]   ;;  %v18765_v13 = vld [vmem:[%s25551_s1 + $0x44] ss:$8 sps:$4 sm:$0xff]  }
  0x1e   : > { %v18763_v11 = vld [vmem:[%s25552_s2 + $0x98] sm:$0xff]   ;;  %v18767_v14 = vld [vmem:[%s25552_s2 + $0xa0] sm:$0xff]   ;;  %v18771_v17 = vld [vmem:[%s25552_s2 + $0xa8] sm:$0xff]   ;;  %s287_s21 = scalar_select %p286_p12, %s20655_s28, 1  ;;  %vm20671_vm0 = vmmov 0   ;;  %vm14652_vm1 = vcmask 1040384  }
  0x1f   : > { %v18768_v15 = vld [vmem:[%s25551_s1 + $0x40] ss:$8 sps:$4 sm:$0xff]   ;;  %v18769_v16 = vld [vmem:[%s25551_s1 + $0x54] ss:$8 sps:$4 sm:$0xff]   ;;  %v18772_v18 = vld [vmem:[%s25551_s1 + $0x50] ss:$8 sps:$4 sm:$0xff]  }
  0x20   : > { %17414 = vmatpush1.bf16.msra.mxu1 %v18755_v5  ;;  %2287 = vmatpush1.bf16.msra.mxu0 %v18756_v6  ;;  %v18773_v19 = vld [vmem:[%s25551_s1 + $0x64] ss:$8 sps:$4 sm:$0xff]   ;;  %v18775_v20 = vld [vmem:[%s25552_s2 + $0xb0] sm:$0xff]   ;;  %v18776_v21 = vld [vmem:[%s25551_s1 + $0x60] ss:$8 sps:$4 sm:$0xff]   ;;  %s3449_s13 = sadd.s32 192, %s20852_s17 }
  0x21   : > { %17399 = vmatprep.subr.bf16.mxu1 %v25562_v1  ;;  %2288 = vmatprep.subr.bf16.mxu0 %v18757_v7  ;;  %v18777_v22 = vld [vmem:[%s25551_s1 + $0x74] ss:$8 sps:$4 sm:$0xff]   ;;  %s294_s16 = sadd.s32 256, %s20852_s17  ;;  %s18670_s18 = smul.u32 6624, %s287_s21  ;;  %v18780_v24 = vld [vmem:[%s25551_s1 + $0x70] ss:$8 sps:$4 sm:$0xff]  }
  0x22   : > { %v18779_v23 = vld [vmem:[%s25552_s2 + $0xb8] sm:$0xff]   ;;  %s3450_s22 = sshra.s32 %s3449_s13, 3  ;;  %s295_s23 = sshra.s32 %s294_s16, 3  ;;  %v18781_v25 = vld [vmem:[%s25551_s1 + $0x84] ss:$8 sps:$4 sm:$0xff]   ;;  %v18791_v33 = vld [vmem:[%s25552_s2 + $0xd0] sm:$0xff]  }
  0x23   : > { %v18783_v26 = vld [vmem:[%s25552_s2 + $0xc0] sm:$0xff]   ;;  %s16972_s11 = smul.u32 36, %s3450_s22  ;;  %s20887_s16 = scalar_lea.vmem %s25550_s0, %s18670_s18  ;;  %v18785_v28 = vld [vmem:[%s25551_s1 + $0x94] ss:$8 sps:$4 sm:$0xff]   ;;  %v18787_v29 = vld [vmem:[%s25552_s2 + $0xc8] sm:$0xff]   ;;  %vm14654_vm2 = vcmask 1041408  }
  0x24   : > { %17415 = vmatpush1.bf16.msra.mxu1 %v18759_v8  ;;  %2289 = vmatpush1.bf16.msra.mxu0 %v18760_v9  ;;  %v18784_v27 = vld [vmem:[%s25551_s1 + $0x80] ss:$8 sps:$4 sm:$0xff]   ;;  %s16971_s20 = smul.u32 36, %s295_s23  ;;  %v18788_v30 = vld [vmem:[%s25551_s1 + $0x90] ss:$8 sps:$4 sm:$0xff]   ;;  %s6156_s18 = sadd.s32 320, %s20852_s17 }
  0x25   : > { %17400 = vmatprep.subr.bf16.mxu1 %v25562_v1  ;;  %2290 = vmatprep.subr.bf16.mxu0 %v18761_v10  ;;  %s20896_s10 = scalar_lea.vmem %s20887_s16, %s16972_s11  ;;  %v18789_v31 = vld [vmem:[%s25551_s1 + $0xa4] ss:$8 sps:$4 sm:$0xff]   ;;  %v18792_v35 = vld [vmem:[%s25551_s1 + $0xa0] ss:$8 sps:$4 sm:$0xff]   ;;  %v18793_v36 = vld [vmem:[%s25551_s1 + $0xb4] ss:$8 sps:$4 sm:$0xff]  }
  0x26   : > { %s20903_s23 = scalar_lea.vmem %s20887_s16, %s16971_s20  ;;  %v18815_v32 = vld [vmem:[%s20896_s10 + $0x294] ss:$36 sps:$4 sm:$0xff]   ;;  %v18797_v39 = vld [vmem:[%s25551_s1 + $0xc4] ss:$8 sps:$4 sm:$0xff]   ;;  %v18800_v41 = vld [vmem:[%s25551_s1 + $0xc0] ss:$8 sps:$4 sm:$0xff]  }
  0x27   : > { %v18818_v34 = vld [vmem:[%s20903_s23 + $0x4] ss:$36 sps:$4 sm:$0xff]   ;;  %5448 = vmatprep.mubr.bf16.mxu1 %v18815_v32  ;;  %v18795_v37 = vld [vmem:[%s25552_s2 + $0xd8] sm:$0xff]   ;;  %v18807_v46 = vld [vmem:[%s25552_s2 + $0xf0] sm:$0xff]   ;;  %s6157_s12 = sshra.s32 %s6156_s18, 3  ;;  %s8864_s30 = sshra.s32 %s20852_s17, 3 }
  0x28   : > { %17416 = vmatpush1.bf16.msra.mxu1 %v18763_v11  ;;  %2291 = vmatpush1.bf16.msra.mxu0 %v18764_v12  ;;  %v18796_v38 = vld [vmem:[%s25551_s1 + $0xb0] ss:$8 sps:$4 sm:$0xff]   ;;  %v18799_v40 = vld [vmem:[%s25552_s2 + $0xe0] sm:$0xff]   ;;  %v18801_v42 = vld [vmem:[%s25551_s1 + $0xd4] ss:$8 sps:$4 sm:$0xff]   ;;  %s16973_s21 = smul.u32 36, %s6157_s12 }
  0x29   : > { %17401 = vmatprep.subr.bf16.mxu1 %v25562_v1  ;;  %2292 = vmatprep.subr.bf16.mxu0 %v18765_v13  ;;  %v18803_v43 = vld [vmem:[%s25552_s2 + $0xe8] sm:$0xff]   ;;  %v18804_v44 = vld [vmem:[%s25551_s1 + $0xd0] ss:$8 sps:$4 sm:$0xff]   ;;  %v18809_v48 = vld [vmem:[%s25551_s1 + $0xf4] ss:$8 sps:$4 sm:$0xff]   ;;  %s16974_s29 = smul.u32 36, %s8864_s30 }
  0x2a   : > { %2316 = vmatprep.mubr.bf16.mxu0 %v18818_v34  ;;  %v18805_v45 = vld [vmem:[%s25551_s1 + $0xe4] ss:$8 sps:$4 sm:$0xff]   ;;  %v18808_v47 = vld [vmem:[%s25551_s1 + $0xe0] ss:$8 sps:$4 sm:$0xff]   ;;  %v18811_v49 = vld [vmem:[%s25552_s2 + $0xf8] sm:$0xff]   ;;  %s21563_s13 = scalar_lea.vmem %s20887_s16, %s16973_s21  ;;  %s11571_s20 = sadd.s32 512, %s20852_s17 }
  0x2b   : > { %v18812_v50 = vld [vmem:[%s25551_s1 + $0xf0] ss:$8 sps:$4 sm:$0xff]   ;;  %v18829_v52 = vld [vmem:[%s25551_s1 + $0x104] ss:$8 sps:$4 sm:$0xff]   ;;  %v18820_v55 = vld [vmem:[%s20896_s10 + $0x2dc] ss:$36 sps:$4 sm:$0xff]   ;;  %s22680_s19 = scalar_lea.vmem %s20887_s16, %s16974_s29 }
  0x2c   : > { %17417 = vmatpush1.bf16.msra.mxu1 %v18767_v14  ;;  %2293 = vmatpush1.bf16.msra.mxu0 %v18768_v15  ;;  %v18813_v51 = vld [vmem:[%s20896_s10 + $0x290] ss:$36 sps:$4 sm:$0xff]   ;;  %v18816_v53 = vld [vmem:[%s20903_s23] ss:$36 sps:$4 sm:$0xff]   ;;  %v18822_v59 = vld [vmem:[%s25552_s2 + $0x108] sm:$0xff]   ;;  %vm14656_vm3 = vcmask 1042432  }
  0x2d   : > { %17402 = vmatprep.subr.bf16.mxu1 %v25562_v1  ;;  %2294 = vmatprep.subr.bf16.mxu0 %v18769_v16  ;;  %v18819_v54 = vld [vmem:[%s25552_s2 + $0x100] sm:$0xff]   ;;  %v18823_v56 = vld [vmem:[%s20903_s23 + $0x4c] ss:$36 sps:$4 sm:$0xff]   ;;  %v18840_v58 = vld [vmem:[%s25551_s1 + $0x114] ss:$8 sps:$4 sm:$0xff]   ;;  %vm14658_vm4 = vcmask 1043456  }
  0x2e   : > { %v18827_v57 = vld [vmem:[%s25551_s1 + $0x100] ss:$8 sps:$4 sm:$0xff]   ;;  %v18825_v60 = vld [vmem:[%s20896_s10 + $0x2d8] ss:$36 sps:$4 sm:$0xff]   ;;  %v18851_v63 = vld [vmem:[%s25551_s1 + $0x124] ss:$8 sps:$4 sm:$0xff]  }
  0x2f   : > { %v18826_v61 = vld [vmem:[%s20903_s23 + $0x48] ss:$36 sps:$4 sm:$0xff]   ;;  %v18838_v62 = vld [vmem:[%s25551_s1 + $0x110] ss:$8 sps:$4 sm:$0xff]   ;;  %v18868_v5 = vld [vmem:[%s25551_s1 + $0x134] ss:$8 sps:$4 sm:$0xff]  }
  0x30   : > { %17418 = vmatpush1.bf16.msra.mxu1 %v18771_v17  ;;  %2295 = vmatpush1.bf16.msra.mxu0 %v18772_v18  ;;  %v18830_v0 = vld [vmem:[%s25552_s2 + $0x110] sm:$0xff]   ;;  %v18831_v2 = vld [vmem:[%s20896_s10 + $0x324] ss:$36 sps:$4 sm:$0xff]   ;;  %v18837_v6 = vld [vmem:[%s25552_s2 + $0x118] sm:$0xff]   ;;  %vm14765_vm5 = vcmask 261120   ;;  %s16976_s30 = smul.u32 40, %s20651_s27 }
  0x31   : > { %17403 = vmatprep.subr.bf16.mxu1 %v25562_v1  ;;  %2296 = vmatprep.subr.bf16.mxu0 %v18773_v19  ;;  %v18833_v3 = vld [vmem:[%s20903_s23 + $0x94] ss:$36 sps:$4 sm:$0xff]   ;;  %v18849_v4 = vld [vmem:[%s25551_s1 + $0x120] ss:$8 sps:$4 sm:$0xff]   ;;  %v18878_v10 = vld [vmem:[%s25551_s1 + $0x144] ss:$8 sps:$4 sm:$0xff]  }
  0x32   : > { %v18835_v7 = vld [vmem:[%s20896_s10 + $0x320] ss:$36 sps:$4 sm:$0xff]   ;;  %v18836_v8 = vld [vmem:[%s20903_s23 + $0x90] ss:$36 sps:$4 sm:$0xff]   ;;  %v18846_v16 = vld [vmem:[%s20896_s10 + $0x368] ss:$36 sps:$4 sm:$0xff]  }
  0x33   : > { %v18866_v9 = vld [vmem:[%s25551_s1 + $0x130] ss:$8 sps:$4 sm:$0xff]   ;;  %v18843_v12 = vld [vmem:[%s25552_s2 + $0x120] sm:$0xff]   ;;  %v18889_v15 = vld [vmem:[%s25551_s1 + $0x154] ss:$8 sps:$4 sm:$0xff]   ;;  %s18671_s27 = smul.u32 120, %s20655_s28 }
  0x34   : > { %17419 = vmatpush1.bf16.msra.mxu1 %v18775_v20  ;;  %2297 = vmatpush1.bf16.msra.mxu0 %v18776_v21  ;;  %v18841_v11 = vld [vmem:[%s20896_s10 + $0x36c] ss:$36 sps:$4 sm:$0xff]   ;;  %v18844_v13 = vld [vmem:[%s20903_s23 + $0xdc] ss:$36 sps:$4 sm:$0xff]   ;;  %v18852_v19 = vld [vmem:[%s20896_s10 + $0x3b4] ss:$36 sps:$4 sm:$0xff]  }
  0x35   : > { %17404 = vmatprep.subr.bf16.mxu1 %v25562_v1  ;;  %2298 = vmatprep.subr.bf16.mxu0 %v18777_v22  ;;  %v18876_v14 = vld [vmem:[%s25551_s1 + $0x140] ss:$8 sps:$4 sm:$0xff]   ;;  %v18847_v18 = vld [vmem:[%s20903_s23 + $0xd8] ss:$36 sps:$4 sm:$0xff]   ;;  %v18900_v21 = vld [vmem:[%s25551_s1 + $0x164] ss:$8 sps:$4 sm:$0xff]   ;;  %s25426_s28 = sadd.s32 %s18671_s27, %s16976_s30 }
  0x36   : > { %v18848_v17 = vld [vmem:[%s25552_s2 + $0x128] sm:$0xff]   ;;  %v18887_v20 = vld [vmem:[%s25551_s1 + $0x150] ss:$8 sps:$4 sm:$0xff]   ;;  %v18869_v32 = vld [vmem:[%s25552_s2 + $0x140] sm:$0xff]   ;;  %s16968_s11 = sshll.u32 %s25426_s28, 7  ;;  %s20673_s22 = smov [#allocation2]  }
  0x37   : > { %v18854_v22 = vld [vmem:[%s20903_s23 + $0x124] ss:$36 sps:$4 sm:$0xff]  }
  0x38   : > { %17420 = vmatpush1.bf16.msra.mxu1 %v18779_v23  ;;  %2299 = vmatpush1.bf16.msra.mxu0 %v18780_v24  ;;  %v18858_v23 = vld [vmem:[%s25552_s2 + $0x130] sm:$0xff]   ;;  %v18898_v24 = vld [vmem:[%s25551_s1 + $0x160] ss:$8 sps:$4 sm:$0xff]   ;;  %v18928_v34 = vld [vmem:[%s25551_s1 + $0x184] ss:$8 sps:$4 sm:$0xff]  }
  0x39   : > { %17405 = vmatprep.subr.bf16.mxu1 %v25562_v1  ;;  %2300 = vmatprep.subr.bf16.mxu0 %v18781_v25  ;;  %v18864_v25 = vld [vmem:[%s25552_s2 + $0x138] sm:$0xff]  }
  0x3c   : > { %17421 = vmatpush1.bf16.msra.mxu1 %v18783_v26  ;;  %2301 = vmatpush1.bf16.msra.mxu0 %v18784_v27  ;;  %v18917_v26 = vld [vmem:[%s25551_s1 + $0x174] ss:$8 sps:$4 sm:$0xff]   ;;  %v18915_v27 = vld [vmem:[%s25551_s1 + $0x170] ss:$8 sps:$4 sm:$0xff]  }
  0x3d   : > { %17406 = vmatprep.subr.bf16.mxu1 %v25562_v1  ;;  %2302 = vmatprep.subr.bf16.mxu0 %v18785_v28  ;;  %v18856_v28 = vld [vmem:[%s20896_s10 + $0x3b0] ss:$36 sps:$4 sm:$0xff]  }
  0x40   : > { %17422 = vmatpush1.bf16.msra.mxu1 %v18787_v29  ;;  %2303 = vmatpush1.bf16.msra.mxu0 %v18788_v30  ;;  %v18857_v29 = vld [vmem:[%s20903_s23 + $0x120] ss:$36 sps:$4 sm:$0xff]  }
  0x41   : > { %17407 = vmatprep.subr.bf16.mxu1 %v25562_v1  ;;  %2304 = vmatprep.subr.bf16.mxu0 %v18789_v31  ;;  %v18859_v30 = vld [vmem:[%s20896_s10 + $0x3fc] ss:$36 sps:$4 sm:$0xff]   ;;  %v18861_v31 = vld [vmem:[%s20903_s23 + $0x16c] ss:$36 sps:$4 sm:$0xff]  }
  0x44   : > { %17423 = vmatpush1.bf16.msra.mxu1 %v18791_v33  ;;  %2305 = vmatpush1.bf16.msra.mxu0 %v18792_v35  ;;  %v18926_v33 = vld [vmem:[%s25551_s1 + $0x180] ss:$8 sps:$4 sm:$0xff]   ;;  %v18863_v35 = vld [vmem:[%s20896_s10 + $0x3f8] ss:$36 sps:$4 sm:$0xff]  }
  0x45   : > { %17408 = vmatprep.subr.bf16.mxu1 %v25562_v1  ;;  %2306 = vmatprep.subr.bf16.mxu0 %v18793_v36  ;;  %v18879_v36 = vld [vmem:[%s25552_s2 + $0x148] sm:$0xff]  }
  0x48   : > { %17424 = vmatpush1.bf16.msra.mxu1 %v18795_v37  ;;  %2307 = vmatpush1.bf16.msra.mxu0 %v18796_v38  ;;  %v18865_v37 = vld [vmem:[%s20903_s23 + $0x168] ss:$36 sps:$4 sm:$0xff]  }
  0x49   : > { %17409 = vmatprep.subr.bf16.mxu1 %v25562_v1  ;;  %2308 = vmatprep.subr.bf16.mxu0 %v18797_v39  ;;  %v18870_v38 = vld [vmem:[%s20896_s10 + $0x444] ss:$36 sps:$4 sm:$0xff]   ;;  %v18872_v39 = vld [vmem:[%s20903_s23 + $0x1b4] ss:$36 sps:$4 sm:$0xff]  }
  0x4c   : > { %17425 = vmatpush1.bf16.msra.mxu1 %v18799_v40  ;;  %2309 = vmatpush1.bf16.msra.mxu0 %v18800_v41  ;;  %v18936_v40 = vld [vmem:[%s25551_s1 + $0x190] ss:$8 sps:$4 sm:$0xff]   ;;  %v18938_v41 = vld [vmem:[%s25551_s1 + $0x194] ss:$8 sps:$4 sm:$0xff]  }
  0x4d   : > { %17410 = vmatprep.subr.bf16.mxu1 %v25562_v1  ;;  %2310 = vmatprep.subr.bf16.mxu0 %v18801_v42  ;;  %v18885_v42 = vld [vmem:[%s25552_s2 + $0x150] sm:$0xff]  }
  0x50   : > { %17426 = vmatpush1.bf16.msra.mxu1 %v18803_v43  ;;  %2311 = vmatpush1.bf16.msra.mxu0 %v18804_v44  ;;  %v18890_v43 = vld [vmem:[%s25552_s2 + $0x158] sm:$0xff]   ;;  %v18946_v44 = vld [vmem:[%s25551_s1 + $0x1a0] ss:$8 sps:$4 sm:$0xff]  }
  0x51   : > { %17411 = vmatprep.subr.bf16.mxu1 %v25562_v1  ;;  %2312 = vmatprep.subr.bf16.mxu0 %v18805_v45  ;;  %v18948_v45 = vld [vmem:[%s25551_s1 + $0x1a4] ss:$8 sps:$4 sm:$0xff]  }
  0x54   : > { %17427 = vmatpush1.bf16.msra.mxu1 %v18807_v46  ;;  %2313 = vmatpush1.bf16.msra.mxu0 %v18808_v47  ;;  %v18874_v46 = vld [vmem:[%s20896_s10 + $0x440] ss:$36 sps:$4 sm:$0xff]   ;;  %v18875_v47 = vld [vmem:[%s20903_s23 + $0x1b0] ss:$36 sps:$4 sm:$0xff]  }
  0x55   : > { %17412 = vmatprep.subr.bf16.mxu1 %v25562_v1  ;;  %2314 = vmatprep.subr.bf16.mxu0 %v18809_v48  ;;  %v18880_v48 = vld [vmem:[%s20896_s10 + $0x48c] ss:$36 sps:$4 sm:$0xff]  }
  0x58   : > { %17428 = vmatpush1.bf16.msra.mxu1 %v18811_v49  ;;  %2315 = vmatpush1.bf16.msra.mxu0 %v18812_v50  ;;  %v18882_v49 = vld [vmem:[%s20903_s23 + $0x1fc] ss:$36 sps:$4 sm:$0xff]  }
  0x59   : > { %5537 = vmatprep.subr.bf16.mxu1 %v25562_v1  ;;  %2517 = vmatprep.subr.bf16.mxu0 %v18829_v52  ;;  %v18897_v50 = vld [vmem:[%s25552_s2 + $0x160] sm:$0xff]   ;;  %v18964_v52 = vld [vmem:[%s25551_s1 + $0x1b4] ss:$8 sps:$4 sm:$0xff]  }
  0x5b   : > { %5449 = vmatmul.mubr.bf16.vlgmr.msra.gmra.mrb[0].mxu1 %v18813_v51  ;;  %2317 = vmatmul.mubr.bf16.vlgmr.msra.gmra.mrb[0].mxu0 %v18816_v53  ;;  %v18962_v51 = vld [vmem:[%s25551_s1 + $0x1b0] ss:$8 sps:$4 sm:$0xff]   ;;  %v18907_v53 = vld [vmem:[%s25552_s2 + $0x168] sm:$0xff]  }
  0x5c   : > { %5538 = vmatpush1.bf16.msra.mxu1 %v18819_v54  ;;  %5456 = vmatprep.mubr.bf16.mxu1 %v18820_v55  ;;  %v18884_v54 = vld [vmem:[%s20896_s10 + $0x488] ss:$36 sps:$4 sm:$0xff]   ;;  %v18886_v55 = vld [vmem:[%s20903_s23 + $0x1f8] ss:$36 sps:$4 sm:$0xff]  }
  0x5d   : > { %5539 = vmatprep.subr.bf16.mxu1 %v25562_v1  ;;  %2326 = vmatprep.mubr.bf16.mxu0 %v18823_v56  ;;  %v18891_v56 = vld [vmem:[%s20896_s10 + $0x4d4] ss:$36 sps:$4 sm:$0xff]  }
  0x5e   : > { %2518 = vmatpush1.bf16.msra.mxu0 %v18827_v57  ;;  %v18893_v57 = vld [vmem:[%s20903_s23 + $0x244] ss:$36 sps:$4 sm:$0xff]  }
  0x5f   : > { %2519 = vmatprep.subr.bf16.mxu0 %v18840_v58  ;;  %v18908_v58 = vld [vmem:[%s25552_s2 + $0x170] sm:$0xff]  }
  0x60   : > { %5540 = vmatpush1.bf16.msra.mxu1 %v18822_v59  ;;  %v18974_v59 = vld [vmem:[%s25551_s1 + $0x1c4] ss:$8 sps:$4 sm:$0xff]  }
  0x61   : > { %5541 = vmatprep.subr.bf16.mxu1 %v25562_v1 }
  0x62   : > { %2520 = vmatpush1.bf16.msra.mxu0 %v18838_v62  ;;  %v18918_v62 = vld [vmem:[%s25552_s2 + $0x178] sm:$0xff]  }
  0x63   : > { %5457 = vmatmul.mubr.bf16.gmra.mrb[4].mxu1 %v18825_v60  ;;  %2521 = vmatprep.subr.bf16.mxu0 %v18851_v63  ;;  %v18972_v60 = vld [vmem:[%s25551_s1 + $0x1c0] ss:$8 sps:$4 sm:$0xff]   ;;  %v18982_v63 = vld [vmem:[%s25551_s1 + $0x1d0] ss:$8 sps:$4 sm:$0xff]  }
  0x64   : > { %2327 = vmatmul.mubr.bf16.gmra.mrb[4].mxu0 %v18826_v61  ;;  %5542 = vmatpush1.bf16.msra.mxu1 %v18830_v0  ;;  %v18895_v61 = vld [vmem:[%s20896_s10 + $0x4d0] ss:$36 sps:$4 sm:$0xff]  }
  0x65   : > { %5464 = vmatprep.mubr.bf16.mxu1 %v18831_v2  ;;  %2336 = vmatprep.mubr.bf16.mxu0 %v18833_v3  ;;  %v18984_v0 = vld [vmem:[%s25551_s1 + $0x1d4] ss:$8 sps:$4 sm:$0xff]   ;;  %v18896_v2 = vld [vmem:[%s20903_s23 + $0x240] ss:$36 sps:$4 sm:$0xff]  }
  0x66   : > { %5543 = vmatprep.subr.bf16.mxu1 %v25562_v1  ;;  %2522 = vmatpush1.bf16.msra.mxu0 %v18849_v4  ;;  %v18901_v3 = vld [vmem:[%s20896_s10 + $0x51c] ss:$36 sps:$4 sm:$0xff]   ;;  %v18903_v4 = vld [vmem:[%s20903_s23 + $0x28c] ss:$36 sps:$4 sm:$0xff]  }
  0x67   : > { %2523 = vmatprep.subr.bf16.mxu0 %v18868_v5  ;;  %v18992_v5 = vld [vmem:[%s25551_s1 + $0x1e0] ss:$8 sps:$4 sm:$0xff]  }
  0x68   : > { %5544 = vmatpush1.bf16.msra.mxu1 %v18837_v6  ;;  %v18994_v6 = vld [vmem:[%s25551_s1 + $0x1e4] ss:$8 sps:$4 sm:$0xff]  }
  0x69   : > { %5545 = vmatprep.subr.bf16.mxu1 %v25562_v1 }
  0x6a   : > { %2524 = vmatpush1.bf16.msra.mxu0 %v18866_v9  ;;  %v19001_v9 = vld [vmem:[%s25551_s1 + $0x1f0] ss:$8 sps:$4 sm:$0xff]  }
  0x6b   : > { %5465 = vmatmul.mubr.bf16.gmra.mrb[8].mxu1 %v18835_v7  ;;  %2525 = vmatprep.subr.bf16.mxu0 %v18878_v10  ;;  %v18905_v7 = vld [vmem:[%s20896_s10 + $0x518] ss:$36 sps:$4 sm:$0xff]  }
  0x6c   : > { %2337 = vmatmul.mubr.bf16.gmra.mrb[8].mxu0 %v18836_v8  ;;  %5472 = vmatprep.mubr.bf16.mxu1 %v18841_v11  ;;  %v18906_v8 = vld [vmem:[%s20903_s23 + $0x288] ss:$36 sps:$4 sm:$0xff]   ;;  %v19003_v10 = vld [vmem:[%s25551_s1 + $0x1f4] ss:$8 sps:$4 sm:$0xff]  }
  0x6d   : > { %5546 = vmatpush1.bf16.msra.mxu1 %v18843_v12  ;;  %2346 = vmatprep.mubr.bf16.mxu0 %v18844_v13  ;;  %v18909_v11 = vld [vmem:[%s20896_s10 + $0x564] ss:$36 sps:$4 sm:$0xff]   ;;  %v18911_v12 = vld [vmem:[%s20903_s23 + $0x2d4] ss:$36 sps:$4 sm:$0xff]  }
  0x6e   : > { %5547 = vmatprep.subr.bf16.mxu1 %v25562_v1  ;;  %2526 = vmatpush1.bf16.msra.mxu0 %v18876_v14  ;;  %v18913_v13 = vld [vmem:[%s20896_s10 + $0x560] ss:$36 sps:$4 sm:$0xff]   ;;  %v18914_v14 = vld [vmem:[%s20903_s23 + $0x2d0] ss:$36 sps:$4 sm:$0xff]  }
  0x6f   : > { %2527 = vmatprep.subr.bf16.mxu0 %v18889_v15  ;;  %v18921_v15 = vld [vmem:[%s20896_s10 + $0x14] ss:$36 sps:$4 sm:$0xff]  }
  0x71   : > { %5548 = vmatpush1.bf16.msra.mxu1 %v18848_v17  ;;  %v18922_v17 = vld [vmem:[%s20903_s23 + $0x31c] ss:$36 sps:$4 sm:$0xff]  }
  0x72   : > { %5549 = vmatprep.subr.bf16.mxu1 %v25562_v1  ;;  %2528 = vmatpush1.bf16.msra.mxu0 %v18887_v20  ;;  %v18925_v20 = vld [vmem:[%s25552_s2 + $0x180] sm:$0xff]  }
  0x73   : > { %5473 = vmatmul.mubr.bf16.gmra.mrb[12].mxu1 %v18846_v16  ;;  %2529 = vmatprep.subr.bf16.mxu0 %v18900_v21  ;;  %v19020_v16 = vld [vmem:[%s25551_s1 + $0x204] ss:$8 sps:$4 sm:$0xff]   ;;  %v18929_v21 = vld [vmem:[%s20896_s10 + $0x5c] ss:$36 sps:$4 sm:$0xff]  }
  0x74   : > { %2347 = vmatmul.mubr.bf16.gmra.mrb[12].mxu0 %v18847_v18  ;;  %5480 = vmatprep.mubr.bf16.mxu1 %v18852_v19  ;;  %v18919_v18 = vld [vmem:[%s20896_s10 + $0x10] ss:$36 sps:$4 sm:$0xff]   ;;  %v18924_v19 = vld [vmem:[%s20903_s23 + $0x318] ss:$36 sps:$4 sm:$0xff]  }
  0x75   : > { %2356 = vmatprep.mubr.bf16.mxu0 %v18854_v22  ;;  %5550 = vmatpush1.bf16.msra.mxu1 %v18858_v23  ;;  %v18931_v22 = vld [vmem:[%s20903_s23 + $0x364] ss:$36 sps:$4 sm:$0xff]  }
  0x76   : > { %5551 = vmatprep.subr.bf16.mxu1 %v25562_v1  ;;  %2530 = vmatpush1.bf16.msra.mxu0 %v18898_v24  ;;  %v18935_v23 = vld [vmem:[%s25552_s2 + $0x188] sm:$0xff]   ;;  %v18933_v24 = vld [vmem:[%s20896_s10 + $0x58] ss:$36 sps:$4 sm:$0xff]  }
  0x77   : > { %2531 = vmatprep.subr.bf16.mxu0 %v18917_v26  ;;  %v18939_v26 = vld [vmem:[%s20896_s10 + $0xa4] ss:$36 sps:$4 sm:$0xff]  }
  0x79   : > { %5552 = vmatpush1.bf16.msra.mxu1 %v18864_v25  ;;  %v18934_v25 = vld [vmem:[%s20903_s23 + $0x360] ss:$36 sps:$4 sm:$0xff]  }
  0x7a   : > { %5553 = vmatprep.subr.bf16.mxu1 %v25562_v1  ;;  %2532 = vmatpush1.bf16.msra.mxu0 %v18915_v27  ;;  %v18941_v27 = vld [vmem:[%s20903_s23 + $0x3ac] ss:$36 sps:$4 sm:$0xff]  }
  0x7b   : > { %5481 = vmatmul.mubr.bf16.gmra.mrb[16].mxu1 %v18856_v28  ;;  %2533 = vmatprep.subr.bf16.mxu0 %v18928_v34  ;;  %v18945_v28 = vld [vmem:[%s25552_s2 + $0x190] sm:$0xff]   ;;  %v18971_v34 = vld [vmem:[%s25552_s2 + $0x1a0] sm:$0xff]  }
  0x7c   : > { %2357 = vmatmul.mubr.bf16.gmra.mrb[16].mxu0 %v18857_v29  ;;  %5488 = vmatprep.mubr.bf16.mxu1 %v18859_v30  ;;  %v18957_v29 = vld [vmem:[%s25552_s2 + $0x198] sm:$0xff]   ;;  %v18943_v30 = vld [vmem:[%s20896_s10 + $0xa0] ss:$36 sps:$4 sm:$0xff]  }
  0x7d   : > { %2366 = vmatprep.mubr.bf16.mxu0 %v18861_v31  ;;  %5554 = vmatpush1.bf16.msra.mxu1 %v18869_v32  ;;  %v18944_v31 = vld [vmem:[%s20903_s23 + $0x3a8] ss:$36 sps:$4 sm:$0xff]  }
  0x7e   : > { %5555 = vmatprep.subr.bf16.mxu1 %v25562_v1  ;;  %2534 = vmatpush1.bf16.msra.mxu0 %v18926_v33  ;;  %v18949_v32 = vld [vmem:[%s20896_s10 + $0xec] ss:$36 sps:$4 sm:$0xff]   ;;  %v18951_v33 = vld [vmem:[%s20903_s23 + $0x3f4] ss:$36 sps:$4 sm:$0xff]  }
  0x7f   : > { %2535 = vmatprep.subr.bf16.mxu0 %v18938_v41  ;;  %v19006_v41 = vld [vmem:[%s25552_s2 + $0x1b8] sm:$0xff]  }
  0x81   : > { %5556 = vmatpush1.bf16.msra.mxu1 %v18879_v36  ;;  %v18953_v36 = vld [vmem:[%s20896_s10 + $0xe8] ss:$36 sps:$4 sm:$0xff]  }
  0x82   : > { %5557 = vmatprep.subr.bf16.mxu1 %v25562_v1  ;;  %2536 = vmatpush1.bf16.msra.mxu0 %v18936_v40  ;;  %v18991_v40 = vld [vmem:[%s25552_s2 + $0x1b0] sm:$0xff]  }
  0x83   : > { %5489 = vmatmul.mubr.bf16.gmra.mrb[20].mxu1 %v18863_v35  ;;  %2537 = vmatprep.subr.bf16.mxu0 %v18948_v45  ;;  %v18981_v35 = vld [vmem:[%s25552_s2 + $0x1a8] sm:$0xff]  }
  0x84   : > { %2367 = vmatmul.mubr.bf16.gmra.mrb[20].mxu0 %v18865_v37  ;;  %5496 = vmatprep.mubr.bf16.mxu1 %v18870_v38  ;;  %v18954_v37 = vld [vmem:[%s20903_s23 + $0x3f0] ss:$36 sps:$4 sm:$0xff]   ;;  %v18967_v45 = vld [vmem:[%s20903_s23 + $0x484] ss:$36 sps:$4 sm:$0xff]  }
  0x85   : > { %2376 = vmatprep.mubr.bf16.mxu0 %v18872_v39  ;;  %5558 = vmatpush1.bf16.msra.mxu1 %v18885_v42  ;;  %v18955_v38 = vld [vmem:[%s20896_s10 + $0x134] ss:$36 sps:$4 sm:$0xff]   ;;  %v18958_v39 = vld [vmem:[%s20903_s23 + $0x43c] ss:$36 sps:$4 sm:$0xff]  }
  0x86   : > { %5559 = vmatprep.subr.bf16.mxu1 %v25562_v1  ;;  %2538 = vmatpush1.bf16.msra.mxu0 %v18946_v44  ;;  %v18960_v42 = vld [vmem:[%s20896_s10 + $0x130] ss:$36 sps:$4 sm:$0xff]   ;;  %v18965_v44 = vld [vmem:[%s20896_s10 + $0x17c] ss:$36 sps:$4 sm:$0xff]  }
  0x87   : > { %2539 = vmatprep.subr.bf16.mxu0 %v18964_v52  ;;  %v19037_v52 = vld [vmem:[%s25552_s2 + $0x1d0] sm:$0xff]  }
  0x89   : > { %5560 = vmatpush1.bf16.msra.mxu1 %v18890_v43  ;;  %v18961_v43 = vld [vmem:[%s20903_s23 + $0x438] ss:$36 sps:$4 sm:$0xff]  }
  0x8a   : > { %5561 = vmatprep.subr.bf16.mxu1 %v25562_v1  ;;  %2540 = vmatpush1.bf16.msra.mxu0 %v18962_v51  ;;  %v18977_v51 = vld [vmem:[%s20903_s23 + $0x4cc] ss:$36 sps:$4 sm:$0xff]  }
  0x8b   : > { %5497 = vmatmul.mubr.bf16.gmra.mrb[24].mxu1 %v18874_v46  ;;  %2541 = vmatprep.subr.bf16.mxu0 %v18974_v59  ;;  %v19017_v46 = vld [vmem:[%s25552_s2 + $0x1c0] sm:$0xff]   ;;  %v18989_v59 = vld [vmem:[%s20896_s10 + $0x208] ss:$36 sps:$4 sm:$0xff]  }
  0x8c   : > { %2377 = vmatmul.mubr.bf16.gmra.mrb[24].mxu0 %v18875_v47  ;;  %5504 = vmatprep.mubr.bf16.mxu1 %v18880_v48  ;;  %v18969_v47 = vld [vmem:[%s20896_s10 + $0x178] ss:$36 sps:$4 sm:$0xff]   ;;  %v19027_v48 = vld [vmem:[%s25552_s2 + $0x1c8] sm:$0xff]  }
  0x8d   : > { %2386 = vmatprep.mubr.bf16.mxu0 %v18882_v49  ;;  %5562 = vmatpush1.bf16.msra.mxu1 %v18897_v50  ;;  %v18970_v49 = vld [vmem:[%s20903_s23 + $0x480] ss:$36 sps:$4 sm:$0xff]  }
  0x8e   : > { %5563 = vmatprep.subr.bf16.mxu1 %v25562_v1  ;;  %2542 = vmatpush1.bf16.msra.mxu0 %v18972_v60  ;;  %v18975_v50 = vld [vmem:[%s20896_s10 + $0x1c4] ss:$36 sps:$4 sm:$0xff]  }
  0x8f   : > { %2543 = vmatprep.subr.bf16.mxu0 %v18984_v0  ;;  %v19073_v60 = vld [vmem:[%s25552_s2 + $0x1e8] sm:$0xff]   ;;  %v19083_v0 = vld [vmem:[%s25552_s2 + $0x1f0] sm:$0xff]  }
  0x91   : > { %5564 = vmatpush1.bf16.msra.mxu1 %v18907_v53  ;;  %v18979_v53 = vld [vmem:[%s20896_s10 + $0x1c0] ss:$36 sps:$4 sm:$0xff]  }
  0x92   : > { %5565 = vmatprep.subr.bf16.mxu1 %v25562_v1  ;;  %2544 = vmatpush1.bf16.msra.mxu0 %v18982_v63  ;;  %v18997_v63 = vld [vmem:[%s20903_s23 + $0x55c] ss:$36 sps:$4 sm:$0xff]  }
  0x93   : > { %5505 = vmatmul.mubr.bf16.gmra.mrb[28].mxu1 %v18884_v54  ;;  %2545 = vmatprep.subr.bf16.mxu0 %v18994_v6  ;;  %v19049_v54 = vld [vmem:[%s25552_s2 + $0x1d8] sm:$0xff]  }
  0x94   : > { %2387 = vmatmul.mubr.bf16.gmra.mrb[28].mxu0 %v18886_v55  ;;  %5512 = vmatprep.mubr.bf16.mxu1 %v18891_v56  ;;  %v18980_v55 = vld [vmem:[%s20903_s23 + $0x4c8] ss:$36 sps:$4 sm:$0xff]   ;;  %v19004_v6 = vld [vmem:[%s20896_s10 + $0x29c] ss:$36 sps:$4 sm:$0xff]  }
  0x95   : > { %2396 = vmatprep.mubr.bf16.mxu0 %v18893_v57  ;;  %5566 = vmatpush1.bf16.msra.mxu1 %v18908_v58  ;;  %v18985_v56 = vld [vmem:[%s20896_s10 + $0x20c] ss:$36 sps:$4 sm:$0xff]   ;;  %v18987_v57 = vld [vmem:[%s20903_s23 + $0x514] ss:$36 sps:$4 sm:$0xff]   ;;  %v19063_v58 = vld [vmem:[%s25552_s2 + $0x1e0] sm:$0xff]  }
  0x96   : > { %5567 = vmatprep.subr.bf16.mxu1 %v25562_v1  ;;  %2546 = vmatpush1.bf16.msra.mxu0 %v18992_v5  ;;  %v19000_v5 = vld [vmem:[%s20903_s23 + $0x558] ss:$36 sps:$4 sm:$0xff]  }
  0x97   : > { %2547 = vmatprep.subr.bf16.mxu0 %v19003_v10  ;;  %v19011_v10 = vld [vmem:[%s20896_s10 + $0x2e4] ss:$36 sps:$4 sm:$0xff]  }
  0x99   : > { %5568 = vmatpush1.bf16.msra.mxu1 %v18918_v62  ;;  %v18995_v62 = vld [vmem:[%s20896_s10 + $0x254] ss:$36 sps:$4 sm:$0xff]  }
  0x9a   : > { %5730 = vmatprep.subr.bf16.mxu1 %v25562_v1  ;;  %2548 = vmatpush1.bf16.msra.mxu0 %v19001_v9  ;;  %v19007_v9 = vld [vmem:[%s20903_s23 + $0x8] ss:$36 sps:$4 sm:$0xff]  }
  0x9b   : > { %5513 = vmatmul.mubr.bf16.gmra.mrb[32].mxu1 %v18895_v61  ;;  %2750 = vmatprep.subr.bf16.mxu0 %v19020_v16  ;;  %v18990_v61 = vld [vmem:[%s20903_s23 + $0x510] ss:$36 sps:$4 sm:$0xff]   ;;  %v19040_v16 = vld [vmem:[%s25551_s1 + $0x224] ss:$8 sps:$4 sm:$0xff]  }
  0x9c   : > { %2397 = vmatmul.mubr.bf16.gmra.mrb[32].mxu0 %v18896_v2  ;;  %5520 = vmatprep.mubr.bf16.mxu1 %v18901_v3  ;;  %v19095_v2 = vld [vmem:[%s25552_s2 + $0x1f8] sm:$0xff]   ;;  %v18999_v3 = vld [vmem:[%s20896_s10 + $0x250] ss:$36 sps:$4 sm:$0xff]  }
  0x9d   : > { %2406 = vmatprep.mubr.bf16.mxu0 %v18903_v4  ;;  %v21273_v4 = vld [vmem:[%s25552_s2 + $0x200] sm:$0xff]  }
  0xa3   : > { %5521 = vmatmul.mubr.bf16.gmra.mrb[36].mxu1 %v18905_v7  ;;  %v19009_v7 = vld [vmem:[%s20903_s23 + $0xc] ss:$36 sps:$4 sm:$0xff]  }
  0xa4   : > { %2407 = vmatmul.mubr.bf16.gmra.mrb[36].mxu0 %v18906_v8  ;;  %5528 = vmatprep.mubr.bf16.mxu1 %v18909_v11  ;;  %v19010_v8 = vld [vmem:[%s20896_s10 + $0x298] ss:$36 sps:$4 sm:$0xff]  }
  0xa5   : > { %2416 = vmatprep.mubr.bf16.mxu0 %v18911_v12  ;;  %v19013_v11 = vld [vmem:[%s20903_s23 + $0x54] ss:$36 sps:$4 sm:$0xff]   ;;  %v19018_v12 = vld [vmem:[%s25551_s1 + $0x200] ss:$8 sps:$4 sm:$0xff]  }
  0xab   : > { %5529 = vmatmul.mubr.bf16.gmra.mrb[40].mxu1 %v18913_v13  ;;  %v19030_v13 = vld [vmem:[%s25551_s1 + $0x214] ss:$8 sps:$4 sm:$0xff]  }
  0xac   : > { %2417 = vmatmul.mubr.bf16.gmra.mrb[40].mxu0 %v18914_v14  ;;  %5569 = vmatprep.mubr.bf16.mxu1 %v18921_v15  ;;  %v19015_v14 = vld [vmem:[%s20896_s10 + $0x2e0] ss:$36 sps:$4 sm:$0xff]   ;;  %v19028_v15 = vld [vmem:[%s25551_s1 + $0x210] ss:$8 sps:$4 sm:$0xff]  }
  0xad   : > { %2426 = vmatprep.mubr.bf16.mxu0 %v18922_v17  ;;  %v19016_v17 = vld [vmem:[%s20903_s23 + $0x50] ss:$36 sps:$4 sm:$0xff]  }
  0xb3   : > { %5570 = vmatmul.mubr.bf16.vlgmr.msra.gmra.mrb[44].mxu1 %v18919_v18  ;;  %v19021_v18 = vld [vmem:[%s20896_s10 + $0x32c] ss:$36 sps:$4 sm:$0xff]  }
  0xb4   : > { %2427 = vmatmul.mubr.bf16.gmra.mrb[44].mxu0 %v18924_v19  ;;  %5731 = vmatpush1.bf16.msra.mxu1 %v18925_v20  ;;  %v19023_v19 = vld [vmem:[%s20903_s23 + $0x9c] ss:$36 sps:$4 sm:$0xff]  }
  0xb5   : > { %5577 = vmatprep.mubr.bf16.mxu1 %v18929_v21  ;;  %2436 = vmatprep.mubr.bf16.mxu0 %v18931_v22  ;;  %v19038_v20 = vld [vmem:[%s25551_s1 + $0x220] ss:$8 sps:$4 sm:$0xff]   ;;  %v19056_v21 = vld [vmem:[%s25551_s1 + $0x234] ss:$8 sps:$4 sm:$0xff]  }
  0xb6   : > { %5732 = vmatprep.subr.bf16.mxu1 %v25562_v1  ;;  %v19025_v22 = vld [vmem:[%s20896_s10 + $0x328] ss:$36 sps:$4 sm:$0xff]  }
  0xb8   : > { %5733 = vmatpush1.bf16.msra.mxu1 %v18935_v23  ;;  %v19054_v23 = vld [vmem:[%s25551_s1 + $0x230] ss:$8 sps:$4 sm:$0xff]  }
  0xb9   : > { %5734 = vmatprep.subr.bf16.mxu1 %v25562_v1 }
  0xbb   : > { %5578 = vmatmul.mubr.bf16.gmra.mrb[48].mxu1 %v18933_v24  ;;  %v19066_v24 = vld [vmem:[%s25551_s1 + $0x244] ss:$8 sps:$4 sm:$0xff]  }
  0xbc   : > { %2437 = vmatmul.mubr.bf16.gmra.mrb[48].mxu0 %v18934_v25  ;;  %5585 = vmatprep.mubr.bf16.mxu1 %v18939_v26  ;;  %v19026_v25 = vld [vmem:[%s20903_s23 + $0x98] ss:$36 sps:$4 sm:$0xff]  }
  0xbd   : > { %2446 = vmatprep.mubr.bf16.mxu0 %v18941_v27  ;;  %5735 = vmatpush1.bf16.msra.mxu1 %v18945_v28  ;;  %v19031_v26 = vld [vmem:[%s20896_s10 + $0x374] ss:$36 sps:$4 sm:$0xff]   ;;  %v19033_v27 = vld [vmem:[%s20903_s23 + $0xe4] ss:$36 sps:$4 sm:$0xff]  }
  0xbe   : > { %5736 = vmatprep.subr.bf16.mxu1 %v25562_v1  ;;  %v19064_v28 = vld [vmem:[%s25551_s1 + $0x240] ss:$8 sps:$4 sm:$0xff]  }
  0xc1   : > { %5737 = vmatpush1.bf16.msra.mxu1 %v18957_v29  ;;  %v19076_v29 = vld [vmem:[%s25551_s1 + $0x254] ss:$8 sps:$4 sm:$0xff]  }
  0xc2   : > { %5738 = vmatprep.subr.bf16.mxu1 %v25562_v1 }
  0xc3   : > { %5586 = vmatmul.mubr.bf16.gmra.mrb[52].mxu1 %v18943_v30  ;;  %v19035_v30 = vld [vmem:[%s20896_s10 + $0x370] ss:$36 sps:$4 sm:$0xff]  }
  0xc4   : > { %2447 = vmatmul.mubr.bf16.gmra.mrb[52].mxu0 %v18944_v31  ;;  %5593 = vmatprep.mubr.bf16.mxu1 %v18949_v32  ;;  %v19074_v31 = vld [vmem:[%s25551_s1 + $0x250] ss:$8 sps:$4 sm:$0xff]   ;;  %v19086_v32 = vld [vmem:[%s25551_s1 + $0x264] ss:$8 sps:$4 sm:$0xff]  }
  0xc5   : > { %2456 = vmatprep.mubr.bf16.mxu0 %v18951_v33  ;;  %5739 = vmatpush1.bf16.msra.mxu1 %v18971_v34  ;;  %v19036_v33 = vld [vmem:[%s20903_s23 + $0xe0] ss:$36 sps:$4 sm:$0xff]  }
  0xc6   : > { %5740 = vmatprep.subr.bf16.mxu1 %v25562_v1  ;;  %v19041_v34 = vld [vmem:[%s20896_s10 + $0x3bc] ss:$36 sps:$4 sm:$0xff]  }
  0xc9   : > { %5741 = vmatpush1.bf16.msra.mxu1 %v18981_v35  ;;  %v19043_v35 = vld [vmem:[%s20903_s23 + $0x12c] ss:$36 sps:$4 sm:$0xff]  }
  0xca   : > { %5742 = vmatprep.subr.bf16.mxu1 %v25562_v1 }
  0xcb   : > { %5594 = vmatmul.mubr.bf16.gmra.mrb[56].mxu1 %v18953_v36  ;;  %v19084_v36 = vld [vmem:[%s25551_s1 + $0x260] ss:$8 sps:$4 sm:$0xff]  }
  0xcc   : > { %2457 = vmatmul.mubr.bf16.gmra.mrb[56].mxu0 %v18954_v37  ;;  %5601 = vmatprep.mubr.bf16.mxu1 %v18955_v38  ;;  %v19102_v37 = vld [vmem:[%s25551_s1 + $0x274] ss:$8 sps:$4 sm:$0xff]  }
  0xcd   : > { %2466 = vmatprep.mubr.bf16.mxu0 %v18958_v39  ;;  %5743 = vmatpush1.bf16.msra.mxu1 %v18991_v40  ;;  %v19045_v38 = vld [vmem:[%s20896_s10 + $0x3b8] ss:$36 sps:$4 sm:$0xff]   ;;  %v19112_v40 = vld [vmem:[%s25551_s1 + $0x284] ss:$8 sps:$4 sm:$0xff]  }
  0xce   : > { %5744 = vmatprep.subr.bf16.mxu1 %v25562_v1  ;;  %v19100_v39 = vld [vmem:[%s25551_s1 + $0x270] ss:$8 sps:$4 sm:$0xff]  }
  0xd1   : > { %5745 = vmatpush1.bf16.msra.mxu1 %v19006_v41  ;;  %v19046_v41 = vld [vmem:[%s20903_s23 + $0x128] ss:$36 sps:$4 sm:$0xff]  }
  0xd2   : > { %5746 = vmatprep.subr.bf16.mxu1 %v25562_v1 }
  0xd3   : > { %5602 = vmatmul.mubr.bf16.gmra.mrb[60].mxu1 %v18960_v42  ;;  %v19047_v42 = vld [vmem:[%s20896_s10 + $0x404] ss:$36 sps:$4 sm:$0xff]  }
  0xd4   : > { %2467 = vmatmul.mubr.bf16.gmra.mrb[60].mxu0 %v18961_v43  ;;  %5609 = vmatprep.mubr.bf16.mxu1 %v18965_v44  ;;  %v19050_v43 = vld [vmem:[%s20903_s23 + $0x174] ss:$36 sps:$4 sm:$0xff]   ;;  %v19110_v44 = vld [vmem:[%s25551_s1 + $0x280] ss:$8 sps:$4 sm:$0xff]  }
  0xd5   : > { %2476 = vmatprep.mubr.bf16.mxu0 %v18967_v45  ;;  %5747 = vmatpush1.bf16.msra.mxu1 %v19017_v46  ;;  %v19121_v45 = vld [vmem:[%s25551_s1 + $0x294] ss:$8 sps:$4 sm:$0xff]   ;;  %v19119_v46 = vld [vmem:[%s25551_s1 + $0x290] ss:$8 sps:$4 sm:$0xff]  }
  0xd6   : > { %5748 = vmatprep.subr.bf16.mxu1 %v25562_v1 }
  0xd9   : > { %5749 = vmatpush1.bf16.msra.mxu1 %v19027_v48  ;;  %v19131_v48 = vld [vmem:[%s25551_s1 + $0x2a4] ss:$8 sps:$4 sm:$0xff]  }
  0xda   : > { %5750 = vmatprep.subr.bf16.mxu1 %v25562_v1 }
  0xdb   : > { %5610 = vmatmul.mubr.bf16.gmra.mrb[64].mxu1 %v18969_v47  ;;  %v19052_v47 = vld [vmem:[%s20896_s10 + $0x400] ss:$36 sps:$4 sm:$0xff]  }
  0xdc   : > { %2477 = vmatmul.mubr.bf16.gmra.mrb[64].mxu0 %v18970_v49  ;;  %5617 = vmatprep.mubr.bf16.mxu1 %v18975_v50  ;;  %v19053_v49 = vld [vmem:[%s20903_s23 + $0x170] ss:$36 sps:$4 sm:$0xff]  }
  0xdd   : > { %2486 = vmatprep.mubr.bf16.mxu0 %v18977_v51  ;;  %5751 = vmatpush1.bf16.msra.mxu1 %v19037_v52  ;;  %v19057_v50 = vld [vmem:[%s20896_s10 + $0x44c] ss:$36 sps:$4 sm:$0xff]   ;;  %v19059_v51 = vld [vmem:[%s20903_s23 + $0x1bc] ss:$36 sps:$4 sm:$0xff]  }
  0xde   : > { %5752 = vmatprep.subr.bf16.mxu1 %v25562_v1  ;;  %v19129_v52 = vld [vmem:[%s25551_s1 + $0x2a0] ss:$8 sps:$4 sm:$0xff]  }
  0xe1   : > { %5753 = vmatpush1.bf16.msra.mxu1 %v19049_v54  ;;  %v19061_v54 = vld [vmem:[%s20896_s10 + $0x448] ss:$36 sps:$4 sm:$0xff]  }
  0xe2   : > { %5754 = vmatprep.subr.bf16.mxu1 %v25562_v1 }
  0xe3   : > { %5618 = vmatmul.mubr.bf16.gmra.mrb[68].mxu1 %v18979_v53  ;;  %v19146_v53 = vld [vmem:[%s25551_s1 + $0x2b4] ss:$8 sps:$4 sm:$0xff]  }
  0xe4   : > { %2487 = vmatmul.mubr.bf16.gmra.mrb[68].mxu0 %v18980_v55  ;;  %5625 = vmatprep.mubr.bf16.mxu1 %v18985_v56  ;;  %v19144_v55 = vld [vmem:[%s25551_s1 + $0x2b0] ss:$8 sps:$4 sm:$0xff]   ;;  %v19156_v56 = vld [vmem:[%s25551_s1 + $0x2c4] ss:$8 sps:$4 sm:$0xff]  }
  0xe5   : > { %2496 = vmatprep.mubr.bf16.mxu0 %v18987_v57  ;;  %5755 = vmatpush1.bf16.msra.mxu1 %v19063_v58  ;;  %v19062_v57 = vld [vmem:[%s20903_s23 + $0x1b8] ss:$36 sps:$4 sm:$0xff]  }
  0xe6   : > { %5756 = vmatprep.subr.bf16.mxu1 %v25562_v1  ;;  %v19067_v58 = vld [vmem:[%s20896_s10 + $0x494] ss:$36 sps:$4 sm:$0xff]  }
  0xe9   : > { %5757 = vmatpush1.bf16.msra.mxu1 %v19073_v60  ;;  %v19154_v60 = vld [vmem:[%s25551_s1 + $0x2c0] ss:$8 sps:$4 sm:$0xff]  }
  0xea   : > { %5758 = vmatprep.subr.bf16.mxu1 %v25562_v1 }
  0xeb   : > { %5626 = vmatmul.mubr.bf16.gmra.mrb[72].mxu1 %v18989_v59  ;;  %v19069_v59 = vld [vmem:[%s20903_s23 + $0x204] ss:$36 sps:$4 sm:$0xff]  }
  0xec   : > { %2497 = vmatmul.mubr.bf16.gmra.mrb[72].mxu0 %v18990_v61  ;;  %5633 = vmatprep.mubr.bf16.mxu1 %v18995_v62  ;;  %v19165_v61 = vld [vmem:[%s25551_s1 + $0x2d4] ss:$8 sps:$4 sm:$0xff]  }
  0xed   : > { %2506 = vmatprep.mubr.bf16.mxu0 %v18997_v63  ;;  %5759 = vmatpush1.bf16.msra.mxu1 %v19083_v0  ;;  %v19071_v62 = vld [vmem:[%s20896_s10 + $0x490] ss:$36 sps:$4 sm:$0xff]   ;;  %v19175_v0 = vld [vmem:[%s25551_s1 + $0x2e4] ss:$8 sps:$4 sm:$0xff]  }
  0xee   : > { %5760 = vmatprep.subr.bf16.mxu1 %v25562_v1  ;;  %v19163_v63 = vld [vmem:[%s25551_s1 + $0x2d0] ss:$8 sps:$4 sm:$0xff]  }
  0xf1   : > { %5761 = vmatpush1.bf16.msra.mxu1 %v19095_v2  ;;  %v19072_v2 = vld [vmem:[%s20903_s23 + $0x200] ss:$36 sps:$4 sm:$0xff]  }
  0xf2   : > { %17106 = vmatprep.subr.bf16.mxu1 %v21273_v4 }
  0xf3   : > { %5634 = vmatmul.mubr.bf16.gmra.mrb[76].mxu1 %v18999_v3  ;;  %v19077_v3 = vld [vmem:[%s20896_s10 + $0x4dc] ss:$36 sps:$4 sm:$0xff]  }
  0xf4   : > { %2507 = vmatmul.mubr.bf16.gmra.mrb[76].mxu0 %v19000_v5  ;;  %5641 = vmatprep.mubr.bf16.mxu1 %v19004_v6  ;;  %v19079_v5 = vld [vmem:[%s20903_s23 + $0x24c] ss:$36 sps:$4 sm:$0xff]   ;;  %v19173_v6 = vld [vmem:[%s25551_s1 + $0x2e0] ss:$8 sps:$4 sm:$0xff]  }
  0xf5   : > { %2549 = vmatprep.mubr.bf16.mxu0 %v19009_v7  ;;  %v19184_v7 = vld [vmem:[%s25551_s1 + $0x2f4] ss:$8 sps:$4 sm:$0xff]  }
  0xfb   : > { %5642 = vmatmul.mubr.bf16.gmra.mrb[0].mxu1 %v19010_v8  ;;  %v19081_v8 = vld [vmem:[%s20896_s10 + $0x4d8] ss:$36 sps:$4 sm:$0xff]  }
  0xfc   : > { %2550 = vmatmul.mubr.bf16.vlgmr.msra.gmra.mrb[0].mxu0 %v19007_v9  ;;  %5649 = vmatprep.mubr.bf16.mxu1 %v19011_v10  ;;  %v19182_v9 = vld [vmem:[%s25551_s1 + $0x2f0] ss:$8 sps:$4 sm:$0xff]   ;;  %v19200_v10 = vld [vmem:[%s25551_s1 + $0x304] ss:$8 sps:$4 sm:$0xff]  }
  0xfd   : > { %2559 = vmatprep.mubr.bf16.mxu0 %v19013_v11  ;;  %2751 = vmatpush1.bf16.msra.mxu0 %v19018_v12  ;;  %v19082_v11 = vld [vmem:[%s20903_s23 + $0x248] ss:$36 sps:$4 sm:$0xff]  }
  0xfe   : > { %2752 = vmatprep.subr.bf16.mxu0 %v19030_v13  ;;  %v19087_v12 = vld [vmem:[%s20896_s10 + $0x524] ss:$36 sps:$4 sm:$0xff]   ;;  %v19089_v13 = vld [vmem:[%s20903_s23 + $0x294] ss:$36 sps:$4 sm:$0xff]  }
 0x101   : > { %2753 = vmatpush1.bf16.msra.mxu0 %v19028_v15  ;;  %v19092_v15 = vld [vmem:[%s20903_s23 + $0x290] ss:$36 sps:$4 sm:$0xff]  }
 0x102   : > { %2754 = vmatprep.subr.bf16.mxu0 %v19040_v16  ;;  %v19093_v16 = vld [vmem:[%s20896_s10 + $0x56c] ss:$36 sps:$4 sm:$0xff]  }
 0x103   : > { %5650 = vmatmul.mubr.bf16.gmra.mrb[4].mxu1 %v19015_v14  ;;  %v19091_v14 = vld [vmem:[%s20896_s10 + $0x520] ss:$36 sps:$4 sm:$0xff]  }
 0x104   : > { %2560 = vmatmul.mubr.bf16.gmra.mrb[4].mxu0 %v19016_v17  ;;  %5657 = vmatprep.mubr.bf16.mxu1 %v19021_v18  ;;  %v19096_v17 = vld [vmem:[%s20903_s23 + $0x2dc] ss:$36 sps:$4 sm:$0xff]   ;;  %v19098_v18 = vld [vmem:[%s20896_s10 + $0x568] ss:$36 sps:$4 sm:$0xff]  }
 0x105   : > { %2569 = vmatprep.mubr.bf16.mxu0 %v19023_v19  ;;  %2755 = vmatpush1.bf16.msra.mxu0 %v19038_v20  ;;  %v19099_v19 = vld [vmem:[%s20903_s23 + $0x2d8] ss:$36 sps:$4 sm:$0xff]  }
 0x106   : > { %2756 = vmatprep.subr.bf16.mxu0 %v19056_v21  ;;  %v19105_v20 = vld [vmem:[%s20896_s10 + $0x1c] ss:$36 sps:$4 sm:$0xff]   ;;  %v19106_v21 = vld [vmem:[%s20903_s23 + $0x324] ss:$36 sps:$4 sm:$0xff]  }
 0x109   : > { %2757 = vmatpush1.bf16.msra.mxu0 %v19054_v23  ;;  %v19109_v23 = vld [vmem:[%s20903_s23 + $0x320] ss:$36 sps:$4 sm:$0xff]  }
 0x10a   : > { %2758 = vmatprep.subr.bf16.mxu0 %v19066_v24  ;;  %v19113_v24 = vld [vmem:[%s20896_s10 + $0x64] ss:$36 sps:$4 sm:$0xff]  }
 0x10b   : > { %5658 = vmatmul.mubr.bf16.gmra.mrb[8].mxu1 %v19025_v22  ;;  %v19103_v22 = vld [vmem:[%s20896_s10 + $0x18] ss:$36 sps:$4 sm:$0xff]  }
 0x10c   : > { %2570 = vmatmul.mubr.bf16.gmra.mrb[8].mxu0 %v19026_v25  ;;  %5665 = vmatprep.mubr.bf16.mxu1 %v19031_v26  ;;  %v19115_v25 = vld [vmem:[%s20903_s23 + $0x36c] ss:$36 sps:$4 sm:$0xff]  }
 0x10d   : > { %2579 = vmatprep.mubr.bf16.mxu0 %v19033_v27  ;;  %2759 = vmatpush1.bf16.msra.mxu0 %v19064_v28  ;;  %v19128_v26 = vld [vmem:[%s25552_s2 + $0x208] sm:$0xff]   ;;  %v19117_v27 = vld [vmem:[%s20896_s10 + $0x60] ss:$36 sps:$4 sm:$0xff]   ;;  %v19152_v28 = vld [vmem:[%s25552_s2 + $0x210] sm:$0xff]  }
 0x10e   : > { %2760 = vmatprep.subr.bf16.mxu0 %v19076_v29  ;;  %v19118_v29 = vld [vmem:[%s20903_s23 + $0x368] ss:$36 sps:$4 sm:$0xff]  }
 0x111   : > { %2761 = vmatpush1.bf16.msra.mxu0 %v19074_v31  ;;  %v19124_v31 = vld [vmem:[%s20903_s23 + $0x3b4] ss:$36 sps:$4 sm:$0xff]  }
 0x112   : > { %2762 = vmatprep.subr.bf16.mxu0 %v19086_v32  ;;  %v19126_v32 = vld [vmem:[%s20896_s10 + $0xa8] ss:$36 sps:$4 sm:$0xff]  }
 0x113   : > { %5666 = vmatmul.mubr.bf16.gmra.mrb[12].mxu1 %v19035_v30  ;;  %v19122_v30 = vld [vmem:[%s20896_s10 + $0xac] ss:$36 sps:$4 sm:$0xff]  }
 0x114   : > { %2580 = vmatmul.mubr.bf16.gmra.mrb[12].mxu0 %v19036_v33  ;;  %5673 = vmatprep.mubr.bf16.mxu1 %v19041_v34  ;;  %v19196_v33 = vld [vmem:[%s25552_s2 + $0x220] sm:$0xff]   ;;  %v19127_v34 = vld [vmem:[%s20903_s23 + $0x3b0] ss:$36 sps:$4 sm:$0xff]  }
 0x115   : > { %2589 = vmatprep.mubr.bf16.mxu0 %v19043_v35  ;;  %2763 = vmatpush1.bf16.msra.mxu0 %v19084_v36  ;;  %v19132_v35 = vld [vmem:[%s20896_s10 + $0xf4] ss:$36 sps:$4 sm:$0xff]   ;;  %v19134_v36 = vld [vmem:[%s20903_s23 + $0x3fc] ss:$36 sps:$4 sm:$0xff]  }
 0x116   : > { %2764 = vmatprep.subr.bf16.mxu0 %v19102_v37  ;;  %v19216_v37 = vld [vmem:[%s25552_s2 + $0x228] sm:$0xff]  }
 0x119   : > { %2765 = vmatpush1.bf16.msra.mxu0 %v19100_v39  ;;  %v19240_v39 = vld [vmem:[%s25552_s2 + $0x230] sm:$0xff]  }
 0x11a   : > { %2766 = vmatprep.subr.bf16.mxu0 %v19112_v40  ;;  %v19137_v40 = vld [vmem:[%s20903_s23 + $0x3f8] ss:$36 sps:$4 sm:$0xff]  }
 0x11b   : > { %5674 = vmatmul.mubr.bf16.gmra.mrb[16].mxu1 %v19045_v38  ;;  %v19136_v38 = vld [vmem:[%s20896_s10 + $0xf0] ss:$36 sps:$4 sm:$0xff]  }
 0x11c   : > { %2590 = vmatmul.mubr.bf16.gmra.mrb[16].mxu0 %v19046_v41  ;;  %5681 = vmatprep.mubr.bf16.mxu1 %v19047_v42  ;;  %v19138_v41 = vld [vmem:[%s20896_s10 + $0x13c] ss:$36 sps:$4 sm:$0xff]   ;;  %v19140_v42 = vld [vmem:[%s20903_s23 + $0x444] ss:$36 sps:$4 sm:$0xff]  }
 0x11d   : > { %2599 = vmatprep.mubr.bf16.mxu0 %v19050_v43  ;;  %2767 = vmatpush1.bf16.msra.mxu0 %v19110_v44  ;;  %v19260_v43 = vld [vmem:[%s25552_s2 + $0x238] sm:$0xff]  }
 0x11e   : > { %2768 = vmatprep.subr.bf16.mxu0 %v19121_v45  ;;  %v19142_v44 = vld [vmem:[%s20896_s10 + $0x138] ss:$36 sps:$4 sm:$0xff]   ;;  %v19143_v45 = vld [vmem:[%s20903_s23 + $0x440] ss:$36 sps:$4 sm:$0xff]  }
 0x121   : > { %2769 = vmatpush1.bf16.msra.mxu0 %v19119_v46  ;;  %v19147_v46 = vld [vmem:[%s20896_s10 + $0x184] ss:$36 sps:$4 sm:$0xff]  }
 0x122   : > { %2770 = vmatprep.subr.bf16.mxu0 %v19131_v48  ;;  %v19151_v48 = vld [vmem:[%s20896_s10 + $0x180] ss:$36 sps:$4 sm:$0xff]  }
 0x123   : > { %5682 = vmatmul.mubr.bf16.gmra.mrb[20].mxu1 %v19052_v47  ;;  %v19149_v47 = vld [vmem:[%s20903_s23 + $0x48c] ss:$36 sps:$4 sm:$0xff]  }
 0x124   : > { %2600 = vmatmul.mubr.bf16.gmra.mrb[20].mxu0 %v19053_v49  ;;  %5689 = vmatprep.mubr.bf16.mxu1 %v19057_v50  ;;  %v19153_v49 = vld [vmem:[%s20903_s23 + $0x488] ss:$36 sps:$4 sm:$0xff]  }
 0x125   : > { %2609 = vmatprep.mubr.bf16.mxu0 %v19059_v51  ;;  %2771 = vmatpush1.bf16.msra.mxu0 %v19129_v52  ;;  %v19157_v50 = vld [vmem:[%s20896_s10 + $0x1cc] ss:$36 sps:$4 sm:$0xff]   ;;  %v19159_v51 = vld [vmem:[%s20903_s23 + $0x4d4] ss:$36 sps:$4 sm:$0xff]  }
 0x126   : > { %2772 = vmatprep.subr.bf16.mxu0 %v19146_v53  ;;  %v19161_v52 = vld [vmem:[%s20896_s10 + $0x1c8] ss:$36 sps:$4 sm:$0xff]   ;;  %v19162_v53 = vld [vmem:[%s20903_s23 + $0x4d0] ss:$36 sps:$4 sm:$0xff]  }
 0x129   : > { %2773 = vmatpush1.bf16.msra.mxu0 %v19144_v55  ;;  %v19168_v55 = vld [vmem:[%s20903_s23 + $0x51c] ss:$36 sps:$4 sm:$0xff]  }
 0x12a   : > { %2774 = vmatprep.subr.bf16.mxu0 %v19156_v56  ;;  %v19170_v56 = vld [vmem:[%s20896_s10 + $0x210] ss:$36 sps:$4 sm:$0xff]  }
 0x12b   : > { %5690 = vmatmul.mubr.bf16.gmra.mrb[24].mxu1 %v19061_v54  ;;  %v19166_v54 = vld [vmem:[%s20896_s10 + $0x214] ss:$36 sps:$4 sm:$0xff]  }
 0x12c   : > { %2610 = vmatmul.mubr.bf16.gmra.mrb[24].mxu0 %v19062_v57  ;;  %5697 = vmatprep.mubr.bf16.mxu1 %v19067_v58  ;;  %v19171_v57 = vld [vmem:[%s20903_s23 + $0x518] ss:$36 sps:$4 sm:$0xff]  }
 0x12d   : > { %2619 = vmatprep.mubr.bf16.mxu0 %v19069_v59  ;;  %2775 = vmatpush1.bf16.msra.mxu0 %v19154_v60  ;;  %v19176_v58 = vld [vmem:[%s20896_s10 + $0x25c] ss:$36 sps:$4 sm:$0xff]   ;;  %v19178_v59 = vld [vmem:[%s20903_s23 + $0x564] ss:$36 sps:$4 sm:$0xff]  }
 0x12e   : > { %2776 = vmatprep.subr.bf16.mxu0 %v19165_v61  ;;  %v19180_v60 = vld [vmem:[%s20896_s10 + $0x258] ss:$36 sps:$4 sm:$0xff]   ;;  %v19181_v61 = vld [vmem:[%s20903_s23 + $0x560] ss:$36 sps:$4 sm:$0xff]  }
 0x131   : > { %2777 = vmatpush1.bf16.msra.mxu0 %v19163_v63  ;;  %v19189_v63 = vld [vmem:[%s20903_s23 + $0x14] ss:$36 sps:$4 sm:$0xff]  }
 0x132   : > { %2778 = vmatprep.subr.bf16.mxu0 %v19175_v0  ;;  %v19190_v0 = vld [vmem:[%s20896_s10 + $0x2a0] ss:$36 sps:$4 sm:$0xff]  }
 0x133   : > { %5698 = vmatmul.mubr.bf16.gmra.mrb[28].mxu1 %v19071_v62  ;;  %v19185_v62 = vld [vmem:[%s20896_s10 + $0x2a4] ss:$36 sps:$4 sm:$0xff]  }
 0x134   : > { %2620 = vmatmul.mubr.bf16.gmra.mrb[28].mxu0 %v19072_v2  ;;  %5705 = vmatprep.mubr.bf16.mxu1 %v19077_v3  ;;  %v19187_v2 = vld [vmem:[%s20903_s23 + $0x10] ss:$36 sps:$4 sm:$0xff]  }
 0x135   : > { %2629 = vmatprep.mubr.bf16.mxu0 %v19079_v5  ;;  %2779 = vmatpush1.bf16.msra.mxu0 %v19173_v6  ;;  %v19191_v3 = vld [vmem:[%s20896_s10 + $0x2ec] ss:$36 sps:$4 sm:$0xff]   ;;  %v19193_v5 = vld [vmem:[%s20903_s23 + $0x5c] ss:$36 sps:$4 sm:$0xff]  }
 0x136   : > { %2780 = vmatprep.subr.bf16.mxu0 %v19184_v7  ;;  %v19198_v6 = vld [vmem:[%s25551_s1 + $0x300] ss:$8 sps:$4 sm:$0xff]   ;;  %v19209_v7 = vld [vmem:[%s25551_s1 + $0x314] ss:$8 sps:$4 sm:$0xff]  }
 0x139   : > { %2781 = vmatpush1.bf16.msra.mxu0 %v19182_v9  ;;  %v19207_v9 = vld [vmem:[%s25551_s1 + $0x310] ss:$8 sps:$4 sm:$0xff]  }
 0x13a   : > { %2983 = vmatprep.subr.bf16.mxu0 %v19200_v10  ;;  %v19197_v10 = vld [vmem:[%s20903_s23 + $0x58] ss:$36 sps:$4 sm:$0xff]  }
 0x13b   : > { %5706 = vmatmul.mubr.bf16.gmra.mrb[32].mxu1 %v19081_v8  ;;  %v19195_v8 = vld [vmem:[%s20896_s10 + $0x2e8] ss:$36 sps:$4 sm:$0xff]  }
 0x13c   : > { %2630 = vmatmul.mubr.bf16.gmra.mrb[32].mxu0 %v19082_v11  ;;  %5713 = vmatprep.mubr.bf16.mxu1 %v19087_v12  ;;  %v19201_v11 = vld [vmem:[%s20896_s10 + $0x334] ss:$36 sps:$4 sm:$0xff]   ;;  %v19219_v12 = vld [vmem:[%s25551_s1 + $0x324] ss:$8 sps:$4 sm:$0xff]  }
 0x13d   : > { %2639 = vmatprep.mubr.bf16.mxu0 %v19089_v13  ;;  %v19203_v13 = vld [vmem:[%s20903_s23 + $0xa4] ss:$36 sps:$4 sm:$0xff]  }
 0x143   : > { %5714 = vmatmul.mubr.bf16.gmra.mrb[36].mxu1 %v19091_v14  ;;  %v19217_v14 = vld [vmem:[%s25551_s1 + $0x320] ss:$8 sps:$4 sm:$0xff]  }
 0x144   : > { %2640 = vmatmul.mubr.bf16.gmra.mrb[36].mxu0 %v19092_v15  ;;  %5721 = vmatprep.mubr.bf16.mxu1 %v19093_v16  ;;  %v19234_v15 = vld [vmem:[%s25551_s1 + $0x334] ss:$8 sps:$4 sm:$0xff]   ;;  %v19232_v16 = vld [vmem:[%s25551_s1 + $0x330] ss:$8 sps:$4 sm:$0xff]  }
 0x145   : > { %2649 = vmatprep.mubr.bf16.mxu0 %v19096_v17  ;;  %v19244_v17 = vld [vmem:[%s25551_s1 + $0x344] ss:$8 sps:$4 sm:$0xff]  }
 0x14b   : > { %5722 = vmatmul.mubr.bf16.gmra.mrb[40].mxu1 %v19098_v18  ;;  %v19205_v18 = vld [vmem:[%s20896_s10 + $0x330] ss:$36 sps:$4 sm:$0xff]  }
 0x14c   : > { %2650 = vmatmul.mubr.bf16.gmra.mrb[40].mxu0 %v19099_v19  ;;  %5762 = vmatprep.mubr.bf16.mxu1 %v19105_v20  ;;  %v19206_v19 = vld [vmem:[%s20903_s23 + $0xa0] ss:$36 sps:$4 sm:$0xff]  }
 0x14d   : > { %2659 = vmatprep.mubr.bf16.mxu0 %v19106_v21  ;;  %v19210_v20 = vld [vmem:[%s20896_s10 + $0x37c] ss:$36 sps:$4 sm:$0xff]   ;;  %v19212_v21 = vld [vmem:[%s20903_s23 + $0xec] ss:$36 sps:$4 sm:$0xff]  }
 0x153   : > { %5763 = vmatmul.mubr.bf16.vlgmr.msra.gmra.mrb[44].mxu1 %v19103_v22  ;;  %v19242_v22 = vld [vmem:[%s25551_s1 + $0x340] ss:$8 sps:$4 sm:$0xff]  }
 0x154   : > { %2660 = vmatmul.mubr.bf16.gmra.mrb[44].mxu0 %v19109_v23  ;;  %17107 = vmatpush3.bf16.msra.mxu1 %v21273_v4  ;;  %v19172_v4 = vld [vmem:[%s25552_s2 + $0x218] sm:$0xff]  }
 0x155   : > { %5770 = vmatprep.mubr.bf16.mxu1 %v19113_v24  ;;  %2669 = vmatprep.mubr.bf16.mxu0 %v19115_v25  ;;  %v19253_v23 = vld [vmem:[%s25551_s1 + $0x354] ss:$8 sps:$4 sm:$0xff]   ;;  %v19251_v24 = vld [vmem:[%s25551_s1 + $0x350] ss:$8 sps:$4 sm:$0xff]   ;;  %v19263_v25 = vld [vmem:[%s25551_s1 + $0x364] ss:$8 sps:$4 sm:$0xff]  }
 0x156   : > { %17108 = vmatprep.subr.bf16.mxu1 %v19128_v26 }
 0x158   : > { %17109 = vmatpush3.bf16.msra.mxu1 %v19128_v26  ;;  %v19214_v26 = vld [vmem:[%s20896_s10 + $0x378] ss:$36 sps:$4 sm:$0xff]  }
 0x159   : > { %17110 = vmatprep.subr.bf16.mxu1 %v19152_v28 }
 0x15b   : > { %5771 = vmatmul.mubr.bf16.gmra.mrb[48].mxu1 %v19117_v27  ;;  %v19215_v27 = vld [vmem:[%s20903_s23 + $0xe8] ss:$36 sps:$4 sm:$0xff]  }
 0x15c   : > { %2670 = vmatmul.mubr.bf16.gmra.mrb[48].mxu0 %v19118_v29  ;;  %5778 = vmatprep.mubr.bf16.mxu1 %v19122_v30  ;;  %v19222_v29 = vld [vmem:[%s20903_s23 + $0x134] ss:$36 sps:$4 sm:$0xff]   ;;  %v19261_v30 = vld [vmem:[%s25551_s1 + $0x360] ss:$8 sps:$4 sm:$0xff]  }
 0x15d   : > { %2679 = vmatprep.mubr.bf16.mxu0 %v19124_v31  ;;  %17111 = vmatpush3.bf16.msra.mxu1 %v19152_v28  ;;  %v19220_v28 = vld [vmem:[%s20896_s10 + $0x3c4] ss:$36 sps:$4 sm:$0xff]   ;;  %v19278_v31 = vld [vmem:[%s25551_s1 + $0x374] ss:$8 sps:$4 sm:$0xff]  }
 0x15e   : > { %17112 = vmatprep.subr.bf16.mxu1 %v19172_v4 }
 0x161   : > { %17113 = vmatpush3.bf16.msra.mxu1 %v19172_v4  ;;  %v19276_v4 = vld [vmem:[%s25551_s1 + $0x370] ss:$8 sps:$4 sm:$0xff]  }
 0x162   : > { %17114 = vmatprep.subr.bf16.mxu1 %v19196_v33 }
 0x163   : > { %5779 = vmatmul.mubr.bf16.gmra.mrb[52].mxu1 %v19126_v32  ;;  %v19224_v32 = vld [vmem:[%s20896_s10 + $0x3c0] ss:$36 sps:$4 sm:$0xff]  }
 0x164   : > { %2680 = vmatmul.mubr.bf16.gmra.mrb[52].mxu0 %v19127_v34  ;;  %5786 = vmatprep.mubr.bf16.mxu1 %v19132_v35  ;;  %v19225_v34 = vld [vmem:[%s20903_s23 + $0x130] ss:$36 sps:$4 sm:$0xff]  }
 0x165   : > { %2689 = vmatprep.mubr.bf16.mxu0 %v19134_v36  ;;  %17115 = vmatpush3.bf16.msra.mxu1 %v19196_v33  ;;  %v19287_v33 = vld [vmem:[%s25551_s1 + $0x384] ss:$8 sps:$4 sm:$0xff]   ;;  %v19228_v36 = vld [vmem:[%s20903_s23 + $0x17c] ss:$36 sps:$4 sm:$0xff]  }
 0x166   : > { %17116 = vmatprep.subr.bf16.mxu1 %v19216_v37  ;;  %v19226_v35 = vld [vmem:[%s20896_s10 + $0x40c] ss:$36 sps:$4 sm:$0xff]  }
 0x169   : > { %17117 = vmatpush3.bf16.msra.mxu1 %v19216_v37  ;;  %v19285_v37 = vld [vmem:[%s25551_s1 + $0x380] ss:$8 sps:$4 sm:$0xff]  }
 0x16a   : > { %17118 = vmatprep.subr.bf16.mxu1 %v19240_v39 }
 0x16b   : > { %5787 = vmatmul.mubr.bf16.gmra.mrb[56].mxu1 %v19136_v38  ;;  %v19297_v38 = vld [vmem:[%s25551_s1 + $0x394] ss:$8 sps:$4 sm:$0xff]  }
 0x16c   : > { %2690 = vmatmul.mubr.bf16.gmra.mrb[56].mxu0 %v19137_v40  ;;  %5794 = vmatprep.mubr.bf16.mxu1 %v19138_v41  ;;  %v19230_v40 = vld [vmem:[%s20896_s10 + $0x408] ss:$36 sps:$4 sm:$0xff]   ;;  %v19231_v41 = vld [vmem:[%s20903_s23 + $0x178] ss:$36 sps:$4 sm:$0xff]  }
 0x16d   : > { %2699 = vmatprep.mubr.bf16.mxu0 %v19140_v42  ;;  %17119 = vmatpush3.bf16.msra.mxu1 %v19240_v39  ;;  %v19295_v39 = vld [vmem:[%s25551_s1 + $0x390] ss:$8 sps:$4 sm:$0xff]   ;;  %v19307_v42 = vld [vmem:[%s25551_s1 + $0x3a4] ss:$8 sps:$4 sm:$0xff]  }
 0x16e   : > { %17120 = vmatprep.subr.bf16.mxu1 %v19260_v43 }
 0x171   : > { %17121 = vmatpush3.bf16.msra.mxu1 %v19260_v43  ;;  %v19235_v43 = vld [vmem:[%s20896_s10 + $0x454] ss:$36 sps:$4 sm:$0xff]  }
 0x172   : > { %7859 = vmatprep.subr.bf16.mxu1 %v25562_v1 }
 0x173   : > { %5795 = vmatmul.mubr.bf16.gmra.mrb[60].mxu1 %v19142_v44  ;;  %v19237_v44 = vld [vmem:[%s20903_s23 + $0x1c4] ss:$36 sps:$4 sm:$0xff]  }
 0x174   : > { %2700 = vmatmul.mubr.bf16.gmra.mrb[60].mxu0 %v19143_v45  ;;  %5802 = vmatprep.mubr.bf16.mxu1 %v19147_v46  ;;  %v19305_v45 = vld [vmem:[%s25551_s1 + $0x3a0] ss:$8 sps:$4 sm:$0xff]   ;;  %v19322_v46 = vld [vmem:[%s25551_s1 + $0x3b4] ss:$8 sps:$4 sm:$0xff]  }
 0x175   : > { %2709 = vmatprep.mubr.bf16.mxu0 %v19149_v47  ;;  %v19320_v47 = vld [vmem:[%s25551_s1 + $0x3b0] ss:$8 sps:$4 sm:$0xff]  }
 0x17b   : > { %5803 = vmatmul.mubr.bf16.gmra.mrb[64].mxu1 %v19151_v48  ;;  %v19332_v48 = vld [vmem:[%s25551_s1 + $0x3c4] ss:$8 sps:$4 sm:$0xff]  }
 0x17c   : > { %2710 = vmatmul.mubr.bf16.gmra.mrb[64].mxu0 %v19153_v49  ;;  %5810 = vmatprep.mubr.bf16.mxu1 %v19157_v50  ;;  %v19239_v49 = vld [vmem:[%s20896_s10 + $0x450] ss:$36 sps:$4 sm:$0xff]   ;;  %v19241_v50 = vld [vmem:[%s20903_s23 + $0x1c0] ss:$36 sps:$4 sm:$0xff]  }
 0x17d   : > { %2719 = vmatprep.mubr.bf16.mxu0 %v19159_v51  ;;  %v19245_v51 = vld [vmem:[%s20896_s10 + $0x49c] ss:$36 sps:$4 sm:$0xff]  }
 0x183   : > { %5811 = vmatmul.mubr.bf16.gmra.mrb[68].mxu1 %v19161_v52  ;;  %v19247_v52 = vld [vmem:[%s20903_s23 + $0x20c] ss:$36 sps:$4 sm:$0xff]  }
 0x184   : > { %2720 = vmatmul.mubr.bf16.gmra.mrb[68].mxu0 %v19162_v53  ;;  %5818 = vmatprep.mubr.bf16.mxu1 %v19166_v54  ;;  %v19330_v53 = vld [vmem:[%s25551_s1 + $0x3c0] ss:$8 sps:$4 sm:$0xff]   ;;  %v19342_v54 = vld [vmem:[%s25551_s1 + $0x3d4] ss:$8 sps:$4 sm:$0xff]  }
 0x185   : > { %2729 = vmatprep.mubr.bf16.mxu0 %v19168_v55  ;;  %v19340_v55 = vld [vmem:[%s25551_s1 + $0x3d0] ss:$8 sps:$4 sm:$0xff]  }
 0x18b   : > { %5819 = vmatmul.mubr.bf16.gmra.mrb[72].mxu1 %v19170_v56  ;;  %v19249_v56 = vld [vmem:[%s20896_s10 + $0x498] ss:$36 sps:$4 sm:$0xff]  }
 0x18c   : > { %2730 = vmatmul.mubr.bf16.gmra.mrb[72].mxu0 %v19171_v57  ;;  %5826 = vmatprep.mubr.bf16.mxu1 %v19176_v58  ;;  %v19250_v57 = vld [vmem:[%s20903_s23 + $0x208] ss:$36 sps:$4 sm:$0xff]  }
 0x18d   : > { %2739 = vmatprep.mubr.bf16.mxu0 %v19178_v59  ;;  %v19352_v58 = vld [vmem:[%s25551_s1 + $0x3e4] ss:$8 sps:$4 sm:$0xff]  }
 0x18e   : > { %v19254_v59 = vld [vmem:[%s20896_s10 + $0x4e4] ss:$36 sps:$4 sm:$0xff]  }
 0x193   : > { %5827 = vmatmul.mubr.bf16.gmra.mrb[76].mxu1 %v19180_v60  ;;  %v19256_v60 = vld [vmem:[%s20903_s23 + $0x254] ss:$36 sps:$4 sm:$0xff]  }
 0x194   : > { %2740 = vmatmul.mubr.bf16.gmra.mrb[76].mxu0 %v19181_v61  ;;  %5834 = vmatprep.mubr.bf16.mxu1 %v19185_v62  ;;  %v19350_v61 = vld [vmem:[%s25551_s1 + $0x3e0] ss:$8 sps:$4 sm:$0xff]   ;;  %v19361_v62 = vld [vmem:[%s25551_s1 + $0x3f4] ss:$8 sps:$4 sm:$0xff]  }
 0x195   : > { %2782 = vmatprep.mubr.bf16.mxu0 %v19189_v63  ;;  %v19359_v63 = vld [vmem:[%s25551_s1 + $0x3f0] ss:$8 sps:$4 sm:$0xff]  }
 0x19b   : > { %5835 = vmatmul.mubr.bf16.gmra.mrb[0].mxu1 %v19190_v0  ;;  %v19378_v0 = vld [vmem:[%s25551_s1 + $0x404] ss:$8 sps:$4 sm:$0xff]  }
 0x19c   : > { %2783 = vmatmul.mubr.bf16.vlgmr.msra.gmra.mrb[0].mxu0 %v19187_v2  ;;  %5842 = vmatprep.mubr.bf16.mxu1 %v19191_v3  ;;  %v19258_v2 = vld [vmem:[%s20896_s10 + $0x4e0] ss:$36 sps:$4 sm:$0xff]   ;;  %v19259_v3 = vld [vmem:[%s20903_s23 + $0x250] ss:$36 sps:$4 sm:$0xff]  }
 0x19d   : > { %2792 = vmatprep.mubr.bf16.mxu0 %v19193_v5  ;;  %2984 = vmatpush1.bf16.msra.mxu0 %v19198_v6  ;;  %v19264_v5 = vld [vmem:[%s20896_s10 + $0x52c] ss:$36 sps:$4 sm:$0xff]   ;;  %v19266_v6 = vld [vmem:[%s20903_s23 + $0x29c] ss:$36 sps:$4 sm:$0xff]  }
 0x19e   : > { %2985 = vmatprep.subr.bf16.mxu0 %v19209_v7  ;;  %v19268_v7 = vld [vmem:[%s20896_s10 + $0x528] ss:$36 sps:$4 sm:$0xff]  }
 0x1a1   : > { %2986 = vmatpush1.bf16.msra.mxu0 %v19207_v9  ;;  %v19270_v9 = vld [vmem:[%s20896_s10 + $0x574] ss:$36 sps:$4 sm:$0xff]  }
 0x1a2   : > { %2987 = vmatprep.subr.bf16.mxu0 %v19219_v12  ;;  %v19275_v12 = vld [vmem:[%s20903_s23 + $0x2e0] ss:$36 sps:$4 sm:$0xff]  }
 0x1a3   : > { %5843 = vmatmul.mubr.bf16.gmra.mrb[4].mxu1 %v19195_v8  ;;  %v19269_v8 = vld [vmem:[%s20903_s23 + $0x298] ss:$36 sps:$4 sm:$0xff]  }
 0x1a4   : > { %2793 = vmatmul.mubr.bf16.gmra.mrb[4].mxu0 %v19197_v10  ;;  %5850 = vmatprep.mubr.bf16.mxu1 %v19201_v11  ;;  %v19272_v10 = vld [vmem:[%s20903_s23 + $0x2e4] ss:$36 sps:$4 sm:$0xff]   ;;  %v19274_v11 = vld [vmem:[%s20896_s10 + $0x570] ss:$36 sps:$4 sm:$0xff]  }
 0x1a5   : > { %2802 = vmatprep.mubr.bf16.mxu0 %v19203_v13  ;;  %2988 = vmatpush1.bf16.msra.mxu0 %v19217_v14  ;;  %v19279_v13 = vld [vmem:[%s20896_s10 + $0x20] ss:$36 sps:$4 sm:$0xff]   ;;  %v19280_v14 = vld [vmem:[%s20903_s23 + $0x32c] ss:$36 sps:$4 sm:$0xff]  }
 0x1a6   : > { %2989 = vmatprep.subr.bf16.mxu0 %v19234_v15  ;;  %v19282_v15 = vld [vmem:[%s20896_s10 + $0x68] ss:$36 sps:$4 sm:$0xff]  }
 0x1a9   : > { %2990 = vmatpush1.bf16.msra.mxu0 %v19232_v16  ;;  %v19283_v16 = vld [vmem:[%s20903_s23 + $0x328] ss:$36 sps:$4 sm:$0xff]  }
 0x1aa   : > { %2991 = vmatprep.subr.bf16.mxu0 %v19244_v17  ;;  %v19284_v17 = vld [vmem:[%s25552_s2 + $0x240] sm:$0xff]  }
 0x1ab   : > { %5851 = vmatmul.mubr.bf16.gmra.mrb[8].mxu1 %v19205_v18  ;;  %v19289_v18 = vld [vmem:[%s20896_s10 + $0xb0] ss:$36 sps:$4 sm:$0xff]  }
 0x1ac   : > { %2803 = vmatmul.mubr.bf16.gmra.mrb[8].mxu0 %v19206_v19  ;;  %5858 = vmatprep.mubr.bf16.mxu1 %v19210_v20  ;;  %v19288_v19 = vld [vmem:[%s25552_s2 + $0x248] sm:$0xff]   ;;  %v19290_v20 = vld [vmem:[%s20903_s23 + $0x374] ss:$36 sps:$4 sm:$0xff]  }
 0x1ad   : > { %2812 = vmatprep.mubr.bf16.mxu0 %v19212_v21  ;;  %2992 = vmatpush1.bf16.msra.mxu0 %v19242_v22  ;;  %v19292_v21 = vld [vmem:[%s20896_s10 + $0xf8] ss:$36 sps:$4 sm:$0xff]   ;;  %v19293_v22 = vld [vmem:[%s20903_s23 + $0x370] ss:$36 sps:$4 sm:$0xff]  }
 0x1ae   : > { %2993 = vmatprep.subr.bf16.mxu0 %v19253_v23  ;;  %v19294_v23 = vld [vmem:[%s25552_s2 + $0x250] sm:$0xff]  }
 0x1b1   : > { %2994 = vmatpush1.bf16.msra.mxu0 %v19251_v24  ;;  %v19298_v24 = vld [vmem:[%s20896_s10 + $0x140] ss:$36 sps:$4 sm:$0xff]  }
 0x1b2   : > { %2995 = vmatprep.subr.bf16.mxu0 %v19263_v25  ;;  %v19299_v25 = vld [vmem:[%s20903_s23 + $0x3bc] ss:$36 sps:$4 sm:$0xff]  }
 0x1b3   : > { %5859 = vmatmul.mubr.bf16.gmra.mrb[12].mxu1 %v19214_v26  ;;  %v19302_v26 = vld [vmem:[%s25552_s2 + $0x258] sm:$0xff]  }
 0x1b4   : > { %2813 = vmatmul.mubr.bf16.gmra.mrb[12].mxu0 %v19215_v27  ;;  %5866 = vmatprep.mubr.bf16.mxu1 %v19220_v28  ;;  %v19301_v27 = vld [vmem:[%s20896_s10 + $0x188] ss:$36 sps:$4 sm:$0xff]   ;;  %v19303_v28 = vld [vmem:[%s20903_s23 + $0x3b8] ss:$36 sps:$4 sm:$0xff]  }
 0x1b5   : > { %2822 = vmatprep.mubr.bf16.mxu0 %v19222_v29  ;;  %2996 = vmatpush1.bf16.msra.mxu0 %v19261_v30  ;;  %v19304_v29 = vld [vmem:[%s25552_s2 + $0x260] sm:$0xff]   ;;  %v19308_v30 = vld [vmem:[%s20896_s10 + $0x1d0] ss:$36 sps:$4 sm:$0xff]  }
 0x1b6   : > { %2997 = vmatprep.subr.bf16.mxu0 %v19278_v31  ;;  %v19309_v31 = vld [vmem:[%s20903_s23 + $0x404] ss:$36 sps:$4 sm:$0xff]  }
 0x1b9   : > { %2998 = vmatpush1.bf16.msra.mxu0 %v19276_v4  ;;  %v19313_v4 = vld [vmem:[%s25552_s2 + $0x268] sm:$0xff]  }
 0x1ba   : > { %2999 = vmatprep.subr.bf16.mxu0 %v19287_v33  ;;  %v19312_v33 = vld [vmem:[%s20903_s23 + $0x400] ss:$36 sps:$4 sm:$0xff]  }
 0x1bb   : > { %5867 = vmatmul.mubr.bf16.gmra.mrb[16].mxu1 %v19224_v32  ;;  %v19311_v32 = vld [vmem:[%s20896_s10 + $0x218] ss:$36 sps:$4 sm:$0xff]  }
 0x1bc   : > { %2823 = vmatmul.mubr.bf16.gmra.mrb[16].mxu0 %v19225_v34  ;;  %5874 = vmatprep.mubr.bf16.mxu1 %v19226_v35  ;;  %v19314_v34 = vld [vmem:[%s20896_s10 + $0x260] ss:$36 sps:$4 sm:$0xff]   ;;  %v19315_v35 = vld [vmem:[%s25552_s2 + $0x270] sm:$0xff]  }
 0x1bd   : > { %2832 = vmatprep.mubr.bf16.mxu0 %v19228_v36  ;;  %3000 = vmatpush1.bf16.msra.mxu0 %v19285_v37  ;;  %v19316_v36 = vld [vmem:[%s20903_s23 + $0x44c] ss:$36 sps:$4 sm:$0xff]   ;;  %v19323_v37 = vld [vmem:[%s25552_s2 + $0x278] sm:$0xff]  }
 0x1be   : > { %3001 = vmatprep.subr.bf16.mxu0 %v19297_v38  ;;  %v19318_v38 = vld [vmem:[%s20896_s10 + $0x2a8] ss:$36 sps:$4 sm:$0xff]  }
 0x1c1   : > { %3002 = vmatpush1.bf16.msra.mxu0 %v19295_v39  ;;  %v19319_v39 = vld [vmem:[%s20903_s23 + $0x448] ss:$36 sps:$4 sm:$0xff]  }
 0x1c2   : > { %3003 = vmatprep.subr.bf16.mxu0 %v19307_v42  ;;  %v19329_v42 = vld [vmem:[%s25552_s2 + $0x280] sm:$0xff]  }
 0x1c3   : > { %5875 = vmatmul.mubr.bf16.gmra.mrb[20].mxu1 %v19230_v40  ;;  %v19324_v40 = vld [vmem:[%s20896_s10 + $0x2f0] ss:$36 sps:$4 sm:$0xff]  }
 0x1c4   : > { %2833 = vmatmul.mubr.bf16.gmra.mrb[20].mxu0 %v19231_v41  ;;  %5882 = vmatprep.mubr.bf16.mxu1 %v19235_v43  ;;  %v19325_v41 = vld [vmem:[%s20903_s23 + $0x494] ss:$36 sps:$4 sm:$0xff]   ;;  %v19333_v43 = vld [vmem:[%s25552_s2 + $0x288] sm:$0xff]  }
 0x1c5   : > { %2842 = vmatprep.mubr.bf16.mxu0 %v19237_v44  ;;  %3004 = vmatpush1.bf16.msra.mxu0 %v19305_v45  ;;  %v19327_v44 = vld [vmem:[%s20896_s10 + $0x338] ss:$36 sps:$4 sm:$0xff]   ;;  %v19328_v45 = vld [vmem:[%s20903_s23 + $0x490] ss:$36 sps:$4 sm:$0xff]  }
 0x1c6   : > { %3005 = vmatprep.subr.bf16.mxu0 %v19322_v46  ;;  %v19334_v46 = vld [vmem:[%s20896_s10 + $0x380] ss:$36 sps:$4 sm:$0xff]  }
 0x1c9   : > { %3006 = vmatpush1.bf16.msra.mxu0 %v19320_v47  ;;  %v19335_v47 = vld [vmem:[%s20903_s23 + $0x4dc] ss:$36 sps:$4 sm:$0xff]  }
 0x1ca   : > { %3007 = vmatprep.subr.bf16.mxu0 %v19332_v48  ;;  %v19339_v48 = vld [vmem:[%s25552_s2 + $0x290] sm:$0xff]  }
 0x1cb   : > { %5883 = vmatmul.mubr.bf16.gmra.mrb[24].mxu1 %v19239_v49  ;;  %v19347_v49 = vld [vmem:[%s25552_s2 + $0x298] sm:$0xff]  }
 0x1cc   : > { %2843 = vmatmul.mubr.bf16.gmra.mrb[24].mxu0 %v19241_v50  ;;  %5890 = vmatprep.mubr.bf16.mxu1 %v19245_v51  ;;  %v19337_v50 = vld [vmem:[%s20896_s10 + $0x3c8] ss:$36 sps:$4 sm:$0xff]   ;;  %v19338_v51 = vld [vmem:[%s20903_s23 + $0x4d8] ss:$36 sps:$4 sm:$0xff]  }
 0x1cd   : > { %2852 = vmatprep.mubr.bf16.mxu0 %v19247_v52  ;;  %3008 = vmatpush1.bf16.msra.mxu0 %v19330_v53  ;;  %v19343_v52 = vld [vmem:[%s20896_s10 + $0x410] ss:$36 sps:$4 sm:$0xff]   ;;  %v19344_v53 = vld [vmem:[%s20903_s23 + $0x524] ss:$36 sps:$4 sm:$0xff]  }
 0x1ce   : > { %3009 = vmatprep.subr.bf16.mxu0 %v19342_v54  ;;  %v19349_v54 = vld [vmem:[%s25552_s2 + $0x2a0] sm:$0xff]  }
 0x1d1   : > { %3010 = vmatpush1.bf16.msra.mxu0 %v19340_v55  ;;  %v19358_v55 = vld [vmem:[%s25552_s2 + $0x2a8] sm:$0xff]  }
 0x1d2   : > { %3011 = vmatprep.subr.bf16.mxu0 %v19352_v58  ;;  %v19348_v58 = vld [vmem:[%s20903_s23 + $0x520] ss:$36 sps:$4 sm:$0xff]  }
 0x1d3   : > { %5891 = vmatmul.mubr.bf16.gmra.mrb[28].mxu1 %v19249_v56  ;;  %v19346_v56 = vld [vmem:[%s20896_s10 + $0x458] ss:$36 sps:$4 sm:$0xff]  }
 0x1d4   : > { %2853 = vmatmul.mubr.bf16.gmra.mrb[28].mxu0 %v19250_v57  ;;  %5898 = vmatprep.mubr.bf16.mxu1 %v19254_v59 }
 0x1d5   : > { %2862 = vmatprep.mubr.bf16.mxu0 %v19256_v60  ;;  %3012 = vmatpush1.bf16.msra.mxu0 %v19350_v61  ;;  %v19353_v61 = vld [vmem:[%s20896_s10 + $0x4a0] ss:$36 sps:$4 sm:$0xff]  }
 0x1d6   : > { %3013 = vmatprep.subr.bf16.mxu0 %v19361_v62 }
 0x1d9   : > { %3014 = vmatpush1.bf16.msra.mxu0 %v19359_v63  ;;  %v19354_v63 = vld [vmem:[%s20903_s23 + $0x56c] ss:$36 sps:$4 sm:$0xff]  }
 0x1da   : > { %3216 = vmatprep.subr.bf16.mxu0 %v19378_v0  ;;  %v19363_v0 = vld [vmem:[%s25552_s2 + $0x2b0] sm:$0xff]  }
 0x1db   : > { %5899 = vmatmul.mubr.bf16.gmra.mrb[32].mxu1 %v19258_v2  ;;  %v19368_v2 = vld [vmem:[%s25552_s2 + $0x2b8] sm:$0xff]  }
 0x1dc   : > { %2863 = vmatmul.mubr.bf16.gmra.mrb[32].mxu0 %v19259_v3  ;;  %5906 = vmatprep.mubr.bf16.mxu1 %v19264_v5  ;;  %v19356_v3 = vld [vmem:[%s20896_s10 + $0x4e8] ss:$36 sps:$4 sm:$0xff]  }
 0x1dd   : > { %2872 = vmatprep.mubr.bf16.mxu0 %v19266_v6  ;;  %v19357_v6 = vld [vmem:[%s20903_s23 + $0x568] ss:$36 sps:$4 sm:$0xff]  }
 0x1e3   : > { %5907 = vmatmul.mubr.bf16.gmra.mrb[36].mxu1 %v19268_v7 }
 0x1e4   : > { %2873 = vmatmul.mubr.bf16.gmra.mrb[36].mxu0 %v19269_v8  ;;  %5914 = vmatprep.mubr.bf16.mxu1 %v19270_v9  ;;  %v19362_v9 = vld [vmem:[%s20896_s10 + $0x530] ss:$36 sps:$4 sm:$0xff]  }
 0x1e5   : > { %2882 = vmatprep.mubr.bf16.mxu0 %v19272_v10 }
 0x1eb   : > { %5915 = vmatmul.mubr.bf16.gmra.mrb[40].mxu1 %v19274_v11  ;;  %v19366_v11 = vld [vmem:[%s20903_s23 + $0x1c] ss:$36 sps:$4 sm:$0xff]  }
 0x1ec   : > { %2883 = vmatmul.mubr.bf16.gmra.mrb[40].mxu0 %v19275_v12  ;;  %17122 = vmatprep.mubr.bf16.mxu1 %v19279_v13  ;;  %v19367_v12 = vld [vmem:[%s20896_s10 + $0x578] ss:$36 sps:$4 sm:$0xff]  }
 0x1ed   : > { %2892 = vmatprep.mubr.bf16.mxu0 %v19280_v14  ;;  %v19364_v14 = vld [vmem:[%s20903_s23 + $0x18] ss:$36 sps:$4 sm:$0xff]  }
 0x1f3   : > { %17123 = vmatmul.mubr.bf16.vlgmr.msra.gmra.mrb[80].mxu1 %v19282_v15 }
 0x1f4   : > { %2893 = vmatmul.mubr.bf16.gmra.mrb[44].mxu0 %v19283_v16  ;;  %7860 = vmatpush1.bf16.msra.mxu1 %v19284_v17  ;;  %v19371_v17 = vld [vmem:[%s21563_s13 + $0x4] ss:$36 sps:$4 sm:$0xff]  }
 0x1f5   : > { %7861 = vmatprep.subr.bf16.mxu1 %v25562_v1  ;;  %17126 = vmatprep.mubr.bf16.mxu1 %v19289_v18 }
 0x1f6   : > { %2902 = vmatprep.mubr.bf16.mxu0 %v19290_v20  ;;  %v19376_v20 = vld [vmem:[%s25551_s1 + $0x400] ss:$8 sps:$4 sm:$0xff]  }
 0x1f8   : > { %7862 = vmatpush1.bf16.msra.mxu1 %v19288_v19  ;;  %v19372_v19 = vld [vmem:[%s20903_s23 + $0x64] ss:$36 sps:$4 sm:$0xff]  }
 0x1f9   : > { %7863 = vmatprep.subr.bf16.mxu1 %v25562_v1 }
 0x1fb   : > { %17127 = vmatmul.mubr.bf16.gmra.mrb[84].mxu1 %v19292_v21  ;;  %v19395_v21 = vld [vmem:[%s25551_s1 + $0x414] ss:$8 sps:$4 sm:$0xff]  }
 0x1fc   : > { %2903 = vmatmul.mubr.bf16.gmra.mrb[48].mxu0 %v19293_v22  ;;  %7864 = vmatpush1.bf16.msra.mxu1 %v19294_v23  ;;  %v19393_v22 = vld [vmem:[%s25551_s1 + $0x410] ss:$8 sps:$4 sm:$0xff]   ;;  %v19418_v23 = vld [vmem:[%s25551_s1 + $0x424] ss:$8 sps:$4 sm:$0xff]  }
 0x1fd   : > { %17130 = vmatprep.mubr.bf16.mxu1 %v19298_v24  ;;  %7865 = vmatprep.subr.bf16.mxu1 %v25562_v1  ;;  %v19369_v24 = vld [vmem:[%s21563_s13] ss:$36 sps:$4 sm:$0xff]  }
 0x1fe   : > { %2912 = vmatprep.mubr.bf16.mxu0 %v19299_v25 }
 0x200   : > { %7866 = vmatpush1.bf16.msra.mxu1 %v19302_v26  ;;  %v19374_v26 = vld [vmem:[%s20903_s23 + $0x60] ss:$36 sps:$4 sm:$0xff]  }
 0x201   : > { %7867 = vmatprep.subr.bf16.mxu1 %v25562_v1 }
 0x203   : > { %17131 = vmatmul.mubr.bf16.gmra.mrb[88].mxu1 %v19301_v27 }
 0x204   : > { %2913 = vmatmul.mubr.bf16.gmra.mrb[52].mxu0 %v19303_v28  ;;  %7868 = vmatpush1.bf16.msra.mxu1 %v19304_v29  ;;  %v19375_v29 = vld [vmem:[%s25552_s2 + $0x2c0] sm:$0xff]  }
 0x205   : > { %17134 = vmatprep.mubr.bf16.mxu1 %v19308_v30  ;;  %2922 = vmatprep.mubr.bf16.mxu0 %v19309_v31  ;;  %v19379_v30 = vld [vmem:[%s21563_s13 + $0x4c] ss:$36 sps:$4 sm:$0xff]  }
 0x206   : > { %7869 = vmatprep.subr.bf16.mxu1 %v25562_v1 }
 0x208   : > { %7870 = vmatpush1.bf16.msra.mxu1 %v19313_v4  ;;  %v19381_v4 = vld [vmem:[%s20903_s23 + $0xac] ss:$36 sps:$4 sm:$0xff]  }
 0x209   : > { %7871 = vmatprep.subr.bf16.mxu1 %v25562_v1 }
 0x20b   : > { %17135 = vmatmul.mubr.bf16.gmra.mrb[92].mxu1 %v19311_v32  ;;  %v19416_v32 = vld [vmem:[%s25551_s1 + $0x420] ss:$8 sps:$4 sm:$0xff]  }
 0x20c   : > { %2923 = vmatmul.mubr.bf16.gmra.mrb[56].mxu0 %v19312_v33  ;;  %17138 = vmatprep.mubr.bf16.mxu1 %v19314_v34  ;;  %v19385_v33 = vld [vmem:[%s25552_s2 + $0x2c8] sm:$0xff]   ;;  %v19435_v34 = vld [vmem:[%s25551_s1 + $0x434] ss:$8 sps:$4 sm:$0xff]  }
 0x20d   : > { %7872 = vmatpush1.bf16.msra.mxu1 %v19315_v35  ;;  %2932 = vmatprep.mubr.bf16.mxu0 %v19316_v36  ;;  %v19433_v35 = vld [vmem:[%s25551_s1 + $0x430] ss:$8 sps:$4 sm:$0xff]   ;;  %v19383_v36 = vld [vmem:[%s21563_s13 + $0x48] ss:$36 sps:$4 sm:$0xff]  }
 0x20e   : > { %7873 = vmatprep.subr.bf16.mxu1 %v25562_v1 }
 0x211   : > { %7874 = vmatpush1.bf16.msra.mxu1 %v19323_v37  ;;  %v19458_v37 = vld [vmem:[%s25551_s1 + $0x444] ss:$8 sps:$4 sm:$0xff]  }
 0x212   : > { %7875 = vmatprep.subr.bf16.mxu1 %v25562_v1 }
 0x213   : > { %17139 = vmatmul.mubr.bf16.gmra.mrb[96].mxu1 %v19318_v38 }
 0x214   : > { %2933 = vmatmul.mubr.bf16.gmra.mrb[60].mxu0 %v19319_v39  ;;  %17142 = vmatprep.mubr.bf16.mxu1 %v19324_v40  ;;  %v19384_v39 = vld [vmem:[%s20903_s23 + $0xa8] ss:$36 sps:$4 sm:$0xff]  }
 0x215   : > { %2942 = vmatprep.mubr.bf16.mxu0 %v19325_v41  ;;  %7876 = vmatpush1.bf16.msra.mxu1 %v19329_v42  ;;  %v19386_v42 = vld [vmem:[%s21563_s13 + $0x94] ss:$36 sps:$4 sm:$0xff]  }
 0x216   : > { %7877 = vmatprep.subr.bf16.mxu1 %v25562_v1 }
 0x219   : > { %7878 = vmatpush1.bf16.msra.mxu1 %v19333_v43 }
 0x21a   : > { %7879 = vmatprep.subr.bf16.mxu1 %v25562_v1 }
 0x21b   : > { %17143 = vmatmul.mubr.bf16.gmra.mrb[100].mxu1 %v19327_v44  ;;  %v19388_v44 = vld [vmem:[%s20903_s23 + $0xf4] ss:$36 sps:$4 sm:$0xff]  }
 0x21c   : > { %2943 = vmatmul.mubr.bf16.gmra.mrb[64].mxu0 %v19328_v45  ;;  %17146 = vmatprep.mubr.bf16.mxu1 %v19334_v46  ;;  %v19392_v45 = vld [vmem:[%s25552_s2 + $0x2d0] sm:$0xff]   ;;  %v19456_v46 = vld [vmem:[%s25551_s1 + $0x440] ss:$8 sps:$4 sm:$0xff]  }
 0x21d   : > { %2952 = vmatprep.mubr.bf16.mxu0 %v19335_v47  ;;  %7880 = vmatpush1.bf16.msra.mxu1 %v19339_v48  ;;  %v19475_v47 = vld [vmem:[%s25551_s1 + $0x454] ss:$8 sps:$4 sm:$0xff]  }
 0x21e   : > { %7881 = vmatprep.subr.bf16.mxu1 %v25562_v1  ;;  %v19404_v48 = vld [vmem:[%s25552_s2 + $0x2d8] sm:$0xff]  }
 0x221   : > { %7882 = vmatpush1.bf16.msra.mxu1 %v19347_v49  ;;  %v19473_v49 = vld [vmem:[%s25551_s1 + $0x450] ss:$8 sps:$4 sm:$0xff]  }
 0x222   : > { %7883 = vmatprep.subr.bf16.mxu1 %v25562_v1 }
 0x223   : > { %17147 = vmatmul.mubr.bf16.gmra.mrb[104].mxu1 %v19337_v50  ;;  %v19390_v50 = vld [vmem:[%s21563_s13 + $0x90] ss:$36 sps:$4 sm:$0xff]  }
 0x224   : > { %2953 = vmatmul.mubr.bf16.gmra.mrb[68].mxu0 %v19338_v51  ;;  %17150 = vmatprep.mubr.bf16.mxu1 %v19343_v52  ;;  %v19498_v51 = vld [vmem:[%s25551_s1 + $0x464] ss:$8 sps:$4 sm:$0xff]  }
 0x225   : > { %2962 = vmatprep.mubr.bf16.mxu0 %v19344_v53  ;;  %7884 = vmatpush1.bf16.msra.mxu1 %v19349_v54  ;;  %v19391_v53 = vld [vmem:[%s20903_s23 + $0xf0] ss:$36 sps:$4 sm:$0xff]  }
 0x226   : > { %v21706_v57 = vpop.f32.mrb[44].mxu1  ;;  %7885 = vmatprep.subr.bf16.mxu1 %v25562_v1 }
 0x227   : > { %25672 = vst [vmem:[#allocation10_spill] sm:$0xff] %v21706_v57  ;;  %v5766_v59 = vpop.f32.mrb[45].mxu1  ;;  %v19775_v57 = vld [vmem:[%s20896_s10 + $0xc] ss:$36 sps:$4 sm:$0xff]  }
 0x228   : > { %v21710_v60 = vpop.f32.mrb[46].mxu1  ;;  %v19398_v59 = vld [vmem:[%s20903_s23 + $0x13c] ss:$36 sps:$4 sm:$0xff]  }
 0x229   : > { %25673 = vst [vmem:[#allocation11_spill] sm:$0xff] %v21710_v60  ;;  %v5769_v62 = vpop.f32.mrb[47].mxu1  ;;  %7886 = vmatpush1.bf16.msra.mxu1 %v19358_v55  ;;  %v19766_v60 = vld [vmem:[%s20896_s10 + $0x55c] ss:$36 sps:$4 sm:$0xff]  }
 0x22a   : > { %7887 = vmatprep.subr.bf16.mxu1 %v25562_v1  ;;  %v19496_v62 = vld [vmem:[%s25551_s1 + $0x460] ss:$8 sps:$4 sm:$0xff]  }
 0x22b   : > { %17151 = vmatmul.mubr.bf16.gmra.mrb[108].mxu1 %v19346_v56  ;;  %v19396_v56 = vld [vmem:[%s21563_s13 + $0xdc] ss:$36 sps:$4 sm:$0xff]  }
 0x22c   : > { %2963 = vmatmul.mubr.bf16.gmra.mrb[72].mxu0 %v19348_v58  ;;  %17154 = vmatprep.mubr.bf16.mxu1 %v19353_v61  ;;  %v19415_v61 = vld [vmem:[%s25552_s2 + $0x2e0] sm:$0xff]  }
 0x22d   : > { %2972 = vmatprep.mubr.bf16.mxu0 %v19354_v63  ;;  %7888 = vmatpush1.bf16.msra.mxu1 %v19363_v0  ;;  %v19515_v63 = vld [vmem:[%s25551_s1 + $0x474] ss:$8 sps:$4 sm:$0xff]   ;;  %v19425_v0 = vld [vmem:[%s25552_s2 + $0x2e8] sm:$0xff]  }
 0x22e   : > { %v21722_v5 = vpop.f32.mrb[48].mxu1  ;;  %7889 = vmatprep.subr.bf16.mxu1 %v25562_v1 }
 0x22f   : > { %25674 = vst [vmem:[#allocation12_spill] sm:$0xff] %v21722_v5  ;;  %v5774_v7 = vpop.f32.mrb[49].mxu1 }
 0x230   : > { %v21726_v8 = vpop.f32.mrb[50].mxu1  ;;  %v19401_v7 = vld [vmem:[%s20903_s23 + $0x138] ss:$36 sps:$4 sm:$0xff]  }
 0x231   : > { %25675 = vst [vmem:[#allocation13_spill] sm:$0xff] %v21726_v8  ;;  %v5777_v10 = vpop.f32.mrb[51].mxu1  ;;  %7890 = vmatpush1.bf16.msra.mxu1 %v19368_v2  ;;  %v19513_v2 = vld [vmem:[%s25551_s1 + $0x470] ss:$8 sps:$4 sm:$0xff]  }
 0x232   : > { %8052 = vmatprep.subr.bf16.mxu1 %v25562_v1 }
 0x233   : > { %17155 = vmatmul.mubr.bf16.gmra.mrb[112].mxu1 %v19356_v3  ;;  %v19400_v3 = vld [vmem:[%s21563_s13 + $0xd8] ss:$36 sps:$4 sm:$0xff]  }
 0x234   : > { %2973 = vmatmul.mubr.bf16.gmra.mrb[76].mxu0 %v19357_v6  ;;  %17158 = vmatprep.mubr.bf16.mxu1 %v19362_v9 }
 0x235   : > { %3015 = vmatprep.mubr.bf16.mxu0 %v19366_v11  ;;  %v19402_v11 = vld [vmem:[%s21563_s13 + $0x124] ss:$36 sps:$4 sm:$0xff]  }
 0x236   : > { %v21732_v13 = vpop.f32.mrb[52].mxu1 }
 0x237   : > { %25676 = vst [vmem:[#allocation14_spill] sm:$0xff] %v21732_v13  ;;  %v5782_v15 = vpop.f32.mrb[53].mxu1 }
 0x238   : > { %v21735_v16 = vpop.f32.mrb[54].mxu1  ;;  %v19432_v15 = vld [vmem:[%s25552_s2 + $0x2f0] sm:$0xff]  }
 0x239   : > { %25677 = vst [vmem:[#allocation15_spill] sm:$0xff] %v21735_v16  ;;  %v5785_v18 = vpop.f32.mrb[55].mxu1  ;;  %v19634_v16 = vld [vmem:[%s21563_s13 + $0x564] ss:$36 sps:$4 sm:$0xff]  }
 0x23a   : > { %v19407_v18 = vld [vmem:[%s21563_s13 + $0x120] ss:$36 sps:$4 sm:$0xff]  }
 0x23b   : > { %17159 = vmatmul.mubr.bf16.gmra.mrb[116].mxu1 %v19367_v12 }
 0x23c   : > { %3016 = vmatmul.mubr.bf16.vlgmr.msra.gmra.mrb[0].mxu0 %v19364_v14  ;;  %7891 = vmatprep.mubr.bf16.mxu1 %v19371_v17  ;;  %v19405_v14 = vld [vmem:[%s20903_s23 + $0x184] ss:$36 sps:$4 sm:$0xff]   ;;  %v19444_v17 = vld [vmem:[%s25552_s2 + $0x2f8] sm:$0xff]  }
 0x23d   : > { %3025 = vmatprep.mubr.bf16.mxu0 %v19372_v19  ;;  %3217 = vmatpush1.bf16.msra.mxu0 %v19376_v20  ;;  %v19408_v20 = vld [vmem:[%s20903_s23 + $0x180] ss:$36 sps:$4 sm:$0xff]  }
 0x23e   : > { %v21752_v25 = vpop.f32.mrb[56].mxu1  ;;  %3218 = vmatprep.subr.bf16.mxu0 %v19395_v21 }
 0x23f   : > { %25678 = vst [vmem:[#allocation16_spill] sm:$0xff] %v21752_v25  ;;  %v5790_v27 = vpop.f32.mrb[57].mxu1  ;;  %v19630_v25 = vld [vmem:[%s25552_s2 + $0x70] sm:$0xff]  }
 0x240   : > { %v21755_v28 = vpop.f32.mrb[58].mxu1  ;;  %v19455_v27 = vld [vmem:[%s25552_s2 + $0x300] sm:$0xff]  }
 0x241   : > { %25679 = vst [vmem:[#allocation17_spill] sm:$0xff] %v21755_v28  ;;  %v5793_v31 = vpop.f32.mrb[59].mxu1  ;;  %3219 = vmatpush1.bf16.msra.mxu0 %v19393_v22  ;;  %v19567_v28 = vld [vmem:[%s21563_s13 + $0x204] ss:$36 sps:$4 sm:$0xff]  }
 0x242   : > { %3220 = vmatprep.subr.bf16.mxu0 %v19418_v23  ;;  %v19409_v23 = vld [vmem:[%s21563_s13 + $0x16c] ss:$36 sps:$4 sm:$0xff]  }
 0x243   : > { %7892 = vmatmul.mubr.bf16.vlgmr.msra.gmra.mrb[120].mxu1 %v19369_v24 }
 0x244   : > { %3026 = vmatmul.mubr.bf16.gmra.mrb[4].mxu0 %v19374_v26  ;;  %8053 = vmatpush1.bf16.msra.mxu1 %v19375_v29  ;;  %v19411_v26 = vld [vmem:[%s20903_s23 + $0x1cc] ss:$36 sps:$4 sm:$0xff]  }
 0x245   : > { %7899 = vmatprep.mubr.bf16.mxu1 %v19379_v30  ;;  %3035 = vmatprep.mubr.bf16.mxu0 %v19381_v4  ;;  %v19465_v29 = vld [vmem:[%s25552_s2 + $0x308] sm:$0xff]  }
 0x246   : > { %v21778_v38 = vpop.f32.mrb[60].mxu1  ;;  %8054 = vmatprep.subr.bf16.mxu1 %v25562_v1  ;;  %3221 = vmatpush1.bf16.msra.mxu0 %v19416_v32  ;;  %v19413_v30 = vld [vmem:[%s21563_s13 + $0x168] ss:$36 sps:$4 sm:$0xff]  }
 0x247   : > { %25680 = vst [vmem:[#allocation18_spill] sm:$0xff] %v21778_v38  ;;  %v5798_v40 = vpop.f32.mrb[61].mxu1  ;;  %3222 = vmatprep.subr.bf16.mxu0 %v19435_v34  ;;  %v19414_v4 = vld [vmem:[%s20903_s23 + $0x1c8] ss:$36 sps:$4 sm:$0xff]   ;;  %v19419_v34 = vld [vmem:[%s21563_s13 + $0x1b4] ss:$36 sps:$4 sm:$0xff]  }
 0x248   : > { %v21782_v41 = vpop.f32.mrb[62].mxu1  ;;  %8055 = vmatpush1.bf16.msra.mxu1 %v19385_v33  ;;  %v19423_v40 = vld [vmem:[%s21563_s13 + $0x1b0] ss:$36 sps:$4 sm:$0xff]   ;;  %v19616_v38 = vld [vmem:[%s25552_s2 + $0x60] sm:$0xff]  }
 0x249   : > { %25681 = vst [vmem:[#allocation19_spill] sm:$0xff] %v21782_v41  ;;  %v5801_v43 = vpop.f32.mrb[63].mxu1  ;;  %8056 = vmatprep.subr.bf16.mxu1 %v25562_v1  ;;  %v19561_v41 = vld [vmem:[%s21563_s13 + $0x1bc] ss:$36 sps:$4 sm:$0xff]  }
 0x24a   : > { %3223 = vmatpush1.bf16.msra.mxu0 %v19433_v35  ;;  %v19424_v43 = vld [vmem:[%s20903_s23 + $0x210] ss:$36 sps:$4 sm:$0xff]  }
 0x24b   : > { %7900 = vmatmul.mubr.bf16.gmra.mrb[124].mxu1 %v19383_v36  ;;  %3224 = vmatprep.subr.bf16.mxu0 %v19458_v37  ;;  %v19421_v36 = vld [vmem:[%s20903_s23 + $0x214] ss:$36 sps:$4 sm:$0xff]  }
 0x24c   : > { %3036 = vmatmul.mubr.bf16.gmra.mrb[8].mxu0 %v19384_v39  ;;  %7907 = vmatprep.mubr.bf16.mxu1 %v19386_v42  ;;  %v19472_v37 = vld [vmem:[%s25552_s2 + $0x310] sm:$0xff]   ;;  %v19484_v39 = vld [vmem:[%s25552_s2 + $0x318] sm:$0xff]  }
 0x24d   : > { %3045 = vmatprep.mubr.bf16.mxu0 %v19388_v44  ;;  %8057 = vmatpush1.bf16.msra.mxu1 %v19392_v45 }
 0x24e   : > { %v21806_v52 = vpop.f32.mrb[64].mxu1  ;;  %8058 = vmatprep.subr.bf16.mxu1 %v25562_v1  ;;  %3225 = vmatpush1.bf16.msra.mxu0 %v19456_v46  ;;  %v19426_v46 = vld [vmem:[%s21563_s13 + $0x1fc] ss:$36 sps:$4 sm:$0xff]  }
 0x24f   : > { %25682 = vst [vmem:[#allocation20_spill] sm:$0xff] %v21806_v52  ;;  %v5806_v54 = vpop.f32.mrb[65].mxu1  ;;  %3226 = vmatprep.subr.bf16.mxu0 %v19475_v47  ;;  %v19602_v52 = vld [vmem:[%s25552_s2 + $0x50] sm:$0xff]  }
 0x250   : > { %v21810_v55 = vpop.f32.mrb[66].mxu1  ;;  %v19431_v54 = vld [vmem:[%s20903_s23 + $0x258] ss:$36 sps:$4 sm:$0xff]  }
 0x251   : > { %25683 = vst [vmem:[#allocation21_spill] sm:$0xff] %v21810_v55  ;;  %v5809_v58 = vpop.f32.mrb[67].mxu1  ;;  %8059 = vmatpush1.bf16.msra.mxu1 %v19404_v48  ;;  %v19428_v48 = vld [vmem:[%s20903_s23 + $0x25c] ss:$36 sps:$4 sm:$0xff]   ;;  %v19555_v55 = vld [vmem:[%s21563_s13 + $0x174] ss:$36 sps:$4 sm:$0xff]  }
 0x252   : > { %8060 = vmatprep.subr.bf16.mxu1 %v25562_v1  ;;  %3227 = vmatpush1.bf16.msra.mxu0 %v19473_v49  ;;  %v19495_v49 = vld [vmem:[%s25552_s2 + $0x320] sm:$0xff]  }
 0x253   : > { %7908 = vmatmul.mubr.bf16.gmra.mrb[128].mxu1 %v19390_v50  ;;  %3228 = vmatprep.subr.bf16.mxu0 %v19498_v51  ;;  %v19505_v50 = vld [vmem:[%s25552_s2 + $0x328] sm:$0xff]   ;;  %v19430_v51 = vld [vmem:[%s21563_s13 + $0x1f8] ss:$36 sps:$4 sm:$0xff]  }
 0x254   : > { %3046 = vmatmul.mubr.bf16.gmra.mrb[12].mxu0 %v19391_v53  ;;  %7915 = vmatprep.mubr.bf16.mxu1 %v19396_v56 }
 0x255   : > { %3055 = vmatprep.mubr.bf16.mxu0 %v19398_v59  ;;  %8061 = vmatpush1.bf16.msra.mxu1 %v19415_v61  ;;  %v19436_v59 = vld [vmem:[%s21563_s13 + $0x244] ss:$36 sps:$4 sm:$0xff]  }
 0x256   : > { %v21831_v6 = vpop.f32.mrb[68].mxu1  ;;  %8062 = vmatprep.subr.bf16.mxu1 %v25562_v1  ;;  %3229 = vmatpush1.bf16.msra.mxu0 %v19496_v62  ;;  %v19438_v62 = vld [vmem:[%s20903_s23 + $0x2a4] ss:$36 sps:$4 sm:$0xff]  }
 0x257   : > { %25684 = vst [vmem:[#allocation22_spill] sm:$0xff] %v21831_v6  ;;  %v5814_v9 = vpop.f32.mrb[69].mxu1  ;;  %3230 = vmatprep.subr.bf16.mxu0 %v19515_v63  ;;  %v19512_v63 = vld [vmem:[%s25552_s2 + $0x330] sm:$0xff]   ;;  %v19588_v6 = vld [vmem:[%s25552_s2 + $0x40] sm:$0xff]  }
 0x258   : > { %v21835_v10 = vpop.f32.mrb[70].mxu1 }
 0x259   : > { %25685 = vst [vmem:[#allocation23_spill] sm:$0xff] %v21835_v10  ;;  %v5817_v12 = vpop.f32.mrb[71].mxu1  ;;  %8063 = vmatpush1.bf16.msra.mxu1 %v19425_v0  ;;  %v19524_v0 = vld [vmem:[%s25552_s2 + $0x338] sm:$0xff]   ;;  %v19549_v10 = vld [vmem:[%s21563_s13 + $0x12c] ss:$36 sps:$4 sm:$0xff]  }
 0x25a   : > { %8064 = vmatprep.subr.bf16.mxu1 %v25562_v1  ;;  %3231 = vmatpush1.bf16.msra.mxu0 %v19513_v2  ;;  %v19440_v2 = vld [vmem:[%s21563_s13 + $0x240] ss:$36 sps:$4 sm:$0xff]   ;;  %v19442_v12 = vld [vmem:[%s21563_s13 + $0x28c] ss:$36 sps:$4 sm:$0xff]  }
 0x25b   : > { %7916 = vmatmul.mubr.bf16.gmra.mrb[132].mxu1 %v19400_v3  ;;  %5151 = vmatprep.subr.bf16.mxu0 %v25562_v1 }
 0x25c   : > { %3056 = vmatmul.mubr.bf16.gmra.mrb[16].mxu0 %v19401_v7  ;;  %7923 = vmatprep.mubr.bf16.mxu1 %v19402_v11  ;;  %v19441_v7 = vld [vmem:[%s20903_s23 + $0x2a0] ss:$36 sps:$4 sm:$0xff]  }
 0x25d   : > { %3065 = vmatprep.mubr.bf16.mxu0 %v19405_v14  ;;  %8065 = vmatpush1.bf16.msra.mxu1 %v19432_v15  ;;  %v19445_v15 = vld [vmem:[%s20903_s23 + $0x2ec] ss:$36 sps:$4 sm:$0xff]  }
 0x25e   : > { %v21848_v19 = vpop.f32.mrb[72].mxu1  ;;  %8066 = vmatprep.subr.bf16.mxu1 %v25562_v1 }
 0x25f   : > { %25686 = vst [vmem:[#allocation24_spill] sm:$0xff] %v21848_v19  ;;  %v5822_v21 = vpop.f32.mrb[73].mxu1  ;;  %v19574_v19 = vld [vmem:[%s25552_s2 + $0x30] sm:$0xff]  }
 0x260   : > { %v21852_v22 = vpop.f32.mrb[74].mxu1 }
 0x261   : > { %25687 = vst [vmem:[#allocation25_spill] sm:$0xff] %v21852_v22  ;;  %v5825_v24 = vpop.f32.mrb[75].mxu1  ;;  %8067 = vmatpush1.bf16.msra.mxu1 %v19444_v17  ;;  %v19447_v17 = vld [vmem:[%s21563_s13 + $0x288] ss:$36 sps:$4 sm:$0xff]  }
 0x262   : > { %8068 = vmatprep.subr.bf16.mxu1 %v25562_v1  ;;  %v19449_v24 = vld [vmem:[%s21563_s13 + $0x2d4] ss:$36 sps:$4 sm:$0xff]   ;;  %v19544_v22 = vld [vmem:[%s21563_s13 + $0xe4] ss:$36 sps:$4 sm:$0xff]  }
 0x263   : > { %7924 = vmatmul.mubr.bf16.gmra.mrb[136].mxu1 %v19407_v18 }
 0x264   : > { %3066 = vmatmul.mubr.bf16.gmra.mrb[20].mxu0 %v19408_v20  ;;  %7931 = vmatprep.mubr.bf16.mxu1 %v19409_v23  ;;  %v19448_v20 = vld [vmem:[%s20903_s23 + $0x2e8] ss:$36 sps:$4 sm:$0xff]  }
 0x265   : > { %3075 = vmatprep.mubr.bf16.mxu0 %v19411_v26  ;;  %8069 = vmatpush1.bf16.msra.mxu1 %v19455_v27  ;;  %v19451_v27 = vld [vmem:[%s20903_s23 + $0x334] ss:$36 sps:$4 sm:$0xff]  }
 0x266   : > { %v21864_v31 = vpop.f32.mrb[76].mxu1  ;;  %8070 = vmatprep.subr.bf16.mxu1 %v25562_v1 }
 0x267   : > { %25688 = vst [vmem:[#allocation26_spill] sm:$0xff] %v21864_v31  ;;  %v5830_v32 = vpop.f32.mrb[77].mxu1  ;;  %v19536_v31 = vld [vmem:[%s20903_s23 + $0xb0] ss:$36 sps:$4 sm:$0xff]  }
 0x268   : > { %v21868_v33 = vpop.f32.mrb[78].mxu1 }
 0x269   : > { %25689 = vst [vmem:[#allocation27_spill] sm:$0xff] %v21868_v33  ;;  %v5833_v35 = vpop.f32.mrb[79].mxu1  ;;  %8071 = vmatpush1.bf16.msra.mxu1 %v19465_v29  ;;  %v19453_v29 = vld [vmem:[%s21563_s13 + $0x2d0] ss:$36 sps:$4 sm:$0xff]  }
 0x26a   : > { %8072 = vmatprep.subr.bf16.mxu1 %v25562_v1  ;;  %v19459_v35 = vld [vmem:[%s21563_s13 + $0x31c] ss:$36 sps:$4 sm:$0xff]  }
 0x26b   : > { %7932 = vmatmul.mubr.bf16.gmra.mrb[140].mxu1 %v19413_v30 }
 0x26c   : > { %3076 = vmatmul.mubr.bf16.gmra.mrb[24].mxu0 %v19414_v4  ;;  %7939 = vmatprep.mubr.bf16.mxu1 %v19419_v34  ;;  %v19454_v4 = vld [vmem:[%s20903_s23 + $0x330] ss:$36 sps:$4 sm:$0xff]  }
 0x26d   : > { %3085 = vmatprep.mubr.bf16.mxu0 %v19421_v36  ;;  %8073 = vmatpush1.bf16.msra.mxu1 %v19472_v37  ;;  %v19461_v37 = vld [vmem:[%s20903_s23 + $0x37c] ss:$36 sps:$4 sm:$0xff]  }
 0x26e   : > { %v21880_v42 = vpop.f32.mrb[0].mxu1  ;;  %8074 = vmatprep.subr.bf16.mxu1 %v25562_v1 }
 0x26f   : > { %v5838_v44 = vpop.f32.mrb[1].mxu1 }
 0x270   : > { %v21884_v45 = vpop.f32.mrb[2].mxu1  ;;  %v19466_v44 = vld [vmem:[%s21563_s13 + $0x364] ss:$36 sps:$4 sm:$0xff]  }
 0x271   : > { %v5841_v47 = vpop.f32.mrb[3].mxu1  ;;  %8075 = vmatpush1.bf16.msra.mxu1 %v19484_v39  ;;  %v19463_v39 = vld [vmem:[%s21563_s13 + $0x318] ss:$36 sps:$4 sm:$0xff]  }
 0x272   : > { %8076 = vmatprep.subr.bf16.mxu1 %v25562_v1  ;;  %v19468_v47 = vld [vmem:[%s20903_s23 + $0x3c4] ss:$36 sps:$4 sm:$0xff]  }
 0x273   : > { %7940 = vmatmul.mubr.bf16.gmra.mrb[144].mxu1 %v19423_v40 }
 0x274   : > { %3086 = vmatmul.mubr.bf16.gmra.mrb[28].mxu0 %v19424_v43  ;;  %7947 = vmatprep.mubr.bf16.mxu1 %v19426_v46  ;;  %v19464_v43 = vld [vmem:[%s20903_s23 + $0x378] ss:$36 sps:$4 sm:$0xff]  }
 0x275   : > { %3095 = vmatprep.mubr.bf16.mxu0 %v19428_v48  ;;  %8077 = vmatpush1.bf16.msra.mxu1 %v19495_v49 }
 0x276   : > { %v21896_v53 = vpop.f32.mrb[4].mxu1  ;;  %8078 = vmatprep.subr.bf16.mxu1 %v25562_v1 }
 0x277   : > { %v5846_v56 = vpop.f32.mrb[5].mxu1 }
 0x278   : > { %v21900_v58 = vpop.f32.mrb[6].mxu1  ;;  %v19476_v56 = vld [vmem:[%s21563_s13 + $0x3ac] ss:$36 sps:$4 sm:$0xff]  }
 0x279   : > { %v5849_v61 = vpop.f32.mrb[7].mxu1  ;;  %8079 = vmatpush1.bf16.msra.mxu1 %v19505_v50  ;;  %v19470_v50 = vld [vmem:[%s21563_s13 + $0x360] ss:$36 sps:$4 sm:$0xff]  }
 0x27a   : > { %8080 = vmatprep.subr.bf16.mxu1 %v25562_v1  ;;  %v19478_v61 = vld [vmem:[%s20903_s23 + $0x40c] ss:$36 sps:$4 sm:$0xff]  }
 0x27b   : > { %7948 = vmatmul.mubr.bf16.gmra.mrb[148].mxu1 %v19430_v51 }
 0x27c   : > { %3096 = vmatmul.mubr.bf16.gmra.mrb[32].mxu0 %v19431_v54  ;;  %7955 = vmatprep.mubr.bf16.mxu1 %v19436_v59  ;;  %v19471_v54 = vld [vmem:[%s20903_s23 + $0x3c0] ss:$36 sps:$4 sm:$0xff]  }
 0x27d   : > { %3105 = vmatprep.mubr.bf16.mxu0 %v19438_v62  ;;  %8081 = vmatpush1.bf16.msra.mxu1 %v19512_v63 }
 0x27e   : > { %v21912_v3 = vpop.f32.mrb[8].mxu1  ;;  %8082 = vmatprep.subr.bf16.mxu1 %v25562_v1 }
 0x27f   : > { %v5854_v9 = vpop.f32.mrb[9].mxu1 }
 0x280   : > { %v21916_v11 = vpop.f32.mrb[10].mxu1  ;;  %v19482_v9 = vld [vmem:[%s21563_s13 + $0x3f4] ss:$36 sps:$4 sm:$0xff]  }
 0x281   : > { %v5857_v14 = vpop.f32.mrb[11].mxu1  ;;  %8083 = vmatpush1.bf16.msra.mxu1 %v19524_v0  ;;  %v19480_v0 = vld [vmem:[%s21563_s13 + $0x3a8] ss:$36 sps:$4 sm:$0xff]  }
 0x282   : > { %8245 = vmatprep.subr.bf16.mxu1 %v25562_v1 }
 0x283   : > { %7956 = vmatmul.mubr.bf16.gmra.mrb[152].mxu1 %v19440_v2 }
 0x284   : > { %3106 = vmatmul.mubr.bf16.gmra.mrb[36].mxu0 %v19441_v7  ;;  %7963 = vmatprep.mubr.bf16.mxu1 %v19442_v12  ;;  %v19481_v7 = vld [vmem:[%s20903_s23 + $0x408] ss:$36 sps:$4 sm:$0xff]  }
 0x285   : > { %3115 = vmatprep.mubr.bf16.mxu0 %v19445_v15 }
 0x286   : > { %v21922_v18 = vpop.f32.mrb[12].mxu1 }
 0x287   : > { %v5862_v21 = vpop.f32.mrb[13].mxu1 }
 0x288   : > { %v21925_v23 = vpop.f32.mrb[14].mxu1 }
 0x289   : > { %v5865_v26 = vpop.f32.mrb[15].mxu1 }
 0x28b   : > { %7964 = vmatmul.mubr.bf16.gmra.mrb[156].mxu1 %v19447_v17  ;;  %v19485_v17 = vld [vmem:[%s20903_s23 + $0x454] ss:$36 sps:$4 sm:$0xff]  }
 0x28c   : > { %3116 = vmatmul.mubr.bf16.gmra.mrb[40].mxu0 %v19448_v20  ;;  %7971 = vmatprep.mubr.bf16.mxu1 %v19449_v24  ;;  %v19487_v24 = vld [vmem:[%s21563_s13 + $0x3f0] ss:$36 sps:$4 sm:$0xff]  }
 0x28d   : > { %3125 = vmatprep.mubr.bf16.mxu0 %v19451_v27  ;;  %v19488_v27 = vld [vmem:[%s20903_s23 + $0x450] ss:$36 sps:$4 sm:$0xff]  }
 0x28e   : > { %v21930_v30 = vpop.f32.mrb[16].mxu1 }
 0x28f   : > { %v5870_v32 = vpop.f32.mrb[17].mxu1 }
 0x290   : > { %v21933_v34 = vpop.f32.mrb[18].mxu1  ;;  %v19491_v32 = vld [vmem:[%s20903_s23 + $0x49c] ss:$36 sps:$4 sm:$0xff]  }
 0x291   : > { %v5873_v36 = vpop.f32.mrb[19].mxu1 }
 0x293   : > { %7972 = vmatmul.mubr.bf16.gmra.mrb[160].mxu1 %v19453_v29  ;;  %v19489_v29 = vld [vmem:[%s21563_s13 + $0x43c] ss:$36 sps:$4 sm:$0xff]  }
 0x294   : > { %3126 = vmatmul.mubr.bf16.gmra.mrb[44].mxu0 %v19454_v4  ;;  %7979 = vmatprep.mubr.bf16.mxu1 %v19459_v35 }
 0x295   : > { %3135 = vmatprep.mubr.bf16.mxu0 %v19461_v37  ;;  %v19493_v37 = vld [vmem:[%s21563_s13 + $0x438] ss:$36 sps:$4 sm:$0xff]  }
 0x296   : > { %v21938_v40 = vpop.f32.mrb[20].mxu1 }
 0x297   : > { %v5878_v46 = vpop.f32.mrb[21].mxu1 }
 0x298   : > { %v21943_v48 = vpop.f32.mrb[22].mxu1 }
 0x299   : > { %v5881_v49 = vpop.f32.mrb[23].mxu1 }
 0x29b   : > { %7980 = vmatmul.mubr.bf16.gmra.mrb[164].mxu1 %v19463_v39 }
 0x29c   : > { %3136 = vmatmul.mubr.bf16.gmra.mrb[48].mxu0 %v19464_v43  ;;  %7987 = vmatprep.mubr.bf16.mxu1 %v19466_v44  ;;  %v19494_v43 = vld [vmem:[%s20903_s23 + $0x498] ss:$36 sps:$4 sm:$0xff]   ;;  %v19499_v44 = vld [vmem:[%s21563_s13 + $0x484] ss:$36 sps:$4 sm:$0xff]  }
 0x29d   : > { %3145 = vmatprep.mubr.bf16.mxu0 %v19468_v47  ;;  %v19501_v47 = vld [vmem:[%s20903_s23 + $0x4e4] ss:$36 sps:$4 sm:$0xff]  }
 0x29e   : > { %v21946_v51 = vpop.f32.mrb[24].mxu1 }
 0x29f   : > { %v5886_v59 = vpop.f32.mrb[25].mxu1 }
 0x2a0   : > { %v21951_v62 = vpop.f32.mrb[26].mxu1  ;;  %v19504_v59 = vld [vmem:[%s20903_s23 + $0x4e0] ss:$36 sps:$4 sm:$0xff]  }
 0x2a1   : > { %v5889_v63 = vpop.f32.mrb[27].mxu1 }
 0x2a3   : > { %7988 = vmatmul.mubr.bf16.gmra.mrb[168].mxu1 %v19470_v50 }
 0x2a4   : > { %3146 = vmatmul.mubr.bf16.gmra.mrb[52].mxu0 %v19471_v54  ;;  %7995 = vmatprep.mubr.bf16.mxu1 %v19476_v56  ;;  %v19503_v54 = vld [vmem:[%s21563_s13 + $0x480] ss:$36 sps:$4 sm:$0xff]  }
 0x2a5   : > { %3155 = vmatprep.mubr.bf16.mxu0 %v19478_v61  ;;  %v19506_v61 = vld [vmem:[%s21563_s13 + $0x4cc] ss:$36 sps:$4 sm:$0xff]  }
 0x2a6   : > { %v21954_v2 = vpop.f32.mrb[28].mxu1 }
 0x2a7   : > { %v5894_v12 = vpop.f32.mrb[29].mxu1 }
 0x2a8   : > { %v21958_v14 = vpop.f32.mrb[30].mxu1  ;;  %v19510_v12 = vld [vmem:[%s21563_s13 + $0x4c8] ss:$36 sps:$4 sm:$0xff]  }
 0x2a9   : > { %v5897_v15 = vpop.f32.mrb[31].mxu1 }
 0x2ab   : > { %7996 = vmatmul.mubr.bf16.gmra.mrb[172].mxu1 %v19480_v0  ;;  %v19508_v0 = vld [vmem:[%s20903_s23 + $0x52c] ss:$36 sps:$4 sm:$0xff]  }
 0x2ac   : > { %3156 = vmatmul.mubr.bf16.gmra.mrb[56].mxu0 %v19481_v7  ;;  %8003 = vmatprep.mubr.bf16.mxu1 %v19482_v9 }
 0x2ad   : > { %3165 = vmatprep.mubr.bf16.mxu0 %v19485_v17  ;;  %v19511_v17 = vld [vmem:[%s20903_s23 + $0x528] ss:$36 sps:$4 sm:$0xff]  }
 0x2ae   : > { %v21961_v20 = vpop.f32.mrb[32].mxu1 }
 0x2af   : > { %v5902_v21 = vpop.f32.mrb[33].mxu1 }
 0x2b0   : > { %v21964_v26 = vpop.f32.mrb[34].mxu1  ;;  %v19516_v21 = vld [vmem:[%s21563_s13 + $0x514] ss:$36 sps:$4 sm:$0xff]  }
 0x2b1   : > { %25690 = vst [vmem:[#allocation28_spill] sm:$0xff] %v21964_v26  ;;  %v5905_v4 = vpop.f32.mrb[35].mxu1 }
 0x2b3   : > { %8004 = vmatmul.mubr.bf16.gmra.mrb[176].mxu1 %v19487_v24 }
 0x2b4   : > { %3166 = vmatmul.mubr.bf16.gmra.mrb[60].mxu0 %v19488_v27  ;;  %8011 = vmatprep.mubr.bf16.mxu1 %v19489_v29  ;;  %v19518_v27 = vld [vmem:[%s20903_s23 + $0x574] ss:$36 sps:$4 sm:$0xff]  }
 0x2b5   : > { %3175 = vmatprep.mubr.bf16.mxu0 %v19491_v32  ;;  %v19520_v32 = vld [vmem:[%s21563_s13 + $0x510] ss:$36 sps:$4 sm:$0xff]  }
 0x2b6   : > { %v21969_v35 = vpop.f32.mrb[36].mxu1 }
 0x2b7   : > { %25691 = vst [vmem:[#allocation29_spill] sm:$0xff] %v21969_v35  ;;  %v5910_v36 = vpop.f32.mrb[37].mxu1 }
 0x2b8   : > { %v21972_v39 = vpop.f32.mrb[38].mxu1 }
 0x2b9   : > { %25692 = vst [vmem:[#allocation30_spill] sm:$0xff] %v21972_v39  ;;  %v5913_v46 = vpop.f32.mrb[39].mxu1 }
 0x2bb   : > { %8012 = vmatmul.mubr.bf16.gmra.mrb[180].mxu1 %v19493_v37  ;;  %v19521_v37 = vld [vmem:[%s20903_s23 + $0x570] ss:$36 sps:$4 sm:$0xff]  }
 0x2bc   : > { %3176 = vmatmul.mubr.bf16.gmra.mrb[64].mxu0 %v19494_v43  ;;  %8019 = vmatprep.mubr.bf16.mxu1 %v19499_v44  ;;  %v19522_v43 = vld [vmem:[%s21563_s13 + $0x55c] ss:$36 sps:$4 sm:$0xff]  }
 0x2bd   : > { %3185 = vmatprep.mubr.bf16.mxu0 %v19501_v47 }
 0x2be   : > { %v21977_v49 = vpop.f32.mrb[40].mxu1 }
 0x2bf   : > { %25693 = vst [vmem:[#allocation31_spill] sm:$0xff] %v21977_v49  ;;  %v5918_v50 = vpop.f32.mrb[41].mxu1  ;;  %v19785_v49 = vld [vmem:[%s21563_s13 + $0x64] ss:$36 sps:$4 sm:$0xff]  }
 0x2c0   : > { %v21980_v56 = vpop.f32.mrb[42].mxu1  ;;  %v19525_v50 = vld [vmem:[%s21563_s13 + $0x558] ss:$36 sps:$4 sm:$0xff]  }
 0x2c1   : > { %25694 = vst [vmem:[#allocation32_spill] sm:$0xff] %v21980_v56  ;;  %v5921_v63 = vpop.f32.mrb[43].mxu1  ;;  %v19780_v56 = vld [vmem:[%s20896_s10 + $0x54] ss:$36 sps:$4 sm:$0xff]  }
 0x2c3   : > { %8020 = vmatmul.mubr.bf16.gmra.mrb[184].mxu1 %v19503_v54 }
 0x2c4   : > { %3186 = vmatmul.mubr.bf16.gmra.mrb[68].mxu0 %v19504_v59  ;;  %8027 = vmatprep.mubr.bf16.mxu1 %v19506_v61  ;;  %v19526_v59 = vld [vmem:[%s20903_s23 + $0x20] ss:$36 sps:$4 sm:$0xff]   ;;  %v19529_v61 = vld [vmem:[%s21563_s13 + $0xc] ss:$36 sps:$4 sm:$0xff]  }
 0x2c5   : > { %3195 = vmatprep.mubr.bf16.mxu0 %v19508_v0  ;;  %v19532_v0 = vld [vmem:[%s25552_s2] sm:$0xff]  }
 0x2c6   : > { %v21985_v7 = vpop.f32.mrb[80].mxu1 }
 0x2c7   : > { %25695 = vst [vmem:[#allocation33_spill] sm:$0xff] %v21985_v7  ;;  %v21987_v9 = vpop.f32.mrb[81].mxu1  ;;  %v19709_v7 = vld [vmem:[%s21563_s13 + $0x2e4] ss:$36 sps:$4 sm:$0xff]  }
 0x2c8   : > { %25696 = vst [vmem:[#allocation34_spill] sm:$0xff] %v21987_v9  ;;  %v21990_v15 = vpop.f32.mrb[82].mxu1 }
 0x2c9   : > { %25697 = vst [vmem:[#allocation35_spill] sm:$0xff] %v21990_v15  ;;  %v21994_v24 = vpop.f32.mrb[83].mxu1  ;;  %v19698_v15 = vld [vmem:[%s20896_s10 + $0x28c] ss:$36 sps:$4 sm:$0xff]  }
 0x2ca   : > { %25698 = vst [vmem:[#allocation36_spill] sm:$0xff] %v21994_v24 }
 0x2cb   : > { %8028 = vmatmul.mubr.bf16.gmra.mrb[188].mxu1 %v19510_v12  ;;  %v19538_v12 = vld [vmem:[%s25552_s2 + $0x8] sm:$0xff]  }
 0x2cc   : > { %3196 = vmatmul.mubr.bf16.gmra.mrb[72].mxu0 %v19511_v17  ;;  %8035 = vmatprep.mubr.bf16.mxu1 %v19516_v21 }
 0x2cd   : > { %3205 = vmatprep.mubr.bf16.mxu0 %v19518_v27  ;;  %v19527_v27 = vld [vmem:[%s21563_s13 + $0x8] ss:$36 sps:$4 sm:$0xff]  }
 0x2ce   : > { %v21997_v29 = vpop.f32.mrb[84].mxu1 }
 0x2cf   : > { %25699 = vst [vmem:[#allocation37_spill] sm:$0xff] %v21997_v29  ;;  %v21999_v4 = vpop.f32.mrb[85].mxu1 }
 0x2d0   : > { %25700 = vst [vmem:[#allocation38_spill] sm:$0xff] %v21999_v4  ;;  %v22002_v36 = vpop.f32.mrb[86].mxu1  ;;  %v19643_v4 = vld [vmem:[%s21563_s13 + $0x14] ss:$36 sps:$4 sm:$0xff]  }
 0x2d1   : > { %25701 = vst [vmem:[#allocation39_spill] sm:$0xff] %v22002_v36  ;;  %v22006_v44 = vpop.f32.mrb[87].mxu1 }
 0x2d2   : > { %25702 = vst [vmem:[#allocation40_spill] sm:$0xff] %v22006_v44  ;;  %v19569_v44 = vld [vmem:[%s21563_s13 + $0x200] ss:$36 sps:$4 sm:$0xff]  }
 0x2d3   : > { %8036 = vmatmul.mubr.bf16.gmra.mrb[192].mxu1 %v19520_v32 }
 0x2d4   : > { %3206 = vmatmul.mubr.bf16.gmra.mrb[76].mxu0 %v19521_v37  ;;  %8043 = vmatprep.mubr.bf16.mxu1 %v19522_v43  ;;  %v19530_v37 = vld [vmem:[%s20903_s23 + $0x68] ss:$36 sps:$4 sm:$0xff]   ;;  %v19531_v43 = vld [vmem:[%s25552_s2 + $0x340] sm:$0xff]  }
 0x2d5   : > { %3248 = vmatprep.mubr.bf16.mxu0 %v25562_v1 }
 0x2d6   : > { %v22009_v46 = vpop.f32.mrb[88].mxu1 }
 0x2d7   : > { %25703 = vst [vmem:[#allocation41_spill] sm:$0xff] %v22009_v46  ;;  %v22011_v47 = vpop.f32.mrb[89].mxu1 }
 0x2d8   : > { %25704 = vst [vmem:[#allocation42_spill] sm:$0xff] %v22011_v47  ;;  %v22014_v54 = vpop.f32.mrb[90].mxu1 }
 0x2d9   : > { %25705 = vst [vmem:[#allocation43_spill] sm:$0xff] %v22014_v54  ;;  %v22018_v63 = vpop.f32.mrb[91].mxu1 }
 0x2da   : > { %25706 = vst [vmem:[#allocation44_spill] sm:$0xff] %v22018_v63 }
 0x2db   : > { %8044 = vmatmul.mubr.bf16.gmra.mrb[196].mxu1 %v19525_v50 }
 0x2dc   : > { %3249 = vmatmul.mubr.bf16.vlgmr.msra.gmra.mrb[0].mxu0 %v19526_v59  ;;  %8084 = vmatprep.mubr.bf16.mxu1 %v19529_v61  ;;  %v19533_v59 = vld [vmem:[%s21563_s13 + $0x54] ss:$36 sps:$4 sm:$0xff]  }
 0x2dd   : > { %3258 = vmatprep.mubr.bf16.mxu0 %v25562_v1  ;;  %5152 = vmatpush1.bf16.msra.mxu0 %v19532_v0  ;;  %v19546_v61 = vld [vmem:[%s25552_s2 + $0x10] sm:$0xff]   ;;  %v19537_v0 = vld [vmem:[%s25552_s2 + $0x348] sm:$0xff]  }
 0x2de   : > { %v22027_v17 = vpop.f32.mrb[92].mxu1  ;;  %5153 = vmatprep.subr.bf16.mxu0 %v25562_v1 }
 0x2df   : > { %25707 = vst [vmem:[#allocation45_spill] sm:$0xff] %v22027_v17  ;;  %v22030_v21 = vpop.f32.mrb[93].mxu1 }
 0x2e0   : > { %25708 = vst [vmem:[#allocation46_spill] sm:$0xff] %v22030_v21  ;;  %v22033_v32 = vpop.f32.mrb[94].mxu1 }
 0x2e1   : > { %25709 = vst [vmem:[#allocation47_spill] sm:$0xff] %v22033_v32  ;;  %v22039_v50 = vpop.f32.mrb[95].mxu1  ;;  %5154 = vmatpush1.bf16.msra.mxu0 %v19538_v12  ;;  %v19554_v12 = vld [vmem:[%s25552_s2 + $0x18] sm:$0xff]  }
 0x2e2   : > { %25710 = vst [vmem:[#allocation48_spill] sm:$0xff] %v22039_v50  ;;  %5155 = vmatprep.subr.bf16.mxu0 %v25562_v1 }
 0x2e3   : > { %8085 = vmatmul.mubr.bf16.vlgmr.msra.gmra.mrb[120].mxu1 %v19527_v27 }
 0x2e4   : > { %3259 = vmatmul.mubr.bf16.gmra.mrb[4].mxu0 %v19530_v37  ;;  %8246 = vmatpush1.bf16.msra.mxu1 %v19531_v43  ;;  %v19535_v37 = vld [vmem:[%s21563_s13 + $0x50] ss:$36 sps:$4 sm:$0xff]  }
 0x2e5   : > { %8092 = vmatprep.mubr.bf16.mxu1 %v19533_v59  ;;  %3268 = vmatprep.mubr.bf16.mxu0 %v25562_v1  ;;  %v19539_v59 = vld [vmem:[%s21563_s13 + $0x9c] ss:$36 sps:$4 sm:$0xff]  }
 0x2e6   : > { %v22050_v33 = vpop.f32.mrb[96].mxu1  ;;  %8247 = vmatprep.subr.bf16.mxu1 %v25562_v1  ;;  %5156 = vmatpush1.bf16.msra.mxu0 %v19546_v61  ;;  %v19543_v61 = vld [vmem:[%s25552_s2 + $0x350] sm:$0xff]  }
 0x2e7   : > { %v22056_v27 = vpop.f32.mrb[97].mxu1  ;;  %5157 = vmatprep.subr.bf16.mxu0 %v25562_v1 }
 0x2e8   : > { %25711 = vst [vmem:[#allocation49_spill] sm:$0xff] %v22056_v27  ;;  %v22060_v43 = vpop.f32.mrb[98].mxu1  ;;  %8248 = vmatpush1.bf16.msra.mxu1 %v19537_v0  ;;  %v19560_v27 = vld [vmem:[%s25552_s2 + $0x20] sm:$0xff]   ;;  %v19551_v0 = vld [vmem:[%s25552_s2 + $0x358] sm:$0xff]  }
 0x2e9   : > { %v22064_v32 = vpop.f32.mrb[99].mxu1  ;;  %8249 = vmatprep.subr.bf16.mxu1 %v25562_v1 }
 0x2ea   : > { %25712 = vst [vmem:[#allocation50_spill] sm:$0xff] %v22064_v32  ;;  %5158 = vmatpush1.bf16.msra.mxu0 %v19554_v12  ;;  %v19566_v12 = vld [vmem:[%s25552_s2 + $0x28] sm:$0xff]  }
 0x2eb   : > { %8093 = vmatmul.mubr.bf16.gmra.mrb[124].mxu1 %v19535_v37  ;;  %5159 = vmatprep.subr.bf16.mxu0 %v25562_v1 }
 0x2ec   : > { %3269 = vmatmul.mubr.bf16.gmra.mrb[8].mxu0 %v19536_v31  ;;  %8100 = vmatprep.mubr.bf16.mxu1 %v19539_v59  ;;  %v19541_v31 = vld [vmem:[%s21563_s13 + $0x98] ss:$36 sps:$4 sm:$0xff]  }
 0x2ed   : > { %3278 = vmatprep.mubr.bf16.mxu0 %v25562_v1  ;;  %8250 = vmatpush1.bf16.msra.mxu1 %v19543_v61  ;;  %v19542_v61 = vld [vmem:[%s20903_s23 + $0xf8] ss:$36 sps:$4 sm:$0xff]  }
 0x2ee   : > { %v22078_v32 = vpop.f32.mrb[100].mxu1  ;;  %8251 = vmatprep.subr.bf16.mxu1 %v25562_v1  ;;  %5160 = vmatpush1.bf16.msra.mxu0 %v19560_v27  ;;  %v19559_v27 = vld [vmem:[%s25552_s2 + $0x360] sm:$0xff]  }
 0x2ef   : > { %v22084_v37 = vpop.f32.mrb[101].mxu1  ;;  %5161 = vmatprep.subr.bf16.mxu0 %v25562_v1 }
 0x2f0   : > { %v22088_v59 = vpop.f32.mrb[102].mxu1 }
 0x2f1   : > { %v22092_v17 = vpop.f32.mrb[103].mxu1  ;;  %8252 = vmatpush1.bf16.msra.mxu1 %v19551_v0  ;;  %v19565_v0 = vld [vmem:[%s25552_s2 + $0x368] sm:$0xff]  }
 0x2f2   : > { %8253 = vmatprep.subr.bf16.mxu1 %v25562_v1  ;;  %5162 = vmatpush1.bf16.msra.mxu0 %v19566_v12  ;;  %v19582_v12 = vld [vmem:[%s25552_s2 + $0x38] sm:$0xff]  }
 0x2f3   : > { %8101 = vmatmul.mubr.bf16.gmra.mrb[128].mxu1 %v19541_v31  ;;  %5163 = vmatprep.subr.bf16.mxu0 %v25562_v1 }
 0x2f4   : > { %3279 = vmatmul.mubr.bf16.gmra.mrb[12].mxu0 %v19542_v61  ;;  %8108 = vmatprep.mubr.bf16.mxu1 %v19544_v22  ;;  %v19547_v61 = vld [vmem:[%s21563_s13 + $0xe0] ss:$36 sps:$4 sm:$0xff]  }
 0x2f5   : > { %3288 = vmatprep.mubr.bf16.mxu0 %v25562_v1  ;;  %8254 = vmatpush1.bf16.msra.mxu1 %v19559_v27  ;;  %v19548_v27 = vld [vmem:[%s20903_s23 + $0x140] ss:$36 sps:$4 sm:$0xff]  }
 0x2f6   : > { %v22106_v50 = vpop.f32.mrb[104].mxu1  ;;  %8255 = vmatprep.subr.bf16.mxu1 %v25562_v1  ;;  %5164 = vmatpush1.bf16.msra.mxu0 %v19574_v19  ;;  %v19571_v19 = vld [vmem:[%s25552_s2 + $0x370] sm:$0xff]  }
 0x2f7   : > { %v22112_v31 = vpop.f32.mrb[105].mxu1  ;;  %5165 = vmatprep.subr.bf16.mxu0 %v25562_v1 }
 0x2f8   : > { %v22116_v22 = vpop.f32.mrb[106].mxu1 }
 0x2f9   : > { %v22120_v21 = vpop.f32.mrb[107].mxu1  ;;  %8256 = vmatpush1.bf16.msra.mxu1 %v19565_v0  ;;  %v19579_v0 = vld [vmem:[%s25552_s2 + $0x378] sm:$0xff]  }
 0x2fa   : > { %8257 = vmatprep.subr.bf16.mxu1 %v25562_v1  ;;  %5166 = vmatpush1.bf16.msra.mxu0 %v19582_v12  ;;  %v19594_v12 = vld [vmem:[%s25552_s2 + $0x48] sm:$0xff]  }
 0x2fb   : > { %8109 = vmatmul.mubr.bf16.gmra.mrb[132].mxu1 %v19547_v61  ;;  %5167 = vmatprep.subr.bf16.mxu0 %v25562_v1 }
 0x2fc   : > { %3289 = vmatmul.mubr.bf16.gmra.mrb[16].mxu0 %v19548_v27  ;;  %8116 = vmatprep.mubr.bf16.mxu1 %v19549_v10  ;;  %v19552_v27 = vld [vmem:[%s21563_s13 + $0x128] ss:$36 sps:$4 sm:$0xff]  }
 0x2fd   : > { %3298 = vmatprep.mubr.bf16.mxu0 %v25562_v1  ;;  %8258 = vmatpush1.bf16.msra.mxu1 %v19571_v19  ;;  %v19553_v19 = vld [vmem:[%s20903_s23 + $0x188] ss:$36 sps:$4 sm:$0xff]  }
 0x2fe   : > { %v22134_v54 = vpop.f32.mrb[108].mxu1  ;;  %8259 = vmatprep.subr.bf16.mxu1 %v25562_v1  ;;  %5168 = vmatpush1.bf16.msra.mxu0 %v19588_v6  ;;  %v19587_v6 = vld [vmem:[%s25552_s2 + $0x380] sm:$0xff]  }
 0x2ff   : > { %v22140_v61 = vpop.f32.mrb[109].mxu1  ;;  %5169 = vmatprep.subr.bf16.mxu0 %v25562_v1 }
 0x300   : > { %v22144_v10 = vpop.f32.mrb[110].mxu1 }
 0x301   : > { %v22148_v46 = vpop.f32.mrb[111].mxu1  ;;  %8260 = vmatpush1.bf16.msra.mxu1 %v19579_v0  ;;  %v19593_v0 = vld [vmem:[%s25552_s2 + $0x388] sm:$0xff]  }
 0x302   : > { %8261 = vmatprep.subr.bf16.mxu1 %v25562_v1  ;;  %5170 = vmatpush1.bf16.msra.mxu0 %v19594_v12  ;;  %v19610_v12 = vld [vmem:[%s25552_s2 + $0x58] sm:$0xff]  }
 0x303   : > { %8117 = vmatmul.mubr.bf16.gmra.mrb[136].mxu1 %v19552_v27  ;;  %5171 = vmatprep.subr.bf16.mxu0 %v25562_v1 }
 0x304   : > { %3299 = vmatmul.mubr.bf16.gmra.mrb[20].mxu0 %v19553_v19  ;;  %8124 = vmatprep.mubr.bf16.mxu1 %v19555_v55  ;;  %v19557_v19 = vld [vmem:[%s21563_s13 + $0x170] ss:$36 sps:$4 sm:$0xff]  }
 0x305   : > { %3308 = vmatprep.mubr.bf16.mxu0 %v25562_v1  ;;  %8262 = vmatpush1.bf16.msra.mxu1 %v19587_v6  ;;  %v19558_v6 = vld [vmem:[%s20903_s23 + $0x1d0] ss:$36 sps:$4 sm:$0xff]  }
 0x306   : > { %v22162_v63 = vpop.f32.mrb[112].mxu1  ;;  %8263 = vmatprep.subr.bf16.mxu1 %v25562_v1  ;;  %5172 = vmatpush1.bf16.msra.mxu0 %v19602_v52  ;;  %v19599_v52 = vld [vmem:[%s25552_s2 + $0x390] sm:$0xff]  }
 0x307   : > { %v22168_v27 = vpop.f32.mrb[113].mxu1  ;;  %5173 = vmatprep.subr.bf16.mxu0 %v25562_v1 }
 0x308   : > { %v22172_v55 = vpop.f32.mrb[114].mxu1 }
 0x309   : > { %25713 = vst [vmem:[#allocation51_spill] sm:$0xff] %v22172_v55  ;;  %v22176_v47 = vpop.f32.mrb[115].mxu1  ;;  %8264 = vmatpush1.bf16.msra.mxu1 %v19593_v0  ;;  %v19607_v0 = vld [vmem:[%s25552_s2 + $0x398] sm:$0xff]  }
 0x30a   : > { %8265 = vmatprep.subr.bf16.mxu1 %v25562_v1  ;;  %5174 = vmatpush1.bf16.msra.mxu0 %v19610_v12  ;;  %v19622_v12 = vld [vmem:[%s25552_s2 + $0x68] sm:$0xff]  }
 0x30b   : > { %8125 = vmatmul.mubr.bf16.gmra.mrb[140].mxu1 %v19557_v19  ;;  %5175 = vmatprep.subr.bf16.mxu0 %v25562_v1 }
 0x30c   : > { %3309 = vmatmul.mubr.bf16.gmra.mrb[24].mxu0 %v19558_v6  ;;  %8132 = vmatprep.mubr.bf16.mxu1 %v19561_v41  ;;  %v19563_v6 = vld [vmem:[%s21563_s13 + $0x1b8] ss:$36 sps:$4 sm:$0xff]  }
 0x30d   : > { %3318 = vmatprep.mubr.bf16.mxu0 %v25562_v1  ;;  %8266 = vmatpush1.bf16.msra.mxu1 %v19599_v52  ;;  %v19564_v52 = vld [vmem:[%s20903_s23 + $0x218] ss:$36 sps:$4 sm:$0xff]  }
 0x30e   : > { %v22190_v36 = vpop.f32.mrb[116].mxu1  ;;  %8267 = vmatprep.subr.bf16.mxu1 %v25562_v1  ;;  %5176 = vmatpush1.bf16.msra.mxu0 %v19616_v38  ;;  %v19615_v38 = vld [vmem:[%s25552_s2 + $0x3a0] sm:$0xff]  }
 0x30f   : > { %25714 = vst [vmem:[#allocation52_spill] sm:$0xff] %v22190_v36  ;;  %v22196_v19 = vpop.f32.mrb[117].mxu1  ;;  %5177 = vmatprep.subr.bf16.mxu0 %v25562_v1 }
 0x310   : > { %25715 = vst [vmem:[#allocation53_spill] sm:$0xff] %v22196_v19  ;;  %v22200_v41 = vpop.f32.mrb[118].mxu1  ;;  %v19836_v19 = vld [vmem:[%s25552_s2 + $0x478] sm:$0xff]  }
 0x311   : > { %25716 = vst [vmem:[#allocation54_spill] sm:$0xff] %v22200_v41  ;;  %v22204_v29 = vpop.f32.mrb[119].mxu1  ;;  %8268 = vmatpush1.bf16.msra.mxu1 %v19607_v0  ;;  %v19621_v0 = vld [vmem:[%s25552_s2 + $0x3a8] sm:$0xff]  }
 0x312   : > { %25717 = vst [vmem:[#allocation55_spill] sm:$0xff] %v22204_v29  ;;  %8269 = vmatprep.subr.bf16.mxu1 %v25562_v1  ;;  %5178 = vmatpush1.bf16.msra.mxu0 %v19622_v12  ;;  %v19633_v12 = vld [vmem:[%s25552_s2 + $0x78] sm:$0xff]  }
 0x313   : > { %8133 = vmatmul.mubr.bf16.gmra.mrb[144].mxu1 %v19563_v6  ;;  %5179 = vmatprep.subr.bf16.mxu0 %v25562_v1  ;;  %v19572_v6 = vld [vmem:[%s21563_s13 + $0x24c] ss:$36 sps:$4 sm:$0xff]  }
 0x314   : > { %3319 = vmatmul.mubr.bf16.gmra.mrb[28].mxu0 %v19564_v52  ;;  %8140 = vmatprep.mubr.bf16.mxu1 %v19567_v28  ;;  %v19570_v28 = vld [vmem:[%s20903_s23 + $0x260] ss:$36 sps:$4 sm:$0xff]   ;;  %v19627_v52 = vld [vmem:[%s25552_s2 + $0x3b0] sm:$0xff]  }
 0x315   : > { %3328 = vmatprep.mubr.bf16.mxu0 %v25562_v1  ;;  %8270 = vmatpush1.bf16.msra.mxu1 %v19615_v38  ;;  %v19575_v38 = vld [vmem:[%s21563_s13 + $0x248] ss:$36 sps:$4 sm:$0xff]  }
 0x316   : > { %8271 = vmatprep.subr.bf16.mxu1 %v25562_v1  ;;  %5180 = vmatpush1.bf16.msra.mxu0 %v19630_v25  ;;  %v19636_v25 = vld [vmem:[%s25552_s2 + $0x3b8] sm:$0xff]  }
 0x317   : > { %5181 = vmatprep.subr.bf16.mxu0 %v25562_v1 }
 0x319   : > { %8272 = vmatpush1.bf16.msra.mxu1 %v19621_v0  ;;  %v19576_v0 = vld [vmem:[%s20903_s23 + $0x2a8] ss:$36 sps:$4 sm:$0xff]  }
 0x31a   : > { %8273 = vmatprep.subr.bf16.mxu1 %v25562_v1  ;;  %5182 = vmatpush1.bf16.msra.mxu0 %v19633_v12  ;;  %v19580_v12 = vld [vmem:[%s21563_s13 + $0x290] ss:$36 sps:$4 sm:$0xff]  }
 0x31b   : > { %8141 = vmatmul.mubr.bf16.gmra.mrb[148].mxu1 %v19569_v44  ;;  %5344 = vmatprep.subr.bf16.mxu0 %v25562_v1  ;;  %v19577_v44 = vld [vmem:[%s21563_s13 + $0x294] ss:$36 sps:$4 sm:$0xff]  }
 0x31c   : > { %3329 = vmatmul.mubr.bf16.gmra.mrb[32].mxu0 %v19570_v28  ;;  %8148 = vmatprep.mubr.bf16.mxu1 %v19572_v6  ;;  %v19581_v28 = vld [vmem:[%s20903_s23 + $0x2f0] ss:$36 sps:$4 sm:$0xff]   ;;  %v19583_v6 = vld [vmem:[%s21563_s13 + $0x2dc] ss:$36 sps:$4 sm:$0xff]  }
 0x31d   : > { %3338 = vmatprep.mubr.bf16.mxu0 %v25562_v1  ;;  %8274 = vmatpush1.bf16.msra.mxu1 %v19627_v52  ;;  %v19585_v52 = vld [vmem:[%s21563_s13 + $0x2d8] ss:$36 sps:$4 sm:$0xff]  }
 0x31e   : > { %8275 = vmatprep.subr.bf16.mxu1 %v25562_v1 }
 0x321   : > { %8276 = vmatpush1.bf16.msra.mxu1 %v19636_v25  ;;  %v19586_v25 = vld [vmem:[%s20903_s23 + $0x338] ss:$36 sps:$4 sm:$0xff]  }
 0x322   : > { %8438 = vmatprep.subr.bf16.mxu1 %v25562_v1 }
 0x323   : > { %8149 = vmatmul.mubr.bf16.gmra.mrb[152].mxu1 %v19575_v38  ;;  %v19589_v38 = vld [vmem:[%s21563_s13 + $0x324] ss:$36 sps:$4 sm:$0xff]  }
 0x324   : > { %3339 = vmatmul.mubr.bf16.gmra.mrb[36].mxu0 %v19576_v0  ;;  %8156 = vmatprep.mubr.bf16.mxu1 %v19577_v44  ;;  %v19591_v0 = vld [vmem:[%s21563_s13 + $0x320] ss:$36 sps:$4 sm:$0xff]  }
 0x325   : > { %3348 = vmatprep.mubr.bf16.mxu0 %v25562_v1  ;;  %v19592_v44 = vld [vmem:[%s20903_s23 + $0x380] ss:$36 sps:$4 sm:$0xff]  }
 0x32b   : > { %8157 = vmatmul.mubr.bf16.gmra.mrb[156].mxu1 %v19580_v12  ;;  %v19595_v12 = vld [vmem:[%s21563_s13 + $0x36c] ss:$36 sps:$4 sm:$0xff]  }
 0x32c   : > { %3349 = vmatmul.mubr.bf16.gmra.mrb[40].mxu0 %v19581_v28  ;;  %8164 = vmatprep.mubr.bf16.mxu1 %v19583_v6  ;;  %v19597_v28 = vld [vmem:[%s21563_s13 + $0x368] ss:$36 sps:$4 sm:$0xff]  }
 0x32d   : > { %3358 = vmatprep.mubr.bf16.mxu0 %v25562_v1  ;;  %v19598_v6 = vld [vmem:[%s20903_s23 + $0x3c8] ss:$36 sps:$4 sm:$0xff]  }
 0x333   : > { %8165 = vmatmul.mubr.bf16.gmra.mrb[160].mxu1 %v19585_v52  ;;  %v19600_v52 = vld [vmem:[%s21563_s13 + $0x3b4] ss:$36 sps:$4 sm:$0xff]  }
 0x334   : > { %3359 = vmatmul.mubr.bf16.gmra.mrb[44].mxu0 %v19586_v25  ;;  %8172 = vmatprep.mubr.bf16.mxu1 %v19589_v38  ;;  %v19603_v25 = vld [vmem:[%s21563_s13 + $0x3b0] ss:$36 sps:$4 sm:$0xff]  }
 0x335   : > { %3368 = vmatprep.mubr.bf16.mxu0 %v25562_v1  ;;  %v19604_v38 = vld [vmem:[%s20903_s23 + $0x410] ss:$36 sps:$4 sm:$0xff]  }
 0x33b   : > { %8173 = vmatmul.mubr.bf16.gmra.mrb[164].mxu1 %v19591_v0  ;;  %v19605_v0 = vld [vmem:[%s21563_s13 + $0x3fc] ss:$36 sps:$4 sm:$0xff]  }
 0x33c   : > { %3369 = vmatmul.mubr.bf16.gmra.mrb[48].mxu0 %v19592_v44  ;;  %8180 = vmatprep.mubr.bf16.mxu1 %v19595_v12  ;;  %v19608_v44 = vld [vmem:[%s21563_s13 + $0x3f8] ss:$36 sps:$4 sm:$0xff]  }
 0x33d   : > { %3378 = vmatprep.mubr.bf16.mxu0 %v25562_v1  ;;  %v19609_v12 = vld [vmem:[%s20903_s23 + $0x458] ss:$36 sps:$4 sm:$0xff]  }
 0x343   : > { %8181 = vmatmul.mubr.bf16.gmra.mrb[168].mxu1 %v19597_v28  ;;  %v19611_v28 = vld [vmem:[%s21563_s13 + $0x444] ss:$36 sps:$4 sm:$0xff]  }
 0x344   : > { %3379 = vmatmul.mubr.bf16.gmra.mrb[52].mxu0 %v19598_v6  ;;  %8188 = vmatprep.mubr.bf16.mxu1 %v19600_v52  ;;  %v19613_v6 = vld [vmem:[%s21563_s13 + $0x440] ss:$36 sps:$4 sm:$0xff]  }
 0x345   : > { %3388 = vmatprep.mubr.bf16.mxu0 %v25562_v1  ;;  %v19614_v52 = vld [vmem:[%s20903_s23 + $0x4a0] ss:$36 sps:$4 sm:$0xff]  }
 0x34b   : > { %8189 = vmatmul.mubr.bf16.gmra.mrb[172].mxu1 %v19603_v25  ;;  %v19617_v25 = vld [vmem:[%s21563_s13 + $0x48c] ss:$36 sps:$4 sm:$0xff]  }
 0x34c   : > { %3389 = vmatmul.mubr.bf16.gmra.mrb[56].mxu0 %v19604_v38  ;;  %8196 = vmatprep.mubr.bf16.mxu1 %v19605_v0  ;;  %v19619_v38 = vld [vmem:[%s21563_s13 + $0x488] ss:$36 sps:$4 sm:$0xff]  }
 0x34d   : > { %3398 = vmatprep.mubr.bf16.mxu0 %v25562_v1  ;;  %v19620_v0 = vld [vmem:[%s20903_s23 + $0x4e8] ss:$36 sps:$4 sm:$0xff]  }
 0x353   : > { %8197 = vmatmul.mubr.bf16.gmra.mrb[176].mxu1 %v19608_v44  ;;  %v19623_v44 = vld [vmem:[%s21563_s13 + $0x4d4] ss:$36 sps:$4 sm:$0xff]  }
 0x354   : > { %3399 = vmatmul.mubr.bf16.gmra.mrb[60].mxu0 %v19609_v12  ;;  %8204 = vmatprep.mubr.bf16.mxu1 %v19611_v28  ;;  %v19625_v12 = vld [vmem:[%s21563_s13 + $0x4d0] ss:$36 sps:$4 sm:$0xff]  }
 0x355   : > { %3408 = vmatprep.mubr.bf16.mxu0 %v25562_v1  ;;  %v19626_v28 = vld [vmem:[%s20903_s23 + $0x530] ss:$36 sps:$4 sm:$0xff]  }
 0x35b   : > { %8205 = vmatmul.mubr.bf16.gmra.mrb[180].mxu1 %v19613_v6  ;;  %v19628_v6 = vld [vmem:[%s21563_s13 + $0x51c] ss:$36 sps:$4 sm:$0xff]  }
 0x35c   : > { %3409 = vmatmul.mubr.bf16.gmra.mrb[64].mxu0 %v19614_v52  ;;  %8212 = vmatprep.mubr.bf16.mxu1 %v19617_v25  ;;  %v19631_v52 = vld [vmem:[%s21563_s13 + $0x518] ss:$36 sps:$4 sm:$0xff]  }
 0x35d   : > { %3418 = vmatprep.mubr.bf16.mxu0 %v25562_v1  ;;  %v19632_v25 = vld [vmem:[%s20903_s23 + $0x578] ss:$36 sps:$4 sm:$0xff]   ;;  %s11572_s23 = sshra.s32 %s11571_s20, 3  ;;  %s25484_s20 = scalar_lea.hbm %s25557_s7, %s16968_s11 }
 0x35e   : > { %s16975_s18 = smul.u32 36, %s11572_s23 }
 0x360   : > { %s22820_s12 = scalar_lea.vmem %s20887_s16, %s16975_s18  ;;  %s20577_s18 = sshll.u32 %s20673_s22, 4  ;;  %s20578_s18 = int_to_ptr.vmem [resolvable:$false] %s20577_s18 }
 0x361   : > { %s20579_s17 = scalar_lea.vmem %s20578_s18, 10240 }
 0x363   : > { %8213 = vmatmul.mubr.bf16.gmra.mrb[184].mxu1 %v19619_v38  ;;  %v19639_v38 = vld [vmem:[%s20896_s10 + $0x4] ss:$36 sps:$4 sm:$0xff]  }
 0x364   : > { %3419 = vmatmul.mubr.bf16.gmra.mrb[68].mxu0 %v19620_v0  ;;  %8220 = vmatprep.mubr.bf16.mxu1 %v19623_v44  ;;  %v19640_v0 = vld [vmem:[%s21563_s13 + $0x560] ss:$36 sps:$4 sm:$0xff]  }
 0x365   : > { %3428 = vmatprep.mubr.bf16.mxu0 %v25562_v1  ;;  %v19637_v44 = vld [vmem:[%s20896_s10] ss:$36 sps:$4 sm:$0xff]  }
 0x36b   : > { %8221 = vmatmul.mubr.bf16.gmra.mrb[188].mxu1 %v19625_v12  ;;  %v19644_v12 = vld [vmem:[%s20896_s10 + $0x4c] ss:$36 sps:$4 sm:$0xff]  }
 0x36c   : > { %3429 = vmatmul.mubr.bf16.gmra.mrb[72].mxu0 %v19626_v28  ;;  %8228 = vmatprep.mubr.bf16.mxu1 %v19628_v6  ;;  %v20557_v28 = vld [vmem:[%s25552_s2 + $0x80] sm:$0xff]   ;;  %v19641_v6 = vld [vmem:[%s21563_s13 + $0x10] ss:$36 sps:$4 sm:$0xff]  }
 0x36d   : > { %3438 = vmatprep.mubr.bf16.mxu0 %v25562_v1 }
 0x373   : > { %8229 = vmatmul.mubr.bf16.gmra.mrb[192].mxu1 %v19631_v52  ;;  %v19647_v52 = vld [vmem:[%s25552_s2 + $0x3c0] sm:$0xff]  }
 0x374   : > { %3439 = vmatmul.mubr.bf16.gmra.mrb[76].mxu0 %v19632_v25  ;;  %8236 = vmatprep.mubr.bf16.mxu1 %v19634_v16  ;;  %v19646_v16 = vld [vmem:[%s20896_s10 + $0x48] ss:$36 sps:$4 sm:$0xff]   ;;  %v19648_v25 = vld [vmem:[%s21563_s13 + $0x5c] ss:$36 sps:$4 sm:$0xff]  }
 0x375   : > { %5183 = vmatprep.mubr.bf16.mxu0 %v19639_v38  ;;  %v19650_v38 = vld [vmem:[%s20896_s10 + $0x94] ss:$36 sps:$4 sm:$0xff]  }
 0x37b   : > { %8237 = vmatmul.mubr.bf16.gmra.mrb[196].mxu1 %v19640_v0  ;;  %v19654_v0 = vld [vmem:[%s25552_s2 + $0x3c8] sm:$0xff]  }
 0x37c   : > { %5184 = vmatmul.mubr.bf16.vlgmr.msra.gmra.mrb[80].mxu0 %v19637_v44  ;;  %8277 = vmatprep.mubr.bf16.mxu1 %v19643_v4  ;;  %v20558_v4 = vld [vmem:[%s25552_s2 + $0x88] sm:$0xff]   ;;  %v20559_v44 = vld [vmem:[%s25552_s2 + $0x90] sm:$0xff]  }
 0x37d   : > { %5191 = vmatprep.mubr.bf16.mxu0 %v19644_v12  ;;  %5345 = vmatpush1.bf16.msra.mxu0 %v20557_v28  ;;  %v19652_v12 = vld [vmem:[%s21563_s13 + $0x58] ss:$36 sps:$4 sm:$0xff]   ;;  %v19653_v28 = vld [vmem:[%s20896_s10 + $0x90] ss:$36 sps:$4 sm:$0xff]  }
 0x37e   : > { %5346 = vmatprep.subr.bf16.mxu0 %v25562_v1 }
 0x381   : > { %5347 = vmatpush1.bf16.msra.mxu0 %v20558_v4  ;;  %v20561_v4 = vld [vmem:[%s25552_s2 + $0xa0] sm:$0xff]  }
 0x382   : > { %5348 = vmatprep.subr.bf16.mxu0 %v25562_v1 }
 0x383   : > { %8278 = vmatmul.mubr.bf16.vlgmr.msra.gmra.mrb[120].mxu1 %v19641_v6  ;;  %v19655_v6 = vld [vmem:[%s21563_s13 + $0xa4] ss:$36 sps:$4 sm:$0xff]  }
 0x384   : > { %5192 = vmatmul.mubr.bf16.gmra.mrb[84].mxu0 %v19646_v16  ;;  %8439 = vmatpush1.bf16.msra.mxu1 %v19647_v52  ;;  %v19657_v16 = vld [vmem:[%s20896_s10 + $0xdc] ss:$36 sps:$4 sm:$0xff]   ;;  %v19661_v52 = vld [vmem:[%s25552_s2 + $0x3d0] sm:$0xff]  }
 0x385   : > { %8285 = vmatprep.mubr.bf16.mxu1 %v19648_v25  ;;  %5199 = vmatprep.mubr.bf16.mxu0 %v19650_v38  ;;  %v20560_v25 = vld [vmem:[%s25552_s2 + $0x98] sm:$0xff]  }
 0x386   : > { %8440 = vmatprep.subr.bf16.mxu1 %v25562_v1  ;;  %5349 = vmatpush1.bf16.msra.mxu0 %v20559_v44  ;;  %v19670_v38 = vld [vmem:[%s25552_s2 + $0x3d8] sm:$0xff]  }
 0x387   : > { %5350 = vmatprep.subr.bf16.mxu0 %v25562_v1  ;;  %v19660_v44 = vld [vmem:[%s20896_s10 + $0xd8] ss:$36 sps:$4 sm:$0xff]  }
 0x388   : > { %8441 = vmatpush1.bf16.msra.mxu1 %v19654_v0  ;;  %v19659_v0 = vld [vmem:[%s21563_s13 + $0xa0] ss:$36 sps:$4 sm:$0xff]  }
 0x389   : > { %8442 = vmatprep.subr.bf16.mxu1 %v25562_v1 }
 0x38a   : > { %5351 = vmatpush1.bf16.msra.mxu0 %v20560_v25  ;;  %v20563_v25 = vld [vmem:[%s25552_s2 + $0xb0] sm:$0xff]  }
 0x38b   : > { %8286 = vmatmul.mubr.bf16.gmra.mrb[124].mxu1 %v19652_v12  ;;  %5352 = vmatprep.subr.bf16.mxu0 %v25562_v1  ;;  %v19662_v12 = vld [vmem:[%s21563_s13 + $0xec] ss:$36 sps:$4 sm:$0xff]  }
 0x38c   : > { %5200 = vmatmul.mubr.bf16.gmra.mrb[88].mxu0 %v19653_v28  ;;  %8293 = vmatprep.mubr.bf16.mxu1 %v19655_v6  ;;  %v19664_v28 = vld [vmem:[%s20896_s10 + $0x124] ss:$36 sps:$4 sm:$0xff]  }
 0x38d   : > { %5207 = vmatprep.mubr.bf16.mxu0 %v19657_v16  ;;  %8443 = vmatpush1.bf16.msra.mxu1 %v19661_v52  ;;  %v19681_v6 = vld [vmem:[%s25552_s2 + $0x3e0] sm:$0xff]   ;;  %v20562_v16 = vld [vmem:[%s25552_s2 + $0xa8] sm:$0xff]  }
 0x38e   : > { %8444 = vmatprep.subr.bf16.mxu1 %v25562_v1  ;;  %5353 = vmatpush1.bf16.msra.mxu0 %v20561_v4  ;;  %v19688_v52 = vld [vmem:[%s25552_s2 + $0x3e8] sm:$0xff]   ;;  %v19667_v4 = vld [vmem:[%s20896_s10 + $0x120] ss:$36 sps:$4 sm:$0xff]  }
 0x38f   : > { %5354 = vmatprep.subr.bf16.mxu0 %v25562_v1 }
 0x391   : > { %8445 = vmatpush1.bf16.msra.mxu1 %v19670_v38  ;;  %v19666_v38 = vld [vmem:[%s21563_s13 + $0xe8] ss:$36 sps:$4 sm:$0xff]  }
 0x392   : > { %8446 = vmatprep.subr.bf16.mxu1 %v25562_v1  ;;  %5355 = vmatpush1.bf16.msra.mxu0 %v20562_v16  ;;  %v20565_v16 = vld [vmem:[%s25552_s2 + $0xc0] sm:$0xff]  }
 0x393   : > { %8294 = vmatmul.mubr.bf16.gmra.mrb[128].mxu1 %v19659_v0  ;;  %5356 = vmatprep.subr.bf16.mxu0 %v25562_v1  ;;  %v19668_v0 = vld [vmem:[%s21563_s13 + $0x134] ss:$36 sps:$4 sm:$0xff]  }
 0x394   : > { %5208 = vmatmul.mubr.bf16.gmra.mrb[92].mxu0 %v19660_v44  ;;  %8301 = vmatprep.mubr.bf16.mxu1 %v19662_v12  ;;  %v19671_v44 = vld [vmem:[%s20896_s10 + $0x16c] ss:$36 sps:$4 sm:$0xff]  }
 0x395   : > { %5215 = vmatprep.mubr.bf16.mxu0 %v19664_v28  ;;  %8447 = vmatpush1.bf16.msra.mxu1 %v19681_v6  ;;  %v19695_v12 = vld [vmem:[%s25552_s2 + $0x3f0] sm:$0xff]   ;;  %v20564_v28 = vld [vmem:[%s25552_s2 + $0xb8] sm:$0xff]  }
 0x396   : > { %8448 = vmatprep.subr.bf16.mxu1 %v25562_v1  ;;  %5357 = vmatpush1.bf16.msra.mxu0 %v20563_v25  ;;  %v19704_v6 = vld [vmem:[%s25552_s2 + $0x3f8] sm:$0xff]   ;;  %v19674_v25 = vld [vmem:[%s20896_s10 + $0x168] ss:$36 sps:$4 sm:$0xff]  }
 0x397   : > { %5358 = vmatprep.subr.bf16.mxu0 %v25562_v1 }
 0x399   : > { %8449 = vmatpush1.bf16.msra.mxu1 %v19688_v52  ;;  %v19673_v52 = vld [vmem:[%s21563_s13 + $0x130] ss:$36 sps:$4 sm:$0xff]  }
 0x39a   : > { %8450 = vmatprep.subr.bf16.mxu1 %v25562_v1  ;;  %5359 = vmatpush1.bf16.msra.mxu0 %v20564_v28  ;;  %v20567_v28 = vld [vmem:[%s25552_s2 + $0xd0] sm:$0xff]  }
 0x39b   : > { %8302 = vmatmul.mubr.bf16.gmra.mrb[132].mxu1 %v19666_v38  ;;  %5360 = vmatprep.subr.bf16.mxu0 %v25562_v1  ;;  %v19675_v38 = vld [vmem:[%s21563_s13 + $0x17c] ss:$36 sps:$4 sm:$0xff]  }
 0x39c   : > { %5216 = vmatmul.mubr.bf16.gmra.mrb[96].mxu0 %v19667_v4  ;;  %8309 = vmatprep.mubr.bf16.mxu1 %v19668_v0  ;;  %v19677_v4 = vld [vmem:[%s20896_s10 + $0x1b4] ss:$36 sps:$4 sm:$0xff]   ;;  %v19715_v0 = vld [vmem:[%s25552_s2 + $0x400] sm:$0xff]  }
 0x39d   : > { %5223 = vmatprep.mubr.bf16.mxu0 %v19671_v44  ;;  %8451 = vmatpush1.bf16.msra.mxu1 %v19695_v12  ;;  %v20566_v44 = vld [vmem:[%s25552_s2 + $0xc8] sm:$0xff]  }
 0x39e   : > { %8452 = vmatprep.subr.bf16.mxu1 %v25562_v1  ;;  %5361 = vmatpush1.bf16.msra.mxu0 %v20565_v16  ;;  %v19722_v12 = vld [vmem:[%s25552_s2 + $0x408] sm:$0xff]   ;;  %v19680_v16 = vld [vmem:[%s20896_s10 + $0x1b0] ss:$36 sps:$4 sm:$0xff]  }
 0x39f   : > { %5362 = vmatprep.subr.bf16.mxu0 %v25562_v1 }
 0x3a1   : > { %8453 = vmatpush1.bf16.msra.mxu1 %v19704_v6  ;;  %v19679_v6 = vld [vmem:[%s21563_s13 + $0x178] ss:$36 sps:$4 sm:$0xff]  }
 0x3a2   : > { %8454 = vmatprep.subr.bf16.mxu1 %v25562_v1  ;;  %5363 = vmatpush1.bf16.msra.mxu0 %v20566_v44  ;;  %v20569_v44 = vld [vmem:[%s25552_s2 + $0xe0] sm:$0xff]  }
 0x3a3   : > { %8310 = vmatmul.mubr.bf16.gmra.mrb[136].mxu1 %v19673_v52  ;;  %5364 = vmatprep.subr.bf16.mxu0 %v25562_v1  ;;  %v19682_v52 = vld [vmem:[%s21563_s13 + $0x1c4] ss:$36 sps:$4 sm:$0xff]  }
 0x3a4   : > { %5224 = vmatmul.mubr.bf16.gmra.mrb[100].mxu0 %v19674_v25  ;;  %8317 = vmatprep.mubr.bf16.mxu1 %v19675_v38  ;;  %v19684_v25 = vld [vmem:[%s20896_s10 + $0x1fc] ss:$36 sps:$4 sm:$0xff]   ;;  %v19729_v38 = vld [vmem:[%s25552_s2 + $0x410] sm:$0xff]  }
 0x3a5   : > { %5231 = vmatprep.mubr.bf16.mxu0 %v19677_v4  ;;  %8455 = vmatpush1.bf16.msra.mxu1 %v19715_v0  ;;  %v20568_v4 = vld [vmem:[%s25552_s2 + $0xd8] sm:$0xff]  }
 0x3a6   : > { %8456 = vmatprep.subr.bf16.mxu1 %v25562_v1  ;;  %5365 = vmatpush1.bf16.msra.mxu0 %v20567_v28  ;;  %v19738_v0 = vld [vmem:[%s25552_s2 + $0x418] sm:$0xff]   ;;  %v19686_v28 = vld [vmem:[%s21563_s13 + $0x1c0] ss:$36 sps:$4 sm:$0xff]  }
 0x3a7   : > { %5366 = vmatprep.subr.bf16.mxu0 %v25562_v1 }
 0x3a9   : > { %8457 = vmatpush1.bf16.msra.mxu1 %v19722_v12 }
 0x3aa   : > { %8458 = vmatprep.subr.bf16.mxu1 %v25562_v1  ;;  %5367 = vmatpush1.bf16.msra.mxu0 %v20568_v4  ;;  %v19749_v4 = vld [vmem:[%s25552_s2 + $0x420] sm:$0xff]  }
 0x3ab   : > { %8318 = vmatmul.mubr.bf16.gmra.mrb[140].mxu1 %v19679_v6  ;;  %5368 = vmatprep.subr.bf16.mxu0 %v25562_v1 }
 0x3ac   : > { %5232 = vmatmul.mubr.bf16.gmra.mrb[104].mxu0 %v19680_v16  ;;  %8325 = vmatprep.mubr.bf16.mxu1 %v19682_v52  ;;  %v19687_v16 = vld [vmem:[%s20896_s10 + $0x1f8] ss:$36 sps:$4 sm:$0xff]   ;;  %v19689_v52 = vld [vmem:[%s21563_s13 + $0x20c] ss:$36 sps:$4 sm:$0xff]  }
 0x3ad   : > { %5239 = vmatprep.mubr.bf16.mxu0 %v19684_v25  ;;  %8459 = vmatpush1.bf16.msra.mxu1 %v19729_v38  ;;  %v19691_v38 = vld [vmem:[%s20896_s10 + $0x244] ss:$36 sps:$4 sm:$0xff]  }
 0x3ae   : > { %8460 = vmatprep.subr.bf16.mxu1 %v25562_v1  ;;  %5369 = vmatpush1.bf16.msra.mxu0 %v20569_v44  ;;  %v20570_v44 = vld [vmem:[%s25552_s2 + $0xe8] sm:$0xff]  }
 0x3af   : > { %v22407_v12 = vpop.f32.mrb[0].mxu0  ;;  %5370 = vmatprep.subr.bf16.mxu0 %v25562_v1 }
 0x3b0   : > { %25718 = vst [vmem:[#allocation56_spill] sm:$0xff] %v22407_v12  ;;  %v22411_v6 = vpop.f32.mrb[1].mxu0  ;;  %v19759_v12 = vld [vmem:[%s20896_s10 + $0x514] ss:$36 sps:$4 sm:$0xff]  }
 0x3b1   : > { %25719 = vst [vmem:[#allocation57_spill] sm:$0xff] %v22411_v6  ;;  %v22415_v25 = vpop.f32.mrb[2].mxu0  ;;  %8461 = vmatpush1.bf16.msra.mxu1 %v19738_v0  ;;  %v19756_v0 = vld [vmem:[%s25552_s2 + $0x428] sm:$0xff]  }
 0x3b2   : > { %25720 = vst [vmem:[#allocation58_spill] sm:$0xff] %v22415_v25  ;;  %v22421_v13 = vpop.f32.mrb[3].mxu0  ;;  %8462 = vmatprep.subr.bf16.mxu1 %v25562_v1  ;;  %5371 = vmatpush1.bf16.msra.mxu0 %v20570_v44  ;;  %v20571_v44 = vld [vmem:[%s25552_s2 + $0xf0] sm:$0xff]  }
 0x3b3   : > { %25721 = vst [vmem:[#allocation59_spill] sm:$0xff] %v22421_v13  ;;  %8326 = vmatmul.mubr.bf16.gmra.mrb[144].mxu1 %v19686_v28  ;;  %5372 = vmatprep.subr.bf16.mxu0 %v25562_v1  ;;  %v19693_v13 = vld [vmem:[%s21563_s13 + $0x208] ss:$36 sps:$4 sm:$0xff]  }
 0x3b4   : > { %5240 = vmatmul.mubr.bf16.gmra.mrb[108].mxu0 %v19687_v16  ;;  %8333 = vmatprep.mubr.bf16.mxu1 %v19689_v52  ;;  %v22442_v16 = vld [vmem:[%s25552_s2 + $0x440] sm:$0xff]  }
 0x3b5   : > { %5247 = vmatprep.mubr.bf16.mxu0 %v19691_v38  ;;  %8463 = vmatpush1.bf16.msra.mxu1 %v19749_v4  ;;  %v19694_v38 = vld [vmem:[%s20896_s10 + $0x240] ss:$36 sps:$4 sm:$0xff]   ;;  %v19696_v4 = vld [vmem:[%s21563_s13 + $0x254] ss:$36 sps:$4 sm:$0xff]  }
 0x3b6   : > { %8464 = vmatprep.subr.bf16.mxu1 %v25562_v1  ;;  %5373 = vmatpush1.bf16.msra.mxu0 %v20571_v44  ;;  %v19763_v44 = vld [vmem:[%s25552_s2 + $0x430] sm:$0xff]  }
 0x3b7   : > { %v22435_v28 = vpop.f32.mrb[4].mxu0  ;;  %5374 = vmatprep.subr.bf16.mxu0 %v25562_v1 }
 0x3b8   : > { %25722 = vst [vmem:[#allocation60_spill] sm:$0xff] %v22435_v28  ;;  %v22444_v52 = vpop.f32.mrb[5].mxu0 }
 0x3b9   : > { %25723 = vst [vmem:[#allocation61_spill] sm:$0xff] %v22444_v52  ;;  %v22448_v6 = vpop.f32.mrb[6].mxu0  ;;  %8465 = vmatpush1.bf16.msra.mxu1 %v19756_v0  ;;  %v20572_v52 = vld [vmem:[%s25552_s2 + $0xf8] sm:$0xff]  }
 0x3ba   : > { %25724 = vst [vmem:[#allocation62_spill] sm:$0xff] %v22448_v6  ;;  %v22454_v28 = vpop.f32.mrb[7].mxu0  ;;  %8466 = vmatprep.subr.bf16.mxu1 %v25562_v1  ;;  %5375 = vmatpush1.bf16.msra.mxu0 %v20572_v52  ;;  %v19772_v0 = vld [vmem:[%s25552_s2 + $0x438] sm:$0xff]  }
 0x3bb   : > { %25725 = vst [vmem:[#allocation63_spill] sm:$0xff] %v22454_v28  ;;  %8334 = vmatmul.mubr.bf16.gmra.mrb[148].mxu1 %v19693_v13  ;;  %17162 = vmatprep.subr.bf16.mxu0 %v22442_v16  ;;  %v22468_v28 = vld [vmem:[%s25552_s2 + $0x680] sm:$0xff]   ;;  %v19700_v13 = vld [vmem:[%s21563_s13 + $0x250] ss:$36 sps:$4 sm:$0xff]  }
 0x3bc   : > { %5248 = vmatmul.mubr.bf16.gmra.mrb[112].mxu0 %v19694_v38  ;;  %8341 = vmatprep.mubr.bf16.mxu1 %v19696_v4  ;;  %v19702_v4 = vld [vmem:[%s21563_s13 + $0x29c] ss:$36 sps:$4 sm:$0xff]   ;;  %v19705_v6 = vld [vmem:[%s20896_s10 + $0x2d4] ss:$36 sps:$4 sm:$0xff]  }
 0x3bd   : > { %5255 = vmatprep.mubr.bf16.mxu0 %v19698_v15  ;;  %8467 = vmatpush1.bf16.msra.mxu1 %v19763_v44  ;;  %v19701_v15 = vld [vmem:[%s20896_s10 + $0x288] ss:$36 sps:$4 sm:$0xff]  }
 0x3be   : > { %8468 = vmatprep.subr.bf16.mxu1 %v25562_v1 }
 0x3bf   : > { %v22470_v52 = vpop.f32.mrb[8].mxu0 }
 0x3c0   : > { %25726 = vst [vmem:[#allocation64_spill] sm:$0xff] %v22470_v52  ;;  %v22473_v38 = vpop.f32.mrb[9].mxu0 }
 0x3c1   : > { %25727 = vst [vmem:[#allocation65_spill] sm:$0xff] %v22473_v38  ;;  %v22477_v44 = vpop.f32.mrb[10].mxu0  ;;  %8469 = vmatpush1.bf16.msra.mxu1 %v19772_v0  ;;  %v19707_v38 = vld [vmem:[%s21563_s13 + $0x298] ss:$36 sps:$4 sm:$0xff]  }
 0x3c2   : > { %25728 = vst [vmem:[#allocation66_spill] sm:$0xff] %v22477_v44  ;;  %v22480_v1 = vpop.f32.mrb[11].mxu0  ;;  %17218 = vmatprep.subr.bf16.mxu1 %v22468_v28  ;;  %v19708_v44 = vld [vmem:[%s20896_s10 + $0x2d0] ss:$36 sps:$4 sm:$0xff]  }
 0x3c3   : > { %25729 = vst [vmem:[#allocation67_spill] sm:$0xff] %v22480_v1  ;;  %8342 = vmatmul.mubr.bf16.gmra.mrb[152].mxu1 %v19700_v13  ;;  %v19711_v1 = vld [vmem:[%s20896_s10 + $0x31c] ss:$36 sps:$4 sm:$0xff]  }
 0x3c4   : > { %5256 = vmatmul.mubr.bf16.gmra.mrb[116].mxu0 %v19701_v15  ;;  %8349 = vmatprep.mubr.bf16.mxu1 %v19702_v4  ;;  %v19713_v13 = vld [vmem:[%s21563_s13 + $0x2e0] ss:$36 sps:$4 sm:$0xff]   ;;  %v19714_v4 = vld [vmem:[%s20896_s10 + $0x318] ss:$36 sps:$4 sm:$0xff]  }
 0x3c5   : > { %5263 = vmatprep.mubr.bf16.mxu0 %v19705_v6 }
 0x3c7   : > { %v22483_v52 = vpop.f32.mrb[12].mxu0 }
 0x3c8   : > { %25730 = vst [vmem:[#allocation68_spill] sm:$0xff] %v22483_v52  ;;  %v22486_v8 = vpop.f32.mrb[13].mxu0 }
 0x3c9   : > { %25731 = vst [vmem:[#allocation69_spill] sm:$0xff] %v22486_v8  ;;  %v22490_v0 = vpop.f32.mrb[14].mxu0  ;;  %v19716_v8 = vld [vmem:[%s21563_s13 + $0x32c] ss:$36 sps:$4 sm:$0xff]  }
 0x3ca   : > { %25732 = vst [vmem:[#allocation70_spill] sm:$0xff] %v22490_v0  ;;  %v22493_v5 = vpop.f32.mrb[15].mxu0  ;;  %v19718_v0 = vld [vmem:[%s20896_s10 + $0x364] ss:$36 sps:$4 sm:$0xff]  }
 0x3cb   : > { %25733 = vst [vmem:[#allocation71_spill] sm:$0xff] %v22493_v5  ;;  %8350 = vmatmul.mubr.bf16.gmra.mrb[156].mxu1 %v19707_v38 }
 0x3cc   : > { %5264 = vmatmul.mubr.bf16.gmra.mrb[120].mxu0 %v19708_v44  ;;  %8357 = vmatprep.mubr.bf16.mxu1 %v19709_v7  ;;  %v19720_v7 = vld [vmem:[%s21563_s13 + $0x328] ss:$36 sps:$4 sm:$0xff]   ;;  %v19721_v44 = vld [vmem:[%s20896_s10 + $0x360] ss:$36 sps:$4 sm:$0xff]  }
 0x3cd   : > { %5271 = vmatprep.mubr.bf16.mxu0 %v19711_v1 }
 0x3cf   : > { %v22495_v6 = vpop.f32.mrb[16].mxu0 }
 0x3d0   : > { %25734 = vst [vmem:[#allocation72_spill] sm:$0xff] %v22495_v6  ;;  %v22498_v15 = vpop.f32.mrb[17].mxu0 }
 0x3d1   : > { %25735 = vst [vmem:[#allocation73_spill] sm:$0xff] %v22498_v15  ;;  %v22502_v52 = vpop.f32.mrb[18].mxu0  ;;  %v19723_v15 = vld [vmem:[%s21563_s13 + $0x374] ss:$36 sps:$4 sm:$0xff]  }
 0x3d2   : > { %25736 = vst [vmem:[#allocation74_spill] sm:$0xff] %v22502_v52  ;;  %v22505_v25 = vpop.f32.mrb[19].mxu0  ;;  %v19725_v52 = vld [vmem:[%s20896_s10 + $0x3ac] ss:$36 sps:$4 sm:$0xff]  }
 0x3d3   : > { %25737 = vst [vmem:[#allocation75_spill] sm:$0xff] %v22505_v25  ;;  %8358 = vmatmul.mubr.bf16.gmra.mrb[160].mxu1 %v19713_v13 }
 0x3d4   : > { %5272 = vmatmul.mubr.bf16.gmra.mrb[124].mxu0 %v19714_v4  ;;  %8365 = vmatprep.mubr.bf16.mxu1 %v19716_v8  ;;  %v19728_v4 = vld [vmem:[%s20896_s10 + $0x3a8] ss:$36 sps:$4 sm:$0xff]  }
 0x3d5   : > { %5279 = vmatprep.mubr.bf16.mxu0 %v19718_v0  ;;  %v19727_v0 = vld [vmem:[%s21563_s13 + $0x370] ss:$36 sps:$4 sm:$0xff]  }
 0x3d7   : > { %v22507_v1 = vpop.f32.mrb[20].mxu0 }
 0x3d8   : > { %25738 = vst [vmem:[#allocation76_spill] sm:$0xff] %v22507_v1  ;;  %v22510_v38 = vpop.f32.mrb[21].mxu0 }
 0x3d9   : > { %25739 = vst [vmem:[#allocation77_spill] sm:$0xff] %v22510_v38  ;;  %v22514_v5 = vpop.f32.mrb[22].mxu0  ;;  %v19730_v38 = vld [vmem:[%s21563_s13 + $0x3bc] ss:$36 sps:$4 sm:$0xff]  }
 0x3da   : > { %25740 = vst [vmem:[#allocation78_spill] sm:$0xff] %v22514_v5  ;;  %v22517_v6 = vpop.f32.mrb[23].mxu0  ;;  %v19732_v5 = vld [vmem:[%s20896_s10 + $0x3f4] ss:$36 sps:$4 sm:$0xff]  }
 0x3db   : > { %25741 = vst [vmem:[#allocation79_spill] sm:$0xff] %v22517_v6  ;;  %8366 = vmatmul.mubr.bf16.gmra.mrb[164].mxu1 %v19720_v7 }
 0x3dc   : > { %5280 = vmatmul.mubr.bf16.gmra.mrb[128].mxu0 %v19721_v44  ;;  %8373 = vmatprep.mubr.bf16.mxu1 %v19723_v15  ;;  %v19734_v15 = vld [vmem:[%s21563_s13 + $0x3b8] ss:$36 sps:$4 sm:$0xff]   ;;  %v19735_v44 = vld [vmem:[%s20896_s10 + $0x3f0] ss:$36 sps:$4 sm:$0xff]  }
 0x3dd   : > { %5287 = vmatprep.mubr.bf16.mxu0 %v19725_v52 }
 0x3df   : > { %v22519_v8 = vpop.f32.mrb[24].mxu0 }
 0x3e0   : > { %25742 = vst [vmem:[#allocation80_spill] sm:$0xff] %v22519_v8  ;;  %v22522_v13 = vpop.f32.mrb[25].mxu0 }
 0x3e1   : > { %25743 = vst [vmem:[#allocation81_spill] sm:$0xff] %v22522_v13  ;;  %v22526_v25 = vpop.f32.mrb[26].mxu0  ;;  %v19736_v13 = vld [vmem:[%s21563_s13 + $0x404] ss:$36 sps:$4 sm:$0xff]  }
 0x3e2   : > { %25744 = vst [vmem:[#allocation82_spill] sm:$0xff] %v22526_v25  ;;  %v22529_v1 = vpop.f32.mrb[27].mxu0  ;;  %v19739_v25 = vld [vmem:[%s20896_s10 + $0x43c] ss:$36 sps:$4 sm:$0xff]  }
 0x3e3   : > { %25745 = vst [vmem:[#allocation83_spill] sm:$0xff] %v22529_v1  ;;  %8374 = vmatmul.mubr.bf16.gmra.mrb[168].mxu1 %v19727_v0 }
 0x3e4   : > { %5288 = vmatmul.mubr.bf16.gmra.mrb[132].mxu0 %v19728_v4  ;;  %8381 = vmatprep.mubr.bf16.mxu1 %v19730_v38  ;;  %v19741_v38 = vld [vmem:[%s21563_s13 + $0x400] ss:$36 sps:$4 sm:$0xff]   ;;  %v19742_v4 = vld [vmem:[%s20896_s10 + $0x438] ss:$36 sps:$4 sm:$0xff]  }
 0x3e5   : > { %5295 = vmatprep.mubr.bf16.mxu0 %v19732_v5 }
 0x3e7   : > { %v22531_v52 = vpop.f32.mrb[28].mxu0 }
 0x3e8   : > { %25746 = vst [vmem:[#allocation84_spill] sm:$0xff] %v22531_v52  ;;  %v22534_v7 = vpop.f32.mrb[29].mxu0 }
 0x3e9   : > { %25747 = vst [vmem:[#allocation85_spill] sm:$0xff] %v22534_v7  ;;  %v22538_v6 = vpop.f32.mrb[30].mxu0  ;;  %v19743_v7 = vld [vmem:[%s21563_s13 + $0x44c] ss:$36 sps:$4 sm:$0xff]  }
 0x3ea   : > { %25748 = vst [vmem:[#allocation86_spill] sm:$0xff] %v22538_v6  ;;  %v22541_v8 = vpop.f32.mrb[31].mxu0  ;;  %v19745_v6 = vld [vmem:[%s20896_s10 + $0x484] ss:$36 sps:$4 sm:$0xff]  }
 0x3eb   : > { %25749 = vst [vmem:[#allocation87_spill] sm:$0xff] %v22541_v8  ;;  %8382 = vmatmul.mubr.bf16.gmra.mrb[172].mxu1 %v19734_v15 }
 0x3ec   : > { %5296 = vmatmul.mubr.bf16.gmra.mrb[136].mxu0 %v19735_v44  ;;  %8389 = vmatprep.mubr.bf16.mxu1 %v19736_v13  ;;  %v19747_v13 = vld [vmem:[%s21563_s13 + $0x448] ss:$36 sps:$4 sm:$0xff]   ;;  %v19748_v44 = vld [vmem:[%s20896_s10 + $0x480] ss:$36 sps:$4 sm:$0xff]  }
 0x3ed   : > { %5303 = vmatprep.mubr.bf16.mxu0 %v19739_v25 }
 0x3ef   : > { %v22543_v5 = vpop.f32.mrb[32].mxu0 }
 0x3f0   : > { %25750 = vst [vmem:[#allocation88_spill] sm:$0xff] %v22543_v5  ;;  %v22546_v0 = vpop.f32.mrb[33].mxu0 }
 0x3f1   : > { %25751 = vst [vmem:[#allocation89_spill] sm:$0xff] %v22546_v0  ;;  %v22550_v1 = vpop.f32.mrb[34].mxu0  ;;  %v19750_v0 = vld [vmem:[%s21563_s13 + $0x494] ss:$36 sps:$4 sm:$0xff]  }
 0x3f2   : > { %25752 = vst [vmem:[#allocation90_spill] sm:$0xff] %v22550_v1  ;;  %v22553_v52 = vpop.f32.mrb[35].mxu0  ;;  %v19752_v1 = vld [vmem:[%s20896_s10 + $0x4cc] ss:$36 sps:$4 sm:$0xff]  }
 0x3f3   : > { %25753 = vst [vmem:[#allocation91_spill] sm:$0xff] %v22553_v52  ;;  %8390 = vmatmul.mubr.bf16.gmra.mrb[176].mxu1 %v19741_v38 }
 0x3f4   : > { %5304 = vmatmul.mubr.bf16.gmra.mrb[140].mxu0 %v19742_v4  ;;  %8397 = vmatprep.mubr.bf16.mxu1 %v19743_v7  ;;  %v19754_v7 = vld [vmem:[%s21563_s13 + $0x490] ss:$36 sps:$4 sm:$0xff]   ;;  %v19755_v4 = vld [vmem:[%s20896_s10 + $0x4c8] ss:$36 sps:$4 sm:$0xff]  }
 0x3f5   : > { %5311 = vmatprep.mubr.bf16.mxu0 %v19745_v6 }
 0x3f7   : > { %v22555_v25 = vpop.f32.mrb[36].mxu0 }
 0x3f8   : > { %v22558_v15 = vpop.f32.mrb[37].mxu0 }
 0x3f9   : > { %25754 = vst [vmem:[#allocation92_spill] sm:$0xff] %v22558_v15  ;;  %v22562_v8 = vpop.f32.mrb[38].mxu0  ;;  %v19757_v15 = vld [vmem:[%s21563_s13 + $0x4dc] ss:$36 sps:$4 sm:$0xff]  }
 0x3fa   : > { %v22565_v5 = vpop.f32.mrb[39].mxu0 }
 0x3fb   : > { %25755 = vst [vmem:[#allocation93_spill] sm:$0xff] %v22565_v5  ;;  %8398 = vmatmul.mubr.bf16.gmra.mrb[180].mxu1 %v19747_v13 }
 0x3fc   : > { %5312 = vmatmul.mubr.bf16.gmra.mrb[144].mxu0 %v19748_v44  ;;  %8405 = vmatprep.mubr.bf16.mxu1 %v19750_v0  ;;  %v19761_v0 = vld [vmem:[%s21563_s13 + $0x4d8] ss:$36 sps:$4 sm:$0xff]   ;;  %v19762_v44 = vld [vmem:[%s20896_s10 + $0x510] ss:$36 sps:$4 sm:$0xff]  }
 0x3fd   : > { %5319 = vmatprep.mubr.bf16.mxu0 %v19752_v1 }
 0x3ff   : > { %v22567_v6 = vpop.f32.mrb[40].mxu0 }
 0x400   : > { %v22570_v38 = vpop.f32.mrb[41].mxu0 }
 0x401   : > { %25756 = vst [vmem:[#allocation94_spill] sm:$0xff] %v22570_v38  ;;  %v22574_v52 = vpop.f32.mrb[42].mxu0  ;;  %v19764_v38 = vld [vmem:[%s21563_s13 + $0x524] ss:$36 sps:$4 sm:$0xff]  }
 0x402   : > { %v22577_v24 = vpop.f32.mrb[43].mxu0 }
 0x403   : > { %25757 = vst [vmem:[#allocation95_spill] sm:$0xff] %v22577_v24  ;;  %8406 = vmatmul.mubr.bf16.gmra.mrb[184].mxu1 %v19754_v7 }
 0x404   : > { %5320 = vmatmul.mubr.bf16.gmra.mrb[148].mxu0 %v19755_v4  ;;  %8413 = vmatprep.mubr.bf16.mxu1 %v19757_v15  ;;  %v19768_v15 = vld [vmem:[%s21563_s13 + $0x520] ss:$36 sps:$4 sm:$0xff]   ;;  %v19769_v4 = vld [vmem:[%s20896_s10 + $0x558] ss:$36 sps:$4 sm:$0xff]  }
 0x405   : > { %5327 = vmatprep.mubr.bf16.mxu0 %v19759_v12 }
 0x407   : > { %v22579_v1 = vpop.f32.mrb[44].mxu0 }
 0x408   : > { %v22582_v13 = vpop.f32.mrb[45].mxu0 }
 0x409   : > { %25758 = vst [vmem:[#allocation96_spill] sm:$0xff] %v22582_v13  ;;  %v22586_v5 = vpop.f32.mrb[46].mxu0  ;;  %v19770_v13 = vld [vmem:[%s21563_s13 + $0x56c] ss:$36 sps:$4 sm:$0xff]  }
 0x40a   : > { %v22589_v9 = vpop.f32.mrb[47].mxu0 }
 0x40b   : > { %25759 = vst [vmem:[#allocation97_spill] sm:$0xff] %v22589_v9  ;;  %8414 = vmatmul.mubr.bf16.gmra.mrb[188].mxu1 %v19761_v0 }
 0x40c   : > { %5328 = vmatmul.mubr.bf16.gmra.mrb[152].mxu0 %v19762_v44  ;;  %8421 = vmatprep.mubr.bf16.mxu1 %v19764_v38  ;;  %v19776_v38 = vld [vmem:[%s21563_s13 + $0x568] ss:$36 sps:$4 sm:$0xff]  }
 0x40d   : > { %5335 = vmatprep.mubr.bf16.mxu0 %v19766_v60  ;;  %v19773_v44 = vld [vmem:[%s20896_s10 + $0x8] ss:$36 sps:$4 sm:$0xff]  }
 0x40f   : > { %v22591_v12 = vpop.f32.mrb[48].mxu0 }
 0x410   : > { %v22594_v7 = vpop.f32.mrb[49].mxu0 }
 0x411   : > { %25760 = vst [vmem:[#allocation98_spill] sm:$0xff] %v22594_v7  ;;  %v22598_v24 = vpop.f32.mrb[50].mxu0  ;;  %v19779_v7 = vld [vmem:[%s21563_s13 + $0x1c] ss:$36 sps:$4 sm:$0xff]  }
 0x412   : > { %v22601_v41 = vpop.f32.mrb[51].mxu0 }
 0x413   : > { %25761 = vst [vmem:[#allocation99_spill] sm:$0xff] %v22601_v41  ;;  %8422 = vmatmul.mubr.bf16.gmra.mrb[192].mxu1 %v19768_v15 }
 0x414   : > { %5336 = vmatmul.mubr.bf16.gmra.mrb[156].mxu0 %v19769_v4  ;;  %8429 = vmatprep.mubr.bf16.mxu1 %v19770_v13  ;;  %v19799_v13 = vld [vmem:[%s25552_s2 + $0x450] sm:$0xff]   ;;  %v19777_v4 = vld [vmem:[%s21563_s13 + $0x18] ss:$36 sps:$4 sm:$0xff]  }
 0x415   : > { %5376 = vmatprep.mubr.bf16.mxu0 %v19775_v57  ;;  %v19791_v57 = vld [vmem:[%s25552_s2 + $0x448] sm:$0xff]  }
 0x417   : > { %v22603_v60 = vpop.f32.mrb[52].mxu0 }
 0x418   : > { %v22606_v0 = vpop.f32.mrb[53].mxu0 }
 0x419   : > { %25762 = vst [vmem:[#allocation100_spill] sm:$0xff] %v22606_v0  ;;  %v22610_v9 = vpop.f32.mrb[54].mxu0 }
 0x41a   : > { %v22613_v36 = vpop.f32.mrb[55].mxu0 }
 0x41b   : > { %25763 = vst [vmem:[#allocation101_spill] sm:$0xff] %v22613_v36  ;;  %8430 = vmatmul.mubr.bf16.gmra.mrb[196].mxu1 %v19776_v38  ;;  %v19783_v36 = vld [vmem:[%s20896_s10 + $0x50] ss:$36 sps:$4 sm:$0xff]   ;;  %v19787_v38 = vld [vmem:[%s20896_s10 + $0x9c] ss:$36 sps:$4 sm:$0xff]  }
 0x41c   : > { %5377 = vmatmul.mubr.bf16.vlgmr.msra.gmra.mrb[80].mxu0 %v19773_v44  ;;  %8470 = vmatprep.mubr.bf16.mxu1 %v19779_v7  ;;  %v19806_v7 = vld [vmem:[%s25552_s2 + $0x458] sm:$0xff]   ;;  %v19819_v44 = vld [vmem:[%s25552_s2 + $0x690] sm:$0xff]  }
 0x41d   : > { %5384 = vmatprep.mubr.bf16.mxu0 %v19780_v56  ;;  %17163 = vmatpush3.bf16.msra.mxu0 %v22442_v16  ;;  %v19798_v16 = vld [vmem:[%s25552_s2 + $0x688] sm:$0xff]  }
 0x41e   : > { %17164 = vmatprep.subr.bf16.mxu0 %v19791_v57 }
 0x41f   : > { %v22622_v15 = vpop.f32.mrb[56].mxu0 }
 0x420   : > { %v22625_v0 = vpop.f32.mrb[57].mxu0 }
 0x421   : > { %25764 = vst [vmem:[#allocation102_spill] sm:$0xff] %v22625_v0  ;;  %v22628_v41 = vpop.f32.mrb[58].mxu0  ;;  %17165 = vmatpush3.bf16.msra.mxu0 %v19791_v57  ;;  %v19790_v0 = vld [vmem:[%s20896_s10 + $0x98] ss:$36 sps:$4 sm:$0xff]  }
 0x422   : > { %v22632_v56 = vpop.f32.mrb[59].mxu0  ;;  %17166 = vmatprep.subr.bf16.mxu0 %v19799_v13 }
 0x423   : > { %25765 = vst [vmem:[#allocation103_spill] sm:$0xff] %v22632_v56  ;;  %8471 = vmatmul.mubr.bf16.vlgmr.msra.gmra.mrb[120].mxu1 %v19777_v4  ;;  %v19789_v56 = vld [vmem:[%s21563_s13 + $0x60] ss:$36 sps:$4 sm:$0xff]  }
 0x424   : > { %5385 = vmatmul.mubr.bf16.gmra.mrb[84].mxu0 %v19783_v36  ;;  %17219 = vmatpush3.bf16.msra.mxu1 %v22468_v28  ;;  %v19815_v4 = vld [vmem:[%s25552_s2 + $0x460] sm:$0xff]  }
 0x425   : > { %8478 = vmatprep.mubr.bf16.mxu1 %v19785_v49  ;;  %5392 = vmatprep.mubr.bf16.mxu0 %v19787_v38  ;;  %v19792_v49 = vld [vmem:[%s21563_s13 + $0xac] ss:$36 sps:$4 sm:$0xff]   ;;  %v19794_v38 = vld [vmem:[%s20896_s10 + $0xe4] ss:$36 sps:$4 sm:$0xff]  }
 0x426   : > { %17220 = vmatprep.subr.bf16.mxu1 %v19798_v16  ;;  %17167 = vmatpush3.bf16.msra.mxu0 %v19799_v13  ;;  %v19835_v13 = vld [vmem:[%s25552_s2 + $0x698] sm:$0xff]  }
 0x427   : > { %v22644_v57 = vpop.f32.mrb[60].mxu0  ;;  %17168 = vmatprep.subr.bf16.mxu0 %v19806_v7 }
 0x428   : > { %v22650_v36 = vpop.f32.mrb[61].mxu0  ;;  %17221 = vmatpush3.bf16.msra.mxu1 %v19798_v16 }
 0x429   : > { %25766 = vst [vmem:[#allocation104_spill] sm:$0xff] %v22650_v36  ;;  %v22654_v28 = vpop.f32.mrb[62].mxu0  ;;  %17222 = vmatprep.subr.bf16.mxu1 %v19819_v44  ;;  %v19826_v36 = vld [vmem:[%s25552_s2 + $0x468] sm:$0xff]  }
 0x42a   : > { %v22657_v29 = vpop.f32.mrb[63].mxu0  ;;  %17169 = vmatpush3.bf16.msra.mxu0 %v19806_v7  ;;  %v19796_v7 = vld [vmem:[%s21563_s13 + $0xa8] ss:$36 sps:$4 sm:$0xff]  }
 0x42b   : > { %25767 = vst [vmem:[#allocation105_spill] sm:$0xff] %v22657_v29  ;;  %8479 = vmatmul.mubr.bf16.gmra.mrb[124].mxu1 %v19789_v56  ;;  %17170 = vmatprep.subr.bf16.mxu0 %v19815_v4  ;;  %v19852_v56 = vld [vmem:[%s25552_s2 + $0x6a0] sm:$0xff]   ;;  %v19802_v29 = vld [vmem:[%s20896_s10 + $0x12c] ss:$36 sps:$4 sm:$0xff]  }
 0x42c   : > { %5393 = vmatmul.mubr.bf16.gmra.mrb[88].mxu0 %v19790_v0  ;;  %8486 = vmatprep.mubr.bf16.mxu1 %v19792_v49  ;;  %v19834_v0 = vld [vmem:[%s25552_s2 + $0x470] sm:$0xff]  }
 0x42d   : > { %5400 = vmatprep.mubr.bf16.mxu0 %v19794_v38  ;;  %17223 = vmatpush3.bf16.msra.mxu1 %v19819_v44  ;;  %v19797_v38 = vld [vmem:[%s20896_s10 + $0xe0] ss:$36 sps:$4 sm:$0xff]   ;;  %v19800_v44 = vld [vmem:[%s21563_s13 + $0xf4] ss:$36 sps:$4 sm:$0xff]  }
 0x42e   : > { %17171 = vmatpush3.bf16.msra.mxu0 %v19815_v4  ;;  %17224 = vmatprep.subr.bf16.mxu1 %v19835_v13 }
 0x42f   : > { %v22669_v16 = vpop.f32.mrb[64].mxu0  ;;  %17172 = vmatprep.subr.bf16.mxu0 %v19826_v36 }
 0x430   : > { %v22675_v49 = vpop.f32.mrb[65].mxu0 }
 0x431   : > { %25768 = vst [vmem:[#allocation106_spill] sm:$0xff] %v22675_v49  ;;  %v22682_v4 = vpop.f32.mrb[66].mxu0  ;;  %17225 = vmatpush3.bf16.msra.mxu1 %v19835_v13  ;;  %v19868_v49 = vld [vmem:[%s25552_s2 + $0x6a8] sm:$0xff]   ;;  %v19888_v13 = vld [vmem:[%s25552_s2 + $0x6b0] sm:$0xff]  }
 0x432   : > { %v22685_v39 = vpop.f32.mrb[67].mxu0  ;;  %17173 = vmatpush3.bf16.msra.mxu0 %v19826_v36  ;;  %17226 = vmatprep.subr.bf16.mxu1 %v19852_v56  ;;  %v19804_v36 = vld [vmem:[%s21563_s13 + $0xf0] ss:$36 sps:$4 sm:$0xff]  }
 0x433   : > { %25769 = vst [vmem:[#allocation107_spill] sm:$0xff] %v22685_v39  ;;  %8487 = vmatmul.mubr.bf16.gmra.mrb[128].mxu1 %v19796_v7  ;;  %17174 = vmatprep.subr.bf16.mxu0 %v19834_v0  ;;  %v19805_v39 = vld [vmem:[%s20896_s10 + $0x128] ss:$36 sps:$4 sm:$0xff]   ;;  %v19807_v7 = vld [vmem:[%s21563_s13 + $0x13c] ss:$36 sps:$4 sm:$0xff]  }
 0x434   : > { %5401 = vmatmul.mubr.bf16.gmra.mrb[92].mxu0 %v19797_v38  ;;  %8494 = vmatprep.mubr.bf16.mxu1 %v19800_v44  ;;  %v19809_v44 = vld [vmem:[%s20896_s10 + $0x174] ss:$36 sps:$4 sm:$0xff]  }
 0x435   : > { %5408 = vmatprep.mubr.bf16.mxu0 %v19802_v29  ;;  %17227 = vmatpush3.bf16.msra.mxu1 %v19852_v56  ;;  %v19905_v29 = vld [vmem:[%s25552_s2 + $0x6b8] sm:$0xff]   ;;  %v25774_v56 = vmov 0  }
 0x436   : > { %17175 = vmatpush3.bf16.msra.mxu0 %v19834_v0  ;;  %17228 = vmatprep.subr.bf16.mxu1 %v19868_v49  ;;  %v19811_v0 = vld [vmem:[%s21563_s13 + $0x138] ss:$36 sps:$4 sm:$0xff]  }
 0x437   : > { %v22698_v35 = vpop.f32.mrb[68].mxu0  ;;  %17176 = vmatprep.subr.bf16.mxu0 %v19836_v19 }
 0x438   : > { %25770 = vst [vmem:[#allocation108_spill] sm:$0xff] %v22698_v35  ;;  %v22700_v55 = vpop.f32.mrb[69].mxu0 }
 0x439   : > { %25771 = vst [vmem:[#allocation109_spill] sm:$0xff] %v22700_v55  ;;  %v22703_v38 = vpop.f32.mrb[70].mxu0  ;;  %17229 = vmatpush3.bf16.msra.mxu1 %v19868_v49  ;;  %v19812_v49 = vld [vmem:[%s20896_s10 + $0x170] ss:$36 sps:$4 sm:$0xff]   ;;  %v19813_v55 = vld [vmem:[%s21563_s13 + $0x184] ss:$36 sps:$4 sm:$0xff]  }
 0x43a   : > { %25772 = vst [vmem:[#allocation110_spill] sm:$0xff] %v22703_v38  ;;  %v22706_v26 = vpop.f32.mrb[71].mxu0  ;;  %17177 = vmatpush3.bf16.msra.mxu0 %v19836_v19  ;;  %17230 = vmatprep.subr.bf16.mxu1 %v19888_v13 }
 0x43b   : > { %25773 = vst [vmem:[#allocation111_spill] sm:$0xff] %v22706_v26  ;;  %8495 = vmatmul.mubr.bf16.gmra.mrb[132].mxu1 %v19804_v36  ;;  %10566 = vmatprep.subr.bf16.mxu0 %v25774_v56  ;;  %v19816_v36 = vld [vmem:[%s20896_s10 + $0x1bc] ss:$36 sps:$4 sm:$0xff]  }
 0x43c   : > { %5409 = vmatmul.mubr.bf16.gmra.mrb[96].mxu0 %v19805_v39  ;;  %8502 = vmatprep.mubr.bf16.mxu1 %v19807_v7  ;;  %v19820_v7 = vld [vmem:[%s20896_s10 + $0x1b8] ss:$36 sps:$4 sm:$0xff]  }
 0x43d   : > { %5416 = vmatprep.mubr.bf16.mxu0 %v19809_v44  ;;  %17231 = vmatpush3.bf16.msra.mxu1 %v19888_v13  ;;  %v19818_v13 = vld [vmem:[%s21563_s13 + $0x180] ss:$36 sps:$4 sm:$0xff]  }
 0x43e   : > { %17232 = vmatprep.subr.bf16.mxu1 %v19905_v29 }
 0x43f   : > { %v22714_v26 = vpop.f32.mrb[72].mxu0 }
 0x440   : > { %25775 = vst [vmem:[#allocation112_spill] sm:$0xff] %v22714_v26  ;;  %v22716_v19 = vpop.f32.mrb[73].mxu0  ;;  %v19845_v26 = vld [vmem:[%s21563_s13 + $0xb0] ss:$36 sps:$4 sm:$0xff]  }
 0x441   : > { %25776 = vst [vmem:[#allocation113_spill] sm:$0xff] %v22716_v19  ;;  %v22719_v38 = vpop.f32.mrb[74].mxu0  ;;  %17233 = vmatpush3.bf16.msra.mxu1 %v19905_v29 }
 0x442   : > { %25777 = vst [vmem:[#allocation114_spill] sm:$0xff] %v22719_v38  ;;  %v22722_v39 = vpop.f32.mrb[75].mxu0  ;;  %13274 = vmatprep.subr.bf16.mxu1 %v25774_v56  ;;  %v19821_v38 = vld [vmem:[%s21563_s13 + $0x1cc] ss:$36 sps:$4 sm:$0xff]  }
 0x443   : > { %25778 = vst [vmem:[#allocation115_spill] sm:$0xff] %v22722_v39  ;;  %8503 = vmatmul.mubr.bf16.gmra.mrb[136].mxu1 %v19811_v0  ;;  %v19823_v39 = vld [vmem:[%s20896_s10 + $0x204] ss:$36 sps:$4 sm:$0xff]  }
 0x444   : > { %5417 = vmatmul.mubr.bf16.gmra.mrb[100].mxu0 %v19812_v49  ;;  %8510 = vmatprep.mubr.bf16.mxu1 %v19813_v55  ;;  %v19825_v55 = vld [vmem:[%s21563_s13 + $0x1c8] ss:$36 sps:$4 sm:$0xff]   ;;  %v19827_v49 = vld [vmem:[%s20896_s10 + $0x200] ss:$36 sps:$4 sm:$0xff]  }
 0x445   : > { %5424 = vmatprep.mubr.bf16.mxu0 %v19816_v36  ;;  %v19828_v36 = vld [vmem:[%s21563_s13 + $0x214] ss:$36 sps:$4 sm:$0xff]  }
 0x447   : > { %v22727_v44 = vpop.f32.mrb[76].mxu0 }
 0x448   : > { %25779 = vst [vmem:[#allocation116_spill] sm:$0xff] %v22727_v44  ;;  %v22729_v19 = vpop.f32.mrb[77].mxu0  ;;  %v19833_v44 = vld [vmem:[%s20896_s10 + $0x248] ss:$36 sps:$4 sm:$0xff]  }
 0x449   : > { %25780 = vst [vmem:[#allocation117_spill] sm:$0xff] %v22729_v19  ;;  %v22732_v29 = vpop.f32.mrb[78].mxu0  ;;  %v19830_v19 = vld [vmem:[%s20896_s10 + $0x24c] ss:$36 sps:$4 sm:$0xff]  }
 0x44a   : > { %25781 = vst [vmem:[#allocation118_spill] sm:$0xff] %v22732_v29  ;;  %v22735_v0 = vpop.f32.mrb[79].mxu0  ;;  %v19832_v29 = vld [vmem:[%s21563_s13 + $0x210] ss:$36 sps:$4 sm:$0xff]  }
 0x44b   : > { %25782 = vst [vmem:[#allocation119_spill] sm:$0xff] %v22735_v0  ;;  %8511 = vmatmul.mubr.bf16.gmra.mrb[140].mxu1 %v19818_v13  ;;  %v19837_v0 = vld [vmem:[%s21563_s13 + $0x25c] ss:$36 sps:$4 sm:$0xff]  }
 0x44c   : > { %5425 = vmatmul.mubr.bf16.gmra.mrb[104].mxu0 %v19820_v7  ;;  %8518 = vmatprep.mubr.bf16.mxu1 %v19821_v38  ;;  %v19840_v13 = vld [vmem:[%s21563_s13 + $0x20] ss:$36 sps:$4 sm:$0xff]   ;;  %v19839_v38 = vld [vmem:[%s21563_s13 + $0x258] ss:$36 sps:$4 sm:$0xff]  }
 0x44d   : > { %5432 = vmatprep.mubr.bf16.mxu0 %v19823_v39  ;;  %v19841_v39 = vld [vmem:[%s21563_s13 + $0x68] ss:$36 sps:$4 sm:$0xff]  }
 0x44e   : > { %v19842_v7 = vld [vmem:[%s21563_s13 + $0x2a4] ss:$36 sps:$4 sm:$0xff]  }
 0x453   : > { %8519 = vmatmul.mubr.bf16.gmra.mrb[144].mxu1 %v19825_v55  ;;  %v19848_v55 = vld [vmem:[%s21563_s13 + $0x2ec] ss:$36 sps:$4 sm:$0xff]  }
 0x454   : > { %5433 = vmatmul.mubr.bf16.gmra.mrb[108].mxu0 %v19827_v49  ;;  %8526 = vmatprep.mubr.bf16.mxu1 %v19828_v36  ;;  %v19851_v49 = vld [vmem:[%s21563_s13 + $0x140] ss:$36 sps:$4 sm:$0xff]   ;;  %v19855_v36 = vld [vmem:[%s25552_s2 + $0x490] sm:$0xff]  }
 0x455   : > { %5440 = vmatprep.mubr.bf16.mxu0 %v19830_v19  ;;  %v19847_v19 = vld [vmem:[%s25552_s2 + $0x480] sm:$0xff]  }
 0x45b   : > { %8527 = vmatmul.mubr.bf16.gmra.mrb[148].mxu1 %v19832_v29  ;;  %v19844_v29 = vld [vmem:[%s21563_s13 + $0x2a0] ss:$36 sps:$4 sm:$0xff]  }
 0x45c   : > { %5441 = vmatmul.mubr.bf16.gmra.mrb[112].mxu0 %v19833_v44  ;;  %8534 = vmatprep.mubr.bf16.mxu1 %v19837_v0  ;;  %v19854_v44 = vld [vmem:[%s25552_s2 + $0x488] sm:$0xff]   ;;  %v19846_v0 = vld [vmem:[%s21563_s13 + $0xf8] ss:$36 sps:$4 sm:$0xff]  }
 0x45d   : > { %17178 = vmatprep.mubr.bf16.mxu0 %v19840_v13  ;;  %v19850_v13 = vld [vmem:[%s21563_s13 + $0x2e8] ss:$36 sps:$4 sm:$0xff]  }
 0x463   : > { %8535 = vmatmul.mubr.bf16.gmra.mrb[152].mxu1 %v19839_v38  ;;  %v19853_v38 = vld [vmem:[%s21563_s13 + $0x188] ss:$36 sps:$4 sm:$0xff]  }
 0x464   : > { %17179 = vmatmul.mubr.bf16.vlgmr.msra.gmra.mrb[160].mxu0 %v19841_v39  ;;  %8542 = vmatprep.mubr.bf16.mxu1 %v19842_v7  ;;  %v19856_v39 = vld [vmem:[%s21563_s13 + $0x334] ss:$36 sps:$4 sm:$0xff]  }
 0x465   : > { %17182 = vmatprep.mubr.bf16.mxu0 %v19845_v26  ;;  %10567 = vmatpush1.bf16.msra.mxu0 %v19847_v19  ;;  %v19861_v26 = vld [vmem:[%s25552_s2 + $0x498] sm:$0xff]   ;;  %v19859_v7 = vld [vmem:[%s21563_s13 + $0x1d0] ss:$36 sps:$4 sm:$0xff]   ;;  %v19866_v19 = vld [vmem:[%s25552_s2 + $0x4a0] sm:$0xff]  }
 0x466   : > { %10568 = vmatprep.subr.bf16.mxu0 %v25774_v56 }
 0x469   : > { %10569 = vmatpush1.bf16.msra.mxu0 %v19854_v44  ;;  %v19869_v44 = vld [vmem:[%s25552_s2 + $0x4a8] sm:$0xff]  }
 0x46a   : > { %10570 = vmatprep.subr.bf16.mxu0 %v25774_v56 }
 0x46b   : > { %8543 = vmatmul.mubr.bf16.gmra.mrb[156].mxu1 %v19844_v29  ;;  %v19858_v29 = vld [vmem:[%s21563_s13 + $0x330] ss:$36 sps:$4 sm:$0xff]  }
 0x46c   : > { %17183 = vmatmul.mubr.bf16.gmra.mrb[164].mxu0 %v19846_v0  ;;  %8550 = vmatprep.mubr.bf16.mxu1 %v19848_v55  ;;  %v19860_v0 = vld [vmem:[%s21563_s13 + $0x218] ss:$36 sps:$4 sm:$0xff]  }
 0x46d   : > { %17186 = vmatprep.mubr.bf16.mxu0 %v19851_v49  ;;  %10571 = vmatpush1.bf16.msra.mxu0 %v19855_v36  ;;  %v19862_v55 = vld [vmem:[%s21563_s13 + $0x37c] ss:$36 sps:$4 sm:$0xff]   ;;  %v19875_v36 = vld [vmem:[%s25552_s2 + $0x4b0] sm:$0xff]  }
 0x46e   : > { %10572 = vmatprep.subr.bf16.mxu0 %v25774_v56  ;;  %v19865_v49 = vld [vmem:[%s21563_s13 + $0x260] ss:$36 sps:$4 sm:$0xff]  }
 0x471   : > { %10573 = vmatpush1.bf16.msra.mxu0 %v19861_v26  ;;  %v19876_v26 = vld [vmem:[%s25552_s2 + $0x4b8] sm:$0xff]  }
 0x472   : > { %10574 = vmatprep.subr.bf16.mxu0 %v25774_v56 }
 0x473   : > { %8551 = vmatmul.mubr.bf16.gmra.mrb[160].mxu1 %v19850_v13  ;;  %v19864_v13 = vld [vmem:[%s21563_s13 + $0x378] ss:$36 sps:$4 sm:$0xff]  }
 0x474   : > { %17187 = vmatmul.mubr.bf16.gmra.mrb[168].mxu0 %v19853_v38  ;;  %8558 = vmatprep.mubr.bf16.mxu1 %v19856_v39  ;;  %v19867_v38 = vld [vmem:[%s21563_s13 + $0x2a8] ss:$36 sps:$4 sm:$0xff]  }
 0x475   : > { %17190 = vmatprep.mubr.bf16.mxu0 %v19859_v7  ;;  %10575 = vmatpush1.bf16.msra.mxu0 %v19866_v19  ;;  %v19870_v39 = vld [vmem:[%s21563_s13 + $0x3c4] ss:$36 sps:$4 sm:$0xff]   ;;  %v19873_v7 = vld [vmem:[%s21563_s13 + $0x2f0] ss:$36 sps:$4 sm:$0xff]  }
 0x476   : > { %10576 = vmatprep.subr.bf16.mxu0 %v25774_v56  ;;  %v19882_v19 = vld [vmem:[%s25552_s2 + $0x4c0] sm:$0xff]  }
 0x479   : > { %10577 = vmatpush1.bf16.msra.mxu0 %v19869_v44  ;;  %v19883_v44 = vld [vmem:[%s25552_s2 + $0x4c8] sm:$0xff]  }
 0x47a   : > { %10578 = vmatprep.subr.bf16.mxu0 %v25774_v56 }
 0x47b   : > { %8559 = vmatmul.mubr.bf16.gmra.mrb[164].mxu1 %v19858_v29  ;;  %v19872_v29 = vld [vmem:[%s21563_s13 + $0x3c0] ss:$36 sps:$4 sm:$0xff]  }
 0x47c   : > { %17191 = vmatmul.mubr.bf16.gmra.mrb[172].mxu0 %v19860_v0  ;;  %8566 = vmatprep.mubr.bf16.mxu1 %v19862_v55  ;;  %v19874_v0 = vld [vmem:[%s21563_s13 + $0x338] ss:$36 sps:$4 sm:$0xff]   ;;  %v19877_v55 = vld [vmem:[%s21563_s13 + $0x40c] ss:$36 sps:$4 sm:$0xff]  }
 0x47d   : > { %17194 = vmatprep.mubr.bf16.mxu0 %v19865_v49  ;;  %10579 = vmatpush1.bf16.msra.mxu0 %v19875_v36  ;;  %v19880_v49 = vld [vmem:[%s21563_s13 + $0x380] ss:$36 sps:$4 sm:$0xff]   ;;  %v19890_v36 = vld [vmem:[%s25552_s2 + $0x4d0] sm:$0xff]  }
 0x47e   : > { %10580 = vmatprep.subr.bf16.mxu0 %v25774_v56 }
 0x481   : > { %10581 = vmatpush1.bf16.msra.mxu0 %v19876_v26  ;;  %v19891_v26 = vld [vmem:[%s25552_s2 + $0x4d8] sm:$0xff]  }
 0x482   : > { %10582 = vmatprep.subr.bf16.mxu0 %v25774_v56 }
 0x483   : > { %8567 = vmatmul.mubr.bf16.gmra.mrb[168].mxu1 %v19864_v13  ;;  %v19879_v13 = vld [vmem:[%s21563_s13 + $0x408] ss:$36 sps:$4 sm:$0xff]  }
 0x484   : > { %17195 = vmatmul.mubr.bf16.gmra.mrb[176].mxu0 %v19867_v38  ;;  %8574 = vmatprep.mubr.bf16.mxu1 %v19870_v39  ;;  %v19881_v38 = vld [vmem:[%s21563_s13 + $0x3c8] ss:$36 sps:$4 sm:$0xff]   ;;  %v19884_v39 = vld [vmem:[%s21563_s13 + $0x454] ss:$36 sps:$4 sm:$0xff]  }
 0x485   : > { %17198 = vmatprep.mubr.bf16.mxu0 %v19873_v7  ;;  %10583 = vmatpush1.bf16.msra.mxu0 %v19882_v19  ;;  %v19887_v7 = vld [vmem:[%s21563_s13 + $0x410] ss:$36 sps:$4 sm:$0xff]   ;;  %v19897_v19 = vld [vmem:[%s25552_s2 + $0x4e0] sm:$0xff]  }
 0x486   : > { %10584 = vmatprep.subr.bf16.mxu0 %v25774_v56 }
 0x489   : > { %10585 = vmatpush1.bf16.msra.mxu0 %v19883_v44  ;;  %v19898_v44 = vld [vmem:[%s25552_s2 + $0x4e8] sm:$0xff]  }
 0x48a   : > { %10586 = vmatprep.subr.bf16.mxu0 %v25774_v56 }
 0x48b   : > { %8575 = vmatmul.mubr.bf16.gmra.mrb[172].mxu1 %v19872_v29  ;;  %v19886_v29 = vld [vmem:[%s21563_s13 + $0x450] ss:$36 sps:$4 sm:$0xff]  }
 0x48c   : > { %17199 = vmatmul.mubr.bf16.gmra.mrb[180].mxu0 %v19874_v0  ;;  %8582 = vmatprep.mubr.bf16.mxu1 %v19877_v55  ;;  %v19889_v0 = vld [vmem:[%s21563_s13 + $0x458] ss:$36 sps:$4 sm:$0xff]  }
 0x48d   : > { %17202 = vmatprep.mubr.bf16.mxu0 %v19880_v49  ;;  %10587 = vmatpush1.bf16.msra.mxu0 %v19890_v36 }
 0x48e   : > { %10588 = vmatprep.subr.bf16.mxu0 %v25774_v56 }
 0x491   : > { %10589 = vmatpush1.bf16.msra.mxu0 %v19891_v26  ;;  %v19892_v26 = vld [vmem:[%s21563_s13 + $0x49c] ss:$36 sps:$4 sm:$0xff]  }
 0x492   : > { %10590 = vmatprep.subr.bf16.mxu0 %v25774_v56 }
 0x493   : > { %8583 = vmatmul.mubr.bf16.gmra.mrb[176].mxu1 %v19879_v13  ;;  %v19895_v13 = vld [vmem:[%s21563_s13 + $0x4a0] ss:$36 sps:$4 sm:$0xff]  }
 0x494   : > { %17203 = vmatmul.mubr.bf16.gmra.mrb[184].mxu0 %v19881_v38  ;;  %8590 = vmatprep.mubr.bf16.mxu1 %v19884_v39  ;;  %v19904_v38 = vld [vmem:[%s25552_s2 + $0x4f0] sm:$0xff]  }
 0x495   : > { %17206 = vmatprep.mubr.bf16.mxu0 %v19887_v7  ;;  %10591 = vmatpush1.bf16.msra.mxu0 %v19897_v19 }
 0x496   : > { %10592 = vmatprep.subr.bf16.mxu0 %v25774_v56 }
 0x497   : > { %v5257_v55 = vpop.f32.mrb[116].mxu0 }
 0x498   : > { %v17447_v49 = vadd.f32 %v21880_v42, %v5257_v55  ;;  %v5259_v36 = vpop.f32.mrb[117].mxu0 }
 0x499   : > { %v5260_v35 = vpop.f32.mrb[118].mxu0  ;;  %10593 = vmatpush1.bf16.msra.mxu0 %v19898_v44  ;;  %v19906_v44 = vld [vmem:[%s25552_s2 + $0x4f8] sm:$0xff]  }
 0x49a   : > { %v6030_v39 = vadd.f32 %v17447_v49, %v22050_v33  ;;  %v17448_v7 = vadd.f32 %v21884_v45, %v5260_v35  ;;  %v5262_v19 = vpop.f32.mrb[119].mxu0  ;;  %10594 = vmatprep.subr.bf16.mxu0 %v25774_v56  ;;  %v19894_v33 = vld [vmem:[%s21563_s13 + $0x498] ss:$36 sps:$4 sm:$0xff]   ;;  %v19896_v45 = vld [vmem:[%s21563_s13 + $0x4e8] ss:$36 sps:$4 sm:$0xff]  }
 0x49b   : > { %8591 = vmatmul.mubr.bf16.gmra.mrb[180].mxu1 %v19886_v29  ;;  %v19899_v49 = vld [vmem:[%s21563_s13 + $0x4e4] ss:$36 sps:$4 sm:$0xff]  }
 0x49c   : > { %v6033_v42 = vadd.f32 %v17448_v7, %v22060_v43  ;;  %17207 = vmatmul.mubr.bf16.gmra.mrb[188].mxu0 %v19889_v0  ;;  %8598 = vmatprep.mubr.bf16.mxu1 %v19892_v26  ;;  %v22848_v55 = vadd.f32 %v6030_v39, %v22555_v25  ;;  %v19902_v26 = vld [vmem:[%s21563_s13 + $0x530] ss:$36 sps:$4 sm:$0xff]   ;;  %v19901_v39 = vld [vmem:[%s21563_s13 + $0x4e0] ss:$36 sps:$4 sm:$0xff]   ;;  %v19903_v7 = vld [vmem:[%s21563_s13 + $0x578] ss:$36 sps:$4 sm:$0xff]  }
 0x49d   : > { %17210 = vmatprep.mubr.bf16.mxu0 %v19895_v13  ;;  %10595 = vmatpush1.bf16.msra.mxu0 %v19904_v38 }
 0x49e   : > { %10596 = vmatprep.subr.bf16.mxu0 %v25774_v56  ;;  %v22854_v35 = vadd.f32 %v6033_v42, %v22562_v8 }
 0x49f   : > { %v5265_v43 = vpop.f32.mrb[120].mxu0 }
 0x4a0   : > { %v17449_v29 = vadd.f32 %v21896_v53, %v5265_v43  ;;  %v5267_v0 = vpop.f32.mrb[121].mxu0 }
 0x4a1   : > { %v5268_v36 = vpop.f32.mrb[122].mxu0  ;;  %10597 = vmatpush1.bf16.msra.mxu0 %v19906_v44  ;;  %v19907_v44 = vld [vmem:[%s21563_s13 + $0x52c] ss:$36 sps:$4 sm:$0xff]   ;;  %v19910_v0 = vld [vmem:[%s22680_s19] ss:$36 sps:$4 sm:$0xff]  }
 0x4a2   : > { %v6038_v25 = vadd.f32 %v17449_v29, %v22084_v37  ;;  %v17450_v13 = vadd.f32 %v21900_v58, %v5268_v36  ;;  %v5270_v38 = vpop.f32.mrb[123].mxu0  ;;  %10759 = vmatprep.subr.bf16.mxu0 %v25774_v56 }
 0x4a3   : > { %8599 = vmatmul.mubr.bf16.gmra.mrb[184].mxu1 %v19894_v33 }
 0x4a4   : > { %v6041_v8 = vadd.f32 %v17450_v13, %v22092_v17  ;;  %17211 = vmatmul.mubr.bf16.gmra.mrb[192].mxu0 %v19896_v45  ;;  %8606 = vmatprep.mubr.bf16.mxu1 %v19899_v49  ;;  %v22864_v53 = vadd.f32 %v6038_v25, %v22567_v6  ;;  %v19912_v17 = vld [vmem:[%s22680_s19 + $0x4] ss:$36 sps:$4 sm:$0xff]  }
 0x4a5   : > { %17214 = vmatprep.mubr.bf16.mxu0 %v19902_v26  ;;  %v19913_v26 = vld [vmem:[%s21563_s13 + $0x574] ss:$36 sps:$4 sm:$0xff]  }
 0x4a6   : > { %v22869_v37 = vadd.f32 %v6041_v8, %v22574_v52 }
 0x4a7   : > { %v5273_v58 = vpop.f32.mrb[124].mxu0 }
 0x4a8   : > { %v17451_v19 = vadd.f32 %v21912_v3, %v5273_v58  ;;  %v5275_v42 = vpop.f32.mrb[125].mxu0  ;;  %v19909_v3 = vld [vmem:[%s21563_s13 + $0x528] ss:$36 sps:$4 sm:$0xff]  }
 0x4a9   : > { %v5276_v33 = vpop.f32.mrb[126].mxu0  ;;  %v19920_v42 = vld [vmem:[%s22680_s19 + $0x20] ss:$36 sps:$4 sm:$0xff]  }
 0x4aa   : > { %v6046_v45 = vadd.f32 %v17451_v19, %v22078_v32  ;;  %v17452_v6 = vadd.f32 %v21916_v11, %v5276_v33  ;;  %v5278_v43 = vpop.f32.mrb[127].mxu0  ;;  %v19921_v33 = vld [vmem:[%s22680_s19 + $0x94] ss:$36 sps:$4 sm:$0xff]  }
 0x4ab   : > { %8607 = vmatmul.mubr.bf16.gmra.mrb[188].mxu1 %v19901_v39 }
 0x4ac   : > { %v6049_v29 = vadd.f32 %v17452_v6, %v22088_v59  ;;  %17215 = vmatmul.mubr.bf16.gmra.mrb[196].mxu0 %v19903_v7  ;;  %8614 = vmatprep.mubr.bf16.mxu1 %v19907_v44  ;;  %v22878_v52 = vadd.f32 %v6046_v45, %v22579_v1  ;;  %v19916_v59 = vld [vmem:[%s22680_s19 + $0x4c] ss:$36 sps:$4 sm:$0xff]   ;;  %v19919_v1 = vld [vmem:[%s25552_s2 + $0x500] sm:$0xff]  }
 0x4ad   : > { %10598 = vmatprep.mubr.bf16.mxu0 %v19912_v17  ;;  %v19915_v7 = vld [vmem:[%s21563_s13 + $0x570] ss:$36 sps:$4 sm:$0xff]  }
 0x4ae   : > { %v22883_v49 = vadd.f32 %v6049_v29, %v22586_v5 }
 0x4af   : > { %v5281_v36 = vpop.f32.mrb[128].mxu0 }
 0x4b0   : > { %v17453_v11 = vadd.f32 %v21922_v18, %v5281_v36  ;;  %v5283_v32 = vpop.f32.mrb[129].mxu0  ;;  %v19926_v18 = vld [vmem:[%s25552_s2 + $0x508] sm:$0xff]   ;;  %v19924_v36 = vld [vmem:[%s22680_s19 + $0x90] ss:$36 sps:$4 sm:$0xff]  }
 0x4b1   : > { %v5284_v25 = vpop.f32.mrb[130].mxu0  ;;  %v19929_v32 = vld [vmem:[%s22680_s19 + $0xdc] ss:$36 sps:$4 sm:$0xff]  }
 0x4b2   : > { %v6054_v13 = vadd.f32 %v17453_v11, %v22112_v31  ;;  %v17454_v38 = vadd.f32 %v21925_v23, %v5284_v25  ;;  %v5286_v8 = vpop.f32.mrb[131].mxu0  ;;  %v19918_v31 = vld [vmem:[%s22680_s19 + $0x48] ss:$36 sps:$4 sm:$0xff]  }
 0x4b3   : > { %8615 = vmatmul.mubr.bf16.gmra.mrb[192].mxu1 %v19909_v3  ;;  %v19932_v8 = vld [vmem:[%s22680_s19 + $0xd8] ss:$36 sps:$4 sm:$0xff]  }
 0x4b4   : > { %v6057_v5 = vadd.f32 %v17454_v38, %v22120_v21  ;;  %10599 = vmatmul.mubr.bf16.vlgmr.msra.gmra.mrb[200].mxu0 %v19910_v0  ;;  %8622 = vmatprep.mubr.bf16.mxu1 %v19913_v26  ;;  %v22898_v39 = vadd.f32 %v6054_v13, %v22591_v12  ;;  %v19937_v12 = vld [vmem:[%s25552_s2 + $0x510] sm:$0xff]   ;;  %v19931_v13 = vld [vmem:[%s22680_s19 + $0xf8] ss:$36 sps:$4 sm:$0xff]  }
 0x4b5   : > { %10606 = vmatprep.mubr.bf16.mxu0 %v19916_v59  ;;  %10760 = vmatpush1.bf16.msra.mxu0 %v19919_v1  ;;  %v19927_v59 = vld [vmem:[%s25552_s2 + $0x6c8] sm:$0xff]  }
 0x4b6   : > { %10761 = vmatprep.subr.bf16.mxu0 %v25774_v56  ;;  %v22904_v23 = vadd.f32 %v6057_v5, %v22598_v24 }
 0x4b7   : > { %v5289_v21 = vpop.f32.mrb[132].mxu0 }
 0x4b8   : > { %v17455_v58 = vadd.f32 %v21930_v30, %v5289_v21  ;;  %v5291_v19 = vpop.f32.mrb[133].mxu0  ;;  %v19947_v30 = vld [vmem:[%s25552_s2 + $0x518] sm:$0xff]   ;;  %v19935_v21 = vld [vmem:[%s22680_s19 + $0x124] ss:$36 sps:$4 sm:$0xff]  }
 0x4b9   : > { %v5292_v44 = vpop.f32.mrb[134].mxu0  ;;  %10762 = vmatpush1.bf16.msra.mxu0 %v19926_v18 }
 0x4ba   : > { %v6062_v17 = vadd.f32 %v17455_v58, %v22106_v50  ;;  %v17456_v45 = vadd.f32 %v21933_v34, %v5292_v44  ;;  %v5294_v6 = vpop.f32.mrb[135].mxu0  ;;  %10763 = vmatprep.subr.bf16.mxu0 %v25774_v56  ;;  %v19923_v34 = vld [vmem:[%s22680_s19 + $0x68] ss:$36 sps:$4 sm:$0xff]  }
 0x4bb   : > { %8623 = vmatmul.mubr.bf16.gmra.mrb[196].mxu1 %v19915_v7 }
 0x4bc   : > { %v6065_v24 = vadd.f32 %v17456_v45, %v22116_v22  ;;  %10607 = vmatmul.mubr.bf16.gmra.mrb[204].mxu0 %v19918_v31  ;;  %17234 = vmatprep.mubr.bf16.mxu1 %v19920_v42  ;;  %v22920_v43 = vadd.f32 %v6062_v17, %v22603_v60  ;;  %v19925_v22 = vld [vmem:[%s25552_s2 + $0x6c0] sm:$0xff]   ;;  %v19928_v60 = vld [vmem:[%s22680_s19 + $0xb0] ss:$36 sps:$4 sm:$0xff]   ;;  %v19939_v42 = vld [vmem:[%s25552_s2 + $0x6d8] sm:$0xff]  }
 0x4bd   : > { %10614 = vmatprep.mubr.bf16.mxu0 %v19921_v33  ;;  %10764 = vmatpush1.bf16.msra.mxu0 %v19937_v12  ;;  %v19934_v31 = vld [vmem:[%s22680_s19 + $0x140] ss:$36 sps:$4 sm:$0xff]   ;;  %v19938_v33 = vld [vmem:[%s22680_s19 + $0x188] ss:$36 sps:$4 sm:$0xff]  }
 0x4be   : > { %10765 = vmatprep.subr.bf16.mxu0 %v25774_v56  ;;  %v22925_v50 = vadd.f32 %v6065_v24, %v22610_v9  ;;  %v19940_v17 = vld [vmem:[%s22680_s19 + $0x120] ss:$36 sps:$4 sm:$0xff]   ;;  %v19942_v24 = vld [vmem:[%s22680_s19 + $0x1d0] ss:$36 sps:$4 sm:$0xff]  }
 0x4bf   : > { %v5297_v29 = vpop.f32.mrb[136].mxu0 }
 0x4c0   : > { %v17457_v3 = vadd.f32 %v21938_v40, %v5297_v29  ;;  %v5299_v0 = vpop.f32.mrb[137].mxu0  ;;  %v19955_v40 = vld [vmem:[%s25552_s2 + $0x520] sm:$0xff]  }
 0x4c1   : > { %v5300_v11 = vpop.f32.mrb[138].mxu0  ;;  %10766 = vmatpush1.bf16.msra.mxu0 %v19947_v30  ;;  %v19992_v0 = vld [vmem:[%s25552_s2 + $0x540] sm:$0xff]  }
 0x4c2   : > { %v6070_v26 = vadd.f32 %v17457_v3, %v22140_v61  ;;  %v17458_v25 = vadd.f32 %v21943_v48, %v5300_v11  ;;  %v5302_v9 = vpop.f32.mrb[139].mxu0  ;;  %10767 = vmatprep.subr.bf16.mxu0 %v25774_v56  ;;  %v19963_v48 = vld [vmem:[%s25552_s2 + $0x528] sm:$0xff]  }
 0x4c3   : > { %17235 = vmatmul.mubr.bf16.vlgmr.msra.gmra.mrb[200].mxu1 %v19923_v34  ;;  %v19943_v34 = vld [vmem:[%s22680_s19 + $0x16c] ss:$36 sps:$4 sm:$0xff]  }
 0x4c4   : > { %v6073_v1 = vadd.f32 %v17458_v25, %v22148_v46  ;;  %10615 = vmatmul.mubr.bf16.gmra.mrb[208].mxu0 %v19924_v36  ;;  %13275 = vmatpush1.bf16.msra.mxu1 %v19925_v22  ;;  %v22948_v61 = vadd.f32 %v6070_v26, %v22622_v15  ;;  %v19933_v15 = vld [vmem:[%s25552_s2 + $0x6d0] sm:$0xff]   ;;  %v19945_v22 = vld [vmem:[%s22680_s19 + $0x218] ss:$36 sps:$4 sm:$0xff]   ;;  %v19946_v11 = vld [vmem:[%s22680_s19 + $0x168] ss:$36 sps:$4 sm:$0xff]  }
 0x4c5   : > { %13276 = vmatprep.subr.bf16.mxu1 %v25774_v56  ;;  %17238 = vmatprep.mubr.bf16.mxu1 %v19928_v60  ;;  %v19950_v9 = vld [vmem:[%s25552_s2 + $0x6f0] sm:$0xff]  }
 0x4c6   : > { %10622 = vmatprep.mubr.bf16.mxu0 %v19929_v32  ;;  %10768 = vmatpush1.bf16.msra.mxu0 %v19955_v40  ;;  %v22953_v38 = vadd.f32 %v6073_v1, %v22628_v41  ;;  %v19951_v40 = vld [vmem:[%s22680_s19 + $0x1b4] ss:$36 sps:$4 sm:$0xff]  }
 0x4c7   : > { %v5305_v46 = vpop.f32.mrb[140].mxu0  ;;  %10769 = vmatprep.subr.bf16.mxu0 %v25774_v56 }
 0x4c8   : > { %25783 = vst [vmem:[#allocation120_spill] sm:$0xff] %v22953_v38  ;;  %v17459_v5 = vadd.f32 %v21946_v51, %v5305_v46  ;;  %v5307_v18 = vpop.f32.mrb[141].mxu0  ;;  %13277 = vmatpush1.bf16.msra.mxu1 %v19927_v59  ;;  %v19974_v51 = vld [vmem:[%s25552_s2 + $0x530] sm:$0xff]   ;;  %v25787_v46 = vld [vmem:[#allocation51_spill] sm:$0xff] }
 0x4c9   : > { %v5308_v7 = vpop.f32.mrb[142].mxu0  ;;  %13278 = vmatprep.subr.bf16.mxu1 %v25774_v56  ;;  %v25786_v59 = vld [vmem:[#allocation28_spill] sm:$0xff] }
 0x4ca   : > { %v6078_v41 = vadd.f32 %v17459_v5, %v22134_v54  ;;  %v17460_v58 = vadd.f32 %v21951_v62, %v5308_v7  ;;  %v5310_v19 = vpop.f32.mrb[143].mxu0  ;;  %10770 = vmatpush1.bf16.msra.mxu0 %v19963_v48  ;;  %v19984_v62 = vld [vmem:[%s25552_s2 + $0x538] sm:$0xff]   ;;  %v25788_v5 = vld [vmem:[#allocation108_spill] sm:$0xff] }
 0x4cb   : > { %17239 = vmatmul.mubr.bf16.gmra.mrb[204].mxu1 %v19931_v13  ;;  %10771 = vmatprep.subr.bf16.mxu0 %v25774_v56  ;;  %v19956_v13 = vld [vmem:[%s25552_s2 + $0x6f8] sm:$0xff]   ;;  %v19954_v7 = vld [vmem:[%s22680_s19 + $0x1b0] ss:$36 sps:$4 sm:$0xff]  }
 0x4cc   : > { %v6081_v44 = vadd.f32 %v17460_v58, %v22144_v10  ;;  %10623 = vmatmul.mubr.bf16.gmra.mrb[212].mxu0 %v19932_v8  ;;  %13279 = vmatpush1.bf16.msra.mxu1 %v19933_v15  ;;  %v22978_v54 = vadd.f32 %v6078_v41, %v22644_v57  ;;  %v19941_v57 = vld [vmem:[%s25552_s2 + $0x6e0] sm:$0xff]   ;;  %v19953_v15 = vld [vmem:[%s22680_s19 + $0x2a8] ss:$36 sps:$4 sm:$0xff]   ;;  %v25792_v58 = vld [vmem:[#allocation29_spill] sm:$0xff] }
 0x4cd   : > { %17242 = vmatprep.mubr.bf16.mxu1 %v19934_v31  ;;  %13280 = vmatprep.subr.bf16.mxu1 %v25774_v56  ;;  %v25790_v31 = vld [vmem:[#allocation110_spill] sm:$0xff]  ;;  %v20045_v38 = vld [vmem:[%s22680_s19 + $0x514] ss:$36 sps:$4 sm:$0xff]  }
 0x4ce   : > { %10630 = vmatprep.mubr.bf16.mxu0 %v19935_v21  ;;  %10772 = vmatpush1.bf16.msra.mxu0 %v19974_v51  ;;  %v22983_v12 = vadd.f32 %v6081_v44, %v22654_v28 }
 0x4cf   : > { %v5313_v10 = vpop.f32.mrb[144].mxu0  ;;  %10773 = vmatprep.subr.bf16.mxu0 %v25774_v56 }
 0x4d0   : > { %v17461_v45 = vadd.f32 %v21954_v2, %v5313_v10  ;;  %v5315_v6 = vpop.f32.mrb[145].mxu0  ;;  %13281 = vmatpush1.bf16.msra.mxu1 %v19939_v42  ;;  %v19948_v2 = vld [vmem:[%s25552_s2 + $0x6e8] sm:$0xff]   ;;  %v19957_v42 = vld [vmem:[%s22680_s19 + $0x2f0] ss:$36 sps:$4 sm:$0xff]   ;;  %v25793_v10 = vld [vmem:[#allocation53_spill] sm:$0xff] }
 0x4d1   : > { %v5316_v30 = vpop.f32.mrb[146].mxu0  ;;  %13282 = vmatprep.subr.bf16.mxu1 %v25774_v56 }
 0x4d2   : > { %v6086_v28 = vadd.f32 %v17461_v45, %v22168_v27  ;;  %v17462_v29 = vadd.f32 %v21958_v14, %v5316_v30  ;;  %v5318_v3 = vpop.f32.mrb[147].mxu0  ;;  %10774 = vmatpush1.bf16.msra.mxu0 %v19984_v62  ;;  %v20001_v14 = vld [vmem:[%s25552_s2 + $0x548] sm:$0xff]   ;;  %v19958_v62 = vld [vmem:[%s22680_s19 + $0x1fc] ss:$36 sps:$4 sm:$0xff]  }
 0x4d3   : > { %17243 = vmatmul.mubr.bf16.gmra.mrb[208].mxu1 %v19938_v33  ;;  %10775 = vmatprep.subr.bf16.mxu0 %v25774_v56  ;;  %v19962_v33 = vld [vmem:[%s25552_s2 + $0x700] sm:$0xff]   ;;  %v25796_v3 = vld [vmem:[#allocation112_spill] sm:$0xff] }
 0x4d4   : > { %v6089_v36 = vadd.f32 %v17462_v29, %v22176_v47  ;;  %10631 = vmatmul.mubr.bf16.gmra.mrb[216].mxu0 %v19940_v17  ;;  %13283 = vmatpush1.bf16.msra.mxu1 %v19941_v57  ;;  %v23008_v27 = vadd.f32 %v6086_v28, %v22669_v16  ;;  %v19949_v16 = vld [vmem:[%s22680_s19 + $0x260] ss:$36 sps:$4 sm:$0xff]   ;;  %v20039_v29 = vld [vmem:[%s25552_s2 + $0x568] sm:$0xff]  }
 0x4d5   : > { %17246 = vmatprep.mubr.bf16.mxu1 %v19942_v24  ;;  %10638 = vmatprep.mubr.bf16.mxu0 %v19943_v34  ;;  %v25794_v45 = vld [vmem:[#allocation30_spill] sm:$0xff]  ;;  %v19964_v24 = vld [vmem:[%s25552_s2 + $0x708] sm:$0xff]  }
 0x4d6   : > { %25784 = vst [vmem:[#allocation121_spill] sm:$0xff] %v23008_v27  ;;  %13284 = vmatprep.subr.bf16.mxu1 %v25774_v56  ;;  %10776 = vmatpush1.bf16.msra.mxu0 %v19992_v0  ;;  %v23014_v47 = vadd.f32 %v6089_v36, %v22682_v4  ;;  %v20031_v30 = vld [vmem:[%s25552_s2 + $0x560] sm:$0xff]   ;;  %v25795_v34 = vld [vmem:[#allocation55_spill] sm:$0xff] }
 0x4d7   : > { %v5321_v60 = vpop.f32.mrb[148].mxu0  ;;  %10777 = vmatprep.subr.bf16.mxu0 %v25774_v56  ;;  %v25798_v0 = vld [vmem:[#allocation114_spill] sm:$0xff] }
 0x4d8   : > { %25785 = vst [vmem:[#allocation122_spill] sm:$0xff] %v23014_v47  ;;  %v17463_v32 = vadd.f32 %v21961_v20, %v5321_v60  ;;  %v5323_v26 = vpop.f32.mrb[149].mxu0  ;;  %13285 = vmatpush1.bf16.msra.mxu1 %v19948_v2  ;;  %v20014_v20 = vld [vmem:[%s25552_s2 + $0x550] sm:$0xff]   ;;  %v25858_v47 = vld [vmem:[#allocation27_spill] sm:$0xff] }
 0x4d9   : > { %v5324_v25 = vpop.f32.mrb[150].mxu0  ;;  %13286 = vmatprep.subr.bf16.mxu1 %v25774_v56  ;;  %v19961_v26 = vld [vmem:[%s22680_s19 + $0x1f8] ss:$36 sps:$4 sm:$0xff]  }
 0x4da   : > { %v6094_v4 = vadd.f32 %v17463_v32, %v22162_v63  ;;  %v17464_v1 = vadd.f32 %v25786_v59, %v5324_v25  ;;  %v5326_v48 = vpop.f32.mrb[151].mxu0  ;;  %10778 = vmatpush1.bf16.msra.mxu0 %v20001_v14  ;;  %v20023_v63 = vld [vmem:[%s25552_s2 + $0x558] sm:$0xff]  }
 0x4db   : > { %17247 = vmatmul.mubr.bf16.gmra.mrb[212].mxu1 %v19945_v22  ;;  %10779 = vmatprep.subr.bf16.mxu0 %v25774_v56  ;;  %v19960_v22 = vld [vmem:[%s22680_s19 + $0x338] ss:$36 sps:$4 sm:$0xff]  }
 0x4dc   : > { %v6097_v8 = vadd.f32 %v17464_v1, %v25787_v46  ;;  %10639 = vmatmul.mubr.bf16.gmra.mrb[220].mxu0 %v19946_v11  ;;  %17250 = vmatprep.mubr.bf16.mxu1 %v19949_v16  ;;  %v23038_v18 = vadd.f32 %v6094_v4, %v25788_v5  ;;  %v25800_v11 = vld [vmem:[#allocation31_spill] sm:$0xff]  ;;  %v19965_v16 = vld [vmem:[%s22680_s19 + $0x380] ss:$36 sps:$4 sm:$0xff]   ;;  %v25801_v4 = vld [vmem:[#allocation52_spill] sm:$0xff] }
 0x4dd   : > { %13287 = vmatpush1.bf16.msra.mxu1 %v19950_v9  ;;  %10646 = vmatprep.mubr.bf16.mxu0 %v19951_v40  ;;  %v19966_v9 = vld [vmem:[%s22680_s19 + $0x244] ss:$36 sps:$4 sm:$0xff]   ;;  %v19970_v40 = vld [vmem:[%s25552_s2 + $0x710] sm:$0xff]  }
 0x4de   : > { %25789 = vst [vmem:[#allocation28_spill] sm:$0xff] %v23038_v18  ;;  %13288 = vmatprep.subr.bf16.mxu1 %v25774_v56  ;;  %10780 = vmatpush1.bf16.msra.mxu0 %v20014_v20  ;;  %v23044_v21 = vadd.f32 %v6097_v8, %v25790_v31  ;;  %v25802_v1 = vld [vmem:[#allocation32_spill] sm:$0xff]  ;;  %v25803_v46 = vld [vmem:[#allocation54_spill] sm:$0xff] }
 0x4df   : > { %v5329_v41 = vpop.f32.mrb[152].mxu0  ;;  %10781 = vmatprep.subr.bf16.mxu0 %v25774_v56  ;;  %v25806_v31 = vld [vmem:[#allocation118_spill] sm:$0xff] }
 0x4e0   : > { %25791 = vst [vmem:[#allocation51_spill] sm:$0xff] %v23044_v21  ;;  %v17465_v19 = vadd.f32 %v25792_v58, %v5329_v41  ;;  %v5331_v51 = vpop.f32.mrb[153].mxu0  ;;  %v20037_v21 = vld [vmem:[%s22680_s19 + $0x4cc] ss:$36 sps:$4 sm:$0xff]  }
 0x4e1   : > { %v5332_v44 = vpop.f32.mrb[154].mxu0  ;;  %13289 = vmatpush1.bf16.msra.mxu1 %v19956_v13  ;;  %v20053_v13 = vld [vmem:[%s25552_s2 + $0x570] sm:$0xff]   ;;  %v25808_v51 = vld [vmem:[#allocation10_spill] sm:$0xff] }
 0x4e2   : > { %v6102_v17 = vadd.f32 %v17465_v19, %v25793_v10  ;;  %v17466_v6 = vadd.f32 %v25794_v45, %v5332_v44  ;;  %v5334_v57 = vpop.f32.mrb[155].mxu0  ;;  %13290 = vmatprep.subr.bf16.mxu1 %v25774_v56  ;;  %10782 = vmatpush1.bf16.msra.mxu0 %v20023_v63  ;;  %v25804_v63 = vld [vmem:[#allocation116_spill] sm:$0xff]  ;;  %v19968_v19 = vld [vmem:[%s22680_s19 + $0x3c8] ss:$36 sps:$4 sm:$0xff]   ;;  %v19978_v45 = vld [vmem:[%s25552_s2 + $0x720] sm:$0xff]  }
 0x4e3   : > { %17251 = vmatmul.mubr.bf16.gmra.mrb[216].mxu1 %v19953_v15  ;;  %10783 = vmatprep.subr.bf16.mxu0 %v25774_v56  ;;  %v19976_v15 = vld [vmem:[%s25552_s2 + $0x718] sm:$0xff]  }
 0x4e4   : > { %v6105_v28 = vadd.f32 %v17466_v6, %v25795_v34  ;;  %10647 = vmatmul.mubr.bf16.gmra.mrb[224].mxu0 %v19954_v7  ;;  %17254 = vmatprep.mubr.bf16.mxu1 %v19957_v42  ;;  %v23068_v2 = vadd.f32 %v6102_v17, %v25796_v3  ;;  %v20055_v7 = vld [vmem:[%s25552_s2 + $0x578] sm:$0xff]   ;;  %v19972_v17 = vld [vmem:[%s22680_s19 + $0x28c] ss:$36 sps:$4 sm:$0xff]   ;;  %v25809_v6 = vld [vmem:[#allocation34_spill] sm:$0xff] }
 0x4e5   : > { %10654 = vmatprep.mubr.bf16.mxu0 %v19958_v62  ;;  %13291 = vmatpush1.bf16.msra.mxu1 %v19962_v33  ;;  %v19969_v62 = vld [vmem:[%s22680_s19 + $0x240] ss:$36 sps:$4 sm:$0xff]   ;;  %v19971_v33 = vld [vmem:[%s22680_s19 + $0x410] ss:$36 sps:$4 sm:$0xff]  }
 0x4e6   : > { %25797 = vst [vmem:[#allocation108_spill] sm:$0xff] %v23068_v2  ;;  %13292 = vmatprep.subr.bf16.mxu1 %v25774_v56  ;;  %10784 = vmatpush1.bf16.msra.mxu0 %v20031_v30  ;;  %v23072_v36 = vadd.f32 %v6105_v28, %v25798_v0  ;;  %v25810_v30 = vld [vmem:[#allocation11_spill] sm:$0xff]  ;;  %v25811_v28 = vld [vmem:[#allocation36_spill] sm:$0xff] }
 0x4e7   : > { %v5337_v14 = vpop.f32.mrb[156].mxu0  ;;  %10785 = vmatprep.subr.bf16.mxu0 %v25774_v56  ;;  %v25812_v3 = vld [vmem:[#allocation56_spill] sm:$0xff] }
 0x4e8   : > { %25799 = vst [vmem:[#allocation110_spill] sm:$0xff] %v23072_v36  ;;  %v17467_v60 = vadd.f32 %v25800_v11, %v5337_v14  ;;  %v5339_v32 = vpop.f32.mrb[157].mxu0  ;;  %v19985_v14 = vld [vmem:[%s25552_s2 + $0x728] sm:$0xff]   ;;  %v25813_v11 = vld [vmem:[#allocation58_spill] sm:$0xff]  ;;  %v25852_v36 = vld [vmem:[#allocation25_spill] sm:$0xff] }
 0x4e9   : > { %v5340_v25 = vpop.f32.mrb[158].mxu0  ;;  %13293 = vmatpush1.bf16.msra.mxu1 %v19964_v24 }
 0x4ea   : > { %v6110_v59 = vadd.f32 %v17467_v60, %v25801_v4  ;;  %v17468_v48 = vadd.f32 %v25802_v1, %v5340_v25  ;;  %v5342_v20 = vpop.f32.mrb[159].mxu0  ;;  %13294 = vmatprep.subr.bf16.mxu1 %v25774_v56  ;;  %10786 = vmatpush1.bf16.msra.mxu0 %v20039_v29  ;;  %v25814_v25 = vld [vmem:[#allocation12_spill] sm:$0xff]  ;;  %v19979_v1 = vld [vmem:[%s22680_s19 + $0x4a0] ss:$36 sps:$4 sm:$0xff]  }
 0x4eb   : > { %17255 = vmatmul.mubr.bf16.gmra.mrb[220].mxu1 %v19960_v22  ;;  %10787 = vmatprep.subr.bf16.mxu0 %v25774_v56 }
 0x4ec   : > { %v6113_v8 = vadd.f32 %v17468_v48, %v25803_v46  ;;  %10655 = vmatmul.mubr.bf16.gmra.mrb[228].mxu0 %v19961_v26  ;;  %17258 = vmatprep.mubr.bf16.mxu1 %v19965_v16  ;;  %v23092_v5 = vadd.f32 %v6110_v59, %v25804_v63  ;;  %v19975_v16 = vld [vmem:[%s22680_s19 + $0x458] ss:$36 sps:$4 sm:$0xff]   ;;  %v19977_v59 = vld [vmem:[%s22680_s19 + $0x288] ss:$36 sps:$4 sm:$0xff]   ;;  %v19987_v46 = vld [vmem:[%s25552_s2 + $0x730] sm:$0xff]  }
 0x4ed   : > { %10662 = vmatprep.mubr.bf16.mxu0 %v19966_v9  ;;  %13295 = vmatpush1.bf16.msra.mxu1 %v19970_v40 }
 0x4ee   : > { %25805 = vst [vmem:[#allocation29_spill] sm:$0xff] %v23092_v5  ;;  %13296 = vmatprep.subr.bf16.mxu1 %v25774_v56  ;;  %10788 = vmatpush1.bf16.msra.mxu0 %v20053_v13  ;;  %v23102_v41 = vadd.f32 %v6113_v8, %v25806_v31  ;;  %v19980_v13 = vld [vmem:[%s22680_s19 + $0x2d4] ss:$36 sps:$4 sm:$0xff]  }
 0x4ef   : > { %v5378_v58 = vpop.f32.mrb[80].mxu0  ;;  %10789 = vmatprep.subr.bf16.mxu0 %v25774_v56  ;;  %v25815_v8 = vld [vmem:[#allocation33_spill] sm:$0xff]  ;;  %v20054_v5 = vld [vmem:[%s25552_s2 + $0x770] sm:$0xff]  }
 0x4f0   : > { %25807 = vst [vmem:[#allocation53_spill] sm:$0xff] %v23102_v41  ;;  %v17429_v42 = vadd.f32 %v25808_v51, %v5378_v58  ;;  %v5380_v44 = vpop.f32.mrb[81].mxu0  ;;  %v25817_v58 = vld [vmem:[#allocation35_spill] sm:$0xff]  ;;  %v25818_v51 = vld [vmem:[#allocation60_spill] sm:$0xff] }
 0x4f1   : > { %v5381_v10 = vpop.f32.mrb[82].mxu0  ;;  %13297 = vmatpush1.bf16.msra.mxu1 %v19976_v15  ;;  %v25816_v15 = vld [vmem:[#allocation13_spill] sm:$0xff]  ;;  %v20030_v41 = vld [vmem:[%s22680_s19 + $0x484] ss:$36 sps:$4 sm:$0xff]  }
 0x4f2   : > { %v5958_v57 = vadd.f32 %v17429_v42, %v25809_v6  ;;  %v17430_v24 = vadd.f32 %v25810_v30, %v5381_v10  ;;  %v5383_v34 = vpop.f32.mrb[83].mxu0  ;;  %13298 = vmatprep.subr.bf16.mxu1 %v25774_v56  ;;  %10790 = vmatpush1.bf16.msra.mxu0 %v20055_v7  ;;  %v19993_v44 = vld [vmem:[%s25552_s2 + $0x738] sm:$0xff]   ;;  %v19982_v6 = vld [vmem:[%s22680_s19 + $0x4e8] ss:$36 sps:$4 sm:$0xff]  }
 0x4f3   : > { %17259 = vmatmul.mubr.bf16.gmra.mrb[224].mxu1 %v19968_v19  ;;  %10952 = vmatprep.subr.bf16.mxu0 %v25774_v56 }
 0x4f4   : > { %v5961_v29 = vadd.f32 %v17430_v24, %v25811_v28  ;;  %10663 = vmatmul.mubr.bf16.gmra.mrb[232].mxu0 %v19969_v62  ;;  %17262 = vmatprep.mubr.bf16.mxu1 %v19971_v33  ;;  %v23119_v0 = vadd.f32 %v5958_v57, %v25812_v3  ;;  %v25819_v33 = vld [vmem:[#allocation62_spill] sm:$0xff]  ;;  %v19983_v28 = vld [vmem:[%s22680_s19 + $0x2d0] ss:$36 sps:$4 sm:$0xff]  }
 0x4f5   : > { %10670 = vmatprep.mubr.bf16.mxu0 %v19972_v17  ;;  %13299 = vmatpush1.bf16.msra.mxu1 %v19978_v45  ;;  %v25820_v57 = vld [vmem:[#allocation14_spill] sm:$0xff] }
 0x4f6   : > { %v23124_v22 = vpop.f32.mrb[120].mxu1  ;;  %13300 = vmatprep.subr.bf16.mxu1 %v25774_v56  ;;  %v23128_v60 = vadd.f32 %v5961_v29, %v25813_v11  ;;  %v19986_v29 = vld [vmem:[%s22680_s19 + $0x530] ss:$36 sps:$4 sm:$0xff]   ;;  %v19988_v11 = vld [vmem:[%s22680_s19 + $0x31c] ss:$36 sps:$4 sm:$0xff]  }
 0x4f7   : > { %v5386_v32 = vpop.f32.mrb[84].mxu0  ;;  %v8474_v26 = vpop.f32.mrb[121].mxu1 }
 0x4f8   : > { %v17431_v9 = vadd.f32 %v25814_v25, %v5386_v32  ;;  %v5388_v40 = vpop.f32.mrb[85].mxu0  ;;  %v23132_v4 = vpop.f32.mrb[122].mxu1  ;;  %v25821_v32 = vld [vmem:[#allocation38_spill] sm:$0xff] }
 0x4f9   : > { %v5389_v48 = vpop.f32.mrb[86].mxu0  ;;  %v8477_v20 = vpop.f32.mrb[123].mxu1  ;;  %13301 = vmatpush1.bf16.msra.mxu1 %v19985_v14  ;;  %v25823_v40 = vld [vmem:[#allocation40_spill] sm:$0xff] }
 0x4fa   : > { %v5966_v63 = vadd.f32 %v17431_v9, %v25815_v8  ;;  %v17432_v7 = vadd.f32 %v25816_v15, %v5389_v48  ;;  %v5391_v31 = vpop.f32.mrb[87].mxu0  ;;  %13302 = vmatprep.subr.bf16.mxu1 %v25774_v56  ;;  %v19990_v15 = vld [vmem:[%s22680_s19 + $0x578] ss:$36 sps:$4 sm:$0xff]  }
 0x4fb   : > { %17263 = vmatmul.mubr.bf16.gmra.mrb[228].mxu1 %v19975_v16  ;;  %v25822_v16 = vld [vmem:[#allocation15_spill] sm:$0xff] }
 0x4fc   : > { %v5969_v19 = vadd.f32 %v17432_v7, %v25817_v58  ;;  %10671 = vmatmul.mubr.bf16.gmra.mrb[236].mxu0 %v19977_v59  ;;  %17266 = vmatprep.mubr.bf16.mxu1 %v19979_v1  ;;  %v23145_v42 = vadd.f32 %v5966_v63, %v25818_v51  ;;  %v25824_v1 = vld [vmem:[#allocation64_spill] sm:$0xff]  ;;  %v19991_v51 = vld [vmem:[%s22680_s19 + $0x318] ss:$36 sps:$4 sm:$0xff]  }
 0x4fd   : > { %10678 = vmatprep.mubr.bf16.mxu0 %v19980_v13  ;;  %13303 = vmatpush1.bf16.msra.mxu1 %v19987_v46  ;;  %v25825_v13 = vld [vmem:[#allocation66_spill] sm:$0xff]  ;;  %v25826_v7 = vld [vmem:[#allocation16_spill] sm:$0xff] }
 0x4fe   : > { %v23150_v62 = vpop.f32.mrb[124].mxu1  ;;  %13304 = vmatprep.subr.bf16.mxu1 %v25774_v56  ;;  %v23154_v10 = vadd.f32 %v5969_v19, %v25819_v33 }
 0x4ff   : > { %v5394_v17 = vpop.f32.mrb[88].mxu0  ;;  %v8482_v45 = vpop.f32.mrb[125].mxu1 }
 0x500   : > { %v17433_v30 = vadd.f32 %v25820_v57, %v5394_v17  ;;  %v5396_v24 = vpop.f32.mrb[89].mxu0  ;;  %v23158_v34 = vpop.f32.mrb[126].mxu1  ;;  %v19997_v45 = vld [vmem:[%s22680_s19 + $0x364] ss:$36 sps:$4 sm:$0xff]  }
 0x501   : > { %v5397_v3 = vpop.f32.mrb[90].mxu0  ;;  %v8485_v14 = vpop.f32.mrb[127].mxu1  ;;  %13305 = vmatpush1.bf16.msra.mxu1 %v19993_v44  ;;  %v19996_v44 = vld [vmem:[%s22820_s12 + $0x4] ss:$36 sps:$4 sm:$0xff]  }
 0x502   : > { %v5974_v26 = vadd.f32 %v17433_v30, %v25821_v32  ;;  %v17434_v25 = vadd.f32 %v25822_v16, %v5397_v3  ;;  %v5399_v9 = vpop.f32.mrb[91].mxu0  ;;  %13467 = vmatprep.subr.bf16.mxu1 %v25774_v56  ;;  %v25828_v30 = vld [vmem:[#allocation17_spill] sm:$0xff]  ;;  %v25830_v14 = vld [vmem:[#allocation68_spill] sm:$0xff] }
 0x503   : > { %17267 = vmatmul.mubr.bf16.gmra.mrb[232].mxu1 %v19982_v6  ;;  %v25827_v6 = vld [vmem:[#allocation37_spill] sm:$0xff] }
 0x504   : > { %v5977_v59 = vadd.f32 %v17434_v25, %v25823_v40  ;;  %10679 = vmatmul.mubr.bf16.gmra.mrb[240].mxu0 %v19983_v28  ;;  %17270 = vmatprep.mubr.bf16.mxu1 %v19986_v29  ;;  %v23168_v48 = vadd.f32 %v5974_v26, %v25824_v1  ;;  %v25829_v29 = vld [vmem:[#allocation39_spill] sm:$0xff]  ;;  %v25831_v26 = vld [vmem:[#allocation70_spill] sm:$0xff] }
 0x505   : > { %10686 = vmatprep.mubr.bf16.mxu0 %v19988_v11  ;;  %v19994_v40 = vld [vmem:[%s22820_s12] ss:$36 sps:$4 sm:$0xff]  }
 0x506   : > { %v23170_v20 = vpop.f32.mrb[128].mxu1  ;;  %v23173_v46 = vadd.f32 %v5977_v59, %v25825_v13  ;;  %v25832_v59 = vld [vmem:[#allocation18_spill] sm:$0xff] }
 0x507   : > { %v5402_v8 = vpop.f32.mrb[92].mxu0  ;;  %v8490_v63 = vpop.f32.mrb[129].mxu1 }
 0x508   : > { %v17435_v31 = vadd.f32 %v25826_v7, %v5402_v8  ;;  %v5404_v58 = vpop.f32.mrb[93].mxu0  ;;  %v23177_v19 = vpop.f32.mrb[130].mxu1  ;;  %v19999_v63 = vld [vmem:[%s22680_s19 + $0x360] ss:$36 sps:$4 sm:$0xff]  }
 0x509   : > { %v5405_v33 = vpop.f32.mrb[94].mxu0  ;;  %v8493_v17 = vpop.f32.mrb[131].mxu1  ;;  %v20002_v58 = vld [vmem:[%s22820_s12 + $0x4c] ss:$36 sps:$4 sm:$0xff]  }
 0x50a   : > { %v5982_v57 = vadd.f32 %v17435_v31, %v25827_v6  ;;  %v17436_v24 = vadd.f32 %v25828_v30, %v5405_v33  ;;  %v5407_v28 = vpop.f32.mrb[95].mxu0  ;;  %v25834_v17 = vld [vmem:[#allocation19_spill] sm:$0xff] }
 0x50b   : > { %17271 = vmatmul.mubr.bf16.gmra.mrb[236].mxu1 %v19990_v15  ;;  %v20000_v15 = vld [vmem:[%s25552_s2 + $0x740] sm:$0xff]   ;;  %v25836_v28 = vld [vmem:[#allocation72_spill] sm:$0xff] }
 0x50c   : > { %v5985_v3 = vadd.f32 %v17436_v24, %v25829_v29  ;;  %10687 = vmatmul.mubr.bf16.gmra.mrb[244].mxu0 %v19991_v51  ;;  %13306 = vmatprep.mubr.bf16.mxu1 %v19996_v44  ;;  %v23186_v11 = vadd.f32 %v5982_v57, %v25830_v14  ;;  %v20004_v51 = vld [vmem:[%s22680_s19 + $0x3ac] ss:$36 sps:$4 sm:$0xff]   ;;  %v25833_v44 = vld [vmem:[#allocation42_spill] sm:$0xff] }
 0x50d   : > { %10694 = vmatprep.mubr.bf16.mxu0 %v19997_v45  ;;  %v25835_v57 = vld [vmem:[#allocation44_spill] sm:$0xff]  ;;  %v20008_v24 = vld [vmem:[%s25552_s2 + $0x748] sm:$0xff]   ;;  %v25837_v14 = vld [vmem:[#allocation74_spill] sm:$0xff] }
 0x50e   : > { %v23188_v32 = vpop.f32.mrb[132].mxu1  ;;  %v23191_v16 = vadd.f32 %v5985_v3, %v25831_v26 }
 0x50f   : > { %v5410_v25 = vpop.f32.mrb[96].mxu0  ;;  %v8498_v9 = vpop.f32.mrb[133].mxu1 }
 0x510   : > { %v17437_v1 = vadd.f32 %v25832_v59, %v5410_v25  ;;  %v5412_v13 = vpop.f32.mrb[97].mxu0  ;;  %v23195_v8 = vpop.f32.mrb[134].mxu1  ;;  %v25838_v59 = vld [vmem:[#allocation20_spill] sm:$0xff] }
 0x511   : > { %v5413_v7 = vpop.f32.mrb[98].mxu0  ;;  %v8501_v31 = vpop.f32.mrb[135].mxu1 }
 0x512   : > { %v5990_v33 = vadd.f32 %v17437_v1, %v25833_v44  ;;  %v17438_v45 = vadd.f32 %v25834_v17, %v5413_v7  ;;  %v5415_v6 = vpop.f32.mrb[99].mxu0  ;;  %v20009_v7 = vld [vmem:[%s22820_s12 + $0x94] ss:$36 sps:$4 sm:$0xff]  }
 0x513   : > { %13307 = vmatmul.mubr.bf16.vlgmr.msra.gmra.mrb[240].mxu1 %v19994_v40  ;;  %v20006_v40 = vld [vmem:[%s22820_s12 + $0x48] ss:$36 sps:$4 sm:$0xff]   ;;  %v20016_v44 = vld [vmem:[%s25552_s2 + $0x750] sm:$0xff]  }
 0x514   : > { %v5993_v30 = vadd.f32 %v17438_v45, %v25835_v57  ;;  %10695 = vmatmul.mubr.bf16.gmra.mrb[248].mxu0 %v19999_v63  ;;  %13468 = vmatpush1.bf16.msra.mxu1 %v20000_v15  ;;  %v23210_v29 = vadd.f32 %v5990_v33, %v25836_v28  ;;  %v20007_v15 = vld [vmem:[%s22680_s19 + $0x3a8] ss:$36 sps:$4 sm:$0xff]   ;;  %v25839_v33 = vld [vmem:[#allocation41_spill] sm:$0xff] }
 0x515   : > { %13314 = vmatprep.mubr.bf16.mxu1 %v20002_v58  ;;  %10702 = vmatprep.mubr.bf16.mxu0 %v20004_v51  ;;  %v20013_v51 = vld [vmem:[%s22680_s19 + $0x3f4] ss:$36 sps:$4 sm:$0xff]  }
 0x516   : > { %v23212_v3 = vpop.f32.mrb[136].mxu1  ;;  %13469 = vmatprep.subr.bf16.mxu1 %v25774_v56  ;;  %v23216_v26 = vadd.f32 %v5993_v30, %v25837_v14  ;;  %v25840_v45 = vld [vmem:[#allocation21_spill] sm:$0xff]  ;;  %v25841_v30 = vld [vmem:[#allocation43_spill] sm:$0xff] }
 0x517   : > { %v5418_v25 = vpop.f32.mrb[100].mxu0  ;;  %v8506_v9 = vpop.f32.mrb[137].mxu1 }
 0x518   : > { %v17439_v1 = vadd.f32 %v25838_v59, %v5418_v25  ;;  %v5420_v13 = vpop.f32.mrb[101].mxu0  ;;  %v23220_v63 = vpop.f32.mrb[138].mxu1  ;;  %13470 = vmatpush1.bf16.msra.mxu1 %v20008_v24  ;;  %v25842_v24 = vld [vmem:[#allocation76_spill] sm:$0xff]  ;;  %v20027_v25 = vld [vmem:[%s25552_s2 + $0x758] sm:$0xff]  }
 0x519   : > { %v5421_v31 = vpop.f32.mrb[102].mxu0  ;;  %v8509_v58 = vpop.f32.mrb[139].mxu1  ;;  %13471 = vmatprep.subr.bf16.mxu1 %v25774_v56 }
 0x51a   : > { %v5998_v17 = vadd.f32 %v17439_v1, %v25839_v33  ;;  %v17440_v6 = vadd.f32 %v25840_v45, %v5421_v31  ;;  %v5423_v57 = vpop.f32.mrb[103].mxu0  ;;  %v20017_v33 = vld [vmem:[%s22820_s12 + $0xdc] ss:$36 sps:$4 sm:$0xff]  }
 0x51b   : > { %13315 = vmatmul.mubr.bf16.gmra.mrb[244].mxu1 %v20006_v40  ;;  %v25843_v40 = vld [vmem:[#allocation78_spill] sm:$0xff] }
 0x51c   : > { %v6001_v28 = vadd.f32 %v17440_v6, %v25841_v30  ;;  %10703 = vmatmul.mubr.bf16.gmra.mrb[252].mxu0 %v20007_v15  ;;  %13322 = vmatprep.mubr.bf16.mxu1 %v20009_v7  ;;  %v23233_v14 = vadd.f32 %v5998_v17, %v25842_v24  ;;  %v20015_v15 = vld [vmem:[%s22820_s12 + $0x90] ss:$36 sps:$4 sm:$0xff]   ;;  %v25844_v7 = vld [vmem:[#allocation22_spill] sm:$0xff]  ;;  %v25846_v24 = vld [vmem:[#allocation23_spill] sm:$0xff] }
 0x51d   : > { %10710 = vmatprep.mubr.bf16.mxu0 %v20013_v51  ;;  %13472 = vmatpush1.bf16.msra.mxu1 %v20016_v44  ;;  %v20011_v44 = vld [vmem:[%s22680_s19 + $0x3f0] ss:$36 sps:$4 sm:$0xff]   ;;  %v20021_v6 = vld [vmem:[%s22680_s19 + $0x43c] ss:$36 sps:$4 sm:$0xff]  }
 0x51e   : > { %v23238_v9 = vpop.f32.mrb[140].mxu1  ;;  %13473 = vmatprep.subr.bf16.mxu1 %v25774_v56  ;;  %v23242_v59 = vadd.f32 %v6001_v28, %v25843_v40  ;;  %v20038_v57 = vld [vmem:[%s25552_s2 + $0x760] sm:$0xff]  }
 0x51f   : > { %v5426_v1 = vpop.f32.mrb[104].mxu0  ;;  %v8514_v13 = vpop.f32.mrb[141].mxu1  ;;  %v25845_v30 = vld [vmem:[#allocation46_spill] sm:$0xff] }
 0x520   : > { %v17441_v31 = vadd.f32 %v25844_v7, %v5426_v1  ;;  %v5428_v58 = vpop.f32.mrb[105].mxu0  ;;  %v23246_v51 = vpop.f32.mrb[142].mxu1  ;;  %v25847_v1 = vld [vmem:[#allocation48_spill] sm:$0xff] }
 0x521   : > { %v5429_v17 = vpop.f32.mrb[106].mxu0  ;;  %v8517_v45 = vpop.f32.mrb[143].mxu1  ;;  %13474 = vmatpush1.bf16.msra.mxu1 %v20027_v25  ;;  %v25848_v25 = vld [vmem:[#allocation80_spill] sm:$0xff] }
 0x522   : > { %v6006_v28 = vadd.f32 %v17441_v31, %v25845_v30  ;;  %v17442_v40 = vadd.f32 %v25846_v24, %v5429_v17  ;;  %v5431_v13 = vpop.f32.mrb[107].mxu0  ;;  %13475 = vmatprep.subr.bf16.mxu1 %v25774_v56  ;;  %v20046_v31 = vld [vmem:[%s25552_s2 + $0x768] sm:$0xff]   ;;  %v25850_v24 = vld [vmem:[#allocation24_spill] sm:$0xff] }
 0x523   : > { %13323 = vmatmul.mubr.bf16.gmra.mrb[248].mxu1 %v20015_v15  ;;  %v25849_v15 = vld [vmem:[#allocation82_spill] sm:$0xff] }
 0x524   : > { %v6009_v7 = vadd.f32 %v17442_v40, %v25847_v1  ;;  %10711 = vmatmul.mubr.bf16.gmra.mrb[0].mxu0 %v20011_v44  ;;  %13330 = vmatprep.mubr.bf16.mxu1 %v20017_v33  ;;  %v23259_v58 = vadd.f32 %v6006_v28, %v25848_v25  ;;  %v20022_v33 = vld [vmem:[%s22820_s12 + $0xd8] ss:$36 sps:$4 sm:$0xff]   ;;  %v20026_v13 = vld [vmem:[%s22820_s12 + $0x124] ss:$36 sps:$4 sm:$0xff]  }
 0x525   : > { %10718 = vmatprep.mubr.bf16.mxu0 %v20021_v6  ;;  %13476 = vmatpush1.bf16.msra.mxu1 %v20038_v57  ;;  %v20019_v57 = vld [vmem:[%s22680_s19 + $0x438] ss:$36 sps:$4 sm:$0xff]  }
 0x526   : > { %v23264_v17 = vpop.f32.mrb[144].mxu1  ;;  %13477 = vmatprep.subr.bf16.mxu1 %v25774_v56  ;;  %v23268_v45 = vadd.f32 %v6009_v7, %v25849_v15  ;;  %v25851_v7 = vld [vmem:[#allocation45_spill] sm:$0xff] }
 0x527   : > { %v5434_v44 = vpop.f32.mrb[108].mxu0  ;;  %v8522_v30 = vpop.f32.mrb[145].mxu1 }
 0x528   : > { %v17443_v28 = vadd.f32 %v25850_v24, %v5434_v44  ;;  %v5436_v40 = vpop.f32.mrb[109].mxu0  ;;  %v23272_v6 = vpop.f32.mrb[146].mxu1  ;;  %v25853_v44 = vld [vmem:[#allocation47_spill] sm:$0xff] }
 0x529   : > { %v5437_v1 = vpop.f32.mrb[110].mxu0  ;;  %v8525_v25 = vpop.f32.mrb[147].mxu1  ;;  %13478 = vmatpush1.bf16.msra.mxu1 %v20046_v31  ;;  %v25854_v31 = vld [vmem:[#allocation84_spill] sm:$0xff] }
 0x52a   : > { %v6014_v15 = vadd.f32 %v17443_v28, %v25851_v7  ;;  %v17444_v30 = vadd.f32 %v25852_v36, %v5437_v1  ;;  %v5439_v2 = vpop.f32.mrb[111].mxu0  ;;  %13479 = vmatprep.subr.bf16.mxu1 %v25774_v56  ;;  %v20065_v36 = vld [vmem:[%s25552_s2 + $0x778] sm:$0xff]   ;;  %v25855_v28 = vld [vmem:[#allocation86_spill] sm:$0xff] }
 0x52b   : > { %13331 = vmatmul.mubr.bf16.gmra.mrb[252].mxu1 %v20022_v33  ;;  %v25856_v25 = vld [vmem:[#allocation26_spill] sm:$0xff] }
 0x52c   : > { %v6017_v24 = vadd.f32 %v17444_v30, %v25853_v44  ;;  %10719 = vmatmul.mubr.bf16.gmra.mrb[4].mxu0 %v20019_v57  ;;  %13338 = vmatprep.mubr.bf16.mxu1 %v20026_v13  ;;  %v23285_v40 = vadd.f32 %v6014_v15, %v25854_v31  ;;  %v20024_v13 = vld [vmem:[%s22820_s12 + $0x120] ss:$36 sps:$4 sm:$0xff]   ;;  %v20034_v30 = vld [vmem:[%s22820_s12 + $0x16c] ss:$36 sps:$4 sm:$0xff]  }
 0x52d   : > { %10726 = vmatprep.mubr.bf16.mxu0 %v20030_v41  ;;  %13480 = vmatpush1.bf16.msra.mxu1 %v20054_v5  ;;  %v20028_v5 = vld [vmem:[%s22680_s19 + $0x480] ss:$36 sps:$4 sm:$0xff]  }
 0x52e   : > { %v23290_v2 = vpop.f32.mrb[148].mxu1  ;;  %v23293_v33 = vadd.f32 %v6017_v24, %v25855_v28  ;;  %13481 = vmatprep.subr.bf16.mxu1 %v25774_v56  ;;  %v20076_v24 = vld [vmem:[%s25552_s2 + $0x780] sm:$0xff]   ;;  %v25857_v28 = vld [vmem:[#allocation49_spill] sm:$0xff] }
 0x52f   : > { %v5442_v57 = vpop.f32.mrb[112].mxu0  ;;  %v8530_v1 = vpop.f32.mrb[149].mxu1 }
 0x530   : > { %v17445_v7 = vadd.f32 %v25856_v25, %v5442_v57  ;;  %v5444_v15 = vpop.f32.mrb[113].mxu0  ;;  %v23298_v41 = vpop.f32.mrb[150].mxu1  ;;  %v25859_v57 = vld [vmem:[#allocation50_spill] sm:$0xff] }
 0x531   : > { %v5445_v44 = vpop.f32.mrb[114].mxu0  ;;  %v8533_v31 = vpop.f32.mrb[151].mxu1  ;;  %13482 = vmatpush1.bf16.msra.mxu1 %v20065_v36  ;;  %v25860_v36 = vld [vmem:[#allocation88_spill] sm:$0xff] }
 0x532   : > { %v6022_v18 = vadd.f32 %v17445_v7, %v25857_v28  ;;  %v17446_v1 = vadd.f32 %v25858_v47, %v5445_v44  ;;  %v5447_v27 = vpop.f32.mrb[115].mxu0  ;;  %13483 = vmatprep.subr.bf16.mxu1 %v25774_v56  ;;  %v20084_v47 = vld [vmem:[%s25552_s2 + $0x788] sm:$0xff]   ;;  %v25861_v7 = vld [vmem:[#allocation90_spill] sm:$0xff]  ;;  %v20042_v28 = vld [vmem:[%s22820_s12 + $0x1b4] ss:$36 sps:$4 sm:$0xff]  }
 0x533   : > { %13339 = vmatmul.mubr.bf16.gmra.mrb[44].mxu1 %v20024_v13 }
 0x534   : > { %v6025_v25 = vadd.f32 %v17446_v1, %v25859_v57  ;;  %10727 = vmatmul.mubr.bf16.gmra.mrb[8].mxu0 %v20028_v5  ;;  %13346 = vmatprep.mubr.bf16.mxu1 %v20034_v30  ;;  %v23311_v15 = vadd.f32 %v6022_v18, %v25860_v36  ;;  %v20032_v30 = vld [vmem:[%s22820_s12 + $0x168] ss:$36 sps:$4 sm:$0xff]  }
 0x535   : > { %10734 = vmatprep.mubr.bf16.mxu0 %v20037_v21  ;;  %13484 = vmatpush1.bf16.msra.mxu1 %v20076_v24  ;;  %v20035_v24 = vld [vmem:[%s22680_s19 + $0x4c8] ss:$36 sps:$4 sm:$0xff]  }
 0x536   : > { %v23316_v27 = vpop.f32.mrb[152].mxu1  ;;  %v23319_v13 = vadd.f32 %v6025_v25, %v25861_v7  ;;  %13485 = vmatprep.subr.bf16.mxu1 %v25774_v56  ;;  %v20092_v25 = vld [vmem:[%s25552_s2 + $0x790] sm:$0xff]  }
 0x537   : > { %v8538_v5 = vpop.f32.mrb[153].mxu1  ;;  %v17180_v44 = vpop.f32.mrb[160].mxu0 }
 0x538   : > { %v8674_v18 = vadd.f32 %v17180_v44, %v23150_v62  ;;  %v23324_v31 = vpop.f32.mrb[154].mxu1  ;;  %v8665_v21 = vpop.f32.mrb[161].mxu0 }
 0x539   : > { %v8666_v1 = vadd.f32 %v8665_v21, %v23124_v22  ;;  %v8541_v57 = vpop.f32.mrb[155].mxu1  ;;  %v17181_v36 = vpop.f32.mrb[162].mxu0  ;;  %13486 = vmatpush1.bf16.msra.mxu1 %v20084_v47 }
 0x53a   : > { %v23334_v7 = vadd.f32 %v8674_v18, %v23145_v42  ;;  %v8677_v62 = vadd.f32 %v17181_v36, %v23158_v34  ;;  %v8668_v5 = vpop.f32.mrb[163].mxu0  ;;  %13487 = vmatprep.subr.bf16.mxu1 %v25774_v56  ;;  %v20052_v36 = vld [vmem:[%s22680_s19 + $0x55c] ss:$36 sps:$4 sm:$0xff]  }
 0x53b   : > { %v23339_v44 = vadd.f32 %v8666_v1, %v23119_v0  ;;  %v8669_v22 = vadd.f32 %v8668_v5, %v23132_v4  ;;  %13347 = vmatmul.mubr.bf16.gmra.mrb[48].mxu1 %v20032_v30  ;;  %v20103_v0 = vld [vmem:[%s25552_s2 + $0x798] sm:$0xff]   ;;  %v20040_v30 = vld [vmem:[%s22820_s12 + $0x1b0] ss:$36 sps:$4 sm:$0xff]  }
 0x53c   : > { %v23343_v47 = vadd.f32 %v8677_v62, %v23154_v10  ;;  %10735 = vmatmul.mubr.bf16.gmra.mrb[12].mxu0 %v20035_v24  ;;  %13354 = vmatprep.mubr.bf16.mxu1 %v20042_v28  ;;  %v20043_v24 = vld [vmem:[%s22680_s19 + $0x510] ss:$36 sps:$4 sm:$0xff]  }
 0x53d   : > { %v23346_v42 = vadd.f32 %v8669_v22, %v23128_v60  ;;  %10742 = vmatprep.mubr.bf16.mxu0 %v20045_v38  ;;  %13488 = vmatpush1.bf16.msra.mxu1 %v20092_v25  ;;  %v20049_v38 = vld [vmem:[%s22820_s12 + $0x1fc] ss:$36 sps:$4 sm:$0xff]  }
 0x53e   : > { %v23351_v34 = vpop.f32.mrb[156].mxu1  ;;  %13489 = vmatprep.subr.bf16.mxu1 %v25774_v56  ;;  %v20114_v25 = vld [vmem:[%s25552_s2 + $0x7a0] sm:$0xff]  }
 0x53f   : > { %v8546_v4 = vpop.f32.mrb[157].mxu1  ;;  %v17184_v10 = vpop.f32.mrb[164].mxu0 }
 0x540   : > { %v8690_v18 = vadd.f32 %v17184_v10, %v23188_v32  ;;  %v23356_v21 = vpop.f32.mrb[158].mxu1  ;;  %v8681_v60 = vpop.f32.mrb[165].mxu0  ;;  %v20047_v4 = vld [vmem:[%s22820_s12 + $0x1f8] ss:$36 sps:$4 sm:$0xff]  }
 0x541   : > { %v8682_v28 = vadd.f32 %v8681_v60, %v23170_v20  ;;  %v8549_v1 = vpop.f32.mrb[159].mxu1  ;;  %v17185_v57 = vpop.f32.mrb[166].mxu0  ;;  %13490 = vmatpush1.bf16.msra.mxu1 %v20103_v0  ;;  %v20058_v60 = vld [vmem:[%s22820_s12 + $0x244] ss:$36 sps:$4 sm:$0xff]  }
 0x542   : > { %v23366_v62 = vadd.f32 %v8690_v18, %v23186_v11  ;;  %v8693_v32 = vadd.f32 %v17185_v57, %v23195_v8  ;;  %v8684_v5 = vpop.f32.mrb[167].mxu0  ;;  %13491 = vmatprep.subr.bf16.mxu1 %v25774_v56  ;;  %v20050_v18 = vld [vmem:[%s22680_s19 + $0x558] ss:$36 sps:$4 sm:$0xff]   ;;  %v20061_v1 = vld [vmem:[%s22680_s19 + $0xc] ss:$36 sps:$4 sm:$0xff]  }
 0x543   : > { %v23371_v22 = vadd.f32 %v8682_v28, %v23168_v48  ;;  %v8685_v20 = vadd.f32 %v8684_v5, %v23177_v19  ;;  %13355 = vmatmul.mubr.bf16.gmra.mrb[52].mxu1 %v20040_v30  ;;  %v20122_v48 = vld [vmem:[%s25552_s2 + $0x7a8] sm:$0xff]   ;;  %v20130_v57 = vld [vmem:[%s25552_s2 + $0x7b0] sm:$0xff]  }
 0x544   : > { %v23375_v0 = vadd.f32 %v8693_v32, %v23191_v16  ;;  %10743 = vmatmul.mubr.bf16.gmra.mrb[16].mxu0 %v20043_v24  ;;  %13362 = vmatprep.mubr.bf16.mxu1 %v20049_v38 }
 0x545   : > { %v23378_v11 = vadd.f32 %v8685_v20, %v23173_v46  ;;  %10750 = vmatprep.mubr.bf16.mxu0 %v20052_v36  ;;  %13492 = vmatpush1.bf16.msra.mxu1 %v20114_v25  ;;  %v20056_v20 = vld [vmem:[%s22820_s12 + $0x240] ss:$36 sps:$4 sm:$0xff]  }
 0x546   : > { %v23383_v8 = vpop.f32.mrb[160].mxu1  ;;  %13493 = vmatprep.subr.bf16.mxu1 %v25774_v56 }
 0x547   : > { %v8554_v19 = vpop.f32.mrb[161].mxu1  ;;  %v17188_v16 = vpop.f32.mrb[168].mxu0 }
 0x548   : > { %v8706_v10 = vadd.f32 %v17188_v16, %v23238_v9  ;;  %v23388_v30 = vpop.f32.mrb[162].mxu1  ;;  %v8697_v46 = vpop.f32.mrb[169].mxu0  ;;  %v20059_v16 = vld [vmem:[%s22680_s19 + $0x8] ss:$36 sps:$4 sm:$0xff]  }
 0x549   : > { %v8698_v24 = vadd.f32 %v8697_v46, %v23212_v3  ;;  %v8557_v38 = vpop.f32.mrb[163].mxu1  ;;  %v17189_v28 = vpop.f32.mrb[170].mxu0  ;;  %13494 = vmatpush1.bf16.msra.mxu1 %v20122_v48 }
 0x54a   : > { %v23398_v36 = vadd.f32 %v8706_v10, %v23233_v14  ;;  %v8709_v9 = vadd.f32 %v17189_v28, %v23246_v51  ;;  %v8700_v25 = vpop.f32.mrb[171].mxu0  ;;  %13495 = vmatprep.subr.bf16.mxu1 %v25774_v56 }
 0x54b   : > { %v23403_v32 = vadd.f32 %v8698_v24, %v23210_v29  ;;  %v8701_v3 = vadd.f32 %v8700_v25, %v23220_v63  ;;  %13363 = vmatmul.mubr.bf16.gmra.mrb[56].mxu1 %v20047_v4  ;;  %v20141_v29 = vld [vmem:[%s25552_s2 + $0x7b8] sm:$0xff]   ;;  %v20064_v4 = vld [vmem:[%s22820_s12 + $0x28c] ss:$36 sps:$4 sm:$0xff]   ;;  %v20069_v24 = vld [vmem:[%s25552_s2 + $0x580] sm:$0xff]  }
 0x54c   : > { %25862 = vst [vmem:[#allocation30_spill] sm:$0xff] %v23398_v36  ;;  %v23407_v5 = vadd.f32 %v8709_v9, %v23242_v59  ;;  %10751 = vmatmul.mubr.bf16.gmra.mrb[20].mxu0 %v20050_v18  ;;  %13370 = vmatprep.mubr.bf16.mxu1 %v20058_v60  ;;  %v20066_v60 = vld [vmem:[%s22680_s19 + $0x54] ss:$36 sps:$4 sm:$0xff]   ;;  %v20062_v9 = vld [vmem:[%s22820_s12 + $0x288] ss:$36 sps:$4 sm:$0xff]  }
 0x54d   : > { %25863 = vst [vmem:[#allocation55_spill] sm:$0xff] %v23403_v32  ;;  %v23410_v14 = vadd.f32 %v8701_v3, %v23216_v26  ;;  %10791 = vmatprep.mubr.bf16.mxu0 %v20061_v1  ;;  %13496 = vmatpush1.bf16.msra.mxu1 %v20130_v57  ;;  %v20541_v36 = vld [vmem:[%s22820_s12 + $0x4e8] ss:$36 sps:$4 sm:$0xff]  }
 0x54e   : > { %25864 = vst [vmem:[#allocation112_spill] sm:$0xff] %v23407_v5  ;;  %v23415_v51 = vpop.f32.mrb[164].mxu1  ;;  %13497 = vmatprep.subr.bf16.mxu1 %v25774_v56  ;;  %v20301_v5 = vld [vmem:[%s22680_s19 + $0x374] ss:$36 sps:$4 sm:$0xff]  }
 0x54f   : > { %25865 = vst [vmem:[#allocation114_spill] sm:$0xff] %v23410_v14  ;;  %v8562_v63 = vpop.f32.mrb[165].mxu1  ;;  %v17192_v59 = vpop.f32.mrb[172].mxu0  ;;  %v20300_v14 = vld [vmem:[%s22820_s12 + $0x14] ss:$36 sps:$4 sm:$0xff]  }
 0x550   : > { %v8722_v48 = vadd.f32 %v17192_v59, %v23290_v2  ;;  %v23420_v19 = vpop.f32.mrb[166].mxu1  ;;  %v8713_v26 = vpop.f32.mrb[173].mxu0  ;;  %v20072_v63 = vld [vmem:[%s22820_s12 + $0x2d4] ss:$36 sps:$4 sm:$0xff]  }
 0x551   : > { %v8714_v10 = vadd.f32 %v8713_v26, %v23264_v17  ;;  %v8565_v46 = vpop.f32.mrb[167].mxu1  ;;  %v17193_v18 = vpop.f32.mrb[174].mxu0  ;;  %13498 = vmatpush1.bf16.msra.mxu1 %v20141_v29  ;;  %v20068_v29 = vld [vmem:[%s22680_s19 + $0x50] ss:$36 sps:$4 sm:$0xff]   ;;  %v20073_v26 = vld [vmem:[%s22680_s19 + $0x9c] ss:$36 sps:$4 sm:$0xff]  }
 0x552   : > { %v23430_v38 = vadd.f32 %v8722_v48, %v23285_v40  ;;  %v8725_v2 = vadd.f32 %v17193_v18, %v23298_v41  ;;  %v8716_v28 = vpop.f32.mrb[175].mxu0  ;;  %13660 = vmatprep.subr.bf16.mxu1 %v25774_v56 }
 0x553   : > { %v23435_v1 = vadd.f32 %v8714_v10, %v23259_v58  ;;  %v8717_v17 = vadd.f32 %v8716_v28, %v23272_v6  ;;  %13371 = vmatmul.mubr.bf16.gmra.mrb[60].mxu1 %v20056_v20  ;;  %v20077_v58 = vld [vmem:[%s25552_s2 + $0x588] sm:$0xff]  }
 0x554   : > { %25866 = vst [vmem:[#allocation31_spill] sm:$0xff] %v23430_v38  ;;  %v23439_v57 = vadd.f32 %v8725_v2, %v23293_v33  ;;  %10792 = vmatmul.mubr.bf16.vlgmr.msra.gmra.mrb[200].mxu0 %v20059_v16  ;;  %13378 = vmatprep.mubr.bf16.mxu1 %v20064_v4  ;;  %v20090_v16 = vld [vmem:[%s25552_s2 + $0x590] sm:$0xff]   ;;  %v20288_v38 = vld [vmem:[%s22680_s19 + $0x2e0] ss:$36 sps:$4 sm:$0xff]  }
 0x555   : > { %25867 = vst [vmem:[#allocation52_spill] sm:$0xff] %v23435_v1  ;;  %v23442_v40 = vadd.f32 %v8717_v17, %v23268_v45  ;;  %10799 = vmatprep.mubr.bf16.mxu0 %v20066_v60  ;;  %10953 = vmatpush1.bf16.msra.mxu0 %v20069_v24  ;;  %v20075_v17 = vld [vmem:[%s22680_s19 + $0x98] ss:$36 sps:$4 sm:$0xff]  }
 0x556   : > { %25868 = vst [vmem:[#allocation32_spill] sm:$0xff] %v23439_v57  ;;  %v23447_v41 = vpop.f32.mrb[168].mxu1  ;;  %10954 = vmatprep.subr.bf16.mxu0 %v25774_v56  ;;  %v20210_v57 = vld [vmem:[%s22820_s12 + $0x24c] ss:$36 sps:$4 sm:$0xff]   ;;  %v20213_v1 = vld [vmem:[%s22680_s19 + $0x14] ss:$36 sps:$4 sm:$0xff]  }
 0x557   : > { %25869 = vst [vmem:[#allocation54_spill] sm:$0xff] %v23442_v40  ;;  %v8570_v6 = vpop.f32.mrb[169].mxu1  ;;  %v17196_v33 = vpop.f32.mrb[176].mxu0  ;;  %v20202_v40 = vld [vmem:[%s22680_s19 + $0x560] ss:$36 sps:$4 sm:$0xff]  }
 0x558   : > { %v8738_v25 = vadd.f32 %v17196_v33, %v23351_v34  ;;  %v23452_v3 = vpop.f32.mrb[170].mxu1  ;;  %v8729_v45 = vpop.f32.mrb[177].mxu0 }
 0x559   : > { %v8730_v59 = vadd.f32 %v8729_v45, %v23316_v27  ;;  %v8573_v20 = vpop.f32.mrb[171].mxu1  ;;  %v17197_v48 = vpop.f32.mrb[178].mxu0  ;;  %10955 = vmatpush1.bf16.msra.mxu0 %v20077_v58 }
 0x55a   : > { %v23462_v4 = vadd.f32 %v8738_v25, %v22848_v55  ;;  %v8741_v34 = vadd.f32 %v17197_v48, %v23356_v21  ;;  %v8732_v10 = vpop.f32.mrb[179].mxu0  ;;  %10956 = vmatprep.subr.bf16.mxu0 %v25774_v56  ;;  %v20107_v25 = vld [vmem:[%s25552_s2 + $0x5a0] sm:$0xff]  }
 0x55b   : > { %v23467_v46 = vadd.f32 %v8730_v59, %v23311_v15  ;;  %v8733_v27 = vadd.f32 %v8732_v10, %v23324_v31  ;;  %13379 = vmatmul.mubr.bf16.gmra.mrb[64].mxu1 %v20062_v9  ;;  %v20099_v15 = vld [vmem:[%s25552_s2 + $0x598] sm:$0xff]   ;;  %v20081_v9 = vld [vmem:[%s22680_s19 + $0xe4] ss:$36 sps:$4 sm:$0xff]  }
 0x55c   : > { %25870 = vst [vmem:[#allocation116_spill] sm:$0xff] %v23462_v4  ;;  %v23471_v18 = vadd.f32 %v8741_v34, %v22854_v35  ;;  %10800 = vmatmul.mubr.bf16.gmra.mrb[204].mxu0 %v20068_v29  ;;  %13386 = vmatprep.mubr.bf16.mxu1 %v20072_v63  ;;  %v20070_v35 = vld [vmem:[%s22820_s12 + $0x2d0] ss:$36 sps:$4 sm:$0xff]   ;;  %v20083_v34 = vld [vmem:[%s22680_s19 + $0xe0] ss:$36 sps:$4 sm:$0xff]   ;;  %v20274_v4 = vld [vmem:[%s25552_s2 + $0x828] sm:$0xff]  }
 0x55d   : > { %25871 = vst [vmem:[#allocation118_spill] sm:$0xff] %v23467_v46  ;;  %v23474_v55 = vadd.f32 %v8733_v27, %v23319_v13  ;;  %10807 = vmatprep.mubr.bf16.mxu0 %v20073_v26  ;;  %10957 = vmatpush1.bf16.msra.mxu0 %v20090_v16  ;;  %v20080_v13 = vld [vmem:[%s22820_s12 + $0x31c] ss:$36 sps:$4 sm:$0xff]   ;;  %v20087_v10 = vld [vmem:[%s22820_s12 + $0x364] ss:$36 sps:$4 sm:$0xff]  }
 0x55e   : > { %25872 = vst [vmem:[#allocation10_spill] sm:$0xff] %v23471_v18  ;;  %v8576_v21 = vpop.f32.mrb[172].mxu1  ;;  %10958 = vmatprep.subr.bf16.mxu0 %v25774_v56  ;;  %v20192_v18 = vld [vmem:[%s22820_s12 + $0x1b8] ss:$36 sps:$4 sm:$0xff]  }
 0x55f   : > { %25873 = vst [vmem:[#allocation34_spill] sm:$0xff] %v23474_v55  ;;  %v8578_v31 = vpop.f32.mrb[173].mxu1  ;;  %v17200_v60 = vpop.f32.mrb[180].mxu0 }
 0x560   : > { %v8754_v24 = vadd.f32 %v17200_v60, %v23415_v51  ;;  %v8579_v2 = vpop.f32.mrb[174].mxu1  ;;  %v8745_v28 = vpop.f32.mrb[181].mxu0  ;;  %v20088_v31 = vld [vmem:[%s22680_s19 + $0x12c] ss:$36 sps:$4 sm:$0xff]  }
 0x561   : > { %v8746_v58 = vadd.f32 %v8745_v28, %v23383_v8  ;;  %v8581_v6 = vpop.f32.mrb[175].mxu1  ;;  %v17201_v33 = vpop.f32.mrb[182].mxu0  ;;  %10959 = vmatpush1.bf16.msra.mxu0 %v20099_v15  ;;  %v20128_v60 = vld [vmem:[%s25552_s2 + $0x5b0] sm:$0xff]  }
 0x562   : > { %v23490_v45 = vadd.f32 %v8754_v24, %v22878_v52  ;;  %v8757_v29 = vadd.f32 %v17201_v33, %v23420_v19  ;;  %v8748_v51 = vpop.f32.mrb[183].mxu0  ;;  %10960 = vmatprep.subr.bf16.mxu0 %v25774_v56 }
 0x563   : > { %v23495_v63 = vadd.f32 %v8746_v58, %v22864_v53  ;;  %v8749_v8 = vadd.f32 %v8748_v51, %v23388_v30  ;;  %13387 = vmatmul.mubr.bf16.gmra.mrb[68].mxu1 %v20070_v35  ;;  %v20115_v53 = vld [vmem:[%s25552_s2 + $0x5a8] sm:$0xff]  }
 0x564   : > { %25874 = vst [vmem:[#allocation11_spill] sm:$0xff] %v23490_v45  ;;  %v23499_v59 = vadd.f32 %v8757_v29, %v22883_v49  ;;  %10808 = vmatmul.mubr.bf16.gmra.mrb[208].mxu0 %v20075_v17  ;;  %13394 = vmatprep.mubr.bf16.mxu1 %v20080_v13  ;;  %v20078_v49 = vld [vmem:[%s22820_s12 + $0x318] ss:$36 sps:$4 sm:$0xff]   ;;  %v20187_v45 = vld [vmem:[%s22680_s19 + $0x4d0] ss:$36 sps:$4 sm:$0xff]  }
 0x565   : > { %25875 = vst [vmem:[#allocation36_spill] sm:$0xff] %v23495_v63  ;;  %v23502_v52 = vadd.f32 %v8749_v8, %v22869_v37  ;;  %10815 = vmatprep.mubr.bf16.mxu0 %v20081_v9  ;;  %10961 = vmatpush1.bf16.msra.mxu0 %v20107_v25  ;;  %v20091_v9 = vld [vmem:[%s22680_s19 + $0x128] ss:$36 sps:$4 sm:$0xff]   ;;  %v20096_v8 = vld [vmem:[%s22680_s19 + $0x174] ss:$36 sps:$4 sm:$0xff]  }
 0x566   : > { %25876 = vst [vmem:[#allocation56_spill] sm:$0xff] %v23499_v59  ;;  %v8584_v19 = vpop.f32.mrb[176].mxu1  ;;  %10962 = vmatprep.subr.bf16.mxu0 %v25774_v56  ;;  %v20095_v25 = vld [vmem:[%s22820_s12 + $0x3ac] ss:$36 sps:$4 sm:$0xff]  }
 0x567   : > { %25877 = vst [vmem:[#allocation58_spill] sm:$0xff] %v23502_v52  ;;  %v8586_v30 = vpop.f32.mrb[177].mxu1  ;;  %v17204_v20 = vpop.f32.mrb[184].mxu0  ;;  %v20184_v59 = vld [vmem:[%s22820_s12 + $0x170] ss:$36 sps:$4 sm:$0xff]  }
 0x568   : > { %v8770_v48 = vadd.f32 %v17204_v20, %v8576_v21  ;;  %v8587_v26 = vpop.f32.mrb[178].mxu1  ;;  %v8761_v16 = vpop.f32.mrb[185].mxu0 }
 0x569   : > { %v8762_v37 = vadd.f32 %v8761_v16, %v23447_v41  ;;  %v8589_v27 = vpop.f32.mrb[179].mxu1  ;;  %v17205_v15 = vpop.f32.mrb[186].mxu0  ;;  %10963 = vmatpush1.bf16.msra.mxu0 %v20115_v53  ;;  %v20145_v53 = vld [vmem:[%s25552_s2 + $0x5c0] sm:$0xff]  }
 0x56a   : > { %v23517_v35 = vadd.f32 %v8770_v48, %v22920_v43  ;;  %v8773_v24 = vadd.f32 %v17205_v15, %v8579_v2  ;;  %v8764_v28 = vpop.f32.mrb[187].mxu0  ;;  %10964 = vmatprep.subr.bf16.mxu0 %v25774_v56  ;;  %v20093_v27 = vld [vmem:[%s22820_s12 + $0x3a8] ss:$36 sps:$4 sm:$0xff]  }
 0x56b   : > { %v23521_v21 = vadd.f32 %v8762_v37, %v22898_v39  ;;  %v8765_v41 = vadd.f32 %v8764_v28, %v23452_v3  ;;  %13395 = vmatmul.mubr.bf16.gmra.mrb[72].mxu1 %v20078_v49  ;;  %v20137_v39 = vld [vmem:[%s25552_s2 + $0x5b8] sm:$0xff]  }
 0x56c   : > { %25878 = vst [vmem:[#allocation12_spill] sm:$0xff] %v23517_v35  ;;  %v23525_v17 = vadd.f32 %v8773_v24, %v22925_v50  ;;  %10816 = vmatmul.mubr.bf16.gmra.mrb[212].mxu0 %v20083_v34  ;;  %13402 = vmatprep.mubr.bf16.mxu1 %v20087_v10  ;;  %v20085_v50 = vld [vmem:[%s22820_s12 + $0x360] ss:$36 sps:$4 sm:$0xff]   ;;  %v25885_v34 = vld [vmem:[#allocation120_spill] sm:$0xff]  ;;  %v20180_v35 = vld [vmem:[%s22680_s19 + $0x488] ss:$36 sps:$4 sm:$0xff]  }
 0x56d   : > { %25879 = vst [vmem:[#allocation33_spill] sm:$0xff] %v23521_v21  ;;  %v23528_v43 = vadd.f32 %v8765_v41, %v22904_v23  ;;  %10823 = vmatprep.mubr.bf16.mxu0 %v20088_v31  ;;  %10965 = vmatpush1.bf16.msra.mxu0 %v20128_v60  ;;  %v20098_v31 = vld [vmem:[%s22680_s19 + $0x170] ss:$36 sps:$4 sm:$0xff]  }
 0x56e   : > { %25880 = vst [vmem:[#allocation13_spill] sm:$0xff] %v23525_v17  ;;  %v8592_v2 = vpop.f32.mrb[180].mxu1  ;;  %10966 = vmatprep.subr.bf16.mxu0 %v25774_v56  ;;  %v20102_v60 = vld [vmem:[%s22820_s12 + $0x3f4] ss:$36 sps:$4 sm:$0xff]   ;;  %v20176_v17 = vld [vmem:[%s22820_s12 + $0x128] ss:$36 sps:$4 sm:$0xff]  }
 0x56f   : > { %25881 = vst [vmem:[#allocation35_spill] sm:$0xff] %v23528_v43  ;;  %v8594_v3 = vpop.f32.mrb[181].mxu1  ;;  %v17208_v13 = vpop.f32.mrb[188].mxu0 }
 0x570   : > { %v8786_v58 = vadd.f32 %v17208_v13, %v8592_v2  ;;  %v8595_v6 = vpop.f32.mrb[182].mxu1  ;;  %v8777_v33 = vpop.f32.mrb[189].mxu0  ;;  %v20166_v2 = vld [vmem:[%s25552_s2 + $0x5d0] sm:$0xff]   ;;  %v25887_v13 = vld [vmem:[#allocation121_spill] sm:$0xff] }
 0x571   : > { %v8778_v23 = vadd.f32 %v8777_v33, %v8584_v19  ;;  %v8597_v29 = vpop.f32.mrb[183].mxu1  ;;  %v17209_v51 = vpop.f32.mrb[190].mxu0  ;;  %10967 = vmatpush1.bf16.msra.mxu0 %v20137_v39  ;;  %v20104_v39 = vld [vmem:[%s22680_s19 + $0x1bc] ss:$36 sps:$4 sm:$0xff]  }
 0x572   : > { %v23542_v30 = vadd.f32 %v8786_v58, %v22978_v54  ;;  %v8789_v20 = vadd.f32 %v17209_v51, %v8595_v6  ;;  %v8780_v49 = vpop.f32.mrb[191].mxu0  ;;  %10968 = vmatprep.subr.bf16.mxu0 %v25774_v56  ;;  %v25889_v6 = vld [vmem:[#allocation122_spill] sm:$0xff]  ;;  %v20100_v51 = vld [vmem:[%s22820_s12 + $0x3f0] ss:$36 sps:$4 sm:$0xff]  }
 0x573   : > { %v23546_v48 = vadd.f32 %v8778_v23, %v22948_v61  ;;  %v8781_v19 = vadd.f32 %v8780_v49, %v8587_v26  ;;  %13403 = vmatmul.mubr.bf16.gmra.mrb[76].mxu1 %v20085_v50  ;;  %v20153_v61 = vld [vmem:[%s25552_s2 + $0x5c8] sm:$0xff]  }
 0x574   : > { %25882 = vst [vmem:[#allocation60_spill] sm:$0xff] %v23542_v30  ;;  %v23549_v16 = vadd.f32 %v8789_v20, %v22983_v12  ;;  %10824 = vmatmul.mubr.bf16.gmra.mrb[216].mxu0 %v20091_v9  ;;  %13410 = vmatprep.mubr.bf16.mxu1 %v20095_v25  ;;  %v20175_v9 = vld [vmem:[%s25552_s2 + $0x5d8] sm:$0xff]   ;;  %v20171_v30 = vld [vmem:[%s22680_s19 + $0x440] ss:$36 sps:$4 sm:$0xff]  }
 0x575   : > { %25883 = vst [vmem:[#allocation62_spill] sm:$0xff] %v23546_v48  ;;  %v23552_v54 = vadd.f32 %v8781_v19, %v25885_v34  ;;  %10831 = vmatprep.mubr.bf16.mxu0 %v20096_v8  ;;  %10969 = vmatpush1.bf16.msra.mxu0 %v20145_v53  ;;  %v20106_v20 = vld [vmem:[%s22680_s19 + $0x1b8] ss:$36 sps:$4 sm:$0xff]   ;;  %v25891_v34 = vld [vmem:[#allocation28_spill] sm:$0xff] }
 0x576   : > { %25884 = vst [vmem:[#allocation14_spill] sm:$0xff] %v23549_v16  ;;  %v8600_v10 = vpop.f32.mrb[184].mxu1  ;;  %10970 = vmatprep.subr.bf16.mxu0 %v25774_v56  ;;  %v20110_v19 = vld [vmem:[%s22820_s12 + $0x43c] ss:$36 sps:$4 sm:$0xff]  }
 0x577   : > { %25886 = vst [vmem:[#allocation38_spill] sm:$0xff] %v23552_v54  ;;  %v8602_v26 = vpop.f32.mrb[185].mxu1  ;;  %v17212_v37 = vpop.f32.mrb[192].mxu0  ;;  %v20174_v16 = vld [vmem:[%s22820_s12 + $0xe0] ss:$36 sps:$4 sm:$0xff]  }
 0x578   : > { %v8603_v12 = vpop.f32.mrb[186].mxu1  ;;  %v8793_v15 = vpop.f32.mrb[193].mxu0 }
 0x579   : > { %v8794_v24 = vadd.f32 %v8793_v15, %v8600_v10  ;;  %v8605_v28 = vpop.f32.mrb[187].mxu1  ;;  %v17213_v41 = vpop.f32.mrb[194].mxu0  ;;  %10971 = vmatpush1.bf16.msra.mxu0 %v20153_v61 }
 0x57a   : > { %v8796_v3 = vpop.f32.mrb[195].mxu0  ;;  %10972 = vmatprep.subr.bf16.mxu0 %v25774_v56 }
 0x57b   : > { %v23567_v50 = vadd.f32 %v8794_v24, %v25887_v13  ;;  %v8797_v58 = vadd.f32 %v8796_v3, %v8603_v12  ;;  %13411 = vmatmul.mubr.bf16.gmra.mrb[0].mxu1 %v20093_v27  ;;  %v20111_v12 = vld [vmem:[%s22680_s19 + $0x204] ss:$36 sps:$4 sm:$0xff]  }
 0x57c   : > { %10832 = vmatmul.mubr.bf16.gmra.mrb[220].mxu0 %v20098_v31  ;;  %13418 = vmatprep.mubr.bf16.mxu1 %v20102_v60  ;;  %v25893_v31 = vld [vmem:[#allocation51_spill] sm:$0xff]  ;;  %v20113_v13 = vld [vmem:[%s22680_s19 + $0x200] ss:$36 sps:$4 sm:$0xff]  }
 0x57d   : > { %25888 = vst [vmem:[#allocation15_spill] sm:$0xff] %v23567_v50  ;;  %v23570_v33 = vadd.f32 %v8797_v58, %v25889_v6  ;;  %10839 = vmatprep.mubr.bf16.mxu0 %v20104_v39  ;;  %10973 = vmatpush1.bf16.msra.mxu0 %v20166_v2  ;;  %v20191_v24 = vld [vmem:[%s25552_s2 + $0x5e8] sm:$0xff]   ;;  %v20108_v2 = vld [vmem:[%s22820_s12 + $0x438] ss:$36 sps:$4 sm:$0xff]   ;;  %v25895_v6 = vld [vmem:[#allocation108_spill] sm:$0xff] }
 0x57e   : > { %v8608_v25 = vpop.f32.mrb[188].mxu1  ;;  %10974 = vmatprep.subr.bf16.mxu0 %v25774_v56  ;;  %v20118_v58 = vld [vmem:[%s22820_s12 + $0x484] ss:$36 sps:$4 sm:$0xff]   ;;  %v20163_v50 = vld [vmem:[%s22680_s19 + $0x3f8] ss:$36 sps:$4 sm:$0xff]  }
 0x57f   : > { %25890 = vst [vmem:[#allocation40_spill] sm:$0xff] %v23570_v33  ;;  %v8802_v23 = vadd.f32 %v17212_v37, %v8608_v25  ;;  %v8610_v29 = vpop.f32.mrb[189].mxu1  ;;  %v17216_v8 = vpop.f32.mrb[196].mxu0  ;;  %v20183_v37 = vld [vmem:[%s25552_s2 + $0x5e0] sm:$0xff]  }
 0x580   : > { %v8611_v53 = vpop.f32.mrb[190].mxu1  ;;  %v8809_v49 = vpop.f32.mrb[197].mxu0  ;;  %v20119_v29 = vld [vmem:[%s22680_s19 + $0x24c] ss:$36 sps:$4 sm:$0xff]  }
 0x581   : > { %v23580_v61 = vadd.f32 %v8802_v23, %v25891_v34  ;;  %v8805_v10 = vadd.f32 %v17213_v41, %v8611_v53  ;;  %v8613_v26 = vpop.f32.mrb[191].mxu1  ;;  %v17217_v27 = vpop.f32.mrb[198].mxu0  ;;  %10975 = vmatpush1.bf16.msra.mxu0 %v20175_v9  ;;  %v25897_v53 = vld [vmem:[#allocation110_spill] sm:$0xff] }
 0x582   : > { %v8812_v15 = vpop.f32.mrb[199].mxu0  ;;  %10976 = vmatprep.subr.bf16.mxu0 %v25774_v56  ;;  %v20116_v26 = vld [vmem:[%s22820_s12 + $0x480] ss:$36 sps:$4 sm:$0xff]  }
 0x583   : > { %25892 = vst [vmem:[#allocation64_spill] sm:$0xff] %v23580_v61  ;;  %v23588_v60 = vadd.f32 %v8805_v10, %v25893_v31  ;;  %13419 = vmatmul.mubr.bf16.gmra.mrb[4].mxu1 %v20100_v51  ;;  %v20205_v51 = vld [vmem:[%s25552_s2 + $0x5f0] sm:$0xff]   ;;  %v25899_v31 = vld [vmem:[#allocation29_spill] sm:$0xff] }
 0x584   : > { %10840 = vmatmul.mubr.bf16.gmra.mrb[224].mxu0 %v20106_v20  ;;  %13426 = vmatprep.mubr.bf16.mxu1 %v20110_v19  ;;  %v20167_v61 = vld [vmem:[%s22820_s12 + $0x98] ss:$36 sps:$4 sm:$0xff]  }
 0x585   : > { %25894 = vst [vmem:[#allocation66_spill] sm:$0xff] %v23588_v60  ;;  %10847 = vmatprep.mubr.bf16.mxu0 %v20111_v12  ;;  %10977 = vmatpush1.bf16.msra.mxu0 %v20183_v37  ;;  %v20121_v37 = vld [vmem:[%s22680_s19 + $0x248] ss:$36 sps:$4 sm:$0xff]  }
 0x586   : > { %v8616_v28 = vpop.f32.mrb[192].mxu1  ;;  %10978 = vmatprep.subr.bf16.mxu0 %v25774_v56 }
 0x587   : > { %v8810_v41 = vadd.f32 %v8809_v49, %v8616_v28  ;;  %v8618_v39 = vpop.f32.mrb[193].mxu1  ;;  %v20207_v49 = vld [vmem:[%s25552_s2 + $0x5f8] sm:$0xff]  }
 0x588   : > { %v8619_v3 = vpop.f32.mrb[194].mxu1  ;;  %v20126_v39 = vld [vmem:[%s22680_s19 + $0x294] ss:$36 sps:$4 sm:$0xff]  }
 0x589   : > { %v23598_v9 = vadd.f32 %v8810_v41, %v25895_v6  ;;  %v8813_v25 = vadd.f32 %v8812_v15, %v8619_v3  ;;  %v8621_v23 = vpop.f32.mrb[195].mxu1  ;;  %10979 = vmatpush1.bf16.msra.mxu0 %v20191_v24  ;;  %v20125_v15 = vld [vmem:[%s22820_s12 + $0x4cc] ss:$36 sps:$4 sm:$0xff]  }
 0x58a   : > { %10980 = vmatprep.subr.bf16.mxu0 %v25774_v56  ;;  %v20129_v6 = vld [vmem:[%s22680_s19 + $0x290] ss:$36 sps:$4 sm:$0xff]  }
 0x58b   : > { %25896 = vst [vmem:[#allocation16_spill] sm:$0xff] %v23598_v9  ;;  %v23606_v20 = vadd.f32 %v8813_v25, %v25897_v53  ;;  %13427 = vmatmul.mubr.bf16.gmra.mrb[8].mxu1 %v20108_v2  ;;  %v25901_v2 = vld [vmem:[#allocation53_spill] sm:$0xff]  ;;  %v20159_v9 = vld [vmem:[%s22680_s19 + $0x3b0] ss:$36 sps:$4 sm:$0xff]  }
 0x58c   : > { %10848 = vmatmul.mubr.bf16.gmra.mrb[228].mxu0 %v20113_v13  ;;  %13434 = vmatprep.mubr.bf16.mxu1 %v20118_v58  ;;  %v20133_v25 = vld [vmem:[%s22820_s12 + $0x514] ss:$36 sps:$4 sm:$0xff]  }
 0x58d   : > { %25898 = vst [vmem:[#allocation37_spill] sm:$0xff] %v23606_v20  ;;  %10855 = vmatprep.mubr.bf16.mxu0 %v20119_v29  ;;  %10981 = vmatpush1.bf16.msra.mxu0 %v20205_v51  ;;  %v20134_v29 = vld [vmem:[%s22680_s19 + $0x2dc] ss:$36 sps:$4 sm:$0xff]  }
 0x58e   : > { %v8624_v19 = vpop.f32.mrb[196].mxu1  ;;  %10982 = vmatprep.subr.bf16.mxu0 %v25774_v56 }
 0x58f   : > { %v8818_v34 = vadd.f32 %v17216_v8, %v8624_v19  ;;  %v8626_v10 = vpop.f32.mrb[197].mxu1 }
 0x590   : > { %v8627_v12 = vpop.f32.mrb[198].mxu1  ;;  %v20140_v10 = vld [vmem:[%s22820_s12 + $0x55c] ss:$36 sps:$4 sm:$0xff]  }
 0x591   : > { %v23616_v24 = vadd.f32 %v8818_v34, %v25899_v31  ;;  %v8821_v28 = vadd.f32 %v17217_v27, %v8627_v12  ;;  %v8629_v41 = vpop.f32.mrb[199].mxu1  ;;  %10983 = vmatpush1.bf16.msra.mxu0 %v20207_v49  ;;  %v20123_v27 = vld [vmem:[%s22820_s12 + $0x4c8] ss:$36 sps:$4 sm:$0xff]   ;;  %v20131_v49 = vld [vmem:[%s22820_s12 + $0x510] ss:$36 sps:$4 sm:$0xff]  }
 0x592   : > { %11145 = vmatprep.subr.bf16.mxu0 %v25774_v56  ;;  %v20136_v34 = vld [vmem:[%s22680_s19 + $0x2d8] ss:$36 sps:$4 sm:$0xff]   ;;  %v20142_v12 = vld [vmem:[%s22680_s19 + $0x324] ss:$36 sps:$4 sm:$0xff]  }
 0x593   : > { %25900 = vst [vmem:[#allocation17_spill] sm:$0xff] %v23616_v24  ;;  %v23621_v8 = vadd.f32 %v8821_v28, %v25901_v2  ;;  %13435 = vmatmul.mubr.bf16.gmra.mrb[12].mxu1 %v20116_v26  ;;  %v20138_v31 = vld [vmem:[%s22820_s12 + $0x558] ss:$36 sps:$4 sm:$0xff]   ;;  %v20144_v41 = vld [vmem:[%s22680_s19 + $0x320] ss:$36 sps:$4 sm:$0xff]  }
 0x594   : > { %10856 = vmatmul.mubr.bf16.gmra.mrb[232].mxu0 %v20121_v37  ;;  %13442 = vmatprep.mubr.bf16.mxu1 %v20125_v15  ;;  %v20158_v24 = vld [vmem:[%s22820_s12 + $0x50] ss:$36 sps:$4 sm:$0xff]  }
 0x595   : > { %25902 = vst [vmem:[#allocation39_spill] sm:$0xff] %v23621_v8  ;;  %10863 = vmatprep.mubr.bf16.mxu0 %v20126_v39  ;;  %v20148_v39 = vld [vmem:[%s22820_s12 + $0xc] ss:$36 sps:$4 sm:$0xff]  }
 0x596   : > { %v23623_v3 = vpop.f32.mrb[200].mxu1 }
 0x597   : > { %v23625_v13 = vpop.f32.mrb[201].mxu1 }
 0x598   : > { %v23628_v58 = vpop.f32.mrb[202].mxu1 }
 0x599   : > { %v23632_v23 = vpop.f32.mrb[203].mxu1 }
 0x59b   : > { %13443 = vmatmul.mubr.bf16.gmra.mrb[16].mxu1 %v20123_v27  ;;  %v20149_v27 = vld [vmem:[%s22680_s19 + $0x36c] ss:$36 sps:$4 sm:$0xff]  }
 0x59c   : > { %10864 = vmatmul.mubr.bf16.gmra.mrb[236].mxu0 %v20129_v6  ;;  %13450 = vmatprep.mubr.bf16.mxu1 %v20133_v25 }
 0x59d   : > { %10871 = vmatprep.mubr.bf16.mxu0 %v20134_v29  ;;  %v20146_v29 = vld [vmem:[%s22820_s12 + $0x8] ss:$36 sps:$4 sm:$0xff]  }
 0x59e   : > { %v23635_v51 = vpop.f32.mrb[204].mxu1 }
 0x59f   : > { %v23637_v53 = vpop.f32.mrb[205].mxu1 }
 0x5a0   : > { %v23640_v19 = vpop.f32.mrb[206].mxu1 }
 0x5a1   : > { %v23644_v26 = vpop.f32.mrb[207].mxu1 }
 0x5a3   : > { %13451 = vmatmul.mubr.bf16.gmra.mrb[20].mxu1 %v20131_v49 }
 0x5a4   : > { %10872 = vmatmul.mubr.bf16.gmra.mrb[240].mxu0 %v20136_v34  ;;  %13458 = vmatprep.mubr.bf16.mxu1 %v20140_v10  ;;  %v20151_v34 = vld [vmem:[%s22680_s19 + $0x368] ss:$36 sps:$4 sm:$0xff]   ;;  %v20152_v10 = vld [vmem:[%s25552_s2 + $0x7c0] sm:$0xff]  }
 0x5a5   : > { %10879 = vmatprep.mubr.bf16.mxu0 %v20142_v12 }
 0x5a6   : > { %v23647_v37 = vpop.f32.mrb[208].mxu1 }
 0x5a7   : > { %v23649_v15 = vpop.f32.mrb[209].mxu1 }
 0x5a8   : > { %v23652_v28 = vpop.f32.mrb[210].mxu1 }
 0x5a9   : > { %v23656_v2 = vpop.f32.mrb[211].mxu1 }
 0x5ab   : > { %13459 = vmatmul.mubr.bf16.gmra.mrb[24].mxu1 %v20138_v31  ;;  %v20154_v31 = vld [vmem:[%s22820_s12 + $0x54] ss:$36 sps:$4 sm:$0xff]  }
 0x5ac   : > { %10880 = vmatmul.mubr.bf16.gmra.mrb[244].mxu0 %v20144_v41  ;;  %13499 = vmatprep.mubr.bf16.mxu1 %v20148_v39  ;;  %v20156_v41 = vld [vmem:[%s22680_s19 + $0x3b4] ss:$36 sps:$4 sm:$0xff]   ;;  %v20160_v39 = vld [vmem:[%s25552_s2 + $0x7c8] sm:$0xff]  }
 0x5ad   : > { %10887 = vmatprep.mubr.bf16.mxu0 %v20149_v27 }
 0x5ae   : > { %v23659_v6 = vpop.f32.mrb[212].mxu1 }
 0x5af   : > { %v23661_v25 = vpop.f32.mrb[213].mxu1 }
 0x5b0   : > { %v23664_v49 = vpop.f32.mrb[214].mxu1 }
 0x5b1   : > { %v23670_v12 = vpop.f32.mrb[215].mxu1 }
 0x5b3   : > { %13500 = vmatmul.mubr.bf16.vlgmr.msra.gmra.mrb[240].mxu1 %v20146_v29  ;;  %v20161_v29 = vld [vmem:[%s22820_s12 + $0x9c] ss:$36 sps:$4 sm:$0xff]  }
 0x5b4   : > { %10888 = vmatmul.mubr.bf16.gmra.mrb[248].mxu0 %v20151_v34  ;;  %13661 = vmatpush1.bf16.msra.mxu1 %v20152_v10  ;;  %v20165_v10 = vld [vmem:[%s22680_s19 + $0x3fc] ss:$36 sps:$4 sm:$0xff]  }
 0x5b5   : > { %13507 = vmatprep.mubr.bf16.mxu1 %v20154_v31  ;;  %10895 = vmatprep.mubr.bf16.mxu0 %v20156_v41  ;;  %v20168_v31 = vld [vmem:[%s25552_s2 + $0x7d0] sm:$0xff]   ;;  %v20179_v41 = vld [vmem:[%s25552_s2 + $0x7d8] sm:$0xff]  }
 0x5b6   : > { %v23677_v27 = vpop.f32.mrb[216].mxu1  ;;  %13662 = vmatprep.subr.bf16.mxu1 %v25774_v56 }
 0x5b7   : > { %v23680_v8 = vpop.f32.mrb[217].mxu1 }
 0x5b8   : > { %v23683_v20 = vpop.f32.mrb[218].mxu1  ;;  %13663 = vmatpush1.bf16.msra.mxu1 %v20160_v39 }
 0x5b9   : > { %v23687_v34 = vpop.f32.mrb[219].mxu1  ;;  %13664 = vmatprep.subr.bf16.mxu1 %v25774_v56 }
 0x5bb   : > { %13508 = vmatmul.mubr.bf16.gmra.mrb[244].mxu1 %v20158_v24  ;;  %v20169_v24 = vld [vmem:[%s22820_s12 + $0xe4] ss:$36 sps:$4 sm:$0xff]  }
 0x5bc   : > { %10896 = vmatmul.mubr.bf16.gmra.mrb[252].mxu0 %v20159_v9  ;;  %13515 = vmatprep.mubr.bf16.mxu1 %v20161_v29  ;;  %v20173_v29 = vld [vmem:[%s22680_s19 + $0x444] ss:$36 sps:$4 sm:$0xff]  }
 0x5bd   : > { %10903 = vmatprep.mubr.bf16.mxu0 %v20165_v10  ;;  %13665 = vmatpush1.bf16.msra.mxu1 %v20168_v31  ;;  %v20190_v10 = vld [vmem:[%s25552_s2 + $0x7e0] sm:$0xff]   ;;  %v20198_v31 = vld [vmem:[%s25552_s2 + $0x7e8] sm:$0xff]  }
 0x5be   : > { %v23697_v39 = vpop.f32.mrb[220].mxu1  ;;  %13666 = vmatprep.subr.bf16.mxu1 %v25774_v56 }
 0x5bf   : > { %v23700_v60 = vpop.f32.mrb[221].mxu1 }
 0x5c0   : > { %v23703_v33 = vpop.f32.mrb[222].mxu1 }
 0x5c1   : > { %v23707_v9 = vpop.f32.mrb[223].mxu1  ;;  %13667 = vmatpush1.bf16.msra.mxu1 %v20179_v41 }
 0x5c2   : > { %13668 = vmatprep.subr.bf16.mxu1 %v25774_v56 }
 0x5c3   : > { %13516 = vmatmul.mubr.bf16.gmra.mrb[248].mxu1 %v20167_v61  ;;  %v20178_v61 = vld [vmem:[%s22820_s12 + $0x12c] ss:$36 sps:$4 sm:$0xff]  }
 0x5c4   : > { %10904 = vmatmul.mubr.bf16.gmra.mrb[0].mxu0 %v20163_v50  ;;  %13523 = vmatprep.mubr.bf16.mxu1 %v20169_v24  ;;  %v20182_v24 = vld [vmem:[%s22680_s19 + $0x48c] ss:$36 sps:$4 sm:$0xff]  }
 0x5c5   : > { %10911 = vmatprep.mubr.bf16.mxu0 %v20173_v29  ;;  %13669 = vmatpush1.bf16.msra.mxu1 %v20190_v10  ;;  %v20206_v29 = vld [vmem:[%s25552_s2 + $0x7f0] sm:$0xff]   ;;  %v20217_v10 = vld [vmem:[%s25552_s2 + $0x7f8] sm:$0xff]  }
 0x5c6   : > { %v23717_v54 = vpop.f32.mrb[224].mxu1  ;;  %13670 = vmatprep.subr.bf16.mxu1 %v25774_v56 }
 0x5c7   : > { %v23720_v41 = vpop.f32.mrb[225].mxu1 }
 0x5c8   : > { %v23723_v48 = vpop.f32.mrb[226].mxu1 }
 0x5c9   : > { %v23727_v50 = vpop.f32.mrb[227].mxu1  ;;  %13671 = vmatpush1.bf16.msra.mxu1 %v20198_v31 }
 0x5ca   : > { %13672 = vmatprep.subr.bf16.mxu1 %v25774_v56 }
 0x5cb   : > { %13524 = vmatmul.mubr.bf16.gmra.mrb[252].mxu1 %v20174_v16  ;;  %v20186_v16 = vld [vmem:[%s22820_s12 + $0x174] ss:$36 sps:$4 sm:$0xff]  }
 0x5cc   : > { %10912 = vmatmul.mubr.bf16.gmra.mrb[4].mxu0 %v20171_v30  ;;  %13531 = vmatprep.mubr.bf16.mxu1 %v20178_v61  ;;  %v20189_v61 = vld [vmem:[%s22680_s19 + $0x4d4] ss:$36 sps:$4 sm:$0xff]  }
 0x5cd   : > { %10919 = vmatprep.mubr.bf16.mxu0 %v20182_v24  ;;  %13673 = vmatpush1.bf16.msra.mxu1 %v20206_v29  ;;  %v20228_v24 = vld [vmem:[%s25552_s2 + $0x800] sm:$0xff]   ;;  %v20236_v29 = vld [vmem:[%s25552_s2 + $0x808] sm:$0xff]  }
 0x5ce   : > { %v23737_v43 = vpop.f32.mrb[228].mxu1  ;;  %13674 = vmatprep.subr.bf16.mxu1 %v25774_v56 }
 0x5cf   : > { %v23740_v31 = vpop.f32.mrb[229].mxu1 }
 0x5d0   : > { %v23743_v21 = vpop.f32.mrb[230].mxu1 }
 0x5d1   : > { %v23747_v30 = vpop.f32.mrb[231].mxu1  ;;  %13675 = vmatpush1.bf16.msra.mxu1 %v20217_v10 }
 0x5d2   : > { %13676 = vmatprep.subr.bf16.mxu1 %v25774_v56 }
 0x5d3   : > { %13532 = vmatmul.mubr.bf16.gmra.mrb[44].mxu1 %v20176_v17  ;;  %v20194_v17 = vld [vmem:[%s22820_s12 + $0x1bc] ss:$36 sps:$4 sm:$0xff]  }
 0x5d4   : > { %10920 = vmatmul.mubr.bf16.gmra.mrb[8].mxu0 %v20180_v35  ;;  %13539 = vmatprep.mubr.bf16.mxu1 %v20186_v16  ;;  %v20197_v16 = vld [vmem:[%s22680_s19 + $0x51c] ss:$36 sps:$4 sm:$0xff]  }
 0x5d5   : > { %10927 = vmatprep.mubr.bf16.mxu0 %v20189_v61  ;;  %13677 = vmatpush1.bf16.msra.mxu1 %v20228_v24  ;;  %v20244_v61 = vld [vmem:[%s25552_s2 + $0x810] sm:$0xff]   ;;  %v20255_v24 = vld [vmem:[%s25552_s2 + $0x818] sm:$0xff]  }
 0x5d6   : > { %v23757_v52 = vpop.f32.mrb[232].mxu1  ;;  %13678 = vmatprep.subr.bf16.mxu1 %v25774_v56 }
 0x5d7   : > { %v23760_v10 = vpop.f32.mrb[233].mxu1 }
 0x5d8   : > { %v23763_v63 = vpop.f32.mrb[234].mxu1 }
 0x5d9   : > { %v23767_v35 = vpop.f32.mrb[235].mxu1  ;;  %13679 = vmatpush1.bf16.msra.mxu1 %v20236_v29 }
 0x5da   : > { %13680 = vmatprep.subr.bf16.mxu1 %v25774_v56 }
 0x5db   : > { %13540 = vmatmul.mubr.bf16.gmra.mrb[48].mxu1 %v20184_v59  ;;  %v20195_v59 = vld [vmem:[%s22680_s19 + $0x518] ss:$36 sps:$4 sm:$0xff]  }
 0x5dc   : > { %10928 = vmatmul.mubr.bf16.gmra.mrb[12].mxu0 %v20187_v45  ;;  %13547 = vmatprep.mubr.bf16.mxu1 %v20194_v17  ;;  %v20201_v45 = vld [vmem:[%s22820_s12 + $0x204] ss:$36 sps:$4 sm:$0xff]  }
 0x5dd   : > { %10935 = vmatprep.mubr.bf16.mxu0 %v20197_v16  ;;  %13681 = vmatpush1.bf16.msra.mxu1 %v20244_v61  ;;  %v20204_v16 = vld [vmem:[%s22680_s19 + $0x564] ss:$36 sps:$4 sm:$0xff]  }
 0x5de   : > { %v23777_v55 = vpop.f32.mrb[236].mxu1  ;;  %13682 = vmatprep.subr.bf16.mxu1 %v25774_v56  ;;  %v20266_v61 = vld [vmem:[%s25552_s2 + $0x820] sm:$0xff]  }
 0x5df   : > { %v23780_v29 = vpop.f32.mrb[237].mxu1 }
 0x5e0   : > { %v23783_v46 = vpop.f32.mrb[238].mxu1 }
 0x5e1   : > { %v23787_v17 = vpop.f32.mrb[239].mxu1  ;;  %13683 = vmatpush1.bf16.msra.mxu1 %v20255_v24  ;;  %v20199_v24 = vld [vmem:[%s22820_s12 + $0x200] ss:$36 sps:$4 sm:$0xff]  }
 0x5e2   : > { %13684 = vmatprep.subr.bf16.mxu1 %v25774_v56 }
 0x5e3   : > { %13548 = vmatmul.mubr.bf16.gmra.mrb[52].mxu1 %v20192_v18  ;;  %v20282_v18 = vld [vmem:[%s25552_s2 + $0x830] sm:$0xff]  }
 0x5e4   : > { %10936 = vmatmul.mubr.bf16.gmra.mrb[16].mxu0 %v20195_v59  ;;  %13555 = vmatprep.mubr.bf16.mxu1 %v20201_v45  ;;  %v20293_v59 = vld [vmem:[%s25552_s2 + $0x838] sm:$0xff]   ;;  %v20211_v45 = vld [vmem:[%s22680_s19 + $0x10] ss:$36 sps:$4 sm:$0xff]  }
 0x5e5   : > { %10943 = vmatprep.mubr.bf16.mxu0 %v20204_v16  ;;  %13685 = vmatpush1.bf16.msra.mxu1 %v20266_v61  ;;  %v20216_v16 = vld [vmem:[%s22820_s12 + $0x294] ss:$36 sps:$4 sm:$0xff]   ;;  %v20218_v61 = vld [vmem:[%s22680_s19 + $0x5c] ss:$36 sps:$4 sm:$0xff]  }
 0x5e6   : > { %13686 = vmatprep.subr.bf16.mxu1 %v25774_v56 }
 0x5e9   : > { %13687 = vmatpush1.bf16.msra.mxu1 %v20274_v4  ;;  %v20208_v4 = vld [vmem:[%s22820_s12 + $0x248] ss:$36 sps:$4 sm:$0xff]  }
 0x5ea   : > { %13688 = vmatprep.subr.bf16.mxu1 %v25774_v56 }
 0x5eb   : > { %13556 = vmatmul.mubr.bf16.gmra.mrb[56].mxu1 %v20199_v24  ;;  %v20220_v24 = vld [vmem:[%s22680_s19 + $0x58] ss:$36 sps:$4 sm:$0xff]  }
 0x5ec   : > { %10944 = vmatmul.mubr.bf16.gmra.mrb[20].mxu0 %v20202_v40  ;;  %13563 = vmatprep.mubr.bf16.mxu1 %v20210_v57  ;;  %v20221_v57 = vld [vmem:[%s25552_s2 + $0x600] sm:$0xff]   ;;  %v20214_v40 = vld [vmem:[%s22820_s12 + $0x290] ss:$36 sps:$4 sm:$0xff]  }
 0x5ed   : > { %10984 = vmatprep.mubr.bf16.mxu0 %v20213_v1  ;;  %13689 = vmatpush1.bf16.msra.mxu1 %v20282_v18  ;;  %v20229_v1 = vld [vmem:[%s25552_s2 + $0x608] sm:$0xff]   ;;  %v20224_v18 = vld [vmem:[%s22820_s12 + $0x2dc] ss:$36 sps:$4 sm:$0xff]  }
 0x5ee   : > { %13690 = vmatprep.subr.bf16.mxu1 %v25774_v56 }
 0x5f1   : > { %13691 = vmatpush1.bf16.msra.mxu1 %v20293_v59  ;;  %v20225_v59 = vld [vmem:[%s22680_s19 + $0xa4] ss:$36 sps:$4 sm:$0xff]  }
 0x5f2   : > { %13853 = vmatprep.subr.bf16.mxu1 %v25774_v56 }
 0x5f3   : > { %13564 = vmatmul.mubr.bf16.gmra.mrb[60].mxu1 %v20208_v4  ;;  %v20242_v4 = vld [vmem:[%s25552_s2 + $0x610] sm:$0xff]  }
 0x5f4   : > { %10985 = vmatmul.mubr.bf16.vlgmr.msra.gmra.mrb[200].mxu0 %v20211_v45  ;;  %13571 = vmatprep.mubr.bf16.mxu1 %v20216_v16  ;;  %v20251_v45 = vld [vmem:[%s25552_s2 + $0x618] sm:$0xff]  }
 0x5f5   : > { %10992 = vmatprep.mubr.bf16.mxu0 %v20218_v61  ;;  %11146 = vmatpush1.bf16.msra.mxu0 %v20221_v57  ;;  %v20222_v16 = vld [vmem:[%s22820_s12 + $0x2d8] ss:$36 sps:$4 sm:$0xff]   ;;  %v20227_v61 = vld [vmem:[%s22680_s19 + $0xa0] ss:$36 sps:$4 sm:$0xff]  }
 0x5f6   : > { %11147 = vmatprep.subr.bf16.mxu0 %v25774_v56  ;;  %v20232_v57 = vld [vmem:[%s22820_s12 + $0x324] ss:$36 sps:$4 sm:$0xff]  }
 0x5f9   : > { %11148 = vmatpush1.bf16.msra.mxu0 %v20229_v1  ;;  %v20233_v1 = vld [vmem:[%s22680_s19 + $0xec] ss:$36 sps:$4 sm:$0xff]  }
 0x5fa   : > { %11149 = vmatprep.subr.bf16.mxu0 %v25774_v56 }
 0x5fb   : > { %13572 = vmatmul.mubr.bf16.gmra.mrb[64].mxu1 %v20214_v40  ;;  %v20259_v40 = vld [vmem:[%s25552_s2 + $0x620] sm:$0xff]  }
 0x5fc   : > { %10993 = vmatmul.mubr.bf16.gmra.mrb[204].mxu0 %v20220_v24  ;;  %13579 = vmatprep.mubr.bf16.mxu1 %v20224_v18  ;;  %v20267_v24 = vld [vmem:[%s25552_s2 + $0x628] sm:$0xff]   ;;  %v20230_v18 = vld [vmem:[%s22820_s12 + $0x320] ss:$36 sps:$4 sm:$0xff]  }
 0x5fd   : > { %11000 = vmatprep.mubr.bf16.mxu0 %v20225_v59  ;;  %11150 = vmatpush1.bf16.msra.mxu0 %v20242_v4  ;;  %v20235_v59 = vld [vmem:[%s22680_s19 + $0xe8] ss:$36 sps:$4 sm:$0xff]  }
 0x5fe   : > { %11151 = vmatprep.subr.bf16.mxu0 %v25774_v56  ;;  %v20239_v4 = vld [vmem:[%s22820_s12 + $0x36c] ss:$36 sps:$4 sm:$0xff]  }
 0x601   : > { %11152 = vmatpush1.bf16.msra.mxu0 %v20251_v45  ;;  %v20240_v45 = vld [vmem:[%s22680_s19 + $0x134] ss:$36 sps:$4 sm:$0xff]  }
 0x602   : > { %11153 = vmatprep.subr.bf16.mxu0 %v25774_v56 }
 0x603   : > { %13580 = vmatmul.mubr.bf16.gmra.mrb[68].mxu1 %v20222_v16  ;;  %v20280_v16 = vld [vmem:[%s25552_s2 + $0x630] sm:$0xff]  }
 0x604   : > { %11001 = vmatmul.mubr.bf16.gmra.mrb[208].mxu0 %v20227_v61  ;;  %13587 = vmatprep.mubr.bf16.mxu1 %v20232_v57  ;;  %v20289_v61 = vld [vmem:[%s25552_s2 + $0x638] sm:$0xff]   ;;  %v20237_v57 = vld [vmem:[%s22820_s12 + $0x368] ss:$36 sps:$4 sm:$0xff]  }
 0x605   : > { %11008 = vmatprep.mubr.bf16.mxu0 %v20233_v1  ;;  %11154 = vmatpush1.bf16.msra.mxu0 %v20259_v40  ;;  %v20243_v1 = vld [vmem:[%s22680_s19 + $0x130] ss:$36 sps:$4 sm:$0xff]  }
 0x606   : > { %11155 = vmatprep.subr.bf16.mxu0 %v25774_v56  ;;  %v20247_v40 = vld [vmem:[%s22820_s12 + $0x3b4] ss:$36 sps:$4 sm:$0xff]  }
 0x609   : > { %11156 = vmatpush1.bf16.msra.mxu0 %v20267_v24  ;;  %v20248_v24 = vld [vmem:[%s22680_s19 + $0x17c] ss:$36 sps:$4 sm:$0xff]  }
 0x60a   : > { %11157 = vmatprep.subr.bf16.mxu0 %v25774_v56 }
 0x60b   : > { %13588 = vmatmul.mubr.bf16.gmra.mrb[72].mxu1 %v20230_v18  ;;  %v20297_v18 = vld [vmem:[%s25552_s2 + $0x640] sm:$0xff]  }
 0x60c   : > { %11009 = vmatmul.mubr.bf16.gmra.mrb[212].mxu0 %v20235_v59  ;;  %13595 = vmatprep.mubr.bf16.mxu1 %v20239_v4  ;;  %v20305_v59 = vld [vmem:[%s25552_s2 + $0x648] sm:$0xff]   ;;  %v20245_v4 = vld [vmem:[%s22820_s12 + $0x3b0] ss:$36 sps:$4 sm:$0xff]  }
 0x60d   : > { %11016 = vmatprep.mubr.bf16.mxu0 %v20240_v45  ;;  %11158 = vmatpush1.bf16.msra.mxu0 %v20280_v16  ;;  %v20250_v45 = vld [vmem:[%s22680_s19 + $0x178] ss:$36 sps:$4 sm:$0xff]  }
 0x60e   : > { %11159 = vmatprep.subr.bf16.mxu0 %v25774_v56  ;;  %v20254_v16 = vld [vmem:[%s22820_s12 + $0x3fc] ss:$36 sps:$4 sm:$0xff]  }
 0x611   : > { %11160 = vmatpush1.bf16.msra.mxu0 %v20289_v61  ;;  %v20256_v61 = vld [vmem:[%s22680_s19 + $0x1c4] ss:$36 sps:$4 sm:$0xff]  }
 0x612   : > { %11161 = vmatprep.subr.bf16.mxu0 %v25774_v56 }
 0x613   : > { %13596 = vmatmul.mubr.bf16.gmra.mrb[76].mxu1 %v20237_v57  ;;  %v20318_v57 = vld [vmem:[%s25552_s2 + $0x650] sm:$0xff]  }
 0x614   : > { %11017 = vmatmul.mubr.bf16.gmra.mrb[216].mxu0 %v20243_v1  ;;  %13603 = vmatprep.mubr.bf16.mxu1 %v20247_v40  ;;  %v20327_v1 = vld [vmem:[%s25552_s2 + $0x658] sm:$0xff]  }
 0x615   : > { %11024 = vmatprep.mubr.bf16.mxu0 %v20248_v24  ;;  %11162 = vmatpush1.bf16.msra.mxu0 %v20297_v18  ;;  %v20252_v40 = vld [vmem:[%s22820_s12 + $0x3f8] ss:$36 sps:$4 sm:$0xff]   ;;  %v20258_v24 = vld [vmem:[%s22680_s19 + $0x1c0] ss:$36 sps:$4 sm:$0xff]  }
 0x616   : > { %11163 = vmatprep.subr.bf16.mxu0 %v25774_v56  ;;  %v20262_v18 = vld [vmem:[%s22820_s12 + $0x444] ss:$36 sps:$4 sm:$0xff]  }
 0x619   : > { %11164 = vmatpush1.bf16.msra.mxu0 %v20305_v59  ;;  %v20263_v59 = vld [vmem:[%s22680_s19 + $0x20c] ss:$36 sps:$4 sm:$0xff]  }
 0x61a   : > { %11165 = vmatprep.subr.bf16.mxu0 %v25774_v56 }
 0x61b   : > { %13604 = vmatmul.mubr.bf16.gmra.mrb[0].mxu1 %v20245_v4  ;;  %v20335_v4 = vld [vmem:[%s25552_s2 + $0x660] sm:$0xff]  }
 0x61c   : > { %11025 = vmatmul.mubr.bf16.gmra.mrb[220].mxu0 %v20250_v45  ;;  %13611 = vmatprep.mubr.bf16.mxu1 %v20254_v16  ;;  %v20343_v45 = vld [vmem:[%s25552_s2 + $0x668] sm:$0xff]   ;;  %v20260_v16 = vld [vmem:[%s22820_s12 + $0x440] ss:$36 sps:$4 sm:$0xff]  }
 0x61d   : > { %11032 = vmatprep.mubr.bf16.mxu0 %v20256_v61  ;;  %11166 = vmatpush1.bf16.msra.mxu0 %v20318_v57  ;;  %v20265_v61 = vld [vmem:[%s22680_s19 + $0x208] ss:$36 sps:$4 sm:$0xff]  }
 0x61e   : > { %11167 = vmatprep.subr.bf16.mxu0 %v25774_v56  ;;  %v20270_v57 = vld [vmem:[%s22820_s12 + $0x48c] ss:$36 sps:$4 sm:$0xff]  }
 0x621   : > { %11168 = vmatpush1.bf16.msra.mxu0 %v20327_v1  ;;  %v20271_v1 = vld [vmem:[%s22680_s19 + $0x254] ss:$36 sps:$4 sm:$0xff]  }
 0x622   : > { %11169 = vmatprep.subr.bf16.mxu0 %v25774_v56 }
 0x623   : > { %13612 = vmatmul.mubr.bf16.gmra.mrb[4].mxu1 %v20252_v40  ;;  %v20357_v40 = vld [vmem:[%s25552_s2 + $0x670] sm:$0xff]  }
 0x624   : > { %11033 = vmatmul.mubr.bf16.gmra.mrb[224].mxu0 %v20258_v24  ;;  %13619 = vmatprep.mubr.bf16.mxu1 %v20262_v18  ;;  %v20359_v24 = vld [vmem:[%s25552_s2 + $0x678] sm:$0xff]   ;;  %v23909_v18 = vld [vmem:[%s25552_s2 + $0x8c0] sm:$0xff]  }
 0x625   : > { %11040 = vmatprep.mubr.bf16.mxu0 %v20263_v59  ;;  %11170 = vmatpush1.bf16.msra.mxu0 %v20335_v4  ;;  %v20268_v59 = vld [vmem:[%s22820_s12 + $0x488] ss:$36 sps:$4 sm:$0xff]   ;;  %v20273_v4 = vld [vmem:[%s22680_s19 + $0x250] ss:$36 sps:$4 sm:$0xff]  }
 0x626   : > { %11171 = vmatprep.subr.bf16.mxu0 %v25774_v56 }
 0x629   : > { %11172 = vmatpush1.bf16.msra.mxu0 %v20343_v45  ;;  %v20277_v45 = vld [vmem:[%s22820_s12 + $0x4d4] ss:$36 sps:$4 sm:$0xff]  }
 0x62a   : > { %11173 = vmatprep.subr.bf16.mxu0 %v25774_v56 }
 0x62b   : > { %13620 = vmatmul.mubr.bf16.gmra.mrb[8].mxu1 %v20260_v16  ;;  %v20278_v16 = vld [vmem:[%s22680_s19 + $0x29c] ss:$36 sps:$4 sm:$0xff]  }
 0x62c   : > { %11041 = vmatmul.mubr.bf16.gmra.mrb[228].mxu0 %v20265_v61  ;;  %13627 = vmatprep.mubr.bf16.mxu1 %v20270_v57  ;;  %v20275_v61 = vld [vmem:[%s22820_s12 + $0x4d0] ss:$36 sps:$4 sm:$0xff]   ;;  %v20281_v57 = vld [vmem:[%s22680_s19 + $0x298] ss:$36 sps:$4 sm:$0xff]  }
 0x62d   : > { %11048 = vmatprep.mubr.bf16.mxu0 %v20271_v1  ;;  %11174 = vmatpush1.bf16.msra.mxu0 %v20357_v40  ;;  %v20285_v1 = vld [vmem:[%s22820_s12 + $0x51c] ss:$36 sps:$4 sm:$0xff]   ;;  %v20286_v40 = vld [vmem:[%s22680_s19 + $0x2e4] ss:$36 sps:$4 sm:$0xff]  }
 0x62e   : > { %11175 = vmatprep.subr.bf16.mxu0 %v25774_v56 }
 0x631   : > { %11176 = vmatpush1.bf16.msra.mxu0 %v20359_v24  ;;  %v20283_v24 = vld [vmem:[%s22820_s12 + $0x518] ss:$36 sps:$4 sm:$0xff]  }
 0x632   : > { %17274 = vmatprep.subr.bf16.mxu0 %v23909_v18 }
 0x633   : > { %13628 = vmatmul.mubr.bf16.gmra.mrb[12].mxu1 %v20268_v59  ;;  %v20292_v59 = vld [vmem:[%s22820_s12 + $0x564] ss:$36 sps:$4 sm:$0xff]  }
 0x634   : > { %11049 = vmatmul.mubr.bf16.gmra.mrb[232].mxu0 %v20273_v4  ;;  %13635 = vmatprep.mubr.bf16.mxu1 %v20277_v45  ;;  %v20294_v4 = vld [vmem:[%s22680_s19 + $0x32c] ss:$36 sps:$4 sm:$0xff]   ;;  %v20290_v45 = vld [vmem:[%s22820_s12 + $0x560] ss:$36 sps:$4 sm:$0xff]  }
 0x635   : > { %11056 = vmatprep.mubr.bf16.mxu0 %v20278_v16  ;;  %v20296_v16 = vld [vmem:[%s22680_s19 + $0x328] ss:$36 sps:$4 sm:$0xff]  }
 0x63b   : > { %13636 = vmatmul.mubr.bf16.gmra.mrb[16].mxu1 %v20275_v61  ;;  %v20298_v61 = vld [vmem:[%s22820_s12 + $0x10] ss:$36 sps:$4 sm:$0xff]  }
 0x63c   : > { %11057 = vmatmul.mubr.bf16.gmra.mrb[236].mxu0 %v20281_v57  ;;  %13643 = vmatprep.mubr.bf16.mxu1 %v20285_v1  ;;  %v20303_v57 = vld [vmem:[%s22680_s19 + $0x370] ss:$36 sps:$4 sm:$0xff]   ;;  %v20306_v1 = vld [vmem:[%s22820_s12 + $0x5c] ss:$36 sps:$4 sm:$0xff]  }
 0x63d   : > { %11064 = vmatprep.mubr.bf16.mxu0 %v20286_v40  ;;  %v20308_v40 = vld [vmem:[%s22680_s19 + $0x3bc] ss:$36 sps:$4 sm:$0xff]  }
 0x643   : > { %13644 = vmatmul.mubr.bf16.gmra.mrb[20].mxu1 %v20283_v24  ;;  %v20312_v24 = vld [vmem:[%s25552_s2 + $0x848] sm:$0xff]  }
 0x644   : > { %11065 = vmatmul.mubr.bf16.gmra.mrb[240].mxu0 %v20288_v38  ;;  %13651 = vmatprep.mubr.bf16.mxu1 %v20292_v59  ;;  %v20304_v38 = vld [vmem:[%s25552_s2 + $0x840] sm:$0xff]  }
 0x645   : > { %11072 = vmatprep.mubr.bf16.mxu0 %v20294_v4  ;;  %v20313_v59 = vld [vmem:[%s22820_s12 + $0xa4] ss:$36 sps:$4 sm:$0xff]  }
 0x646   : > { %v20317_v4 = vld [vmem:[%s22680_s19 + $0x404] ss:$36 sps:$4 sm:$0xff]  }
 0x64b   : > { %13652 = vmatmul.mubr.bf16.gmra.mrb[24].mxu1 %v20290_v45  ;;  %v20320_v45 = vld [vmem:[%s25552_s2 + $0x850] sm:$0xff]  }
 0x64c   : > { %11073 = vmatmul.mubr.bf16.gmra.mrb[244].mxu0 %v20296_v16  ;;  %13692 = vmatprep.mubr.bf16.mxu1 %v20300_v14  ;;  %v20311_v14 = vld [vmem:[%s22680_s19 + $0x3b8] ss:$36 sps:$4 sm:$0xff]  }
 0x64d   : > { %11080 = vmatprep.mubr.bf16.mxu0 %v20301_v5  ;;  %v20310_v5 = vld [vmem:[%s22820_s12 + $0x58] ss:$36 sps:$4 sm:$0xff]  }
 0x64e   : > { %v20331_v16 = vld [vmem:[%s25552_s2 + $0x858] sm:$0xff]  }
 0x653   : > { %13693 = vmatmul.mubr.bf16.vlgmr.msra.gmra.mrb[240].mxu1 %v20298_v61  ;;  %v20319_v61 = vld [vmem:[%s22820_s12 + $0xa0] ss:$36 sps:$4 sm:$0xff]  }
 0x654   : > { %11081 = vmatmul.mubr.bf16.gmra.mrb[248].mxu0 %v20303_v57  ;;  %13854 = vmatpush1.bf16.msra.mxu1 %v20304_v38  ;;  %v20315_v57 = vld [vmem:[%s22680_s19 + $0x400] ss:$36 sps:$4 sm:$0xff]   ;;  %v20321_v38 = vld [vmem:[%s22820_s12 + $0xec] ss:$36 sps:$4 sm:$0xff]  }
 0x655   : > { %13700 = vmatprep.mubr.bf16.mxu1 %v20306_v1  ;;  %11088 = vmatprep.mubr.bf16.mxu0 %v20308_v40  ;;  %v20325_v1 = vld [vmem:[%s22680_s19 + $0x44c] ss:$36 sps:$4 sm:$0xff]   ;;  %v20342_v40 = vld [vmem:[%s25552_s2 + $0x860] sm:$0xff]  }
 0x656   : > { %13855 = vmatprep.subr.bf16.mxu1 %v25774_v56 }
 0x658   : > { %13856 = vmatpush1.bf16.msra.mxu1 %v20312_v24  ;;  %v20350_v24 = vld [vmem:[%s25552_s2 + $0x868] sm:$0xff]  }
 0x659   : > { %13857 = vmatprep.subr.bf16.mxu1 %v25774_v56 }
 0x65b   : > { %13701 = vmatmul.mubr.bf16.gmra.mrb[244].mxu1 %v20310_v5  ;;  %v20326_v5 = vld [vmem:[%s22820_s12 + $0xe8] ss:$36 sps:$4 sm:$0xff]  }
 0x65c   : > { %11089 = vmatmul.mubr.bf16.gmra.mrb[252].mxu0 %v20311_v14  ;;  %13708 = vmatprep.mubr.bf16.mxu1 %v20313_v59  ;;  %v20323_v14 = vld [vmem:[%s22680_s19 + $0x448] ss:$36 sps:$4 sm:$0xff]   ;;  %v20330_v59 = vld [vmem:[%s22820_s12 + $0x134] ss:$36 sps:$4 sm:$0xff]  }
 0x65d   : > { %11096 = vmatprep.mubr.bf16.mxu0 %v20317_v4  ;;  %13858 = vmatpush1.bf16.msra.mxu1 %v20320_v45  ;;  %v20334_v4 = vld [vmem:[%s22680_s19 + $0x494] ss:$36 sps:$4 sm:$0xff]  }
 0x65e   : > { %13859 = vmatprep.subr.bf16.mxu1 %v25774_v56  ;;  %v20358_v45 = vld [vmem:[%s25552_s2 + $0x870] sm:$0xff]  }
 0x661   : > { %13860 = vmatpush1.bf16.msra.mxu1 %v20331_v16  ;;  %v20369_v16 = vld [vmem:[%s25552_s2 + $0x878] sm:$0xff]  }
 0x662   : > { %13861 = vmatprep.subr.bf16.mxu1 %v25774_v56 }
 0x663   : > { %13709 = vmatmul.mubr.bf16.gmra.mrb[248].mxu1 %v20319_v61  ;;  %v20328_v61 = vld [vmem:[%s22820_s12 + $0x130] ss:$36 sps:$4 sm:$0xff]  }
 0x664   : > { %11097 = vmatmul.mubr.bf16.gmra.mrb[0].mxu0 %v20315_v57  ;;  %13716 = vmatprep.mubr.bf16.mxu1 %v20321_v38  ;;  %v20332_v57 = vld [vmem:[%s22680_s19 + $0x490] ss:$36 sps:$4 sm:$0xff]   ;;  %v20338_v38 = vld [vmem:[%s22820_s12 + $0x17c] ss:$36 sps:$4 sm:$0xff]  }
 0x665   : > { %11104 = vmatprep.mubr.bf16.mxu0 %v20325_v1  ;;  %13862 = vmatpush1.bf16.msra.mxu1 %v20342_v40  ;;  %v20341_v1 = vld [vmem:[%s22680_s19 + $0x4dc] ss:$36 sps:$4 sm:$0xff]  }
 0x666   : > { %13863 = vmatprep.subr.bf16.mxu1 %v25774_v56  ;;  %v20380_v40 = vld [vmem:[%s25552_s2 + $0x880] sm:$0xff]  }
 0x669   : > { %13864 = vmatpush1.bf16.msra.mxu1 %v20350_v24  ;;  %v20387_v24 = vld [vmem:[%s25552_s2 + $0x888] sm:$0xff]  }
 0x66a   : > { %13865 = vmatprep.subr.bf16.mxu1 %v25774_v56 }
 0x66b   : > { %13717 = vmatmul.mubr.bf16.gmra.mrb[252].mxu1 %v20326_v5  ;;  %v20336_v5 = vld [vmem:[%s22820_s12 + $0x178] ss:$36 sps:$4 sm:$0xff]  }
 0x66c   : > { %11105 = vmatmul.mubr.bf16.gmra.mrb[4].mxu0 %v20323_v14  ;;  %13724 = vmatprep.mubr.bf16.mxu1 %v20330_v59  ;;  %v20339_v14 = vld [vmem:[%s22680_s19 + $0x4d8] ss:$36 sps:$4 sm:$0xff]   ;;  %v20346_v59 = vld [vmem:[%s22820_s12 + $0x1c4] ss:$36 sps:$4 sm:$0xff]  }
 0x66d   : > { %11112 = vmatprep.mubr.bf16.mxu0 %v20334_v4  ;;  %13866 = vmatpush1.bf16.msra.mxu1 %v20358_v45  ;;  %v20349_v4 = vld [vmem:[%s22680_s19 + $0x524] ss:$36 sps:$4 sm:$0xff]   ;;  %v20395_v45 = vld [vmem:[%s25552_s2 + $0x890] sm:$0xff]  }
 0x66e   : > { %13867 = vmatprep.subr.bf16.mxu1 %v25774_v56 }
 0x671   : > { %13868 = vmatpush1.bf16.msra.mxu1 %v20369_v16  ;;  %v20405_v16 = vld [vmem:[%s25552_s2 + $0x898] sm:$0xff]  }
 0x672   : > { %13869 = vmatprep.subr.bf16.mxu1 %v25774_v56 }
 0x673   : > { %13725 = vmatmul.mubr.bf16.gmra.mrb[44].mxu1 %v20328_v61  ;;  %v20344_v61 = vld [vmem:[%s22820_s12 + $0x1c0] ss:$36 sps:$4 sm:$0xff]  }
 0x674   : > { %11113 = vmatmul.mubr.bf16.gmra.mrb[8].mxu0 %v20332_v57  ;;  %13732 = vmatprep.mubr.bf16.mxu1 %v20338_v38  ;;  %v20347_v57 = vld [vmem:[%s22680_s19 + $0x520] ss:$36 sps:$4 sm:$0xff]   ;;  %v20353_v38 = vld [vmem:[%s22820_s12 + $0x20c] ss:$36 sps:$4 sm:$0xff]  }
 0x675   : > { %11120 = vmatprep.mubr.bf16.mxu0 %v20341_v1  ;;  %13870 = vmatpush1.bf16.msra.mxu1 %v20380_v40  ;;  %v20356_v1 = vld [vmem:[%s22680_s19 + $0x56c] ss:$36 sps:$4 sm:$0xff]   ;;  %v20416_v40 = vld [vmem:[%s25552_s2 + $0x8a0] sm:$0xff]  }
 0x676   : > { %13871 = vmatprep.subr.bf16.mxu1 %v25774_v56 }
 0x679   : > { %13872 = vmatpush1.bf16.msra.mxu1 %v20387_v24  ;;  %v20423_v24 = vld [vmem:[%s25552_s2 + $0x8a8] sm:$0xff]  }
 0x67a   : > { %13873 = vmatprep.subr.bf16.mxu1 %v25774_v56 }
 0x67b   : > { %13733 = vmatmul.mubr.bf16.gmra.mrb[48].mxu1 %v20336_v5  ;;  %v20351_v5 = vld [vmem:[%s22820_s12 + $0x208] ss:$36 sps:$4 sm:$0xff]  }
 0x67c   : > { %11121 = vmatmul.mubr.bf16.gmra.mrb[12].mxu0 %v20339_v14  ;;  %13740 = vmatprep.mubr.bf16.mxu1 %v20346_v59  ;;  %v20354_v14 = vld [vmem:[%s22680_s19 + $0x568] ss:$36 sps:$4 sm:$0xff]   ;;  %v20362_v59 = vld [vmem:[%s22820_s12 + $0x254] ss:$36 sps:$4 sm:$0xff]  }
 0x67d   : > { %11128 = vmatprep.mubr.bf16.mxu0 %v20349_v4  ;;  %13874 = vmatpush1.bf16.msra.mxu1 %v20395_v45  ;;  %v20365_v4 = vld [vmem:[%s22680_s19 + $0x1c] ss:$36 sps:$4 sm:$0xff]   ;;  %v20431_v45 = vld [vmem:[%s25552_s2 + $0x8b0] sm:$0xff]  }
 0x67e   : > { %13875 = vmatprep.subr.bf16.mxu1 %v25774_v56 }
 0x681   : > { %13876 = vmatpush1.bf16.msra.mxu1 %v20405_v16  ;;  %v20441_v16 = vld [vmem:[%s25552_s2 + $0x8b8] sm:$0xff]  }
 0x682   : > { %13877 = vmatprep.subr.bf16.mxu1 %v25774_v56 }
 0x683   : > { %13741 = vmatmul.mubr.bf16.gmra.mrb[52].mxu1 %v20344_v61  ;;  %v20360_v61 = vld [vmem:[%s22820_s12 + $0x250] ss:$36 sps:$4 sm:$0xff]  }
 0x684   : > { %11129 = vmatmul.mubr.bf16.gmra.mrb[16].mxu0 %v20347_v57  ;;  %13748 = vmatprep.mubr.bf16.mxu1 %v20353_v38  ;;  %v20363_v57 = vld [vmem:[%s22680_s19 + $0x18] ss:$36 sps:$4 sm:$0xff]  }
 0x685   : > { %11136 = vmatprep.mubr.bf16.mxu0 %v20356_v1  ;;  %13878 = vmatpush1.bf16.msra.mxu1 %v20416_v40  ;;  %v20368_v38 = vld [vmem:[%s22820_s12 + $0x29c] ss:$36 sps:$4 sm:$0xff]   ;;  %v20370_v1 = vld [vmem:[%s22680_s19 + $0x64] ss:$36 sps:$4 sm:$0xff]  }
 0x686   : > { %13879 = vmatprep.subr.bf16.mxu1 %v25774_v56  ;;  %v20391_v40 = vld [vmem:[%s25552_s2 + $0x8c8] sm:$0xff]  }
 0x689   : > { %13880 = vmatpush1.bf16.msra.mxu1 %v20423_v24  ;;  %v20366_v24 = vld [vmem:[%s22820_s12 + $0x298] ss:$36 sps:$4 sm:$0xff]  }
 0x68a   : > { %13881 = vmatprep.subr.bf16.mxu1 %v25774_v56 }
 0x68b   : > { %13749 = vmatmul.mubr.bf16.gmra.mrb[56].mxu1 %v20351_v5  ;;  %v20372_v5 = vld [vmem:[%s22680_s19 + $0x60] ss:$36 sps:$4 sm:$0xff]  }
 0x68c   : > { %11137 = vmatmul.mubr.bf16.gmra.mrb[20].mxu0 %v20354_v14  ;;  %13756 = vmatprep.mubr.bf16.mxu1 %v20362_v59  ;;  %v20376_v14 = vld [vmem:[%s22820_s12 + $0x2e4] ss:$36 sps:$4 sm:$0xff]   ;;  %v20377_v59 = vld [vmem:[%s22680_s19 + $0xac] ss:$36 sps:$4 sm:$0xff]  }
 0x68d   : > { %11177 = vmatprep.mubr.bf16.mxu0 %v20365_v4  ;;  %13882 = vmatpush1.bf16.msra.mxu1 %v20431_v45  ;;  %v20427_v4 = vld [vmem:[%s25552_s2 + $0x8d8] sm:$0xff]   ;;  %v20374_v45 = vld [vmem:[%s22820_s12 + $0x2e0] ss:$36 sps:$4 sm:$0xff]  }
 0x68e   : > { %13883 = vmatprep.subr.bf16.mxu1 %v25774_v56  ;;  %v20409_v56 = vld [vmem:[%s25552_s2 + $0x8d0] sm:$0xff]  }
 0x691   : > { %13884 = vmatpush1.bf16.msra.mxu1 %v20441_v16  ;;  %v20379_v16 = vld [vmem:[%s22680_s19 + $0xa8] ss:$36 sps:$4 sm:$0xff]  }
 0x693   : > { %13757 = vmatmul.mubr.bf16.gmra.mrb[60].mxu1 %v20360_v61  ;;  %v20383_v61 = vld [vmem:[%s22820_s12 + $0x32c] ss:$36 sps:$4 sm:$0xff]  }
 0x694   : > { %11178 = vmatmul.mubr.bf16.vlgmr.msra.gmra.mrb[200].mxu0 %v20363_v57  ;;  %13764 = vmatprep.mubr.bf16.mxu1 %v20368_v38  ;;  %v20384_v57 = vld [vmem:[%s22680_s19 + $0xf4] ss:$36 sps:$4 sm:$0xff]   ;;  %v20460_v38 = vld [vmem:[%s25552_s2 + $0x8e8] sm:$0xff]  }
 0x695   : > { %11185 = vmatprep.mubr.bf16.mxu0 %v20370_v1  ;;  %17275 = vmatpush3.bf16.msra.mxu0 %v23909_v18  ;;  %v20445_v18 = vld [vmem:[%s25552_s2 + $0x8e0] sm:$0xff]   ;;  %v20477_v1 = vld [vmem:[%s25552_s2 + $0x8f0] sm:$0xff]  }
 0x696   : > { %17276 = vmatprep.subr.bf16.mxu0 %v20391_v40 }
 0x699   : > { %17277 = vmatpush3.bf16.msra.mxu0 %v20391_v40  ;;  %v20381_v40 = vld [vmem:[%s22820_s12 + $0x328] ss:$36 sps:$4 sm:$0xff]  }
 0x69a   : > { %17278 = vmatprep.subr.bf16.mxu0 %v20409_v56 }
 0x69b   : > { %13765 = vmatmul.mubr.bf16.gmra.mrb[64].mxu1 %v20366_v24  ;;  %v20390_v24 = vld [vmem:[%s22820_s12 + $0x374] ss:$36 sps:$4 sm:$0xff]  }
 0x69c   : > { %11186 = vmatmul.mubr.bf16.gmra.mrb[204].mxu0 %v20372_v5  ;;  %13772 = vmatprep.mubr.bf16.mxu1 %v20376_v14  ;;  %v20392_v5 = vld [vmem:[%s22680_s19 + $0x13c] ss:$36 sps:$4 sm:$0xff]  }
 0x69d   : > { %11193 = vmatprep.mubr.bf16.mxu0 %v20377_v59  ;;  %17279 = vmatpush3.bf16.msra.mxu0 %v20409_v56  ;;  %v20386_v56 = vld [vmem:[%s22680_s19 + $0xf0] ss:$36 sps:$4 sm:$0xff]   ;;  %v20493_v14 = vld [vmem:[%s25552_s2 + $0x8f8] sm:$0xff]  }
 0x69e   : > { %17280 = vmatprep.subr.bf16.mxu0 %v20427_v4  ;;  %v20388_v59 = vld [vmem:[%s22820_s12 + $0x370] ss:$36 sps:$4 sm:$0xff]  }
 0x6a1   : > { %17281 = vmatpush3.bf16.msra.mxu0 %v20427_v4  ;;  %v20394_v4 = vld [vmem:[%s22680_s19 + $0x138] ss:$36 sps:$4 sm:$0xff]  }
 0x6a2   : > { %17282 = vmatprep.subr.bf16.mxu0 %v20445_v18 }
 0x6a3   : > { %13773 = vmatmul.mubr.bf16.gmra.mrb[68].mxu1 %v20374_v45  ;;  %v20399_v45 = vld [vmem:[%s22680_s19 + $0x184] ss:$36 sps:$4 sm:$0xff]  }
 0x6a4   : > { %11194 = vmatmul.mubr.bf16.gmra.mrb[208].mxu0 %v20379_v16  ;;  %13780 = vmatprep.mubr.bf16.mxu1 %v20383_v61  ;;  %v20396_v16 = vld [vmem:[%s22820_s12 + $0x3b8] ss:$36 sps:$4 sm:$0xff]   ;;  %v20401_v61 = vld [vmem:[%s22680_s19 + $0x180] ss:$36 sps:$4 sm:$0xff]  }
 0x6a5   : > { %11201 = vmatprep.mubr.bf16.mxu0 %v20384_v57  ;;  %17283 = vmatpush3.bf16.msra.mxu0 %v20445_v18  ;;  %v20398_v18 = vld [vmem:[%s22820_s12 + $0x3bc] ss:$36 sps:$4 sm:$0xff]   ;;  %v20404_v57 = vld [vmem:[%s22820_s12 + $0x404] ss:$36 sps:$4 sm:$0xff]  }
 0x6a6   : > { %17284 = vmatprep.subr.bf16.mxu0 %v20460_v38 }
 0x6a9   : > { %17285 = vmatpush3.bf16.msra.mxu0 %v20460_v38  ;;  %v20406_v38 = vld [vmem:[%s22680_s19 + $0x1cc] ss:$36 sps:$4 sm:$0xff]  }
 0x6aa   : > { %17286 = vmatprep.subr.bf16.mxu0 %v20477_v1 }
 0x6ab   : > { %13781 = vmatmul.mubr.bf16.gmra.mrb[72].mxu1 %v20381_v40  ;;  %v20408_v40 = vld [vmem:[%s22680_s19 + $0x1c8] ss:$36 sps:$4 sm:$0xff]  }
 0x6ac   : > { %11202 = vmatmul.mubr.bf16.gmra.mrb[212].mxu0 %v20386_v56  ;;  %13788 = vmatprep.mubr.bf16.mxu1 %v20390_v24  ;;  %v20412_v56 = vld [vmem:[%s22820_s12 + $0x44c] ss:$36 sps:$4 sm:$0xff]   ;;  %v20413_v24 = vld [vmem:[%s22680_s19 + $0x214] ss:$36 sps:$4 sm:$0xff]  }
 0x6ad   : > { %11209 = vmatprep.mubr.bf16.mxu0 %v20392_v5  ;;  %17287 = vmatpush3.bf16.msra.mxu0 %v20477_v1  ;;  %v20402_v1 = vld [vmem:[%s22820_s12 + $0x400] ss:$36 sps:$4 sm:$0xff]   ;;  %v20410_v5 = vld [vmem:[%s22820_s12 + $0x448] ss:$36 sps:$4 sm:$0xff]  }
 0x6ae   : > { %17288 = vmatprep.subr.bf16.mxu0 %v20493_v14 }
 0x6b1   : > { %17289 = vmatpush3.bf16.msra.mxu0 %v20493_v14  ;;  %v20415_v14 = vld [vmem:[%s22680_s19 + $0x210] ss:$36 sps:$4 sm:$0xff]  }
 0x6b3   : > { %13789 = vmatmul.mubr.bf16.gmra.mrb[76].mxu1 %v20388_v59  ;;  %v20419_v59 = vld [vmem:[%s22820_s12 + $0x494] ss:$36 sps:$4 sm:$0xff]  }
 0x6b4   : > { %11210 = vmatmul.mubr.bf16.gmra.mrb[216].mxu0 %v20394_v4  ;;  %13796 = vmatprep.mubr.bf16.mxu1 %v20398_v18  ;;  %v20420_v4 = vld [vmem:[%s22680_s19 + $0x25c] ss:$36 sps:$4 sm:$0xff]   ;;  %v20417_v18 = vld [vmem:[%s22820_s12 + $0x490] ss:$36 sps:$4 sm:$0xff]  }
 0x6b5   : > { %11217 = vmatprep.mubr.bf16.mxu0 %v20399_v45  ;;  %v20422_v45 = vld [vmem:[%s22680_s19 + $0x258] ss:$36 sps:$4 sm:$0xff]  }
 0x6bb   : > { %13797 = vmatmul.mubr.bf16.gmra.mrb[0].mxu1 %v20396_v16  ;;  %v20426_v16 = vld [vmem:[%s22820_s12 + $0x4dc] ss:$36 sps:$4 sm:$0xff]  }
 0x6bc   : > { %11218 = vmatmul.mubr.bf16.gmra.mrb[220].mxu0 %v20401_v61  ;;  %13804 = vmatprep.mubr.bf16.mxu1 %v20404_v57  ;;  %v20428_v61 = vld [vmem:[%s22680_s19 + $0x2a4] ss:$36 sps:$4 sm:$0xff]   ;;  %v20424_v57 = vld [vmem:[%s22820_s12 + $0x4d8] ss:$36 sps:$4 sm:$0xff]  }
 0x6bd   : > { %11225 = vmatprep.mubr.bf16.mxu0 %v20406_v38  ;;  %v20430_v38 = vld [vmem:[%s22680_s19 + $0x2a0] ss:$36 sps:$4 sm:$0xff]  }
 0x6c3   : > { %13805 = vmatmul.mubr.bf16.gmra.mrb[4].mxu1 %v20402_v1  ;;  %v20434_v1 = vld [vmem:[%s22820_s12 + $0x524] ss:$36 sps:$4 sm:$0xff]  }
 0x6c4   : > { %11226 = vmatmul.mubr.bf16.gmra.mrb[224].mxu0 %v20408_v40  ;;  %13812 = vmatprep.mubr.bf16.mxu1 %v20412_v56  ;;  %v20435_v40 = vld [vmem:[%s22680_s19 + $0x2ec] ss:$36 sps:$4 sm:$0xff]   ;;  %v20432_v56 = vld [vmem:[%s22820_s12 + $0x520] ss:$36 sps:$4 sm:$0xff]  }
 0x6c5   : > { %11233 = vmatprep.mubr.bf16.mxu0 %v20413_v24  ;;  %v20437_v24 = vld [vmem:[%s22680_s19 + $0x2e8] ss:$36 sps:$4 sm:$0xff]  }
 0x6cb   : > { %13813 = vmatmul.mubr.bf16.gmra.mrb[8].mxu1 %v20410_v5  ;;  %v20440_v5 = vld [vmem:[%s22820_s12 + $0x56c] ss:$36 sps:$4 sm:$0xff]  }
 0x6cc   : > { %11234 = vmatmul.mubr.bf16.gmra.mrb[228].mxu0 %v20415_v14  ;;  %13820 = vmatprep.mubr.bf16.mxu1 %v20419_v59  ;;  %v20442_v14 = vld [vmem:[%s22680_s19 + $0x334] ss:$36 sps:$4 sm:$0xff]   ;;  %v20438_v59 = vld [vmem:[%s22820_s12 + $0x568] ss:$36 sps:$4 sm:$0xff]  }
 0x6cd   : > { %11241 = vmatprep.mubr.bf16.mxu0 %v20420_v4  ;;  %v20444_v4 = vld [vmem:[%s22680_s19 + $0x330] ss:$36 sps:$4 sm:$0xff]  }
 0x6d3   : > { %13821 = vmatmul.mubr.bf16.gmra.mrb[12].mxu1 %v20417_v18  ;;  %v20448_v18 = vld [vmem:[%s22820_s12 + $0x1c] ss:$36 sps:$4 sm:$0xff]  }
 0x6d4   : > { %11242 = vmatmul.mubr.bf16.gmra.mrb[232].mxu0 %v20422_v45  ;;  %13828 = vmatprep.mubr.bf16.mxu1 %v20426_v16  ;;  %v20449_v45 = vld [vmem:[%s22680_s19 + $0x37c] ss:$36 sps:$4 sm:$0xff]  }
 0x6d5   : > { %11249 = vmatprep.mubr.bf16.mxu0 %v20428_v61  ;;  %v20446_v16 = vld [vmem:[%s22820_s12 + $0x18] ss:$36 sps:$4 sm:$0xff]  }
 0x6d6   : > { %v20451_v61 = vld [vmem:[%s22680_s19 + $0x378] ss:$36 sps:$4 sm:$0xff]  }
 0x6db   : > { %13829 = vmatmul.mubr.bf16.gmra.mrb[16].mxu1 %v20424_v57  ;;  %v20452_v57 = vld [vmem:[%s22820_s12 + $0x64] ss:$36 sps:$4 sm:$0xff]  }
 0x6dc   : > { %11250 = vmatmul.mubr.bf16.gmra.mrb[236].mxu0 %v20430_v38  ;;  %13836 = vmatprep.mubr.bf16.mxu1 %v20434_v1  ;;  %v20454_v38 = vld [vmem:[%s22680_s19 + $0x3c4] ss:$36 sps:$4 sm:$0xff]  }
 0x6dd   : > { %11257 = vmatprep.mubr.bf16.mxu0 %v20435_v40  ;;  %v20456_v1 = vld [vmem:[%s22820_s12 + $0x60] ss:$36 sps:$4 sm:$0xff]  }
 0x6de   : > { %v20457_v40 = vld [vmem:[%s22680_s19 + $0x3c0] ss:$36 sps:$4 sm:$0xff]  }
 0x6e3   : > { %13837 = vmatmul.mubr.bf16.gmra.mrb[20].mxu1 %v20432_v56  ;;  %v20458_v56 = vld [vmem:[%s22820_s12 + $0xac] ss:$36 sps:$4 sm:$0xff]  }
 0x6e4   : > { %11258 = vmatmul.mubr.bf16.gmra.mrb[240].mxu0 %v20437_v24  ;;  %13844 = vmatprep.mubr.bf16.mxu1 %v20440_v5  ;;  %v20463_v24 = vld [vmem:[%s22680_s19 + $0x40c] ss:$36 sps:$4 sm:$0xff]  }
 0x6e5   : > { %11265 = vmatprep.mubr.bf16.mxu0 %v20442_v14  ;;  %v20464_v5 = vld [vmem:[%s22820_s12 + $0xa8] ss:$36 sps:$4 sm:$0xff]  }
 0x6e6   : > { %v20461_v14 = vld [vmem:[%s22680_s19 + $0x408] ss:$36 sps:$4 sm:$0xff]  }
 0x6eb   : > { %13845 = vmatmul.mubr.bf16.gmra.mrb[24].mxu1 %v20438_v59  ;;  %v20465_v59 = vld [vmem:[%s22820_s12 + $0xf4] ss:$36 sps:$4 sm:$0xff]  }
 0x6ec   : > { %11266 = vmatmul.mubr.bf16.gmra.mrb[244].mxu0 %v20444_v4  ;;  %13885 = vmatprep.mubr.bf16.mxu1 %v20448_v18  ;;  %v20469_v4 = vld [vmem:[%s22680_s19 + $0x454] ss:$36 sps:$4 sm:$0xff]  }
 0x6ed   : > { %11273 = vmatprep.mubr.bf16.mxu0 %v20449_v45  ;;  %v20470_v18 = vld [vmem:[%s22820_s12 + $0xf0] ss:$36 sps:$4 sm:$0xff]  }
 0x6ee   : > { %v20467_v45 = vld [vmem:[%s22680_s19 + $0x450] ss:$36 sps:$4 sm:$0xff]  }
 0x6f3   : > { %13886 = vmatmul.mubr.bf16.vlgmr.msra.gmra.mrb[240].mxu1 %v20446_v16  ;;  %v20473_v16 = vld [vmem:[%s22820_s12 + $0x13c] ss:$36 sps:$4 sm:$0xff]  }
 0x6f4   : > { %11274 = vmatmul.mubr.bf16.gmra.mrb[248].mxu0 %v20451_v61  ;;  %13893 = vmatprep.mubr.bf16.mxu1 %v20452_v57  ;;  %v20476_v61 = vld [vmem:[%s22680_s19 + $0x49c] ss:$36 sps:$4 sm:$0xff]  }
 0x6f5   : > { %11281 = vmatprep.mubr.bf16.mxu0 %v20454_v38  ;;  %v20471_v57 = vld [vmem:[%s22820_s12 + $0x138] ss:$36 sps:$4 sm:$0xff]  }
 0x6f6   : > { %v20474_v38 = vld [vmem:[%s22680_s19 + $0x498] ss:$36 sps:$4 sm:$0xff]  }
 0x6fb   : > { %13894 = vmatmul.mubr.bf16.gmra.mrb[244].mxu1 %v20456_v1  ;;  %v20480_v1 = vld [vmem:[%s22820_s12 + $0x184] ss:$36 sps:$4 sm:$0xff]  }
 0x6fc   : > { %11282 = vmatmul.mubr.bf16.gmra.mrb[252].mxu0 %v20457_v40  ;;  %13901 = vmatprep.mubr.bf16.mxu1 %v20458_v56  ;;  %v20483_v40 = vld [vmem:[%s22680_s19 + $0x4e4] ss:$36 sps:$4 sm:$0xff]  }
 0x6fd   : > { %11289 = vmatprep.mubr.bf16.mxu0 %v20463_v24  ;;  %v20478_v56 = vld [vmem:[%s22820_s12 + $0x180] ss:$36 sps:$4 sm:$0xff]  }
 0x6fe   : > { %v20481_v24 = vld [vmem:[%s22680_s19 + $0x4e0] ss:$36 sps:$4 sm:$0xff]  }
 0x703   : > { %13902 = vmatmul.mubr.bf16.gmra.mrb[248].mxu1 %v20464_v5  ;;  %v20486_v5 = vld [vmem:[%s22820_s12 + $0x1cc] ss:$36 sps:$4 sm:$0xff]  }
 0x704   : > { %11290 = vmatmul.mubr.bf16.gmra.mrb[0].mxu0 %v20461_v14  ;;  %13909 = vmatprep.mubr.bf16.mxu1 %v20465_v59  ;;  %v20489_v14 = vld [vmem:[%s22680_s19 + $0x52c] ss:$36 sps:$4 sm:$0xff]  }
 0x705   : > { %11297 = vmatprep.mubr.bf16.mxu0 %v20469_v4  ;;  %v20484_v59 = vld [vmem:[%s22820_s12 + $0x1c8] ss:$36 sps:$4 sm:$0xff]  }
 0x706   : > { %v20487_v4 = vld [vmem:[%s22680_s19 + $0x528] ss:$36 sps:$4 sm:$0xff]  }
 0x70b   : > { %13910 = vmatmul.mubr.bf16.gmra.mrb[252].mxu1 %v20470_v18  ;;  %v20492_v18 = vld [vmem:[%s22820_s12 + $0x214] ss:$36 sps:$4 sm:$0xff]  }
 0x70c   : > { %11298 = vmatmul.mubr.bf16.gmra.mrb[4].mxu0 %v20467_v45  ;;  %13917 = vmatprep.mubr.bf16.mxu1 %v20473_v16  ;;  %v20496_v45 = vld [vmem:[%s22680_s19 + $0x574] ss:$36 sps:$4 sm:$0xff]  }
 0x70d   : > { %11305 = vmatprep.mubr.bf16.mxu0 %v20476_v61  ;;  %v20490_v16 = vld [vmem:[%s22820_s12 + $0x210] ss:$36 sps:$4 sm:$0xff]  }
 0x70e   : > { %v20494_v61 = vld [vmem:[%s22680_s19 + $0x570] ss:$36 sps:$4 sm:$0xff]   ;;  %s283_s19 = sand.u32 1, %s20643_s25  }
 0x70f   : > { %s25498_s23 = scalar_lea.sflag [#allocation3], %s283_s19 }
 0x713   : > { %13918 = vmatmul.mubr.bf16.gmra.mrb[44].mxu1 %v20471_v57  ;;  %v20499_v57 = vld [vmem:[%s22820_s12 + $0x25c] ss:$36 sps:$4 sm:$0xff]  }
 0x714   : > { %11306 = vmatmul.mubr.bf16.gmra.mrb[8].mxu0 %v20474_v38  ;;  %13925 = vmatprep.mubr.bf16.mxu1 %v20480_v1  ;;  %v20500_v38 = vld [vmem:[%s22820_s12 + $0x20] ss:$36 sps:$4 sm:$0xff]   ;;  %v20497_v1 = vld [vmem:[%s22820_s12 + $0x258] ss:$36 sps:$4 sm:$0xff]  }
 0x715   : > { %11313 = vmatprep.mubr.bf16.mxu0 %v20483_v40  ;;  %v20501_v40 = vld [vmem:[%s22820_s12 + $0x68] ss:$36 sps:$4 sm:$0xff]  }
 0x71b   : > { %13926 = vmatmul.mubr.bf16.gmra.mrb[48].mxu1 %v20478_v56  ;;  %v20504_v56 = vld [vmem:[%s22820_s12 + $0x2a4] ss:$36 sps:$4 sm:$0xff]  }
 0x71c   : > { %11314 = vmatmul.mubr.bf16.gmra.mrb[12].mxu0 %v20481_v24  ;;  %13933 = vmatprep.mubr.bf16.mxu1 %v20486_v5  ;;  %v20505_v24 = vld [vmem:[%s22820_s12 + $0xb0] ss:$36 sps:$4 sm:$0xff]   ;;  %v20502_v5 = vld [vmem:[%s22820_s12 + $0x2a0] ss:$36 sps:$4 sm:$0xff]  }
 0x71d   : > { %11321 = vmatprep.mubr.bf16.mxu0 %v20489_v14  ;;  %v20506_v14 = vld [vmem:[%s22820_s12 + $0xf8] ss:$36 sps:$4 sm:$0xff]  }
 0x723   : > { %13934 = vmatmul.mubr.bf16.gmra.mrb[52].mxu1 %v20484_v59  ;;  %v20509_v59 = vld [vmem:[%s22820_s12 + $0x2ec] ss:$36 sps:$4 sm:$0xff]  }
 0x724   : > { %11322 = vmatmul.mubr.bf16.gmra.mrb[16].mxu0 %v20487_v4  ;;  %13941 = vmatprep.mubr.bf16.mxu1 %v20492_v18  ;;  %v20510_v4 = vld [vmem:[%s22820_s12 + $0x140] ss:$36 sps:$4 sm:$0xff]   ;;  %v20507_v18 = vld [vmem:[%s22820_s12 + $0x2e8] ss:$36 sps:$4 sm:$0xff]  }
 0x725   : > { %11329 = vmatprep.mubr.bf16.mxu0 %v20496_v45  ;;  %v20511_v45 = vld [vmem:[%s22820_s12 + $0x188] ss:$36 sps:$4 sm:$0xff]  }
 0x72b   : > { %13942 = vmatmul.mubr.bf16.gmra.mrb[56].mxu1 %v20490_v16  ;;  %v20514_v16 = vld [vmem:[%s22820_s12 + $0x334] ss:$36 sps:$4 sm:$0xff]  }
 0x72c   : > { %11330 = vmatmul.mubr.bf16.gmra.mrb[20].mxu0 %v20494_v61  ;;  %13949 = vmatprep.mubr.bf16.mxu1 %v20499_v57  ;;  %v20515_v61 = vld [vmem:[%s22820_s12 + $0x1d0] ss:$36 sps:$4 sm:$0xff]  }
 0x72d   : > { %17290 = vmatprep.mubr.bf16.mxu0 %v20500_v38  ;;  %v20512_v57 = vld [vmem:[%s22820_s12 + $0x330] ss:$36 sps:$4 sm:$0xff]   ;;  %v20516_v38 = vld [vmem:[%s22820_s12 + $0x218] ss:$36 sps:$4 sm:$0xff]  }
 0x733   : > { %13950 = vmatmul.mubr.bf16.gmra.mrb[60].mxu1 %v20497_v1  ;;  %v20519_v1 = vld [vmem:[%s22820_s12 + $0x37c] ss:$36 sps:$4 sm:$0xff]  }
 0x734   : > { %17291 = vmatmul.mubr.bf16.vlgmr.msra.gmra.mrb[24].mxu0 %v20501_v40  ;;  %13957 = vmatprep.mubr.bf16.mxu1 %v20504_v56  ;;  %v20520_v40 = vld [vmem:[%s22820_s12 + $0x260] ss:$36 sps:$4 sm:$0xff]   ;;  %v20517_v56 = vld [vmem:[%s22820_s12 + $0x378] ss:$36 sps:$4 sm:$0xff]  }
 0x735   : > { %17294 = vmatprep.mubr.bf16.mxu0 %v20505_v24  ;;  %v20521_v24 = vld [vmem:[%s22820_s12 + $0x2a8] ss:$36 sps:$4 sm:$0xff]  }
 0x73b   : > { %13958 = vmatmul.mubr.bf16.gmra.mrb[64].mxu1 %v20502_v5  ;;  %v20524_v5 = vld [vmem:[%s22820_s12 + $0x3c4] ss:$36 sps:$4 sm:$0xff]  }
 0x73c   : > { %17295 = vmatmul.mubr.bf16.gmra.mrb[28].mxu0 %v20506_v14  ;;  %13965 = vmatprep.mubr.bf16.mxu1 %v20509_v59  ;;  %v20525_v14 = vld [vmem:[%s22820_s12 + $0x2f0] ss:$36 sps:$4 sm:$0xff]   ;;  %v20522_v59 = vld [vmem:[%s22820_s12 + $0x3c0] ss:$36 sps:$4 sm:$0xff]  }
 0x73d   : > { %17298 = vmatprep.mubr.bf16.mxu0 %v20510_v4  ;;  %v20526_v4 = vld [vmem:[%s22820_s12 + $0x338] ss:$36 sps:$4 sm:$0xff]  }
 0x743   : > { %13966 = vmatmul.mubr.bf16.gmra.mrb[68].mxu1 %v20507_v18  ;;  %v20529_v18 = vld [vmem:[%s22820_s12 + $0x40c] ss:$36 sps:$4 sm:$0xff]  }
 0x744   : > { %17299 = vmatmul.mubr.bf16.gmra.mrb[32].mxu0 %v20511_v45  ;;  %13973 = vmatprep.mubr.bf16.mxu1 %v20514_v16  ;;  %v20530_v45 = vld [vmem:[%s22820_s12 + $0x380] ss:$36 sps:$4 sm:$0xff]   ;;  %v20527_v16 = vld [vmem:[%s22820_s12 + $0x408] ss:$36 sps:$4 sm:$0xff]  }
 0x745   : > { %17302 = vmatprep.mubr.bf16.mxu0 %v20515_v61  ;;  %v20531_v61 = vld [vmem:[%s22820_s12 + $0x3c8] ss:$36 sps:$4 sm:$0xff]  }
 0x74b   : > { %13974 = vmatmul.mubr.bf16.gmra.mrb[72].mxu1 %v20512_v57  ;;  %v20534_v57 = vld [vmem:[%s22820_s12 + $0x454] ss:$36 sps:$4 sm:$0xff]  }
 0x74c   : > { %17303 = vmatmul.mubr.bf16.gmra.mrb[36].mxu0 %v20516_v38  ;;  %13981 = vmatprep.mubr.bf16.mxu1 %v20519_v1  ;;  %v20535_v38 = vld [vmem:[%s22820_s12 + $0x410] ss:$36 sps:$4 sm:$0xff]  }
 0x74d   : > { %17306 = vmatprep.mubr.bf16.mxu0 %v20520_v40  ;;  %v20532_v40 = vld [vmem:[%s22820_s12 + $0x450] ss:$36 sps:$4 sm:$0xff]  }
 0x753   : > { %13982 = vmatmul.mubr.bf16.gmra.mrb[76].mxu1 %v20517_v56 }
 0x754   : > { %17307 = vmatmul.mubr.bf16.gmra.mrb[40].mxu0 %v20521_v24  ;;  %13989 = vmatprep.mubr.bf16.mxu1 %v20524_v5  ;;  %v20536_v5 = vld [vmem:[%s22820_s12 + $0x458] ss:$36 sps:$4 sm:$0xff]  }
 0x755   : > { %17310 = vmatprep.mubr.bf16.mxu0 %v20525_v14  ;;  %v20539_v14 = vld [vmem:[%s22820_s12 + $0x49c] ss:$36 sps:$4 sm:$0xff]  }
 0x75b   : > { %13990 = vmatmul.mubr.bf16.gmra.mrb[0].mxu1 %v20522_v59 }
 0x75c   : > { %17311 = vmatmul.mubr.bf16.gmra.mrb[44].mxu0 %v20526_v4  ;;  %13997 = vmatprep.mubr.bf16.mxu1 %v20529_v18  ;;  %v20540_v4 = vld [vmem:[%s22820_s12 + $0x4a0] ss:$36 sps:$4 sm:$0xff]   ;;  %v25903_v18 = vld [vmem:[#allocation57_spill] sm:$0xff] }
 0x75d   : > { %17314 = vmatprep.mubr.bf16.mxu0 %v20530_v45 }
 0x763   : > { %13998 = vmatmul.mubr.bf16.gmra.mrb[4].mxu1 %v20527_v16 }
 0x764   : > { %17315 = vmatmul.mubr.bf16.gmra.mrb[48].mxu0 %v20531_v61  ;;  %14005 = vmatprep.mubr.bf16.mxu1 %v20534_v57  ;;  %v25904_v57 = vld [vmem:[#allocation59_spill] sm:$0xff] }
 0x765   : > { %17318 = vmatprep.mubr.bf16.mxu0 %v20535_v38 }
 0x767   : > { %v11179_v1 = vpop.f32.mrb[200].mxu0 }
 0x768   : > { %v11373_v56 = vadd.f32 %v23625_v13, %v11179_v1  ;;  %v11181_v24 = vpop.f32.mrb[201].mxu0  ;;  %v20537_v1 = vld [vmem:[%s22820_s12 + $0x498] ss:$36 sps:$4 sm:$0xff]  }
 0x769   : > { %v11182_v59 = vpop.f32.mrb[202].mxu0 }
 0x76a   : > { %v24159_v45 = vadd.f32 %v11373_v56, %v25903_v18  ;;  %v11376_v16 = vadd.f32 %v23632_v23, %v11182_v59  ;;  %v11184_v61 = vpop.f32.mrb[203].mxu0  ;;  %v20544_v56 = vld [vmem:[%s22820_s12 + $0x4e4] ss:$36 sps:$4 sm:$0xff]   ;;  %v20545_v23 = vld [vmem:[%s22820_s12 + $0x530] ss:$36 sps:$4 sm:$0xff]   ;;  %v25906_v59 = vld [vmem:[#allocation61_spill] sm:$0xff] }
 0x76b   : > { %14006 = vmatmul.mubr.bf16.gmra.mrb[8].mxu1 %v20532_v40 }
 0x76c   : > { %v24163_v38 = vadd.f32 %v11376_v16, %v25904_v57  ;;  %17319 = vmatmul.mubr.bf16.gmra.mrb[52].mxu0 %v20536_v5  ;;  %14013 = vmatprep.mubr.bf16.mxu1 %v20539_v14  ;;  %v25907_v14 = vld [vmem:[#allocation63_spill] sm:$0xff] }
 0x76d   : > { %17322 = vmatprep.mubr.bf16.mxu0 %v20540_v4 }
 0x76e   : > { %25905 = vst [vmem:[#allocation68_spill] sm:$0xff] %v24163_v38  ;;  %v25908_v38 = vld [vmem:[#allocation65_spill] sm:$0xff] }
 0x76f   : > { %v11187_v13 = vpop.f32.mrb[204].mxu0 }
 0x770   : > { %v11381_v24 = vadd.f32 %v23623_v3, %v11187_v13  ;;  %v11189_v32 = vpop.f32.mrb[205].mxu0  ;;  %v20542_v3 = vld [vmem:[%s22820_s12 + $0x4e0] ss:$36 sps:$4 sm:$0xff]   ;;  %v20548_v13 = vld [vmem:[%s22820_s12 + $0x52c] ss:$36 sps:$4 sm:$0xff]  }
 0x771   : > { %v11190_v18 = vpop.f32.mrb[206].mxu0 }
 0x772   : > { %v24171_v40 = vadd.f32 %v11381_v24, %v25906_v59  ;;  %v11384_v16 = vadd.f32 %v23628_v58, %v11190_v18  ;;  %v11192_v5 = vpop.f32.mrb[207].mxu0  ;;  %v20549_v24 = vld [vmem:[%s22820_s12 + $0x578] ss:$36 sps:$4 sm:$0xff]  }
 0x773   : > { %14014 = vmatmul.mubr.bf16.gmra.mrb[12].mxu1 %v20537_v1 }
 0x774   : > { %v24175_v4 = vadd.f32 %v11384_v16, %v25907_v14  ;;  %17323 = vmatmul.mubr.bf16.gmra.mrb[56].mxu0 %v20541_v36  ;;  %14021 = vmatprep.mubr.bf16.mxu1 %v20544_v56  ;;  %v25909_v36 = vld [vmem:[#allocation67_spill] sm:$0xff]  ;;  %v20552_v14 = vld [vmem:[%s22820_s12 + $0x574] ss:$36 sps:$4 sm:$0xff]  }
 0x775   : > { %17326 = vmatprep.mubr.bf16.mxu0 %v20545_v23 }
 0x777   : > { %v11195_v32 = vpop.f32.mrb[208].mxu0 }
 0x778   : > { %v11389_v61 = vadd.f32 %v23637_v53, %v11195_v32  ;;  %v11197_v57 = vpop.f32.mrb[209].mxu0  ;;  %v20546_v53 = vld [vmem:[%s22820_s12 + $0x528] ss:$36 sps:$4 sm:$0xff]  }
 0x779   : > { %v11198_v59 = vpop.f32.mrb[210].mxu0  ;;  %v25910_v57 = vld [vmem:[#allocation69_spill] sm:$0xff] }
 0x77a   : > { %v24182_v58 = vadd.f32 %v11389_v61, %v25908_v38  ;;  %v11392_v1 = vadd.f32 %v23644_v26, %v11198_v59  ;;  %v11200_v18 = vpop.f32.mrb[211].mxu0 }
 0x77b   : > { %14022 = vmatmul.mubr.bf16.gmra.mrb[16].mxu1 %v20542_v3  ;;  %v25911_v3 = vld [vmem:[#allocation71_spill] sm:$0xff] }
 0x77c   : > { %v24186_v56 = vadd.f32 %v11392_v1, %v25909_v36  ;;  %14029 = vmatprep.mubr.bf16.mxu1 %v20548_v13  ;;  %17327 = vmatmul.mubr.bf16.gmra.mrb[60].mxu0 %v20549_v24  ;;  %v20550_v24 = vld [vmem:[%s22820_s12 + $0x570] ss:$36 sps:$4 sm:$0xff]   ;;  %v25912_v36 = vld [vmem:[#allocation73_spill] sm:$0xff]  ;;  %s18669_s12 = smul.u32 320, %s283_s19 }
 0x77e   : > { %s25285_s13 = scalar_lea.vmem [#allocation2], %s18669_s12 }
 0x77f   : > { %v11203_v23 = vpop.f32.mrb[212].mxu0  ;;  %s15067_s16 = sshll.u32 %s25285_s13, 4  ;;  %s25486_s16 = int_to_ptr.vmem [resolvable:$true] %s15067_s16 }
 0x780   : > { %v11397_v16 = vadd.f32 %v23635_v51, %v11203_v23  ;;  %v11205_v5 = vpop.f32.mrb[213].mxu0  ;;  %s20573_s10 = scalar_lea.vmem %s25486_s16, 5120  ;;  %p20580_p2 = scmp.lt.s32.totalorder %s25486_s16, %s20578_s18 }
 0x781   : > { %v11206_v32 = vpop.f32.mrb[214].mxu0  ;;  %p20574_p13 = scmp.ne.s32.totalorder %s25486_s16, %s20573_s10  ;;  %p20581_p4 = scmp.lt.s32.totalorder %s20579_s17, %s20573_s10 }
 0x782   : > { %v24192_v38 = vadd.f32 %v11397_v16, %v25910_v57  ;;  %v11400_v26 = vadd.f32 %v23640_v19, %v11206_v32  ;;  %v11208_v61 = vpop.f32.mrb[215].mxu0  ;;  %v25913_v19 = vld [vmem:[#allocation75_spill] sm:$0xff] }
 0x783   : > { %14030 = vmatmul.mubr.bf16.gmra.mrb[20].mxu1 %v20546_v53  ;;  %v25914_v61 = vld [vmem:[#allocation77_spill] sm:$0xff]  ;;  %p20575_p0 = pnand %p20574_p13, %p20767_p3  ;;  %p20582_p5 = por %p20581_p4, %p20580_p2 }
 0x784   : > { %v24196_v59 = vadd.f32 %v11400_v26, %v25911_v3  ;;  %14037 = vmatprep.mubr.bf16.mxu1 %v20552_v14 }
 0x785   : > { %p20576_p1 = pneg %p20575_p0 }
 0x787   : > { %v11211_v13 = vpop.f32.mrb[216].mxu0  ;;  %p20583_p6 = pnand %p20582_p5, %p20576_p1 }
 0x788   : > { %v11405_v1 = vadd.f32 %v23649_v15, %v11211_v13  ;;  %v11213_v18 = vpop.f32.mrb[217].mxu0 }
 0x789   : > { %v11214_v51 = vpop.f32.mrb[218].mxu0 }
 0x78a   : > { %v24201_v23 = vadd.f32 %v11405_v1, %v25912_v36  ;;  %v11408_v16 = vadd.f32 %v23656_v2, %v11214_v51  ;;  %v11216_v5 = vpop.f32.mrb[219].mxu0  ;;  %v25915_v1 = vld [vmem:[#allocation79_spill] sm:$0xff] }
 0x78b   : > { %14038 = vmatmul.mubr.bf16.gmra.mrb[24].mxu1 %v20550_v24 }
 0x78c   : > { %v24205_v32 = vadd.f32 %v11408_v16, %v25913_v19  ;;  %v25916_v16 = vld [vmem:[#allocation81_spill] sm:$0xff] }
 0x78f   : > { %v11219_v53 = vpop.f32.mrb[220].mxu0 }
 0x790   : > { %v11413_v57 = vadd.f32 %v23647_v37, %v11219_v53  ;;  %v11221_v14 = vpop.f32.mrb[221].mxu0  ;;  %v25917_v53 = vld [vmem:[#allocation83_spill] sm:$0xff] }
 0x791   : > { %v11222_v26 = vpop.f32.mrb[222].mxu0 }
 0x792   : > { %v24209_v3 = vadd.f32 %v11413_v57, %v25914_v61  ;;  %v11416_v15 = vadd.f32 %v23652_v28, %v11222_v26  ;;  %v11224_v13 = vpop.f32.mrb[223].mxu0 }
 0x794   : > { %v24213_v18 = vadd.f32 %v11416_v15, %v25915_v1  ;;  %v25918_v15 = vld [vmem:[#allocation85_spill] sm:$0xff] }
 0x797   : > { %v11227_v2 = vpop.f32.mrb[224].mxu0 }
 0x798   : > { %v11421_v24 = vadd.f32 %v23661_v25, %v11227_v2  ;;  %v11229_v51 = vpop.f32.mrb[225].mxu0  ;;  %v25919_v2 = vld [vmem:[#allocation87_spill] sm:$0xff] }
 0x799   : > { %v11230_v36 = vpop.f32.mrb[226].mxu0 }
 0x79a   : > { %v24217_v5 = vadd.f32 %v11421_v24, %v25916_v16  ;;  %v11424_v37 = vadd.f32 %v23670_v12, %v11230_v36  ;;  %v11232_v19 = vpop.f32.mrb[227].mxu0 }
 0x79c   : > { %v24221_v57 = vadd.f32 %v11424_v37, %v25917_v53  ;;  %v25920_v37 = vld [vmem:[#allocation89_spill] sm:$0xff] }
 0x79f   : > { %v11235_v14 = vpop.f32.mrb[228].mxu0 }
 0x7a0   : > { %v11429_v28 = vadd.f32 %v23659_v6, %v11235_v14  ;;  %v11237_v26 = vpop.f32.mrb[229].mxu0  ;;  %v25921_v14 = vld [vmem:[#allocation91_spill] sm:$0xff] }
 0x7a1   : > { %v11238_v61 = vpop.f32.mrb[230].mxu0 }
 0x7a2   : > { %v24225_v13 = vadd.f32 %v11429_v28, %v25918_v15  ;;  %v11432_v25 = vadd.f32 %v23664_v49, %v11238_v61  ;;  %v11240_v1 = vpop.f32.mrb[231].mxu0 }
 0x7a4   : > { %v24229_v24 = vadd.f32 %v11432_v25, %v25919_v2  ;;  %v25922_v25 = vld [vmem:[#allocation92_spill] sm:$0xff] }
 0x7a7   : > { %v11243_v51 = vpop.f32.mrb[232].mxu0 }
 0x7a8   : > { %v11437_v12 = vadd.f32 %v23680_v8, %v11243_v51  ;;  %v11245_v36 = vpop.f32.mrb[233].mxu0  ;;  %v25923_v51 = vld [vmem:[#allocation93_spill] sm:$0xff] }
 0x7a9   : > { %v11246_v16 = vpop.f32.mrb[234].mxu0 }
 0x7aa   : > { %v24233_v19 = vadd.f32 %v11437_v12, %v25920_v37  ;;  %v11440_v6 = vadd.f32 %v23687_v34, %v11246_v16  ;;  %v11248_v53 = vpop.f32.mrb[235].mxu0 }
 0x7ac   : > { %v24237_v28 = vadd.f32 %v11440_v6, %v25921_v14  ;;  %v25924_v6 = vld [vmem:[#allocation94_spill] sm:$0xff] }
 0x7af   : > { %v11251_v26 = vpop.f32.mrb[236].mxu0 }
 0x7b0   : > { %v11445_v49 = vadd.f32 %v23677_v27, %v11251_v26  ;;  %v11253_v61 = vpop.f32.mrb[237].mxu0  ;;  %v25926_v26 = vld [vmem:[#allocation95_spill] sm:$0xff] }
 0x7b1   : > { %v11254_v15 = vpop.f32.mrb[238].mxu0 }
 0x7b2   : > { %v24241_v1 = vadd.f32 %v11445_v49, %v25922_v25  ;;  %v11448_v8 = vadd.f32 %v23683_v20, %v11254_v15  ;;  %v11256_v2 = vpop.f32.mrb[239].mxu0 }
 0x7b4   : > { %v24245_v12 = vadd.f32 %v11448_v8, %v25923_v51  ;;  %v25928_v8 = vld [vmem:[#allocation96_spill] sm:$0xff] }
 0x7b7   : > { %v11259_v36 = vpop.f32.mrb[240].mxu0 }
 0x7b8   : > { %v11453_v34 = vadd.f32 %v23700_v60, %v11259_v36  ;;  %v11261_v16 = vpop.f32.mrb[241].mxu0  ;;  %v14660_v36 = vld [vmem:[%s25554_s4] sm:$0xff] }
 0x7b9   : > { %v11262_v37 = vpop.f32.mrb[242].mxu0  ;;  %v25930_v16 = vld [vmem:[#allocation97_spill] sm:$0xff] }
 0x7ba   : > { %v24249_v53 = vadd.f32 %v11453_v34, %v25924_v6  ;;  %v11456_v27 = vadd.f32 %v23707_v9, %v11262_v37  ;;  %v11264_v14 = vpop.f32.mrb[243].mxu0  ;;  %v14661_v9 = vld [vmem:[%s25554_s4 + $0x8] sm:$0xff]  ;;  %v25564_v34 = vmov 0.0|0.0  }
 0x7bb   : > { %17365 = vmatprep.subr.bf16.mxu0 %v25564_v34 }
 0x7bc   : > { %25925 = vst [vmem:[#allocation70_spill] sm:$0xff] %v24249_v53  ;;  %v24253_v49 = vadd.f32 %v11456_v27, %v25926_v26 }
 0x7be   : > { %25927 = vst [vmem:[#allocation18_spill] sm:$0xff] %v24253_v49 }
 0x7bf   : > { %v11267_v61 = vpop.f32.mrb[244].mxu0 }
 0x7c0   : > { %v11461_v20 = vadd.f32 %v23697_v39, %v11267_v61  ;;  %v11269_v15 = vpop.f32.mrb[245].mxu0  ;;  %v17366_v39 = vpack.c.bf16 %v14661_v9, %v14660_v36  ;;  %v25934_v36 = vld [vmem:[#allocation99_spill] sm:$0xff] }
 0x7c1   : > { %v11270_v25 = vpop.f32.mrb[246].mxu0 }
 0x7c2   : > { %v24257_v2 = vadd.f32 %v11461_v20, %v25928_v8  ;;  %v11464_v60 = vadd.f32 %v23703_v33, %v11270_v25  ;;  %v11272_v51 = vpop.f32.mrb[247].mxu0  ;;  %17367 = vmatpush3.bf16.msra.mxu0 %v17366_v39  ;;  %v25932_v25 = vld [vmem:[#allocation98_spill] sm:$0xff] }
 0x7c3   : > { %17368 = vmatprep.subr.bf16.mxu0 %v25564_v34 }
 0x7c4   : > { %25929 = vst [vmem:[#allocation42_spill] sm:$0xff] %v24257_v2  ;;  %v24268_v37 = vadd.f32 %v11464_v60, %v25930_v16 }
 0x7c6   : > { %25931 = vst [vmem:[#allocation19_spill] sm:$0xff] %v24268_v37  ;;  %v24270_v6 = vpop.f32.mrb[240].mxu1 }
 0x7c7   : > { %v11275_v33 = vpop.f32.mrb[248].mxu0  ;;  %v13889_v27 = vpop.f32.mrb[241].mxu1 }
 0x7c8   : > { %v11469_v14 = vadd.f32 %v23720_v41, %v11275_v33  ;;  %v11277_v26 = vpop.f32.mrb[249].mxu0  ;;  %v24274_v61 = vpop.f32.mrb[242].mxu1 }
 0x7c9   : > { %v11278_v20 = vpop.f32.mrb[250].mxu0  ;;  %v13892_v15 = vpop.f32.mrb[243].mxu1 }
 0x7ca   : > { %v24277_v8 = vadd.f32 %v11469_v14, %v25932_v25  ;;  %v11472_v60 = vadd.f32 %v23727_v50, %v11278_v20  ;;  %v11280_v51 = vpop.f32.mrb[251].mxu0  ;;  %v14662_v14 = vld [vmem:[%s25554_s4 + $0x10] sm:$0xff]  ;;  %v14663_v50 = vld [vmem:[%s25554_s4 + $0x18] sm:$0xff] }
 0x7cb   : > { %v25936_v20 = vld [vmem:[#allocation100_spill] sm:$0xff] }
 0x7cc   : > { %25933 = vst [vmem:[#allocation44_spill] sm:$0xff] %v24277_v8  ;;  %v24281_v9 = vadd.f32 %v11472_v60, %v25934_v36  ;;  %v25938_v36 = vld [vmem:[#allocation101_spill] sm:$0xff] }
 0x7ce   : > { %25935 = vst [vmem:[#allocation72_spill] sm:$0xff] %v24281_v9  ;;  %v24283_v39 = vpop.f32.mrb[244].mxu1 }
 0x7cf   : > { %v11283_v16 = vpop.f32.mrb[252].mxu0  ;;  %v13897_v27 = vpop.f32.mrb[245].mxu1 }
 0x7d0   : > { %v11477_v41 = vadd.f32 %v23717_v54, %v11283_v16  ;;  %v11285_v33 = vpop.f32.mrb[253].mxu0  ;;  %v24286_v26 = vpop.f32.mrb[246].mxu1  ;;  %v17369_v54 = vpack.c.bf16 %v14663_v50, %v14662_v14  ;;  %v25940_v27 = vmov 0.0|0.0  }
 0x7d1   : > { %v11286_v34 = vpop.f32.mrb[254].mxu0  ;;  %v13900_v15 = vpop.f32.mrb[247].mxu1 }
 0x7d2   : > { %v24295_v25 = vadd.f32 %v11477_v41, %v25936_v20  ;;  %v11480_v60 = vadd.f32 %v23723_v48, %v11286_v34  ;;  %v11288_v51 = vpop.f32.mrb[255].mxu0  ;;  %17370 = vmatpush3.bf16.msra.mxu0 %v17369_v54  ;;  %v25941_v48 = vld [vmem:[#allocation102_spill] sm:$0xff] }
 0x7d3   : > { %17371 = vmatprep.subr.bf16.mxu0 %v25940_v27 }
 0x7d4   : > { %25937 = vst [vmem:[#allocation74_spill] sm:$0xff] %v24295_v25  ;;  %v24299_v16 = vadd.f32 %v11480_v60, %v25938_v36  ;;  %v25943_v60 = vld [vmem:[#allocation103_spill] sm:$0xff]  ;;  %v25953_v25 = vld [vmem:[#allocation109_spill] sm:$0xff] }
 0x7d6   : > { %25939 = vst [vmem:[#allocation20_spill] sm:$0xff] %v24299_v16  ;;  %v24302_v33 = vpop.f32.mrb[248].mxu1 }
 0x7d7   : > { %v11291_v15 = vpop.f32.mrb[0].mxu0  ;;  %v13905_v9 = vpop.f32.mrb[249].mxu1 }
 0x7d8   : > { %v11485_v8 = vadd.f32 %v23740_v31, %v11291_v15  ;;  %v11293_v49 = vpop.f32.mrb[1].mxu0  ;;  %v24305_v37 = vpop.f32.mrb[250].mxu1  ;;  %v14664_v9 = vld [vmem:[%s25554_s4 + $0x20] sm:$0xff]  ;;  %v14665_v31 = vld [vmem:[%s25554_s4 + $0x28] sm:$0xff] }
 0x7d9   : > { %v11294_v41 = vpop.f32.mrb[2].mxu0  ;;  %v13908_v20 = vpop.f32.mrb[251].mxu1  ;;  %v14666_v49 = vld [vmem:[%s25554_s4 + $0x30] sm:$0xff]  ;;  %v17372_v54 = vpack.c.bf16 %v14665_v31, %v14664_v9 }
 0x7da   : > { %v24308_v34 = vadd.f32 %v11485_v8, %v25941_v48  ;;  %v11488_v14 = vadd.f32 %v23747_v30, %v11294_v41  ;;  %v11296_v50 = vpop.f32.mrb[3].mxu0  ;;  %v14667_v30 = vld [vmem:[%s25554_s4 + $0x38] sm:$0xff] }
 0x7db   : > { %17373 = vmatpush3.bf16.msra.mxu0 %v17372_v54  ;;  %v25947_v54 = vld [vmem:[#allocation105_spill] sm:$0xff] }
 0x7dc   : > { %25942 = vst [vmem:[#allocation41_spill] sm:$0xff] %v24308_v34  ;;  %v24312_v51 = vadd.f32 %v11488_v14, %v25943_v60  ;;  %v17375_v14 = vpack.c.bf16 %v14667_v30, %v14666_v49  ;;  %17374 = vmatprep.subr.bf16.mxu0 %v25940_v27 }
 0x7de   : > { %25944 = vst [vmem:[#allocation21_spill] sm:$0xff] %v24312_v51  ;;  %v24323_v8 = vpop.f32.mrb[252].mxu1  ;;  %v25945_v51 = vld [vmem:[#allocation104_spill] sm:$0xff] }
 0x7df   : > { %v11299_v36 = vpop.f32.mrb[4].mxu0  ;;  %v13913_v15 = vpop.f32.mrb[253].mxu1  ;;  %17376 = vmatpush3.bf16.msra.mxu0 %v17375_v14 }
 0x7e0   : > { %v11493_v41 = vadd.f32 %v23737_v43, %v11299_v36  ;;  %v11301_v20 = vpop.f32.mrb[5].mxu0  ;;  %v24329_v48 = vpop.f32.mrb[254].mxu1  ;;  %v14668_v15 = vld [vmem:[%s25554_s4 + $0x40] sm:$0xff]  ;;  %v14669_v43 = vld [vmem:[%s25554_s4 + $0x48] sm:$0xff]  ;;  %17377 = vmatprep.subr.bf16.mxu0 %v25940_v27 }
 0x7e1   : > { %v11302_v50 = vpop.f32.mrb[6].mxu0  ;;  %v13916_v60 = vpop.f32.mrb[255].mxu1  ;;  %v17378_v30 = vpack.c.bf16 %v14669_v43, %v14668_v15  ;;  %v25951_v43 = vld [vmem:[#allocation107_spill] sm:$0xff] }
 0x7e2   : > { %v24333_v34 = vadd.f32 %v11493_v41, %v25945_v51  ;;  %v11496_v9 = vadd.f32 %v23743_v21, %v11302_v50  ;;  %v11304_v31 = vpop.f32.mrb[7].mxu0 }
 0x7e3   : > { %17379 = vmatpush3.bf16.msra.mxu0 %v17378_v30 }
 0x7e4   : > { %25946 = vst [vmem:[#allocation43_spill] sm:$0xff] %v24333_v34  ;;  %v24343_v49 = vadd.f32 %v11496_v9, %v25947_v54  ;;  %17380 = vmatprep.subr.bf16.mxu0 %v25940_v27  ;;  %v25949_v9 = vld [vmem:[#allocation106_spill] sm:$0xff] }
 0x7e6   : > { %25948 = vst [vmem:[#allocation76_spill] sm:$0xff] %v24343_v49  ;;  %v24346_v51 = vpop.f32.mrb[44].mxu1 }
 0x7e7   : > { %v11307_v36 = vpop.f32.mrb[8].mxu0  ;;  %v13921_v21 = vpop.f32.mrb[45].mxu1 }
 0x7e8   : > { %v11501_v41 = vadd.f32 %v23760_v10, %v11307_v36  ;;  %v11309_v20 = vpop.f32.mrb[9].mxu0  ;;  %v24349_v50 = vpop.f32.mrb[46].mxu1 }
 0x7e9   : > { %v11310_v60 = vpop.f32.mrb[10].mxu0  ;;  %v13924_v31 = vpop.f32.mrb[47].mxu1 }
 0x7ea   : > { %v24353_v54 = vadd.f32 %v11501_v41, %v25949_v9  ;;  %v11504_v14 = vadd.f32 %v23767_v35, %v11310_v60  ;;  %v11312_v15 = vpop.f32.mrb[11].mxu0  ;;  %v14670_v9 = vld [vmem:[%s25554_s4 + $0x50] sm:$0xff] }
 0x7eb   : > { %v25955_v15 = vld [vmem:[#allocation111_spill] sm:$0xff] }
 0x7ec   : > { %25950 = vst [vmem:[#allocation78_spill] sm:$0xff] %v24353_v54  ;;  %v24357_v49 = vadd.f32 %v11504_v14, %v25951_v43  ;;  %v14671_v14 = vld [vmem:[%s25554_s4 + $0x58] sm:$0xff] }
 0x7ee   : > { %25952 = vst [vmem:[#allocation22_spill] sm:$0xff] %v24357_v49  ;;  %v24359_v21 = vpop.f32.mrb[48].mxu1 }
 0x7ef   : > { %v11315_v10 = vpop.f32.mrb[12].mxu0  ;;  %v13929_v36 = vpop.f32.mrb[49].mxu1 }
 0x7f0   : > { %v11509_v20 = vadd.f32 %v23757_v52, %v11315_v10  ;;  %v11317_v30 = vpop.f32.mrb[13].mxu0  ;;  %v24362_v34 = vpop.f32.mrb[50].mxu1  ;;  %v17381_v52 = vpack.c.bf16 %v14671_v14, %v14670_v9  ;;  %v25566_v14 = vmov 0.0  }
 0x7f1   : > { %v11318_v31 = vpop.f32.mrb[14].mxu0  ;;  %v13932_v16 = vpop.f32.mrb[51].mxu1  ;;  %v14674_v30 = vld [vmem:[%s25554_s4 + $0x70] sm:$0xff]  ;;  %17362 = vmatprep.mubr.msk.f32.mxu0 %vm20671_vm0, %v25566_v14 }
 0x7f2   : > { %v24365_v41 = vadd.f32 %v11509_v20, %v25953_v25  ;;  %v11512_v35 = vadd.f32 %v23763_v63, %v11318_v31  ;;  %v11320_v60 = vpop.f32.mrb[15].mxu0  ;;  %17382 = vmatpush3.bf16.msra.mxu0 %v17381_v52  ;;  %v14672_v63 = vld [vmem:[%s25554_s4 + $0x60] sm:$0xff]  ;;  %v14673_v25 = vld [vmem:[%s25554_s4 + $0x68] sm:$0xff]  ;;  %v14675_v31 = vld [vmem:[%s25554_s4 + $0x78] sm:$0xff] }
 0x7f3   : > { %17383 = vmatprep.subr.bf16.mxu0 %v25940_v27  ;;  %v17384_v20 = vpack.c.bf16 %v14673_v25, %v14672_v63  ;;  %v17387_v63 = vpack.c.bf16 %v14675_v31, %v14674_v30  ;;  %v25957_v25 = vld [vmem:[#allocation113_spill] sm:$0xff] }
 0x7f4   : > { %25954 = vst [vmem:[#allocation46_spill] sm:$0xff] %v24365_v41  ;;  %v24375_v43 = vadd.f32 %v11512_v35, %v25955_v15 }
 0x7f6   : > { %25956 = vst [vmem:[#allocation23_spill] sm:$0xff] %v24375_v43  ;;  %v24377_v16 = vpop.f32.mrb[52].mxu1  ;;  %17385 = vmatpush3.bf16.msra.mxu0 %v17384_v20 }
 0x7f7   : > { %v11323_v10 = vpop.f32.mrb[16].mxu0  ;;  %v13937_v36 = vpop.f32.mrb[53].mxu1  ;;  %17386 = vmatprep.subr.bf16.mxu0 %v25940_v27  ;;  %v14760_v27 = vld [vmem:[%s25556_s6 + $0x18] sm:$0xff] }
 0x7f8   : > { %v11517_v35 = vadd.f32 %v23780_v29, %v11323_v10  ;;  %v11325_v60 = vpop.f32.mrb[17].mxu0  ;;  %v24393_v9 = vpop.f32.mrb[54].mxu1  ;;  %v24404_v29 = vld [vmem:[%s25553_s3] ss:$0 sm:$0xff]  ;;  %v25959_v10 = vld [vmem:[#allocation115_spill] sm:$0xff] }
 0x7f9   : > { %v11326_v52 = vpop.f32.mrb[18].mxu0  ;;  %v13940_v15 = vpop.f32.mrb[55].mxu1  ;;  %v14291_v20 = vmul.f32 %v24404_v29, %v23334_v7  ;;  %v14289_v30 = vmul.f32 %v24404_v29, %v23339_v44  ;;  %v14292_v7 = vmul.f32 %v24404_v29, %v23343_v47  ;;  %v14290_v44 = vmul.f32 %v24404_v29, %v23346_v42  ;;  %v25962_v42 = vld [vmem:[#allocation117_spill] sm:$0xff] }
 0x7fa   : > { %v24397_v36 = vadd.f32 %v11517_v35, %v25957_v25  ;;  %v11520_v43 = vadd.f32 %v23787_v17, %v11326_v52  ;;  %v11328_v41 = vpop.f32.mrb[19].mxu0  ;;  %17388 = vmatpush3.bf16.msra.mxu0 %v17387_v63  ;;  %v14758_v17 = vld [vmem:[%s25556_s6 + $0x8] sm:$0xff] }
 0x7fb   : > { %v24424_v41 = vld [vmem:[%s25553_s3 + $0x1] ss:$0 sm:$0xff]  ;;  %v17389_v52 = vpack.c.bf16 %v14760_v27, %v14758_v17 }
 0x7fc   : > { %25958 = vst [vmem:[#allocation48_spill] sm:$0xff] %v24397_v36  ;;  %v24407_v60 = vadd.f32 %v11520_v43, %v25959_v10  ;;  %v14295_v10 = vmul.f32 %v24404_v29, %v23366_v62  ;;  %v24436_v36 = vadd.f32 %v24424_v41, %v14291_v20  ;;  %v24439_v47 = vadd.f32 %v24424_v41, %v14289_v30  ;;  %v25965_v30 = vld [vmem:[#allocation119_spill] sm:$0xff] }
 0x7fd   : > { %17390 = vmatprep.subr.bf16.mxu0 %v17389_v52  ;;  %v24446_v27 = vadd.f32 %v24424_v41, %v14292_v7  ;;  %v24449_v62 = vadd.f32 %v24424_v41, %v14290_v44  ;;  %v14296_v20 = vmul.f32 %v24404_v29, %v23375_v0  ;;  %v25968_v44 = vld [vmem:[#allocation30_spill] sm:$0xff] }
 0x7fe   : > { %25960 = vst [vmem:[#allocation80_spill] sm:$0xff] %v24407_v60  ;;  %v24413_v31 = vpop.f32.mrb[56].mxu1  ;;  %25961 = vst [vmem:[#allocation82_spill] sm:$0xff] %v24439_v47  ;;  %v24459_v52 = vadd.f32 %v24424_v41, %v14295_v10 }
 0x7ff   : > { %v11331_v43 = vpop.f32.mrb[20].mxu0  ;;  %v13945_v35 = vpop.f32.mrb[57].mxu1  ;;  %25964 = vst [vmem:[#allocation45_spill] sm:$0xff] %v24449_v62 }
 0x800   : > { %v11525_v15 = vadd.f32 %v23777_v55, %v11331_v43  ;;  %v11333_v63 = vpop.f32.mrb[21].mxu0  ;;  %v24431_v25 = vpop.f32.mrb[58].mxu1  ;;  %25967 = vst [vmem:[#allocation47_spill] sm:$0xff] %v24459_v52 }
 0x801   : > { %v11334_v14 = vpop.f32.mrb[22].mxu0  ;;  %v13948_v60 = vpop.f32.mrb[59].mxu1 }
 0x802   : > { %v24442_v35 = vadd.f32 %v11525_v15, %v25962_v42  ;;  %v11528_v55 = vadd.f32 %v23783_v46, %v11334_v14  ;;  %v11336_v17 = vpop.f32.mrb[23].mxu0  ;;  %v14293_v60 = vmul.f32 %v24404_v29, %v23371_v22  ;;  %v14294_v46 = vmul.f32 %v24404_v29, %v23378_v11  ;;  %v25969_v22 = vld [vmem:[#allocation55_spill] sm:$0xff]  ;;  %v25971_v11 = vld [vmem:[#allocation114_spill] sm:$0xff] }
 0x803   : > { %v14299_v15 = vmul.f32 %v24404_v29, %v25968_v44  ;;  %v14297_v63 = vmul.f32 %v24404_v29, %v25969_v22  ;;  %v24481_v44 = vadd.f32 %v24424_v41, %v14296_v20  ;;  %v25973_v22 = vld [vmem:[#allocation31_spill] sm:$0xff] }
 0x804   : > { %25963 = vst [vmem:[#allocation24_spill] sm:$0xff] %v24442_v35  ;;  %v24456_v43 = vadd.f32 %v11528_v55, %v25965_v30  ;;  %v25970_v55 = vld [vmem:[#allocation112_spill] sm:$0xff]  ;;  %v14298_v30 = vmul.f32 %v24404_v29, %v25971_v11  ;;  %v14303_v35 = vmul.f32 %v24404_v29, %v25973_v22  ;;  %v24490_v11 = vadd.f32 %v24424_v41, %v14294_v46 }
 0x805   : > { %v14300_v17 = vmul.f32 %v24404_v29, %v25970_v55  ;;  %25972 = vst [vmem:[#allocation84_spill] sm:$0xff] %v24481_v44  ;;  %v24496_v2 = vadd.f32 %v24424_v41, %v14299_v15 }
 0x806   : > { %25966 = vst [vmem:[#allocation25_spill] sm:$0xff] %v24456_v43  ;;  %v24469_v0 = vpop.f32.mrb[60].mxu1  ;;  %v24478_v43 = vadd.f32 %v24424_v41, %v14293_v60  ;;  %25974 = vst [vmem:[#allocation86_spill] sm:$0xff] %v24490_v11 }
 0x807   : > { %v13953_v14 = vpop.f32.mrb[61].mxu1  ;;  %v17292_v7 = vpop.f32.mrb[24].mxu0  ;;  %25976 = vst [vmem:[#allocation26_spill] sm:$0xff] %v24496_v2  ;;  %v24506_v55 = vadd.f32 %v24424_v41, %v14300_v17  ;;  %v25981_v17 = vld [vmem:[#allocation32_spill] sm:$0xff] }
 0x808   : > { %v14089_v42 = vadd.f32 %v17292_v7, %v24283_v39  ;;  %v24486_v10 = vpop.f32.mrb[62].mxu1  ;;  %v14080_v49 = vpop.f32.mrb[25].mxu0  ;;  %v25975_v14 = vld [vmem:[#allocation52_spill] sm:$0xff]  ;;  %v24499_v39 = vadd.f32 %v24424_v41, %v14297_v63 }
 0x809   : > { %v14301_v60 = vmul.f32 %v24404_v29, %v25975_v14  ;;  %v14081_v54 = vadd.f32 %v14080_v49, %v24270_v6  ;;  %v13956_v20 = vpop.f32.mrb[63].mxu1  ;;  %v17293_v53 = vpop.f32.mrb[26].mxu0  ;;  %25978 = vst [vmem:[#allocation27_spill] sm:$0xff] %v24506_v55  ;;  %v24509_v14 = vadd.f32 %v24424_v41, %v14298_v30 }
 0x80a   : > { %25977 = vst [vmem:[#allocation49_spill] sm:$0xff] %v24499_v39  ;;  %v24502_v7 = vadd.f32 %v14089_v42, %v24171_v40  ;;  %v14092_v22 = vadd.f32 %v17293_v53, %v24286_v26  ;;  %v14083_v46 = vpop.f32.mrb[27].mxu0  ;;  %v24518_v40 = vadd.f32 %v24424_v41, %v14303_v35  ;;  %v25983_v35 = vld [vmem:[#allocation54_spill] sm:$0xff] }
 0x80b   : > { %25979 = vst [vmem:[#allocation50_spill] sm:$0xff] %v24509_v14  ;;  %v24512_v6 = vadd.f32 %v14081_v54, %v24159_v45  ;;  %v14084_v49 = vadd.f32 %v14083_v46, %v24274_v61  ;;  %v24525_v42 = vadd.f32 %v24424_v41, %v14301_v60  ;;  %v14304_v45 = vmul.f32 %v24404_v29, %v25981_v17  ;;  %v25982_v54 = vld [vmem:[#allocation68_spill] sm:$0xff]  ;;  %v25985_v17 = vld [vmem:[#allocation118_spill] sm:$0xff] }
 0x80c   : > { %25980 = vst [vmem:[#allocation88_spill] sm:$0xff] %v24518_v40  ;;  %v24521_v53 = vadd.f32 %v14092_v22, %v24175_v4  ;;  %v14302_v46 = vmul.f32 %v24404_v29, %v25983_v35  ;;  %v25984_v4 = vld [vmem:[#allocation116_spill] sm:$0xff]  ;;  %v25987_v35 = vld [vmem:[#allocation34_spill] sm:$0xff] }
 0x80d   : > { %v24530_v61 = vadd.f32 %v14084_v49, %v25982_v54  ;;  %v14307_v22 = vmul.f32 %v24404_v29, %v25984_v4  ;;  %v14305_v49 = vmul.f32 %v24404_v29, %v25985_v17  ;;  %v25986_v54 = vld [vmem:[#allocation10_spill] sm:$0xff]  ;;  %v14306_v2 = vmul.f32 %v24404_v29, %v25987_v35  ;;  %v25988_v4 = vld [vmem:[#allocation11_spill] sm:$0xff] }
 0x80e   : > { %v24538_v63 = vpop.f32.mrb[64].mxu1  ;;  %v14308_v30 = vmul.f32 %v24404_v29, %v25986_v54  ;;  %v14311_v11 = vmul.f32 %v24404_v29, %v25988_v4  ;;  %v24556_v52 = vadd.f32 %v24424_v41, %v14304_v45  ;;  %v24562_v39 = vadd.f32 %v24424_v41, %v14302_v46  ;;  %v25996_v46 = vld [vmem:[#allocation56_spill] sm:$0xff] }
 0x80f   : > { %v13961_v15 = vpop.f32.mrb[65].mxu1  ;;  %v17296_v20 = vpop.f32.mrb[28].mxu0  ;;  %v24572_v17 = vadd.f32 %v24424_v41, %v14305_v49  ;;  %v25999_v49 = vld [vmem:[#allocation12_spill] sm:$0xff] }
 0x810   : > { %v14105_v60 = vadd.f32 %v17296_v20, %v24323_v8  ;;  %v24552_v55 = vpop.f32.mrb[66].mxu1  ;;  %v14096_v26 = vpop.f32.mrb[29].mxu0  ;;  %25989 = vst [vmem:[#allocation90_spill] sm:$0xff] %v24556_v52  ;;  %v25990_v15 = vld [vmem:[#allocation36_spill] sm:$0xff]  ;;  %25991 = vst [vmem:[#allocation120_spill] sm:$0xff] %v24562_v39  ;;  %v24565_v8 = vadd.f32 %v24424_v41, %v14307_v22 }
 0x811   : > { %v14309_v54 = vmul.f32 %v24404_v29, %v25990_v15  ;;  %v14097_v44 = vadd.f32 %v14096_v26, %v24302_v33  ;;  %v13964_v40 = vpop.f32.mrb[67].mxu1  ;;  %v17297_v35 = vpop.f32.mrb[30].mxu0  ;;  %v24575_v15 = vadd.f32 %v24424_v41, %v14308_v30  ;;  %v24582_v26 = vadd.f32 %v24424_v41, %v14306_v2 }
 0x812   : > { %25992 = vst [vmem:[#allocation121_spill] sm:$0xff] %v24565_v8  ;;  %v24568_v20 = vadd.f32 %v14105_v60, %v24192_v38  ;;  %v14108_v4 = vadd.f32 %v17297_v35, %v24329_v48  ;;  %v14099_v45 = vpop.f32.mrb[31].mxu0  ;;  %v24585_v38 = vadd.f32 %v24424_v41, %v14311_v11  ;;  %v14312_v48 = vmul.f32 %v24404_v29, %v25996_v46 }
 0x813   : > { %25993 = vst [vmem:[#allocation122_spill] sm:$0xff] %v24575_v15  ;;  %v24578_v33 = vadd.f32 %v14097_v44, %v24182_v58  ;;  %v14100_v40 = vadd.f32 %v14099_v45, %v24305_v37  ;;  %25994 = vst [vmem:[#allocation28_spill] sm:$0xff] %v24582_v26  ;;  %v24594_v60 = vadd.f32 %v24424_v41, %v14309_v54  ;;  %v25998_v58 = vld [vmem:[#allocation58_spill] sm:$0xff] }
 0x814   : > { %25995 = vst [vmem:[#allocation51_spill] sm:$0xff] %v24585_v38  ;;  %v24590_v22 = vadd.f32 %v14108_v4, %v24196_v59  ;;  %v14310_v37 = vmul.f32 %v24404_v29, %v25998_v58  ;;  %v14315_v35 = vmul.f32 %v24404_v29, %v25999_v49  ;;  %v26000_v59 = vld [vmem:[#allocation33_spill] sm:$0xff] }
 0x815   : > { %25997 = vst [vmem:[#allocation108_spill] sm:$0xff] %v24594_v60  ;;  %v24599_v2 = vadd.f32 %v14100_v40, %v24186_v56  ;;  %v14313_v4 = vmul.f32 %v24404_v29, %v26000_v59  ;;  %v26001_v58 = vld [vmem:[#allocation13_spill] sm:$0xff]  ;;  %v26002_v40 = vld [vmem:[#allocation35_spill] sm:$0xff]  ;;  %v24618_v59 = vadd.f32 %v24424_v41, %v14312_v48 }
 0x816   : > { %v24607_v45 = vpop.f32.mrb[68].mxu1  ;;  %v14316_v56 = vmul.f32 %v24404_v29, %v26001_v58  ;;  %v14314_v30 = vmul.f32 %v24404_v29, %v26002_v40  ;;  %v24625_v58 = vadd.f32 %v24424_v41, %v14310_v37  ;;  %v26005_v40 = vld [vmem:[#allocation60_spill] sm:$0xff]  ;;  %v24631_v48 = vadd.f32 %v24424_v41, %v14315_v35  ;;  %v26014_v60 = vld [vmem:[#allocation15_spill] sm:$0xff] }
 0x817   : > { %v13969_v44 = vpop.f32.mrb[69].mxu1  ;;  %v17300_v11 = vpop.f32.mrb[32].mxu0  ;;  %26003 = vst [vmem:[#allocation110_spill] sm:$0xff] %v24618_v59 }
 0x818   : > { %v14121_v39 = vadd.f32 %v17300_v11, %v24359_v21  ;;  %v24621_v54 = vpop.f32.mrb[70].mxu1  ;;  %v14112_v46 = vpop.f32.mrb[33].mxu0  ;;  %26004 = vst [vmem:[#allocation29_spill] sm:$0xff] %v24625_v58  ;;  %v14319_v44 = vmul.f32 %v24404_v29, %v26005_v40  ;;  %26006 = vst [vmem:[#allocation53_spill] sm:$0xff] %v24631_v48  ;;  %v24634_v21 = vadd.f32 %v24424_v41, %v14313_v4  ;;  %v24639_v11 = vld [vmem:[%s25553_s3 + $0x2] ss:$0 sm:$0xff] }
 0x819   : > { %v14113_v52 = vadd.f32 %v14112_v46, %v24346_v51  ;;  %v13972_v8 = vpop.f32.mrb[71].mxu1  ;;  %v17301_v49 = vpop.f32.mrb[34].mxu0  ;;  %v24646_v51 = vadd.f32 %v24424_v41, %v14316_v56  ;;  %v14418_v35 = vmul.f32 %v24639_v11, %v24530_v61  ;;  %v26010_v46 = vld [vmem:[#allocation62_spill] sm:$0xff] }
 0x81a   : > { %26007 = vst [vmem:[#allocation57_spill] sm:$0xff] %v24634_v21  ;;  %v24642_v37 = vadd.f32 %v14121_v39, %v24209_v3  ;;  %v14124_v40 = vadd.f32 %v17301_v49, %v24362_v34  ;;  %v14115_v15 = vpop.f32.mrb[35].mxu0  ;;  %v24649_v8 = vadd.f32 %v24424_v41, %v14314_v30  ;;  %v14317_v38 = vmul.f32 %v24404_v29, %v26010_v46  ;;  %v26011_v3 = vld [vmem:[#allocation14_spill] sm:$0xff] }
 0x81b   : > { %26008 = vst [vmem:[#allocation59_spill] sm:$0xff] %v24646_v51  ;;  %v24654_v4 = vadd.f32 %v14113_v52, %v24201_v23  ;;  %v14320_v39 = vmul.f32 %v24404_v29, %v26011_v3  ;;  %v14116_v56 = vadd.f32 %v14115_v15, %v24349_v50  ;;  %v24667_v61 = vadd.f32 %v24424_v41, %v14319_v44  ;;  %v26013_v46 = vld [vmem:[#allocation38_spill] sm:$0xff] }
 0x81c   : > { %26009 = vst [vmem:[#allocation61_spill] sm:$0xff] %v24649_v8  ;;  %v24661_v34 = vadd.f32 %v14124_v40, %v24213_v18  ;;  %v14417_v23 = vmul.f32 %v24639_v11, %v24512_v6  ;;  %v14318_v3 = vmul.f32 %v24404_v29, %v26013_v46  ;;  %v14321_v18 = vmul.f32 %v24404_v29, %v26014_v60  ;;  %v24679_v50 = vld [vmem:[%s25553_s3 + $0x3] ss:$0 sm:$0xff] }
 0x81d   : > { %26012 = vst [vmem:[#allocation63_spill] sm:$0xff] %v24667_v61  ;;  %v14248_v15 = vadd.f32 %v14116_v56, %v24205_v32  ;;  %v24688_v46 = vadd.f32 %v24679_v50, %v14418_v35  ;;  %v24691_v52 = vadd.f32 %v24424_v41, %v14317_v38  ;;  %v24694_v59 = vadd.f32 %v24424_v41, %v14320_v39  ;;  %v26017_v32 = vld [vmem:[#allocation40_spill] sm:$0xff] }
 0x81e   : > { %v24682_v44 = vpop.f32.mrb[72].mxu1  ;;  %v14322_v56 = vmul.f32 %v24404_v29, %v26017_v32  ;;  %v14419_v35 = vmul.f32 %v24639_v11, %v24502_v7  ;;  %v24709_v48 = vadd.f32 %v24424_v41, %v14318_v3 }
 0x81f   : > { %26015 = vst [vmem:[#allocation65_spill] sm:$0xff] %v24688_v46  ;;  %v13977_v49 = vpop.f32.mrb[73].mxu1  ;;  %v17304_v60 = vpop.f32.mrb[36].mxu0  ;;  %26016 = vst [vmem:[#allocation67_spill] sm:$0xff] %v24691_v52 }
 0x820   : > { %v14137_v40 = vadd.f32 %v17304_v60, %v24413_v31  ;;  %v24699_v58 = vpop.f32.mrb[74].mxu1  ;;  %v14128_v6 = vpop.f32.mrb[37].mxu0  ;;  %v24705_v49 = vadd.f32 %v24679_v50, %v14417_v23  ;;  %26019 = vst [vmem:[#allocation71_spill] sm:$0xff] %v24709_v48  ;;  %v24712_v31 = vadd.f32 %v24424_v41, %v14321_v18  ;;  %v26021_v60 = vld [vmem:[#allocation64_spill] sm:$0xff]  ;;  %v14420_v23 = vmul.f32 %v24639_v11, %v24521_v53 }
 0x821   : > { %v14129_v38 = vadd.f32 %v14128_v6, %v24377_v16  ;;  %v13980_v39 = vpop.f32.mrb[75].mxu1  ;;  %v17305_v51 = vpop.f32.mrb[38].mxu0  ;;  %v14323_v32 = vmul.f32 %v24404_v29, %v26021_v60  ;;  %v25604_v16 = vmax.f32 %v24688_v46, 0.0  ;;  %v24729_v60 = vadd.f32 %v24424_v41, %v14322_v56  ;;  %v26024_v56 = vld [vmem:[#allocation66_spill] sm:$0xff]  ;;  %v26025_v18 = vld [vmem:[#allocation16_spill] sm:$0xff] }
 0x822   : > { %26018 = vst [vmem:[#allocation69_spill] sm:$0xff] %v24705_v49  ;;  %26020 = vst [vmem:[#allocation73_spill] sm:$0xff] %v24712_v31  ;;  %v24717_v30 = vadd.f32 %v14137_v40, %v24225_v13  ;;  %v14131_v7 = vpop.f32.mrb[39].mxu0  ;;  %v14140_v3 = vadd.f32 %v17305_v51, %v24431_v25  ;;  %v24733_v40 = vadd.f32 %v24679_v50, %v14419_v35 }
 0x823   : > { %v24723_v6 = vadd.f32 %v14129_v38, %v24217_v5  ;;  %26022 = vst [vmem:[#allocation75_spill] sm:$0xff] %v24729_v60  ;;  %v14132_v13 = vadd.f32 %v14131_v7, %v24393_v9  ;;  %v14421_v5 = vmul.f32 %v24639_v11, %v24578_v33  ;;  %v24743_v51 = vadd.f32 %v24424_v41, %v14323_v32 }
 0x824   : > { %26023 = vst [vmem:[#allocation77_spill] sm:$0xff] %v24733_v40  ;;  %v24739_v38 = vadd.f32 %v14140_v3, %v24229_v24  ;;  %v14324_v39 = vmul.f32 %v24404_v29, %v26024_v56  ;;  %v14325_v33 = vmul.f32 %v24404_v29, %v26025_v18  ;;  %v24756_v24 = vadd.f32 %v24679_v50, %v14420_v23 }
 0x825   : > { %v24748_v9 = vadd.f32 %v14132_v13, %v24221_v57  ;;  %v26027_v3 = vmax.f32 %v24449_v62, 0.0  ;;  %v14423_v13 = vmul.f32 %v24639_v11, %v24568_v20  ;;  %v14426_v7 = vmul.f32 %v24639_v11, %v14248_v15  ;;  %v26043_v15 = vld [vmem:[#allocation42_spill] sm:$0xff] }
 0x826   : > { %v24750_v35 = vpop.f32.mrb[76].mxu1  ;;  %26026 = vst [vmem:[#allocation79_spill] sm:$0xff] %v24756_v24  ;;  %v26028_v62 = vmax.f32 %v24439_v47, 0.0 }
 0x827   : > { %v14542_v32 = vadd.f32 %v25604_v16, %v26027_v3  ;;  %v13985_v25 = vpop.f32.mrb[77].mxu1  ;;  %v17308_v56 = vpop.f32.mrb[40].mxu0  ;;  %v26029_v3 = vmax.f32 %v24705_v49, 0.0  ;;  %v24775_v16 = vadd.f32 %v24679_v50, %v14421_v5  ;;  %v25608_v5 = vmax.f32 %v24756_v24, 0.0 }
 0x828   : > { %v14153_v53 = vadd.f32 %v17308_v56, %v24538_v63  ;;  %v24767_v18 = vpop.f32.mrb[78].mxu1  ;;  %v14144_v23 = vpop.f32.mrb[41].mxu0  ;;  %v24780_v63 = vadd.f32 %v24424_v41, %v14324_v39  ;;  %v14425_v56 = vmul.f32 %v24639_v11, %v24654_v4  ;;  %v14422_v39 = vmul.f32 %v24639_v11, %v24599_v2 }
 0x829   : > { %v14541_v25 = vadd.f32 %v26029_v3, %v26028_v62  ;;  %26030 = vst [vmem:[#allocation81_spill] sm:$0xff] %v24775_v16  ;;  %v14145_v57 = vadd.f32 %v14144_v23, %v24469_v0  ;;  %v13988_v20 = vpop.f32.mrb[79].mxu1  ;;  %v17309_v46 = vpop.f32.mrb[42].mxu0  ;;  %v24786_v62 = vadd.f32 %v24424_v41, %v14325_v33  ;;  %v24791_v23 = vadd.f32 %v24679_v50, %v14423_v13  ;;  %v26035_v13 = vld [vmem:[#allocation37_spill] sm:$0xff] }
 0x82a   : > { %v14257_v31 = vadd.f32 %v14153_v53, %v24241_v1  ;;  %v14147_v47 = vpop.f32.mrb[43].mxu0  ;;  %v24796_v20 = vadd.f32 %v24679_v50, %v14426_v7  ;;  %v14156_v1 = vadd.f32 %v17309_v46, %v24552_v55  ;;  %v26033_v4 = vmax.f32 %v24436_v36, 0.0 }
 0x82b   : > { %v14581_v3 = vadd.f32 %v14542_v32, %v14541_v25  ;;  %v14255_v0 = vadd.f32 %v14145_v57, %v24233_v19  ;;  %26031 = vst [vmem:[#allocation83_spill] sm:$0xff] %v24791_v23  ;;  %v26034_v53 = vmax.f32 %v24733_v40, 0.0  ;;  %v14427_v19 = vmul.f32 %v24639_v11, %v24642_v37 }
 0x82c   : > { %26032 = vst [vmem:[#allocation85_spill] sm:$0xff] %v24796_v20  ;;  %v14148_v57 = vadd.f32 %v14147_v47, %v24486_v10  ;;  %v24809_v2 = vmul.f32 %v24404_v29, %v26035_v13  ;;  %v24812_v7 = vadd.f32 %v24679_v50, %v14425_v56  ;;  %v14428_v55 = vmul.f32 %v24639_v11, %v24661_v34 }
 0x82d   : > { %v14543_v33 = vadd.f32 %v26034_v53, %v26033_v4  ;;  %v14258_v46 = vadd.f32 %v14156_v1, %v24245_v12  ;;  %v26037_v4 = vmax.f32 %v24446_v27, 0.0  ;;  %v14424_v47 = vmul.f32 %v24639_v11, %v24590_v22 }
 0x82e   : > { %26036 = vst [vmem:[#allocation87_spill] sm:$0xff] %v24812_v7  ;;  %v13991_v25 = vpop.f32.mrb[0].mxu1  ;;  %v14256_v10 = vadd.f32 %v14148_v57, %v24237_v28  ;;  %v24826_v34 = vadd.f32 %v24679_v50, %v14422_v39  ;;  %v24835_v28 = vadd.f32 %v24679_v50, %v14427_v19  ;;  %v14429_v19 = vmul.f32 %v24639_v11, %v24723_v6 }
 0x82f   : > { %v14544_v37 = vadd.f32 %v25608_v5, %v26037_v4  ;;  %v14582_v53 = vadd.f32 %v14581_v3, %v14543_v33  ;;  %v13993_v13 = vpop.f32.mrb[1].mxu1  ;;  %v17312_v56 = vpop.f32.mrb[44].mxu0  ;;  %v26039_v3 = vmax.f32 %v24478_v43, 0.0  ;;  %v26040_v33 = vmax.f32 %v24775_v16, 0.0 }
 0x830   : > { %26038 = vst [vmem:[#allocation89_spill] sm:$0xff] %v24826_v34  ;;  %v14169_v1 = vadd.f32 %v17312_v56, %v24682_v44  ;;  %v13994_v32 = vpop.f32.mrb[2].mxu1  ;;  %v14160_v24 = vpop.f32.mrb[45].mxu0  ;;  %26041 = vst [vmem:[#allocation91_spill] sm:$0xff] %v24835_v28  ;;  %v14434_v57 = vmul.f32 %v24639_v11, %v14256_v10  ;;  %v24841_v44 = vadd.f32 %v24679_v50, %v14428_v55  ;;  %v26044_v10 = vld [vmem:[#allocation70_spill] sm:$0xff]  ;;  %v26046_v55 = vmax.f32 %v24796_v20, 0.0 }
 0x831   : > { %v14545_v22 = vadd.f32 %v26040_v33, %v26039_v3  ;;  %v14161_v4 = vadd.f32 %v14160_v24, %v24607_v45  ;;  %v13996_v39 = vpop.f32.mrb[3].mxu1  ;;  %v17313_v13 = vpop.f32.mrb[46].mxu0  ;;  %v14433_v56 = vmul.f32 %v24639_v11, %v14255_v0  ;;  %v14583_v33 = vadd.f32 %v14582_v53, %v14544_v37  ;;  %v26054_v24 = vld [vmem:[#allocation47_spill] sm:$0xff] }
 0x832   : > { %26042 = vst [vmem:[#allocation92_spill] sm:$0xff] %v24841_v44  ;;  %v24845_v12 = vadd.f32 %v14169_v1, %v26043_v15  ;;  %v14163_v3 = vpop.f32.mrb[47].mxu0  ;;  %v14172_v45 = vadd.f32 %v17313_v13, %v24699_v58  ;;  %v26045_v39 = vmax.f32 %v24509_v14, 0.0  ;;  %v24857_v0 = vadd.f32 %v24679_v50, %v14434_v57  ;;  %v26048_v58 = vld [vmem:[#allocation19_spill] sm:$0xff]  ;;  %v26058_v57 = vld [vmem:[#allocation86_spill] sm:$0xff] }
 0x833   : > { %v14259_v16 = vadd.f32 %v14161_v4, %v26044_v10  ;;  %v14164_v15 = vadd.f32 %v14163_v3, %v24621_v54  ;;  %v24861_v37 = vadd.f32 %v24679_v50, %v14424_v47  ;;  %v14435_v53 = vmul.f32 %v24639_v11, %v14257_v31  ;;  %v26049_v4 = vld [vmem:[#allocation49_spill] sm:$0xff]  ;;  %v26053_v54 = vld [vmem:[#allocation18_spill] sm:$0xff] }
 0x834   : > { %v14550_v5 = vadd.f32 %v26046_v55, %v26045_v39  ;;  %26047 = vst [vmem:[#allocation93_spill] sm:$0xff] %v24857_v0  ;;  %v24866_v1 = vadd.f32 %v14172_v45, %v26048_v58  ;;  %v26050_v13 = vmax.f32 %v26049_v4, 0.0  ;;  %v26051_v10 = vmax.f32 %v24812_v7, 0.0 }
 0x835   : > { %v24874_v55 = vadd.f32 %v24679_v50, %v14433_v56  ;;  %v14260_v47 = vadd.f32 %v14164_v15, %v26053_v54  ;;  %v26055_v6 = vmax.f32 %v26054_v24, 0.0  ;;  %v26056_v31 = vmax.f32 %v24791_v23, 0.0  ;;  %v26061_v23 = vld [vmem:[#allocation26_spill] sm:$0xff] }
 0x836   : > { %v14549_v39 = vadd.f32 %v26051_v10, %v26050_v13  ;;  %v13999_v3 = vpop.f32.mrb[4].mxu1  ;;  %v24883_v45 = vadd.f32 %v14583_v33, %v14545_v22  ;;  %v14431_v58 = vmul.f32 %v24639_v11, %v24717_v30  ;;  %v24888_v13 = vadd.f32 %v24679_v50, %v14429_v19 }
 0x837   : > { %26052 = vst [vmem:[#allocation94_spill] sm:$0xff] %v24874_v55  ;;  %v24881_v20 = vadd.f32 %v26056_v31, %v26055_v6  ;;  %v14001_v10 = vpop.f32.mrb[5].mxu1  ;;  %v17316_v56 = vpop.f32.mrb[48].mxu0  ;;  %v26059_v7 = vmax.f32 %v26058_v57, 0.0  ;;  %v26060_v15 = vmax.f32 %v24826_v34, 0.0  ;;  %v26062_v49 = vmax.f32 %v26061_v23, 0.0 }
 0x838   : > { %26057 = vst [vmem:[#allocation95_spill] sm:$0xff] %v24888_v13  ;;  %v14596_v40 = vadd.f32 %v14550_v5, %v14549_v39  ;;  %v14185_v31 = vadd.f32 %v17316_v56, %v13991_v25  ;;  %v14002_v22 = vpop.f32.mrb[6].mxu1  ;;  %v14176_v33 = vpop.f32.mrb[49].mxu0  ;;  %v26063_v30 = vmax.f32 %v24835_v28, 0.0  ;;  %v24902_v10 = vadd.f32 %v24679_v50, %v14435_v53  ;;  %v26065_v5 = vld [vmem:[#allocation27_spill] sm:$0xff]  ;;  %v26068_v28 = vld [vmem:[#allocation74_spill] sm:$0xff] }
 0x839   : > { %v24894_v54 = vadd.f32 %v26060_v15, %v26059_v7  ;;  %v14436_v14 = vmul.f32 %v24639_v11, %v14258_v46  ;;  %v14177_v34 = vadd.f32 %v14176_v33, %v24750_v35  ;;  %v14004_v7 = vpop.f32.mrb[7].mxu1  ;;  %v17317_v15 = vpop.f32.mrb[50].mxu0  ;;  %v26066_v39 = vmax.f32 %v26065_v5, 0.0  ;;  %v26069_v33 = vld [vmem:[#allocation44_spill] sm:$0xff] }
 0x83a   : > { %v14551_v19 = vadd.f32 %v26063_v30, %v26062_v49  ;;  %26064 = vst [vmem:[#allocation96_spill] sm:$0xff] %v24902_v10  ;;  %v26067_v25 = vmax.f32 %v24841_v44, 0.0  ;;  %v14437_v23 = vmul.f32 %v24639_v11, %v14259_v16  ;;  %v14265_v49 = vadd.f32 %v14185_v31, %v26068_v28  ;;  %v14179_v30 = vpop.f32.mrb[51].mxu0 }
 0x83b   : > { %v24914_v53 = vadd.f32 %v24679_v50, %v14431_v58  ;;  %v14430_v35 = vmul.f32 %v24639_v11, %v24748_v9  ;;  %v14263_v7 = vadd.f32 %v14177_v34, %v26069_v33  ;;  %v14188_v28 = vadd.f32 %v17317_v15, %v13994_v32  ;;  %v26076_v32 = vld [vmem:[#allocation20_spill] sm:$0xff] }
 0x83c   : > { %v14552_v56 = vadd.f32 %v26067_v25, %v26066_v39  ;;  %v14597_v5 = vadd.f32 %v14596_v40, %v14551_v19  ;;  %v26070_v39 = vmax.f32 %v24582_v26, 0.0  ;;  %v26071_v25 = vmax.f32 %v24857_v0, 0.0 }
 0x83d   : > { %v14443_v16 = vmul.f32 %v24639_v11, %v14265_v49  ;;  %v24927_v58 = vadd.f32 %v24679_v50, %v14436_v14  ;;  %v14441_v46 = vmul.f32 %v24639_v11, %v14263_v7  ;;  %v14180_v9 = vadd.f32 %v14179_v30, %v24767_v18 }
 0x83e   : > { %v14558_v6 = vadd.f32 %v26071_v25, %v26070_v39  ;;  %v26073_v34 = vmax.f32 %v24572_v17, 0.0  ;;  %v26074_v40 = vmax.f32 %v24874_v55, 0.0  ;;  %v24936_v33 = vadd.f32 %v24679_v50, %v14437_v23  ;;  %v14007_v39 = vpop.f32.mrb[8].mxu1 }
 0x83f   : > { %26072 = vst [vmem:[#allocation97_spill] sm:$0xff] %v24927_v58  ;;  %v14438_v49 = vmul.f32 %v24639_v11, %v14260_v47  ;;  %v14266_v15 = vadd.f32 %v14188_v28, %v26076_v32  ;;  %v26077_v14 = vmax.f32 %v24525_v42, 0.0  ;;  %v26078_v25 = vmax.f32 %v24888_v13, 0.0  ;;  %v14009_v23 = vpop.f32.mrb[9].mxu1  ;;  %v17320_v31 = vpop.f32.mrb[52].mxu0 }
 0x840   : > { %v14557_v19 = vadd.f32 %v26074_v40, %v26073_v34  ;;  %26075 = vst [vmem:[#allocation98_spill] sm:$0xff] %v24936_v33  ;;  %v24945_v18 = vadd.f32 %v24679_v50, %v14430_v35  ;;  %v24948_v30 = vadd.f32 %v24679_v50, %v14441_v46  ;;  %v26080_v34 = vld [vmem:[#allocation72_spill] sm:$0xff]  ;;  %v24952_v47 = vadd.f32 %v24679_v50, %v14443_v16  ;;  %v14010_v55 = vpop.f32.mrb[10].mxu1  ;;  %v14192_v13 = vpop.f32.mrb[53].mxu0 }
 0x841   : > { %v14553_v7 = vadd.f32 %v26078_v25, %v26077_v14  ;;  %v14264_v40 = vadd.f32 %v14180_v9, %v26080_v34  ;;  %v14444_v28 = vmul.f32 %v24639_v11, %v14266_v15  ;;  %v14201_v32 = vadd.f32 %v17320_v31, %v14007_v39  ;;  %v26082_v25 = vld [vmem:[#allocation121_spill] sm:$0xff]  ;;  %v14012_v34 = vpop.f32.mrb[11].mxu1  ;;  %v17321_v23 = vpop.f32.mrb[54].mxu0  ;;  %v26085_v31 = vld [vmem:[#allocation43_spill] sm:$0xff] }
 0x842   : > { %26079 = vst [vmem:[#allocation99_spill] sm:$0xff] %v24948_v30  ;;  %v14610_v0 = vadd.f32 %v14558_v6, %v14557_v19  ;;  %26081 = vst [vmem:[#allocation100_spill] sm:$0xff] %v24952_v47  ;;  %v14598_v14 = vadd.f32 %v14597_v5, %v14552_v56  ;;  %v26083_v35 = vmax.f32 %v26082_v25, 0.0  ;;  %v26084_v44 = vmax.f32 %v24902_v10, 0.0  ;;  %v14195_v5 = vpop.f32.mrb[55].mxu0  ;;  %v26089_v56 = vld [vmem:[#allocation122_spill] sm:$0xff] }
 0x843   : > { %v14442_v26 = vmul.f32 %v24639_v11, %v14264_v40  ;;  %v14193_v9 = vadd.f32 %v14192_v13, %v13999_v3  ;;  %v24963_v19 = vadd.f32 %v24679_v50, %v14438_v49  ;;  %v14269_v15 = vadd.f32 %v14201_v32, %v26085_v31  ;;  %v26088_v3 = vld [vmem:[#allocation41_spill] sm:$0xff] }
 0x844   : > { %v14559_v46 = vadd.f32 %v26084_v44, %v26083_v35  ;;  %v24968_v39 = vadd.f32 %v24679_v50, %v14444_v28  ;;  %v14204_v34 = vadd.f32 %v17321_v23, %v14010_v55  ;;  %v14196_v16 = vadd.f32 %v14195_v5, %v14002_v22  ;;  %v26095_v22 = vld [vmem:[#allocation76_spill] sm:$0xff]  ;;  %v26096_v5 = vld [vmem:[#allocation21_spill] sm:$0xff] }
 0x845   : > { %v24971_v44 = vadd.f32 %v24679_v50, %v14442_v26  ;;  %v14267_v13 = vadd.f32 %v14193_v9, %v26088_v3  ;;  %v14439_v32 = vmul.f32 %v24639_v11, %v24845_v12  ;;  %v26090_v6 = vmax.f32 %v26089_v56, 0.0  ;;  %v26092_v9 = vld [vmem:[#allocation108_spill] sm:$0xff]  ;;  %v26115_v56 = vld [vmem:[#allocation29_spill] sm:$0xff] }
 0x846   : > { %26086 = vst [vmem:[#allocation101_spill] sm:$0xff] %v24968_v39  ;;  %v14611_v40 = vadd.f32 %v14610_v0, %v14559_v46  ;;  %v26091_v26 = vmax.f32 %v24927_v58, 0.0  ;;  %v26093_v0 = vmax.f32 %v26092_v9, 0.0  ;;  %v26094_v46 = vmax.f32 %v24936_v33, 0.0  ;;  %v14015_v49 = vpop.f32.mrb[12].mxu1 }
 0x847   : > { %26087 = vst [vmem:[#allocation102_spill] sm:$0xff] %v24971_v44  ;;  %v14445_v28 = vmul.f32 %v24639_v11, %v14267_v13  ;;  %v14270_v23 = vadd.f32 %v14204_v34, %v26095_v22  ;;  %v14268_v3 = vadd.f32 %v14196_v16, %v26096_v5  ;;  %v26097_v12 = vmax.f32 %v24634_v21, 0.0  ;;  %v17324_v34 = vpop.f32.mrb[56].mxu0  ;;  %v26102_v22 = vld [vmem:[#allocation53_spill] sm:$0xff]  ;;  %v26105_v16 = vld [vmem:[#allocation120_spill] sm:$0xff] }
 0x848   : > { %v14560_v10 = vadd.f32 %v26091_v26, %v26090_v6  ;;  %v14561_v55 = vadd.f32 %v26094_v46, %v26093_v0  ;;  %v26098_v35 = vmax.f32 %v24948_v30, 0.0  ;;  %v26099_v58 = vmax.f32 %v24649_v8, 0.0  ;;  %v14017_v0 = vpop.f32.mrb[13].mxu1  ;;  %v14208_v8 = vpop.f32.mrb[57].mxu0 }
 0x849   : > { %v26100_v6 = vmax.f32 %v24971_v44, 0.0  ;;  %v25000_v33 = vadd.f32 %v24679_v50, %v14445_v28  ;;  %v26103_v5 = vmax.f32 %v26102_v22, 0.0  ;;  %v26104_v30 = vmax.f32 %v24952_v47, 0.0  ;;  %v14018_v31 = vpop.f32.mrb[14].mxu1  ;;  %v17325_v44 = vpop.f32.mrb[58].mxu0 }
 0x84a   : > { %v14565_v13 = vadd.f32 %v26098_v35, %v26097_v12  ;;  %v14612_v46 = vadd.f32 %v14611_v40, %v14560_v10  ;;  %v14446_v12 = vmul.f32 %v24639_v11, %v14268_v3  ;;  %v14020_v0 = vpop.f32.mrb[15].mxu1  ;;  %v14599_v10 = vadd.f32 %v14598_v14, %v14553_v7 }
 0x84b   : > { %v14566_v26 = vadd.f32 %v26100_v6, %v26099_v58  ;;  %26101 = vst [vmem:[#allocation103_spill] sm:$0xff] %v25000_v33  ;;  %v14567_v35 = vadd.f32 %v26104_v30, %v26103_v5  ;;  %v14447_v58 = vmul.f32 %v24639_v11, %v14269_v15  ;;  %v14209_v6 = vadd.f32 %v14208_v8, %v14015_v49  ;;  %v26112_v0 = vld [vmem:[#allocation78_spill] sm:$0xff] }
 0x84c   : > { %v14432_v40 = vmul.f32 %v24639_v11, %v24739_v38  ;;  %v26106_v22 = vmax.f32 %v26105_v16, 0.0  ;;  %v26107_v30 = vmax.f32 %v24945_v18, 0.0  ;;  %v25017_v3 = vadd.f32 %v24679_v50, %v14446_v12 }
 0x84d   : > { %v14624_v21 = vadd.f32 %v14566_v26, %v14565_v13  ;;  %v14211_v13 = vpop.f32.mrb[59].mxu0  ;;  %v25020_v15 = vadd.f32 %v24679_v50, %v14439_v32  ;;  %v26109_v26 = vld [vmem:[#allocation59_spill] sm:$0xff]  ;;  %v26111_v49 = vmax.f32 %v24968_v39, 0.0  ;;  %v14271_v38 = vadd.f32 %v14209_v6, %v26112_v0  ;;  %v26119_v0 = vld [vmem:[#allocation22_spill] sm:$0xff] }
 0x84e   : > { %v14554_v5 = vadd.f32 %v26107_v30, %v26106_v22  ;;  %26108 = vst [vmem:[#allocation104_spill] sm:$0xff] %v25017_v3  ;;  %v26110_v8 = vmax.f32 %v26109_v26, 0.0  ;;  %v14440_v28 = vmul.f32 %v24639_v11, %v24866_v1  ;;  %v26113_v22 = vmax.f32 %v24691_v52, 0.0 }
 0x84f   : > { %v14625_v14 = vadd.f32 %v14624_v21, %v14567_v35  ;;  %v26114_v12 = vmax.f32 %v25000_v33, 0.0  ;;  %v25632_v47 = vmax.f32 %v25017_v3, 0.0  ;;  %v14212_v32 = vadd.f32 %v14211_v13, %v14018_v31  ;;  %v14023_v31 = vpop.f32.mrb[16].mxu1 }
 0x850   : > { %v14568_v7 = vadd.f32 %v26111_v49, %v26110_v8  ;;  %v14613_v9 = vadd.f32 %v14612_v46, %v14561_v55  ;;  %v26116_v26 = vmax.f32 %v26115_v56, 0.0  ;;  %v26117_v39 = vmax.f32 %v24963_v19, 0.0  ;;  %v14025_v13 = vpop.f32.mrb[17].mxu1 }
 0x851   : > { %v14569_v30 = vadd.f32 %v26114_v12, %v26113_v22  ;;  %v25039_v21 = vadd.f32 %v24679_v50, %v14447_v58  ;;  %v14585_v1 = vadd.f32 %v24883_v45, %v24894_v54  ;;  %v14448_v6 = vmul.f32 %v24639_v11, %v14270_v23 }
 0x852   : > { %v14562_v8 = vadd.f32 %v26117_v39, %v26116_v26  ;;  %v14626_v35 = vadd.f32 %v14625_v14, %v14568_v7  ;;  %v14449_v49 = vmul.f32 %v24639_v11, %v14271_v38  ;;  %v14272_v22 = vadd.f32 %v14212_v32, %v26119_v0  ;;  %v25051_v26 = vpop.f32.mrb[60].mxu0  ;;  %v14026_v38 = vpop.f32.mrb[18].mxu1  ;;  %v26122_v0 = vld [vmem:[#allocation46_spill] sm:$0xff] }
 0x853   : > { %26118 = vst [vmem:[#allocation105_spill] sm:$0xff] %v25039_v21  ;;  %v25635_v55 = vmax.f32 %v24914_v53, 0.0  ;;  %v25048_v46 = vadd.f32 %v24679_v50, %v14432_v40  ;;  %v14217_v58 = vadd.f32 %v17324_v34, %v14023_v31  ;;  %v25054_v45 = vadd.f32 %v24679_v50, %v14440_v28  ;;  %v14224_v40 = vpop.f32.mrb[61].mxu0  ;;  %v14028_v13 = vpop.f32.mrb[19].mxu1 }
 0x854   : > { %v14627_v54 = vadd.f32 %v14626_v35, %v14569_v30  ;;  %v26121_v23 = vmax.f32 %v24709_v48, 0.0  ;;  %v14450_v14 = vmul.f32 %v24639_v11, %v14272_v22  ;;  %v14600_v12 = vadd.f32 %v14599_v10, %v14554_v5  ;;  %v25063_v39 = vpop.f32.mrb[62].mxu0  ;;  %v26125_v10 = vld [vmem:[#allocation88_spill] sm:$0xff] }
 0x855   : > { %26120 = vst [vmem:[#allocation106_spill] sm:$0xff] %v25054_v45  ;;  %v14614_v32 = vadd.f32 %v14613_v9, %v14562_v8  ;;  %v14273_v31 = vadd.f32 %v14217_v58, %v26122_v0  ;;  %v25066_v28 = vadd.f32 %v24679_v50, %v14448_v6  ;;  %v25069_v30 = vadd.f32 %v24679_v50, %v14449_v49  ;;  %v26127_v58 = vld [vmem:[#allocation51_spill] sm:$0xff] }
 0x856   : > { %v14570_v7 = vadd.f32 %v25632_v47, %v26121_v23  ;;  %v25072_v35 = vadd.f32 %v24679_v50, %v14450_v14  ;;  %v14220_v22 = vadd.f32 %v17325_v44, %v14026_v38  ;;  %v14227_v23 = vpop.f32.mrb[63].mxu0  ;;  %v26126_v9 = vmax.f32 %v26125_v10, 0.0  ;;  %v26130_v38 = vld [vmem:[#allocation23_spill] sm:$0xff]  ;;  %v14031_v44 = vpop.f32.mrb[20].mxu1  ;;  %v26137_v47 = vld [vmem:[#allocation110_spill] sm:$0xff] }
 0x857   : > { %26123 = vst [vmem:[#allocation107_spill] sm:$0xff] %v25069_v30  ;;  %v26128_v0 = vmax.f32 %v26127_v58, 0.0  ;;  %v26129_v6 = vmax.f32 %v25020_v15, 0.0  ;;  %v14451_v49 = vmul.f32 %v24639_v11, %v14273_v31  ;;  %v26132_v8 = vmax.f32 %v24667_v61, 0.0  ;;  %v14033_v3 = vpop.f32.mrb[21].mxu1 }
 0x858   : > { %26124 = vst [vmem:[#allocation109_spill] sm:$0xff] %v25072_v35  ;;  %v14555_v5 = vadd.f32 %v25635_v55, %v26126_v9  ;;  %v14628_v14 = vadd.f32 %v14627_v54, %v14570_v7  ;;  %v14274_v34 = vadd.f32 %v14220_v22, %v26130_v38  ;;  %v14586_v22 = vadd.f32 %v14585_v1, %v24881_v20  ;;  %v26134_v38 = vld [vmem:[#allocation90_spill] sm:$0xff]  ;;  %v14034_v61 = vpop.f32.mrb[22].mxu1 }
 0x859   : > { %v14563_v13 = vadd.f32 %v26129_v6, %v26128_v0  ;;  %v25089_v55 = vadd.f32 %v24679_v50, %v14451_v49  ;;  %v26133_v0 = vmax.f32 %v25039_v21, 0.0  ;;  %v14225_v49 = vadd.f32 %v14224_v40, %v14031_v44 }
 0x85a   : > { %v14601_v33 = vadd.f32 %v14600_v12, %v14555_v5  ;;  %v14452_v7 = vmul.f32 %v24639_v11, %v14274_v34  ;;  %v26135_v12 = vmax.f32 %v26134_v38, 0.0  ;;  %v26140_v34 = vmax.f32 %v24729_v60, 0.0 }
 0x85b   : > { %v14615_v9 = vadd.f32 %v14614_v32, %v14563_v13  ;;  %26131 = vst [vmem:[#allocation111_spill] sm:$0xff] %v25089_v55  ;;  %v14571_v6 = vadd.f32 %v26133_v0, %v26132_v8  ;;  %v26136_v32 = vmax.f32 %v25048_v46, 0.0  ;;  %v26138_v8 = vmax.f32 %v26137_v47, 0.0  ;;  %v26146_v13 = vld [vmem:[#allocation48_spill] sm:$0xff] }
 0x85c   : > { %v26139_v0 = vmax.f32 %v25054_v45, 0.0  ;;  %v26141_v21 = vmax.f32 %v25072_v35, 0.0  ;;  %v25113_v1 = vadd.f32 %v24679_v50, %v14452_v7  ;;  %v26145_v40 = vmax.f32 %v24861_v37, 0.0 }
 0x85d   : > { %v14556_v5 = vadd.f32 %v26136_v32, %v26135_v12  ;;  %v14629_v54 = vadd.f32 %v14628_v14, %v14571_v6  ;;  %v26143_v12 = vld [vmem:[#allocation84_spill] sm:$0xff]  ;;  %v14275_v48 = vadd.f32 %v14225_v49, %v26146_v13  ;;  %v14228_v52 = vadd.f32 %v14227_v23, %v14034_v61 }
 0x85e   : > { %v14564_v31 = vadd.f32 %v26139_v0, %v26138_v8  ;;  %v14574_v20 = vadd.f32 %v26141_v21, %v26140_v34  ;;  %26142 = vst [vmem:[#allocation113_spill] sm:$0xff] %v25113_v1  ;;  %v26144_v32 = vmax.f32 %v26143_v12, 0.0  ;;  %v14036_v8 = vpop.f32.mrb[23].mxu1  ;;  %v26147_v6 = vmax.f32 %v24694_v59, 0.0  ;;  %v26149_v34 = vld [vmem:[#allocation73_spill] sm:$0xff]  ;;  %v26154_v23 = vld [vmem:[#allocation80_spill] sm:$0xff] }
 0x85f   : > { %v14602_v44 = vadd.f32 %v14601_v33, %v14556_v5  ;;  %v26148_v0 = vmax.f32 %v25066_v28, 0.0  ;;  %v26150_v7 = vmax.f32 %v26149_v34, 0.0  ;;  %v26151_v35 = vmax.f32 %v25069_v30, 0.0  ;;  %v26161_v30 = vld [vmem:[#allocation25_spill] sm:$0xff] }
 0x860   : > { %v14548_v3 = vadd.f32 %v26145_v40, %v26144_v32  ;;  %v14616_v14 = vadd.f32 %v14615_v9, %v14564_v31  ;;  %v26152_v45 = vmax.f32 %v24743_v51, 0.0  ;;  %v26153_v32 = vmax.f32 %v25089_v55, 0.0 }
 0x861   : > { %v14572_v21 = vadd.f32 %v26148_v0, %v26147_v6  ;;  %v14573_v60 = vadd.f32 %v26151_v35, %v26150_v7  ;;  %v25643_v5 = vmax.f32 %v25113_v1, 0.0  ;;  %v14453_v61 = vmul.f32 %v24639_v11, %v14275_v48  ;;  %v26156_v0 = vld [vmem:[#allocation17_spill] sm:$0xff] }
 0x862   : > { %v14575_v33 = vadd.f32 %v26153_v32, %v26152_v45  ;;  %v14276_v9 = vadd.f32 %v14228_v52, %v26154_v23  ;;  %v25644_v31 = vmax.f32 %v24780_v63, 0.0  ;;  %v14587_v13 = vadd.f32 %v14586_v22, %v14548_v3  ;;  %v14039_v22 = vpop.f32.mrb[24].mxu1 }
 0x863   : > { %v14630_v49 = vadd.f32 %v14629_v54, %v14572_v21  ;;  %v14638_v40 = vadd.f32 %v14574_v20, %v14573_v60  ;;  %v25650_v8 = vmax.f32 %v24786_v62, 0.0  ;;  %v25139_v35 = vadd.f32 %v24424_v41, %v24809_v2  ;;  %v14041_v3 = vpop.f32.mrb[25].mxu1  ;;  %v26158_v21 = vld [vmem:[#allocation39_spill] sm:$0xff] }
 0x864   : > { %v25142_v6 = vadd.f32 %v24679_v50, %v14453_v61  ;;  %v14454_v45 = vmul.f32 %v24639_v11, %v14276_v9  ;;  %v14327_v48 = vmul.f32 %v24404_v29, %v26156_v0  ;;  %v14603_v52 = vrot.slane %v14602_v44, 4 }
 0x865   : > { %v14617_v7 = vrot.slane %v14616_v14, 4  ;;  %v14639_v32 = vadd.f32 %v14638_v40, %v14575_v33  ;;  %v14576_v60 = vadd.f32 %v25643_v5, %v25644_v31  ;;  %v14233_v20 = vadd.f32 %v25051_v26, %v14039_v22  ;;  %v14042_v33 = vpop.f32.mrb[26].mxu1  ;;  %v26159_v5 = vld [vmem:[#allocation24_spill] sm:$0xff] }
 0x866   : > { %26155 = vst [vmem:[#allocation115_spill] sm:$0xff] %v25142_v6  ;;  %v25649_v2 = vmax.f32 %v25142_v6, 0.0  ;;  %v25153_v54 = vadd.f32 %v24679_v50, %v14454_v45  ;;  %v14328_v61 = vmul.f32 %v24404_v29, %v26158_v21  ;;  %v14588_v23 = vrot.slane %v14587_v13, 4  ;;  %v14044_v1 = vpop.f32.mrb[27].mxu1 }
 0x867   : > { %v14631_v9 = vrot.slane %v14630_v49, 4  ;;  %v14277_v31 = vadd.f32 %v14233_v20, %v26159_v5  ;;  %v14236_v45 = vadd.f32 %v25063_v39, %v14042_v33  ;;  %v25656_v26 = vmax.f32 %v25139_v35, 0.0 }
 0x868   : > { %26157 = vst [vmem:[#allocation117_spill] sm:$0xff] %v25153_v54  ;;  %v14577_v40 = vadd.f32 %v25649_v2, %v25650_v8  ;;  %v25652_v0 = vmax.f32 %v25153_v54, 0.0  ;;  %v25167_v22 = vadd.f32 %v24424_v41, %v14327_v48  ;;  %v14604_v29 = vadd.f32 %v14603_v52, %v14602_v44 }
 0x869   : > { %v14618_v3 = vadd.f32 %v14617_v7, %v14616_v14  ;;  %v14640_v21 = vadd.f32 %v14639_v32, %v14576_v60  ;;  %v14455_v55 = vmul.f32 %v24639_v11, %v14277_v31  ;;  %v14278_v6 = vadd.f32 %v14236_v45, %v26161_v30 }
 0x86a   : > { %26160 = vst [vmem:[#allocation119_spill] sm:$0xff] %v25167_v22  ;;  %v25172_v2 = vadd.f32 %v24424_v41, %v14328_v61  ;;  %v14589_v8 = vadd.f32 %v14588_v23, %v14587_v13  ;;  %v14632_v5 = vadd.f32 %v14631_v9, %v14630_v49  ;;  %v14578_v39 = vadd.f32 %v25652_v0, %v25656_v26  ;;  %v26181_v26 = vld [vmem:[#allocation69_spill] sm:$0xff] }
 0x86b   : > { %v14641_v20 = vadd.f32 %v14640_v21, %v14577_v40  ;;  %v25179_v1 = vadd.f32 %v24679_v50, %v14455_v55  ;;  %v14456_v44 = vmul.f32 %v24639_v11, %v14278_v6  ;;  %v14605_v14 = vrot.slane %v14604_v29, 2 }
 0x86c   : > { %26162 = vst [vmem:[#allocation30_spill] sm:$0xff] %v25172_v2  ;;  %v25655_v31 = vmax.f32 %v25167_v22, 0.0  ;;  %v14619_v30 = vrot.slane %v14618_v3, 2  ;;  %v14590_v49 = vrot.slane %v14589_v8, 2  ;;  %v14633_v48 = vrot.slane %v14632_v5, 2 }
 0x86d   : > { %26163 = vst [vmem:[#allocation55_spill] sm:$0xff] %v25179_v1  ;;  %v25651_v41 = vmax.f32 %v25179_v1, 0.0  ;;  %v25185_v13 = vadd.f32 %v24679_v50, %v14456_v44  ;;  %v25654_v52 = vmax.f32 %v25172_v2, 0.0  ;;  %v14642_v7 = vadd.f32 %v14641_v20, %v14578_v39 }
 0x86e   : > { %v14606_v6 = vadd.f32 %v14605_v14, %v14604_v29  ;;  %v14620_v32 = vadd.f32 %v14619_v30, %v14618_v3  ;;  %v14591_v61 = vadd.f32 %v14590_v49, %v14589_v8  ;;  %v14634_v23 = vadd.f32 %v14633_v48, %v14632_v5 }
 0x86f   : > { %26164 = vst [vmem:[#allocation112_spill] sm:$0xff] %v25185_v13  ;;  %v14579_v55 = vadd.f32 %v25651_v41, %v25655_v31  ;;  %v25653_v11 = vmax.f32 %v25185_v13, 0.0  ;;  %v26179_v31 = vld [vmem:[#allocation26_spill] sm:$0xff] }
 0x870   : > { %v14607_v33 = vrot.slane %v14606_v6, 1  ;;  %v14621_v40 = vrot.slane %v14620_v32, 1  ;;  %v14592_v21 = vrot.slane %v14591_v61, 1  ;;  %v14635_v20 = vrot.slane %v14634_v23, 1 }
 0x871   : > { %v14643_v60 = vadd.f32 %v14642_v7, %v14579_v55  ;;  %v14580_v50 = vadd.f32 %v25653_v11, %v25654_v52 }
 0x872   : > { %v14608_v44 = vadd.f32 %v14607_v33, %v14606_v6  ;;  %v14622_v41 = vadd.f32 %v14621_v40, %v14620_v32  ;;  %v14593_v29 = vadd.f32 %v14592_v21, %v14591_v61  ;;  %v14636_v3 = vadd.f32 %v14635_v20, %v14634_v23  ;;  %v14764_v23 = vld [vmem:[%s25556_s6 + $0x38] sm:$0xff]  ;;  %v14761_v33 = vld [vmem:[%s25556_s6 + $0x20] sm:$0xff]  ;;  %v14763_v40 = vld [vmem:[%s25556_s6 + $0x30] sm:$0xff] }
 0x873   : > { %v14644_v9 = vadd.f32 %v14643_v60, %v14580_v50  ;;  %v26165_v32 = vmov 0.0   ;;  %v16932_v21 = vld [vmem:[%s25555_s5] ss:$0 sm:$0xff]  ;;  %v16933_v20 = vld [vmem:[%s25555_s5 + $0x1] ss:$0 sm:$0xff] }
 0x874   : > { %v14609_v30 = vmul.f32 0.015625, %v14608_v44  ;;  %v14623_v55 = vmul.f32 0.015625, %v14622_v41  ;;  %v14595_v11 = vmul.f32 0.015625, %v14593_v29  ;;  %v14637_v8 = vmul.f32 0.015625, %v14636_v3  ;;  %v14759_v41 = vld [vmem:[%s25556_s6 + $0x10] sm:$0xff] }
 0x875   : > { %v14645_v45 = vrot.slane %v14644_v9, 4 }
 0x876   : > { %v14653_v49 = vsel %vm14652_vm1, %v14595_v11, %v14609_v30  ;;  %v14762_v11 = vld [vmem:[%s25556_s6 + $0x28] sm:$0xff] }
 0x877   : > { %v14646_v39 = vadd.f32 %v14645_v45, %v14644_v9  ;;  %v14655_v60 = vsel %vm14654_vm2, %v14653_v49, %v14623_v55  ;;  %v17393_v9 = vpack.c.bf16 %v14764_v23, %v14762_v11  ;;  %v17395_v45 = vpack.c.bf16 %v14763_v40, %v14761_v33 }
 0x878   : > { %v14657_v50 = vsel %vm14656_vm3, %v14655_v60, %v14637_v8 }
 0x879   : > { %v14647_v0 = vrot.slane %v14646_v39, 2 }
 0x87b   : > { %v14648_v14 = vadd.f32 %v14647_v0, %v14646_v39  ;;  %v14757_v0 = vld [vmem:[%s25556_s6] sm:$0xff] }
 0x87c   : > { %v17391_v61 = vpack.c.bf16 %v14759_v41, %v14757_v0 }
 0x87d   : > { %v14649_v7 = vrot.slane %v14648_v14, 1 }
 0x87f   : > { %v14650_v5 = vadd.f32 %v14649_v7, %v14648_v14 }
 0x881   : > { %v14651_v48 = vmul.f32 0.015625, %v14650_v5 }
 0x883   : > { %v14659_v6 = vsel %vm14658_vm4, %v14657_v50, %v14651_v48  ;;  %v14846_v48 = vlaneseq }
 0x884   : > { %17363 = vmatmul.mubr.f32.vlgmr.msra.gmra.mrb[64].mxu0 %v14659_v6 }
 0x885   : > { %14833 = vmatprep.mubr.f32.mxu0 %v26165_v32  ;;  %17392 = vmatpush1.bf16.msra.mxu0 %v17391_v61  ;;  %v25222_v60 = vshrl.u32 %v14846_v48, 7 }
 0x886   : > { %17394 = vmatprep.subr.bf16.mxu0 %v17393_v9 }
 0x887   : > { %v14848_v50 = vsub.s32 0, %v25222_v60  ;;  %v14888_v6 = vsub.s32 1, %v25222_v60  ;;  %v25659_v32 = vsub.s32 2, %v25222_v60  ;;  %v25658_v0 = vsub.s32 3, %v25222_v60 }
 0x888   : > { %v25657_v41 = vsub.s32 4, %v25222_v60 }
 0x889   : > { %17396 = vmatpush1.bf16.msra.mxu0 %v17395_v45 }
 0x957   : > { %v14742_v39 = vpop.f32.mrb[64].mxu0 }
 0x958   : > { %v14750_v44 = vmul.f32 %v16932_v21, %v14742_v39  ;;  %v17364_v29 = vpop.f32.mrb[65].mxu0  ;;  %v26166_v21 = vld [vmem:[#allocation82_spill] sm:$0xff] }
 0x95a   : > { %v14755_v3 = vadd.f32 %v16933_v20, %v14750_v44  ;;  %v26167_v20 = vmax.f32 %v26166_v21, 0.0  ;;  %v26168_v44 = vld [vmem:[#allocation45_spill] sm:$0xff] }
 0x95b   : > { %v26169_v29 = vmax.f32 %v26168_v44, 0.0 }
 0x95c   : > { %v14756_v14 = vmax.f32 %v14755_v3, 0.0 }
 0x95e   : > { %16934 = vmatmul.mubr.msk.f32.vlgmr.msra.gmra.mrb[66].mxu0 %vm14765_vm5, %v14756_v14  ;;  %v26170_v14 = vmax.f32 %v24436_v36, 0.0  ;;  %v26176_v36 = vmax.f32 %v26049_v4, 0.0  ;;  %v26189_v4 = vld [vmem:[#allocation81_spill] sm:$0xff] }
 0xa31   : > { %v14835_v30 = vpop.f32.mrb[66].mxu0 }
 0xa32   : > { %v14837_v7 = vpop.f32.mrb[67].mxu0 }
 0xa33   : > { %v14840_v55 = vsub.f32 %v14837_v7, %v14835_v30  ;;  %v26171_v7 = vmax.f32 %v24446_v27, 0.0 }
 0xa35   : > { %v14841_v8 = vmul.f32 1.442695, %v14840_v55 }
 0xa37   : > { %20553 = vpow2.f32 %v14841_v8  ;;  %v26172_v8 = vmax.f32 %v24478_v43, 0.0  ;;  %v26180_v43 = vmax.f32 %v26179_v31, 0.0  ;;  %v26193_v31 = vld [vmem:[#allocation83_spill] sm:$0xff] }
 0xa41   : > { %v20554_v5 = vpop.eup %20553 }
 0xa42   : > { %v14843_v49 = vadd.f32 1.0, %v20554_v5 }
 0xa44   : > { %20555 = vrcp.f32 %v14843_v49  ;;  %v26173_v49 = vmax.f32 %v26058_v57, 0.0  ;;  %v26182_v57 = vmax.f32 %v26181_v26, 0.0  ;;  %v26195_v26 = vmax.f32 %v24861_v37, 0.0  ;;  %v26196_v37 = vld [vmem:[#allocation27_spill] sm:$0xff] }
 0xa4e   : > { %v20556_v61 = vpop.eup %20555 }
 0xa4f   : > { %v25230_v11 = vsub.f32 1.0, %v20556_v61  ;;  %v14849_v23 = vrot.slane %v20556_v61, %v14848_v50  ;;  %v14889_v9 = vrot.slane %v20556_v61, %v14888_v6  ;;  %v25234_v33 = vrot.slane %v20556_v61, %v25659_v32 }
 0xa50   : > { %v25238_v40 = vrot.slane %v20556_v61, %v25658_v0  ;;  %v25242_v45 = vrot.slane %v20556_v61, %v25657_v41  ;;  %v26174_v61 = vmax.f32 %v26054_v24, 0.0  ;;  %v26183_v41 = vld [vmem:[#allocation65_spill] sm:$0xff] }
 0xa51   : > { %v14850_v39 = vmul.f32 %v14849_v23, %v26167_v20  ;;  %v14851_v3 = vmul.f32 %v14849_v23, %v26169_v29  ;;  %v14852_v30 = vmul.f32 %v14849_v23, %v26170_v14  ;;  %v14853_v55 = vmul.f32 %v14849_v23, %v26171_v7  ;;  %v26177_v14 = vld [vmem:[#allocation50_spill] sm:$0xff]  ;;  %v26185_v0 = vld [vmem:[#allocation77_spill] sm:$0xff] }
 0xa52   : > { %v14854_v5 = vmul.f32 %v14849_v23, %v26172_v8  ;;  %v14855_v48 = vmul.f32 %v14849_v23, %v26173_v49  ;;  %v14856_v52 = vmul.f32 %v14849_v23, %v26174_v61  ;;  %v14861_v21 = vrot.slane %v25230_v11, %v14848_v50 }
 0xa53   : > { %v26175_v20 = vmax.f32 %v26143_v12, 0.0  ;;  %v14890_v29 = vmul.f32 %v14889_v9, %v26176_v36  ;;  %v26178_v27 = vmax.f32 %v26177_v14, 0.0  ;;  %v14892_v8 = vmul.f32 %v14889_v9, %v26180_v43  ;;  %v26187_v12 = vld [vmem:[#allocation79_spill] sm:$0xff]  ;;  %v26191_v14 = vld [vmem:[#allocation89_spill] sm:$0xff] }
 0xa54   : > { %v14862_v49 = vmul.f32 %v14861_v21, %v26182_v57  ;;  %v26184_v24 = vmax.f32 %v26183_v41, 0.0  ;;  %v26186_v50 = vmax.f32 %v26185_v0, 0.0  ;;  %v26190_v36 = vmax.f32 %v26189_v4, 0.0 }
 0xa55   : > { %v14857_v44 = vmul.f32 %v14849_v23, %v26175_v20  ;;  %v14891_v7 = vmul.f32 %v14889_v9, %v26178_v27  ;;  %v26188_v23 = vmax.f32 %v26187_v12, 0.0  ;;  %v26192_v27 = vmax.f32 %v26191_v14, 0.0 }
 0xa56   : > { %v14863_v61 = vmul.f32 %v14861_v21, %v26184_v24  ;;  %v14864_v32 = vmul.f32 %v14861_v21, %v26186_v50  ;;  %v14866_v13 = vmul.f32 %v14861_v21, %v26190_v36  ;;  %v26194_v43 = vmax.f32 %v26193_v31, 0.0 }
 0xa57   : > { %v14865_v20 = vmul.f32 %v14861_v21, %v26188_v23  ;;  %v14867_v1 = vmul.f32 %v14861_v21, %v26192_v27  ;;  %v14869_v57 = vmul.f32 %v14861_v21, %v26195_v26  ;;  %v14870_v41 = vadd.f32 %v14862_v49, %v14850_v39  ;;  %v26205_v49 = vld [vmem:[#allocation87_spill] sm:$0xff] }
 0xa58   : > { %v14868_v54 = vmul.f32 %v14861_v21, %v26194_v43  ;;  %v14871_v24 = vadd.f32 %v14863_v61, %v14851_v3  ;;  %v14872_v2 = vadd.f32 %v14864_v32, %v14852_v30  ;;  %v14874_v50 = vadd.f32 %v14866_v13, %v14854_v5  ;;  %v26203_v21 = vld [vmem:[#allocation28_spill] sm:$0xff]  ;;  %v26213_v27 = vld [vmem:[#allocation95_spill] sm:$0xff] }
 0xa59   : > { %v14873_v0 = vadd.f32 %v14865_v20, %v14853_v55  ;;  %v14875_v22 = vadd.f32 %v14867_v1, %v14855_v48  ;;  %v14877_v23 = vadd.f32 %v14869_v57, %v14857_v44  ;;  %14878 = vst [vmem:[%s25285_s13] sm:$0xff] %v14870_v41  ;;  %v26197_v32 = vmax.f32 %v26196_v37, 0.0 }
 0xa5a   : > { %v14876_v12 = vadd.f32 %v14868_v54, %v14856_v52  ;;  %14879 = vst [vmem:[%s25285_s13 + $0x8] sm:$0xff] %v14871_v24  ;;  %14880 = vst [vmem:[%s25285_s13 + $0x10] sm:$0xff] %v14872_v2  ;;  %v26198_v54 = vmax.f32 %v24525_v42, 0.0  ;;  %v26199_v52 = vmax.f32 %v26105_v16, 0.0  ;;  %v14901_v3 = vrot.slane %v25230_v11, %v14888_v6 }
 0xa5b   : > { %14881 = vst [vmem:[%s25285_s13 + $0x18] sm:$0xff] %v14873_v0  ;;  %v14893_v13 = vmul.f32 %v14889_v9, %v26197_v32  ;;  %14882 = vst [vmem:[%s25285_s13 + $0x20] sm:$0xff] %v14874_v50  ;;  %v26200_v30 = vmax.f32 %v26125_v10, 0.0  ;;  %v26201_v2 = vmax.f32 %v26134_v38, 0.0  ;;  %v26202_v48 = vmax.f32 %v24572_v17, 0.0  ;;  %v26209_v10 = vld [vmem:[#allocation91_spill] sm:$0xff] }
 0xa5c   : > { %v14894_v1 = vmul.f32 %v14889_v9, %v26198_v54  ;;  %v14895_v39 = vmul.f32 %v14889_v9, %v26199_v52  ;;  %14883 = vst [vmem:[%s25285_s13 + $0x28] sm:$0xff] %v14875_v22  ;;  %14884 = vst [vmem:[%s25285_s13 + $0x30] sm:$0xff] %v14876_v12  ;;  %v26204_v44 = vmax.f32 %v26203_v21, 0.0  ;;  %v26206_v6 = vmax.f32 %v26205_v49, 0.0  ;;  %v26207_v22 = vld [vmem:[#allocation85_spill] sm:$0xff] }
 0xa5d   : > { %14885 = vst [vmem:[%s25285_s13 + $0x38] sm:$0xff] %v14877_v23  ;;  %v14896_v55 = vmul.f32 %v14889_v9, %v26200_v30  ;;  %v14897_v5 = vmul.f32 %v14889_v9, %v26201_v2  ;;  %v14931_v42 = vmul.f32 %v25234_v33, %v26202_v48  ;;  %v26208_v20 = vmax.f32 %v26207_v22, 0.0  ;;  %v26211_v9 = vld [vmem:[#allocation92_spill] sm:$0xff]  ;;  %v26227_v49 = vld [vmem:[#allocation57_spill] sm:$0xff]  ;;  %v26229_v22 = vld [vmem:[#allocation94_spill] sm:$0xff] }
 0xa5e   : > { %v14932_v16 = vmul.f32 %v25234_v33, %v26204_v44  ;;  %v14902_v61 = vmul.f32 %v14901_v3, %v26206_v6  ;;  %v26210_v36 = vmax.f32 %v26209_v10, 0.0  ;;  %v26212_v14 = vmax.f32 %v26211_v9, 0.0  ;;  %v26231_v10 = vld [vmem:[#allocation93_spill] sm:$0xff] }
 0xa5f   : > { %v14903_v4 = vmul.f32 %v14901_v3, %v26208_v20  ;;  %v26214_v31 = vmax.f32 %v26213_v27, 0.0  ;;  %v26215_v26 = vmax.f32 %v24945_v18, 0.0  ;;  %v26216_v41 = vmax.f32 %v24914_v53, 0.0 }
 0xa60   : > { %v14904_v38 = vmul.f32 %v14901_v3, %v26210_v36  ;;  %v14905_v17 = vmul.f32 %v14901_v3, %v26212_v14  ;;  %v26217_v0 = vmax.f32 %v25048_v46, 0.0  ;;  %v14910_v12 = vadd.f32 %v14902_v61, %v14890_v29  ;;  %v26219_v46 = vld [vmem:[#allocation122_spill] sm:$0xff]  ;;  %v26235_v14 = vld [vmem:[#allocation97_spill] sm:$0xff] }
 0xa61   : > { %v14906_v43 = vmul.f32 %v14901_v3, %v26214_v31  ;;  %v14907_v57 = vmul.f32 %v14901_v3, %v26215_v26  ;;  %v14908_v24 = vmul.f32 %v14901_v3, %v26216_v41  ;;  %v14911_v23 = vadd.f32 %v14903_v4, %v14891_v7 }
 0xa62   : > { %v14909_v50 = vmul.f32 %v14901_v3, %v26217_v0  ;;  %v14912_v37 = vadd.f32 %v14904_v38, %v14892_v8  ;;  %v14913_v32 = vadd.f32 %v14905_v17, %v14893_v13  ;;  %16935 = vst [vmem:[%s25285_s13 + $0x40] sm:$0xff] %v14910_v12  ;;  %v26218_v53 = vmax.f32 %v26082_v25, 0.0  ;;  %v26221_v8 = vld [vmem:[#allocation108_spill] sm:$0xff] }
 0xa63   : > { %v14914_v54 = vadd.f32 %v14906_v43, %v14894_v1  ;;  %v14915_v52 = vadd.f32 %v14907_v57, %v14895_v39  ;;  %v14916_v30 = vadd.f32 %v14908_v24, %v14896_v55  ;;  %16936 = vst [vmem:[%s25285_s13 + $0x48] sm:$0xff] %v14911_v23  ;;  %v26220_v29 = vmax.f32 %v26219_v46, 0.0  ;;  %v26233_v38 = vld [vmem:[#allocation96_spill] sm:$0xff]  ;;  %v26241_v24 = vld [vmem:[#allocation106_spill] sm:$0xff]  ;;  %v26247_v46 = vld [vmem:[#allocation59_spill] sm:$0xff] }
 0xa64   : > { %v14917_v2 = vadd.f32 %v14909_v50, %v14897_v5  ;;  %16937 = vst [vmem:[%s25285_s13 + $0x50] sm:$0xff] %v14912_v37  ;;  %16938 = vst [vmem:[%s25285_s13 + $0x58] sm:$0xff] %v14913_v32  ;;  %v14933_v18 = vmul.f32 %v25234_v33, %v26218_v53  ;;  %v26222_v3 = vmax.f32 %v26221_v8, 0.0  ;;  %v26223_v1 = vsub.s32 2, %v25222_v60 }
 0xa65   : > { %v14934_v7 = vmul.f32 %v25234_v33, %v26220_v29  ;;  %16939 = vst [vmem:[%s25285_s13 + $0x60] sm:$0xff] %v14914_v54  ;;  %16940 = vst [vmem:[%s25285_s13 + $0x68] sm:$0xff] %v14915_v52  ;;  %v26224_v25 = vmax.f32 %v26115_v56, 0.0  ;;  %v26225_v5 = vmax.f32 %v26127_v58, 0.0  ;;  %v26226_v21 = vmax.f32 %v26137_v47, 0.0 }
 0xa66   : > { %v14935_v13 = vmul.f32 %v25234_v33, %v26222_v3  ;;  %v14942_v39 = vrot.slane %v25230_v11, %v26223_v1  ;;  %16941 = vst [vmem:[%s25285_s13 + $0x70] sm:$0xff] %v14916_v30  ;;  %16942 = vst [vmem:[%s25285_s13 + $0x78] sm:$0xff] %v14917_v2  ;;  %v26228_v6 = vmax.f32 %v26227_v49, 0.0  ;;  %v26230_v20 = vmax.f32 %v26229_v22, 0.0  ;;  %v26257_v22 = vld [vmem:[#allocation99_spill] sm:$0xff] }
 0xa67   : > { %v14936_v55 = vmul.f32 %v25234_v33, %v26224_v25  ;;  %v14937_v48 = vmul.f32 %v25234_v33, %v26225_v5  ;;  %v14938_v44 = vmul.f32 %v25234_v33, %v26226_v21  ;;  %v26232_v36 = vmax.f32 %v26231_v10, 0.0  ;;  %v26237_v33 = vld [vmem:[#allocation98_spill] sm:$0xff]  ;;  %v26252_v25 = vld [vmem:[#allocation71_spill] sm:$0xff] }
 0xa68   : > { %v14972_v61 = vmul.f32 %v25238_v40, %v26228_v6  ;;  %v14943_v4 = vmul.f32 %v14942_v39, %v26230_v20  ;;  %v26234_v9 = vmax.f32 %v26233_v38, 0.0  ;;  %v26236_v17 = vmax.f32 %v26235_v14, 0.0  ;;  %v26259_v10 = vld [vmem:[#allocation102_spill] sm:$0xff]  ;;  %v26261_v38 = vld [vmem:[#allocation100_spill] sm:$0xff]  ;;  %v26263_v14 = vld [vmem:[#allocation101_spill] sm:$0xff] }
 0xa69   : > { %v14944_v56 = vmul.f32 %v14942_v39, %v26232_v36  ;;  %v26238_v27 = vmax.f32 %v26237_v33, 0.0  ;;  %v26239_v43 = vmax.f32 %v24963_v19, 0.0  ;;  %v26240_v57 = vmax.f32 %v25020_v15, 0.0  ;;  %v26243_v15 = vld [vmem:[#allocation61_spill] sm:$0xff]  ;;  %v26265_v33 = vld [vmem:[#allocation103_spill] sm:$0xff] }
 0xa6a   : > { %v14945_v58 = vmul.f32 %v14942_v39, %v26234_v9  ;;  %v14946_v47 = vmul.f32 %v14942_v39, %v26236_v17  ;;  %v26242_v0 = vmax.f32 %v26241_v24, 0.0  ;;  %v14951_v12 = vadd.f32 %v14943_v4, %v14931_v42 }
 0xa6b   : > { %v14947_v31 = vmul.f32 %v14942_v39, %v26238_v27  ;;  %v14948_v26 = vmul.f32 %v14942_v39, %v26239_v43  ;;  %v14949_v41 = vmul.f32 %v14942_v39, %v26240_v57  ;;  %v14952_v23 = vadd.f32 %v14944_v56, %v14932_v16  ;;  %v26245_v16 = vld [vmem:[#allocation53_spill] sm:$0xff] }
 0xa6c   : > { %v14950_v50 = vmul.f32 %v14942_v39, %v26242_v0  ;;  %v14953_v37 = vadd.f32 %v14945_v58, %v14933_v18  ;;  %v14954_v32 = vadd.f32 %v14946_v47, %v14934_v7  ;;  %16943 = vst [vmem:[%s25285_s13 + $0x80] sm:$0xff] %v14951_v12  ;;  %v26244_v2 = vmax.f32 %v26243_v15, 0.0 }
 0xa6d   : > { %v14955_v54 = vadd.f32 %v14947_v31, %v14935_v13  ;;  %v14956_v52 = vadd.f32 %v14948_v26, %v14936_v55  ;;  %v14957_v30 = vadd.f32 %v14949_v41, %v14937_v48  ;;  %16944 = vst [vmem:[%s25285_s13 + $0x88] sm:$0xff] %v14952_v23  ;;  %v26246_v53 = vmax.f32 %v26245_v16, 0.0  ;;  %v26250_v13 = vld [vmem:[#allocation67_spill] sm:$0xff]  ;;  %v26269_v26 = vld [vmem:[#allocation105_spill] sm:$0xff] }
 0xa6e   : > { %v14958_v19 = vadd.f32 %v14950_v50, %v14938_v44  ;;  %16945 = vst [vmem:[%s25285_s13 + $0x90] sm:$0xff] %v14953_v37  ;;  %16946 = vst [vmem:[%s25285_s13 + $0x98] sm:$0xff] %v14954_v32  ;;  %v14973_v42 = vmul.f32 %v25238_v40, %v26244_v2  ;;  %v26248_v29 = vmax.f32 %v26247_v46, 0.0  ;;  %v26249_v8 = vsub.s32 3, %v25222_v60  ;;  %v26254_v48 = vld [vmem:[#allocation63_spill] sm:$0xff] }
 0xa6f   : > { %v14974_v18 = vmul.f32 %v25238_v40, %v26246_v53  ;;  %16947 = vst [vmem:[%s25285_s13 + $0xa0] sm:$0xff] %v14955_v54  ;;  %16948 = vst [vmem:[%s25285_s13 + $0xa8] sm:$0xff] %v14956_v52  ;;  %v26251_v1 = vmax.f32 %v26250_v13, 0.0  ;;  %v26253_v55 = vmax.f32 %v26252_v25, 0.0  ;;  %v26255_v21 = vmax.f32 %v26254_v48, 0.0  ;;  %v26280_v13 = vld [vmem:[#allocation119_spill] sm:$0xff] }
 0xa70   : > { %v14975_v7 = vmul.f32 %v25238_v40, %v26248_v29  ;;  %v14983_v3 = vrot.slane %v25230_v11, %v26249_v8  ;;  %16949 = vst [vmem:[%s25285_s13 + $0xb0] sm:$0xff] %v14957_v30  ;;  %16950 = vst [vmem:[%s25285_s13 + $0xb8] sm:$0xff] %v14958_v19  ;;  %v26256_v49 = vmax.f32 %v24694_v59, 0.0  ;;  %v26258_v20 = vmax.f32 %v26257_v22, 0.0  ;;  %v26273_v19 = vld [vmem:[#allocation75_spill] sm:$0xff] }
 0xa71   : > { %v14976_v39 = vmul.f32 %v25238_v40, %v26251_v1  ;;  %v14977_v5 = vmul.f32 %v25238_v40, %v26253_v55  ;;  %v14978_v44 = vmul.f32 %v25238_v40, %v26255_v21  ;;  %v26260_v36 = vmax.f32 %v26259_v10, 0.0  ;;  %v26288_v21 = vld [vmem:[#allocation111_spill] sm:$0xff] }
 0xa72   : > { %v14979_v6 = vmul.f32 %v25238_v40, %v26256_v49  ;;  %v14984_v4 = vmul.f32 %v14983_v3, %v26258_v20  ;;  %v26262_v9 = vmax.f32 %v26261_v38, 0.0  ;;  %v26264_v17 = vmax.f32 %v26263_v14, 0.0  ;;  %v26267_v40 = vld [vmem:[#allocation104_spill] sm:$0xff]  ;;  %v26290_v49 = vld [vmem:[#allocation113_spill] sm:$0xff]  ;;  %v26292_v20 = vld [vmem:[#allocation115_spill] sm:$0xff] }
 0xa73   : > { %v14985_v56 = vmul.f32 %v14983_v3, %v26260_v36  ;;  %v26266_v27 = vmax.f32 %v26265_v33, 0.0  ;;  %v26268_v31 = vmax.f32 %v26267_v40, 0.0  ;;  %v26270_v57 = vmax.f32 %v26269_v26, 0.0  ;;  %v26296_v38 = vld [vmem:[#allocation55_spill] sm:$0xff]  ;;  %v26298_v14 = vld [vmem:[#allocation112_spill] sm:$0xff] }
 0xa74   : > { %v14986_v58 = vmul.f32 %v14983_v3, %v26262_v9  ;;  %v14987_v47 = vmul.f32 %v14983_v3, %v26264_v17  ;;  %v26271_v24 = vmax.f32 %v25066_v28, 0.0  ;;  %v14992_v50 = vadd.f32 %v14984_v4, %v14972_v61 }
 0xa75   : > { %v14988_v59 = vmul.f32 %v14983_v3, %v26266_v27  ;;  %v14989_v43 = vmul.f32 %v14983_v3, %v26268_v31  ;;  %v14990_v41 = vmul.f32 %v14983_v3, %v26270_v57  ;;  %v14993_v12 = vadd.f32 %v14985_v56, %v14973_v42 }
 0xa76   : > { %v14991_v0 = vmul.f32 %v14983_v3, %v26271_v24  ;;  %v14994_v23 = vadd.f32 %v14986_v58, %v14974_v18  ;;  %v14995_v37 = vadd.f32 %v14987_v47, %v14975_v7  ;;  %16951 = vst [vmem:[%s25285_s13 + $0xc0] sm:$0xff] %v14992_v50  ;;  %v26272_v28 = vmax.f32 %v26149_v34, 0.0 }
 0xa77   : > { %v14996_v32 = vadd.f32 %v14988_v59, %v14976_v39  ;;  %v14997_v54 = vadd.f32 %v14989_v43, %v14977_v5  ;;  %v14998_v52 = vadd.f32 %v14990_v41, %v14978_v44  ;;  %16952 = vst [vmem:[%s25285_s13 + $0xc8] sm:$0xff] %v14993_v12  ;;  %v26274_v15 = vmax.f32 %v26273_v19, 0.0  ;;  %v26282_v39 = vld [vmem:[#allocation30_spill] sm:$0xff] }
 0xa78   : > { %v14999_v30 = vadd.f32 %v14991_v0, %v14979_v6  ;;  %16953 = vst [vmem:[%s25285_s13 + $0xd0] sm:$0xff] %v14994_v23  ;;  %16954 = vst [vmem:[%s25285_s13 + $0xd8] sm:$0xff] %v14995_v37  ;;  %v15013_v61 = vmul.f32 %v25242_v45, %v26272_v28  ;;  %v26275_v42 = vmax.f32 %v24743_v51, 0.0  ;;  %v26276_v53 = vmax.f32 %v24780_v63, 0.0 }
 0xa79   : > { %16955 = vst [vmem:[%s25285_s13 + $0xe0] sm:$0xff] %v14996_v32  ;;  %16956 = vst [vmem:[%s25285_s13 + $0xe8] sm:$0xff] %v14997_v54  ;;  %v15014_v2 = vmul.f32 %v25242_v45, %v26274_v15  ;;  %v26277_v34 = vsub.s32 4, %v25222_v60  ;;  %v26278_v29 = vmax.f32 %v24786_v62, 0.0  ;;  %v26279_v8 = vmax.f32 %v25139_v35, 0.0  ;;  %v26284_v60 = vld [vmem:[#allocation107_spill] sm:$0xff] }
 0xa7a   : > { %16957 = vst [vmem:[%s25285_s13 + $0xf0] sm:$0xff] %v14998_v52  ;;  %16958 = vst [vmem:[%s25285_s13 + $0xf8] sm:$0xff] %v14999_v30  ;;  %v15015_v16 = vmul.f32 %v25242_v45, %v26275_v42  ;;  %v15016_v18 = vmul.f32 %v25242_v45, %v26276_v53  ;;  %v26281_v51 = vmax.f32 %v26280_v13, 0.0  ;;  %v26283_v63 = vmax.f32 %v26282_v39, 0.0  ;;  %v26286_v62 = vld [vmem:[#allocation109_spill] sm:$0xff] }
 0xa7b   : > { %v15024_v46 = vrot.slane %v25230_v11, %v26277_v34  ;;  %v15017_v7 = vmul.f32 %v25242_v45, %v26278_v29  ;;  %v15018_v3 = vmul.f32 %v25242_v45, %v26279_v8  ;;  %v26285_v11 = vmax.f32 %v26284_v60, 0.0 }
 0xa7c   : > { %v15019_v1 = vmul.f32 %v25242_v45, %v26281_v51  ;;  %v15020_v25 = vmul.f32 %v25242_v45, %v26283_v63  ;;  %v26287_v5 = vmax.f32 %v26286_v62, 0.0  ;;  %v26289_v35 = vmax.f32 %v26288_v21, 0.0  ;;  %v26294_v45 = vld [vmem:[#allocation117_spill] sm:$0xff] }
 0xa7d   : > { %v15025_v55 = vmul.f32 %v15024_v46, %v26285_v11  ;;  %v26291_v6 = vmax.f32 %v26290_v49, 0.0  ;;  %v26293_v4 = vmax.f32 %v26292_v20, 0.0  ;;  %v26295_v36 = vmax.f32 %v26294_v45, 0.0 }
 0xa7e   : > { %v15026_v48 = vmul.f32 %v15024_v46, %v26287_v5  ;;  %v15027_v44 = vmul.f32 %v15024_v46, %v26289_v35  ;;  %v26297_v9 = vmax.f32 %v26296_v38, 0.0  ;;  %v26299_v17 = vmax.f32 %v26298_v14, 0.0 }
 0xa7f   : > { %v15028_v22 = vmul.f32 %v15024_v46, %v26291_v6  ;;  %v15029_v10 = vmul.f32 %v15024_v46, %v26293_v4  ;;  %v15030_v56 = vmul.f32 %v15024_v46, %v26295_v36  ;;  %v15033_v33 = vadd.f32 %v15025_v55, %v15013_v61 }
 0xa80   : > { %v15031_v58 = vmul.f32 %v15024_v46, %v26297_v9  ;;  %v15032_v47 = vmul.f32 %v15024_v46, %v26299_v17  ;;  %v15034_v27 = vadd.f32 %v15026_v48, %v15014_v2  ;;  %v15035_v59 = vadd.f32 %v15027_v44, %v15015_v16 }
 0xa81   : > { %v15036_v40 = vadd.f32 %v15028_v22, %v15016_v18  ;;  %v15037_v31 = vadd.f32 %v15029_v10, %v15017_v7  ;;  %v15038_v43 = vadd.f32 %v15030_v56, %v15018_v3  ;;  %16959 = vst [vmem:[%s25285_s13 + $0x100] sm:$0xff] %v15033_v33 }
 0xa82   : > { %v15039_v26 = vadd.f32 %v15031_v58, %v15019_v1  ;;  %v15040_v57 = vadd.f32 %v15032_v47, %v15020_v25  ;;  %16960 = vst [vmem:[%s25285_s13 + $0x108] sm:$0xff] %v15034_v27  ;;  %16961 = vst [vmem:[%s25285_s13 + $0x110] sm:$0xff] %v15035_v59 }
 0xa83   : > { %16962 = vst [vmem:[%s25285_s13 + $0x118] sm:$0xff] %v15036_v40  ;;  %16963 = vst [vmem:[%s25285_s13 + $0x120] sm:$0xff] %v15037_v31 }
 0xa84   : > { %16964 = vst [vmem:[%s25285_s13 + $0x128] sm:$0xff] %v15038_v43  ;;  %16965 = vst [vmem:[%s25285_s13 + $0x130] sm:$0xff] %v15039_v26 }
 0xa85   : > { %16966 = vst [vmem:[%s25285_s13 + $0x138] sm:$0xff] %v15040_v57 }
 0xa86   : > { %20586 = shalt.err (!%p20583_p6)
}
 0xa87   : > { %s20587_s21 = scalar_lea.hbm %s25484_s20, 5120  ;;  %s20591_s13 = scalar_lea.hbm %s25557_s7, 30720 }
 0xa88   : > { %p20588_p7 = scmp.ne.s32.totalorder %s25484_s20, %s20587_s21  ;;  %p20592_p11 = scmp.lt.u32.totalorder %s25484_s20, %s25557_s7 }
 0xa89   : > { %p20593_p12 = scmp.lt.u32.totalorder %s20591_s13, %s20587_s21  ;;  %p20595_p0 = scmp.lt.u32.totalorder %s20587_s21, %s25484_s20 }
 0xa8a   : > { %p20589_p9 = pnand %p20588_p7, %p20767_p3 }
 0xa8b   : > { %p20594_p13 = por %p20593_p12, %p20592_p11 }
 0xa8c   : > { %p20590_p10 = pneg %p20589_p9 }
 0xa8d   : > { %p20596_p1 = por %p20595_p0, %p20594_p13 }
 0xa8f   : > { %p20597_p2 = pnand %p20596_p1, %p20590_p10 }
 0xa91   : > { %20600 = shalt.err (!%p20597_p2)
}
 0xa92   : > { %s20674_s28 = smov 128   ;;  %s20675_s11 = smov 8  }
 0xa93   : > { %18672 = dma.vmem_to_hbm [thread:$0]  (%p20767_p3), %s25486_s16, 5120, %s25484_s20, %s25498_s23, %s20674_s28, %s20674_s28, %s20675_s11  }
 0xa94 PF: > { %p18678_p4 = scmp.ge.s32.totalorder %s20667_s8, 2  ;;  %s15082_s9 = sand.u32 1, %s20639_s24  }
 0xa95   : > { %s15083_s29 = scalar_lea.sflag [#allocation3], %s15082_s9 }
 0xa96   : > { %p18675_p5 = pnand %p18678_p4, %p20776_p8 }
 0xa98   : > { %20634 = dma.done.wait (!%p18675_p5), %s15083_s29, 5120  }
 0xa99   : > { %20636 = vsyncadd (!%p18675_p5), %s15083_s29, 4294962176  ;;  %s20_s8 = sadd.s32 1, %s20667_s8   ;;  %s26300_s10 = sld [smem:[#allocation9_spill]] }
 0xa9a   : > { %p17_p6 = scmp.ge.s32.totalorder %s20_s8, 8   ;;  %s26301_s27 = sld [smem:[#allocation5_spill]] }
 0xa9b   : > { %s26302_s28 = sld [smem:[#allocation6_spill]]  ;;  %s26303_s29 = sld [smem:[#allocation7_spill]] }
 0xa9c   : > { %s26304_s30 = sld [smem:[#allocation8_spill]]  ;;  %s26305_s24 = smov %s20643_s25 }
 0xa9d   : > { %s26306_s25 = smov %s20647_s26  ;;  %19 = sbr.rel (!%p17_p6) target bundleno = 5 (0x5), region = 95 }
 0xa9f   : > { %s26307_s26 = smov %s26300_s10 }
 0xaa4   :  { %15088 = vsyncpa [#allocation3], 1 }
 0xaa5   :  { %15090 = vsyncpa [#allocation3 + $0x1], 1 }

</bundles_post_ra>
